<compile_context>
chip_gen: v7x
topology: tpu7x:2x2x1
jax: 0.10.0
libtpu: 0.0.40
codegen_flags: <defaults>
</compile_context>

<pallas_src>
import functools

import jax
import jax.numpy as jnp
from jax.experimental import pallas as pl
from jax.experimental.pallas import tpu as pltpu

# ---- model hyper-parameters (from the PyTorch module) ----
n_embd = 384
block_size = 256
num_heads = 6
head_size = n_embd // num_heads
n_layers = 6
vocab_size = 65  # small synthetic vocab

LN_EPS = 1e-5
MATMUL_DTYPE = jnp.bfloat16   # MXU-native on v5e/v6e/v7x; accumulation stays f32
VOCAB_PAD = 128               # lane-dense LM head (pad 65 -> 128, slice after)


# ============================ in-kernel helpers ============================

def _layer_norm(x, g, b):
    # x: (T, C) f32, g/b: (1, C) f32 — stats and affine stay in f32 (v5e-safe)
    mean = jnp.mean(x, axis=-1, keepdims=True)
    xc = x - mean
    var = jnp.mean(xc * xc, axis=-1, keepdims=True)
    return xc * jax.lax.rsqrt(var + LN_EPS) * g + b


# ============================ fused transformer block ============================

def _block_kernel(x_ref, ln1g_ref, ln1b_ref, wkv_ref, wproj_ref, bproj_ref,
                  ln2g_ref, ln2b_ref, w1_ref, b1_ref, w2_ref, b2_ref, o_ref,
                  *, scale):
    x = x_ref[0].astype(jnp.float32)              # (T, C)
    T = x.shape[0]
    D = head_size

    # ---------- self-attention ----------
    h = _layer_norm(x, ln1g_ref[...], ln1b_ref[...])
    # fused key/value projection; reference quirk: q = key(x), so no separate Q
    kv = jnp.dot(h.astype(MATMUL_DTYPE), wkv_ref[...],
                 preferred_element_type=jnp.float32)          # (T, 2*H*D) f32

    # causal additive bias, built once per kernel invocation (hoisted out of head loop)
    row = jax.lax.broadcasted_iota(jnp.int32, (T, T), 0)
    col = jax.lax.broadcasted_iota(jnp.int32, (T, T), 1)
    neg_bias = jnp.where(col <= row, 0.0, -jnp.inf).astype(jnp.float32)

    # Per-head attention. The output projection is applied per head-slice of
    # Wproj so every MXU output is a lane-dense (T, n_embd) tile and no
    # narrow (T, 64) concatenation / HBM store is ever produced.
    proj = jnp.zeros((T, n_embd), jnp.float32)
    for hd in range(num_heads):
        kq = kv[:, hd * D:(hd + 1) * D].astype(MATMUL_DTYPE)                   # (T, D)
        v = kv[:, n_embd + hd * D:n_embd + (hd + 1) * D].astype(MATMUL_DTYPE)  # (T, D)
        # scores = kq @ kq^T (Q == K), contraction over last dims (no explicit transpose)
        s = jax.lax.dot_general(kq, kq, (((1,), (1,)), ((), ())),
                                preferred_element_type=jnp.float32)            # (T, T)
        s = s * scale + neg_bias
        s = s - jnp.max(s, axis=-1, keepdims=True)
        p = jnp.exp(s)
        p = p * pl.reciprocal(jnp.sum(p, axis=-1, keepdims=True), approx=True)
        out_h = jnp.dot(p.astype(MATMUL_DTYPE), v,
                        preferred_element_type=jnp.float32)                    # (T, D)
        proj = proj + jnp.dot(out_h.astype(MATMUL_DTYPE),
                              wproj_ref[hd * D:(hd + 1) * D, :],
                              preferred_element_type=jnp.float32)              # (T, C)
    x = x + proj + bproj_ref[...]      # residual (dropout = identity in eval)

    # ---------- feed-forward ----------
    h2 = _layer_norm(x, ln2g_ref[...], ln2b_ref[...])
    f = jnp.dot(h2.astype(MATMUL_DTYPE), w1_ref[...],
                preferred_element_type=jnp.float32) + b1_ref[...]
    f = jnp.maximum(f, 0.0)
    f = jnp.dot(f.astype(MATMUL_DTYPE), w2_ref[...],
                preferred_element_type=jnp.float32) + b2_ref[...]
    o_ref[0] = (x + f).astype(o_ref.dtype)        # residual (dropout identity)


def transformer_block(x, layer):
    """x: (B, T, C) f32 -> (B, T, C) f32, one fused pallas_call per block."""
    B, T, C = x.shape
    HD = num_heads * head_size
    kernel = functools.partial(_block_kernel, scale=float(head_size) ** -0.5)
    return pl.pallas_call(
        kernel,
        out_shape=jax.ShapeDtypeStruct((B, T, C), jnp.float32),
        grid=(B,),
        in_specs=[
            pl.BlockSpec((1, T, C), lambda b: (b, 0, 0)),        # x (one batch element)
            pl.BlockSpec((1, C), lambda b: (0, 0)),              # ln1 gamma
            pl.BlockSpec((1, C), lambda b: (0, 0)),              # ln1 beta
            pl.BlockSpec((C, 2 * HD), lambda b: (0, 0)),         # Wkv  (key | value)
            pl.BlockSpec((HD, C), lambda b: (0, 0)),             # Wproj
            pl.BlockSpec((1, C), lambda b: (0, 0)),              # bproj
            pl.BlockSpec((1, C), lambda b: (0, 0)),              # ln2 gamma
            pl.BlockSpec((1, C), lambda b: (0, 0)),              # ln2 beta
            pl.BlockSpec((C, 4 * C), lambda b: (0, 0)),          # W1
            pl.BlockSpec((1, 4 * C), lambda b: (0, 0)),          # b1
            pl.BlockSpec((4 * C, C), lambda b: (0, 0)),          # W2
            pl.BlockSpec((1, C), lambda b: (0, 0)),              # b2
        ],
        out_specs=pl.BlockSpec((1, T, C), lambda b: (b, 0, 0)),
        compiler_params=pltpu.CompilerParams(
            dimension_semantics=("parallel",),
            vmem_limit_bytes=64 * 1024 * 1024),
    )(x,
      layer["ln1_g"].reshape(1, C), layer["ln1_b"].reshape(1, C),
      layer["Wkv"], layer["Wproj"], layer["bproj"].reshape(1, C),
      layer["ln2_g"].reshape(1, C), layer["ln2_b"].reshape(1, C),
      layer["W1"], layer["b1"].reshape(1, 4 * C),
      layer["W2"], layer["b2"].reshape(1, C))


# ============================ fused final LN + LM head ============================

def _final_kernel(x_ref, g_ref, b_ref, w_ref, bias_ref, o_ref):
    h = _layer_norm(x_ref[...].astype(jnp.float32), g_ref[...], b_ref[...])
    y = jnp.dot(h.astype(MATMUL_DTYPE), w_ref[...],
                preferred_element_type=jnp.float32) + bias_ref[...]
    o_ref[...] = y.astype(o_ref.dtype)


def final_ln_lm_head(x2d, g, b, w_pad, bias_pad, tm=512):
    M, C = x2d.shape
    N = w_pad.shape[1]
    tm = min(tm, M)
    return pl.pallas_call(
        _final_kernel,
        out_shape=jax.ShapeDtypeStruct((M, N), jnp.float32),
        grid=(pl.cdiv(M, tm),),
        in_specs=[
            pl.BlockSpec((tm, C), lambda i: (i, 0)),
            pl.BlockSpec((1, C), lambda i: (0, 0)),
            pl.BlockSpec((1, C), lambda i: (0, 0)),
            pl.BlockSpec((C, N), lambda i: (0, 0)),
            pl.BlockSpec((1, N), lambda i: (0, 0)),
        ],
        out_specs=pl.BlockSpec((tm, N), lambda i: (i, 0)),
        compiler_params=pltpu.CompilerParams(
            dimension_semantics=("parallel",),
            vmem_limit_bytes=64 * 1024 * 1024),
    )(x2d, g.reshape(1, C), b.reshape(1, C), w_pad, bias_pad.reshape(1, N))


# ============================ parameters ============================

def init_params(key):
    def normal(k, shape, dtype=jnp.float32):
        return (0.02 * jax.random.normal(k, shape, dtype=jnp.float32)).astype(dtype)

    HD = num_heads * head_size
    keys = jax.random.split(key, 3 + n_layers)
    lm_w = 0.02 * jax.random.normal(keys[2], (n_embd, vocab_size), dtype=jnp.float32)
    p = {
        "tok_emb": normal(keys[0], (vocab_size, n_embd)),
        "pos_emb": normal(keys[1], (block_size, n_embd)),
        # LM head padded to 128 output lanes (zero columns, sliced off after the kernel)
        "lm_w_pad": jnp.pad(lm_w, ((0, 0), (0, VOCAB_PAD - vocab_size))).astype(MATMUL_DTYPE),
        "lm_b_pad": jnp.zeros((VOCAB_PAD,), jnp.float32),
        "lnf_g": jnp.ones((n_embd,), jnp.float32),
        "lnf_b": jnp.zeros((n_embd,), jnp.float32),
        "layers": [],
    }
    for l in range(n_layers):
        lk = jax.random.split(keys[3 + l], 4)
        p["layers"].append(dict(
            ln1_g=jnp.ones((n_embd,), jnp.float32),
            ln1_b=jnp.zeros((n_embd,), jnp.float32),
            # per-head key/value projections concatenated along the output dim:
            # columns [0, HD) = key (== query in the reference quirk), [HD, 2*HD) = value.
            # The reference's unused `query` weight is dead and not materialized.
            Wkv=normal(lk[0], (n_embd, 2 * HD), MATMUL_DTYPE),
            Wproj=normal(lk[1], (HD, n_embd), MATMUL_DTYPE),
            bproj=jnp.zeros((n_embd,), jnp.float32),
            ln2_g=jnp.ones((n_embd,), jnp.float32),
            ln2_b=jnp.zeros((n_embd,), jnp.float32),
            W1=normal(lk[2], (n_embd, 4 * n_embd), MATMUL_DTYPE),
            b1=jnp.zeros((4 * n_embd,), jnp.float32),
            W2=normal(lk[3], (4 * n_embd, n_embd), MATMUL_DTYPE),
            b2=jnp.zeros((n_embd,), jnp.float32),
        ))
    return p


# ============================ forward pass ============================

def gpt_forward(params, idx, targets=None):
    B, T = idx.shape
    C = n_embd

    # embeddings (gather stays in plain JAX glue)
    tok = params["tok_emb"][idx]          # (B, T, C)
    pos = params["pos_emb"][:T]           # (T, C)
    x = tok + pos                         # (B, T, C) f32

    for layer in params["layers"]:
        x = transformer_block(x, layer)   # one fused pallas_call per block

    logits_pad = final_ln_lm_head(
        x.reshape(B * T, C), params["lnf_g"], params["lnf_b"],
        params["lm_w_pad"], params["lm_b_pad"])            # (B*T, 128)
    logits = logits_pad[:, :vocab_size].reshape(B, T, vocab_size)

    loss = None  # TODO(synk): cross-entropy loss path (targets is None here, matching forward(idx))
    return logits, loss


# ============================ main ============================

if __name__ == "__main__":
    key = jax.random.PRNGKey(0)
    pkey, ikey = jax.random.split(key)
    params = init_params(pkey)

    B, T = 2, 64  # small shapes; T <= block_size
    idx = jax.random.randint(ikey, (B, T), 0, vocab_size, dtype=jnp.int32)

    fwd = jax.jit(lambda p, i: gpt_forward(p, i)[0])
    logits = jax.block_until_ready(fwd(params, idx))

    assert logits.shape == (B, T, vocab_size), logits.shape
    assert logits.dtype == jnp.float32
    assert bool(jnp.all(jnp.isfinite(logits)))
    print("KERNEL_OK")
</pallas_src>

<mosaic_0001>
module attributes {stable_mosaic.version = 11 : i64} {
  func.func @_final_kernel(%arg0: i32, %arg1: memref<128x384xf32, #tpu.memory_space<vmem>>, %arg2: memref<1x384xf32, #tpu.memory_space<vmem>>, %arg3: memref<1x384xf32, #tpu.memory_space<vmem>>, %arg4: memref<384x128xbf16, #tpu.memory_space<vmem>>, %arg5: memref<1x128xf32, #tpu.memory_space<vmem>>, %arg6: memref<128x128xf32, #tpu.memory_space<vmem>>) attributes {dimension_semantics = [#tpu.dimension_semantics<parallel>], iteration_bounds = array<i64: 1>, scalar_prefetch = 0 : i64, scratch_operands = 0 : i64, tpu.core_type = #tpu.core_type<tc>, window_params = [{transform_indices = @transform_0, window_bounds = array<i64: 128, 384>}, {pipeline_mode = #tpu.pipeline_mode<synchronous>, transform_indices = @transform_1, window_bounds = array<i64: 1, 384>}, {pipeline_mode = #tpu.pipeline_mode<synchronous>, transform_indices = @transform_2, window_bounds = array<i64: 1, 384>}, {pipeline_mode = #tpu.pipeline_mode<synchronous>, transform_indices = @transform_3, window_bounds = array<i64: 384, 128>}, {pipeline_mode = #tpu.pipeline_mode<synchronous>, transform_indices = @transform_4, window_bounds = array<i64: 1, 128>}, {transform_indices = @transform_5, window_bounds = array<i64: 128, 128>}]} {
    %c0 = arith.constant 0 : index
    %c0_0 = arith.constant 0 : index
    %0 = vector.load %arg1[%c0, %c0_0] : memref<128x384xf32, #tpu.memory_space<vmem>>, vector<128x384xf32>
    %c0_1 = arith.constant 0 : index
    %c0_2 = arith.constant 0 : index
    %1 = vector.load %arg2[%c0_1, %c0_2] : memref<1x384xf32, #tpu.memory_space<vmem>>, vector<1x384xf32>
    %c0_3 = arith.constant 0 : index
    %c0_4 = arith.constant 0 : index
    %2 = vector.load %arg3[%c0_3, %c0_4] : memref<1x384xf32, #tpu.memory_space<vmem>>, vector<1x384xf32>
    %cst = arith.constant dense<0.000000e+00> : vector<128xf32>
    %3 = vector.multi_reduction <add>, %0, %cst [1] : vector<128x384xf32> to vector<128xf32>
    %4 = vector.shape_cast %3 : vector<128xf32> to vector<128x1xf32>
    %cst_5 = arith.constant 3.840000e+02 : f32
    %5 = vector.broadcast %cst_5 : f32 to vector<128x1xf32>
    %6 = arith.divf %4, %5 : vector<128x1xf32>
    %7 = vector.broadcast %6 : vector<128x1xf32> to vector<128x384xf32>
    %8 = arith.subf %0, %7 : vector<128x384xf32>
    %9 = arith.mulf %8, %8 : vector<128x384xf32>
    %cst_6 = arith.constant dense<0.000000e+00> : vector<128xf32>
    %10 = vector.multi_reduction <add>, %9, %cst_6 [1] : vector<128x384xf32> to vector<128xf32>
    %11 = vector.shape_cast %10 : vector<128xf32> to vector<128x1xf32>
    %cst_7 = arith.constant 3.840000e+02 : f32
    %12 = vector.broadcast %cst_7 : f32 to vector<128x1xf32>
    %13 = arith.divf %11, %12 : vector<128x1xf32>
    %cst_8 = arith.constant 9.99999974E-6 : f32
    %14 = vector.broadcast %cst_8 : f32 to vector<128x1xf32>
    %15 = arith.addf %13, %14 : vector<128x1xf32>
    %16 = math.rsqrt %15 : vector<128x1xf32>
    %17 = vector.broadcast %16 : vector<128x1xf32> to vector<128x384xf32>
    %18 = arith.mulf %8, %17 : vector<128x384xf32>
    %19 = vector.broadcast %1 : vector<1x384xf32> to vector<128x384xf32>
    %20 = arith.mulf %18, %19 : vector<128x384xf32>
    %21 = vector.broadcast %2 : vector<1x384xf32> to vector<128x384xf32>
    %22 = arith.addf %20, %21 : vector<128x384xf32>
    %23 = arith.truncf %22 : vector<128x384xf32> to vector<128x384xbf16>
    %c0_9 = arith.constant 0 : index
    %c0_10 = arith.constant 0 : index
    %24 = vector.load %arg4[%c0_9, %c0_10] : memref<384x128xbf16, #tpu.memory_space<vmem>>, vector<384x128xbf16>
    %cst_11 = arith.constant dense<0.000000e+00> : vector<128x128xf32>
    %25 = tpu.matmul %23, %24, %cst_11 {dimension_numbers = #tpu.dot_dimension_numbers<[1], [0], [0], [1], [0, 0, 1, 1], [], []>} : vector<128x384xbf16>, vector<384x128xbf16>, vector<128x128xf32> -> vector<128x128xf32>
    %c0_12 = arith.constant 0 : index
    %c0_13 = arith.constant 0 : index
    %26 = vector.load %arg5[%c0_12, %c0_13] : memref<1x128xf32, #tpu.memory_space<vmem>>, vector<1x128xf32>
    %27 = vector.broadcast %26 : vector<1x128xf32> to vector<128x128xf32>
    %28 = arith.addf %25, %27 : vector<128x128xf32>
    %c0_14 = arith.constant 0 : index
    %c0_15 = arith.constant 0 : index
    %29 = vector.load %arg6[%c0_14, %c0_15] : memref<128x128xf32, #tpu.memory_space<vmem>>, vector<128x128xf32>
    tpu.vector_store %arg6[%c0_14, %c0_15], %28 {strides = array<i32>} : memref<128x128xf32, #tpu.memory_space<vmem>>, vector<128x128xf32>,
    return
  }
  func.func @transform_0(%arg0: i32) -> (i32, i32) {
    %c0_i32 = arith.constant 0 : i32
    %c0_i32_0 = arith.constant 0 : i32
    return %arg0, %c0_i32 : i32, i32
  }
  func.func @transform_1(%arg0: i32) -> (i32, i32) {
    %c0_i32 = arith.constant 0 : i32
    %c0_i32_0 = arith.constant 0 : i32
    %c0_i32_1 = arith.constant 0 : i32
    return %c0_i32, %c0_i32_0 : i32, i32
  }
  func.func @transform_2(%arg0: i32) -> (i32, i32) {
    %c0_i32 = arith.constant 0 : i32
    %c0_i32_0 = arith.constant 0 : i32
    %c0_i32_1 = arith.constant 0 : i32
    return %c0_i32, %c0_i32_0 : i32, i32
  }
  func.func @transform_3(%arg0: i32) -> (i32, i32) {
    %c0_i32 = arith.constant 0 : i32
    %c0_i32_0 = arith.constant 0 : i32
    %c0_i32_1 = arith.constant 0 : i32
    return %c0_i32, %c0_i32_0 : i32, i32
  }
  func.func @transform_4(%arg0: i32) -> (i32, i32) {
    %c0_i32 = arith.constant 0 : i32
    %c0_i32_0 = arith.constant 0 : i32
    %c0_i32_1 = arith.constant 0 : i32
    return %c0_i32, %c0_i32_0 : i32, i32
  }
  func.func @transform_5(%arg0: i32) -> (i32, i32) {
    %c0_i32 = arith.constant 0 : i32
    %c0_i32_0 = arith.constant 0 : i32
    return %arg0, %c0_i32 : i32, i32
  }
}

module attributes {stable_mosaic.version = 11 : i64} {
  func.func @_block_kernel(%arg0: i32, %arg1: memref<1x64x384xf32, #tpu.memory_space<vmem>>, %arg2: memref<1x384xf32, #tpu.memory_space<vmem>>, %arg3: memref<1x384xf32, #tpu.memory_space<vmem>>, %arg4: memref<384x768xbf16, #tpu.memory_space<vmem>>, %arg5: memref<384x384xbf16, #tpu.memory_space<vmem>>, %arg6: memref<1x384xf32, #tpu.memory_space<vmem>>, %arg7: memref<1x384xf32, #tpu.memory_space<vmem>>, %arg8: memref<1x384xf32, #tpu.memory_space<vmem>>, %arg9: memref<384x1536xbf16, #tpu.memory_space<vmem>>, %arg10: memref<1x1536xf32, #tpu.memory_space<vmem>>, %arg11: memref<1536x384xbf16, #tpu.memory_space<vmem>>, %arg12: memref<1x384xf32, #tpu.memory_space<vmem>>, %arg13: memref<1x64x384xf32, #tpu.memory_space<vmem>>) attributes {dimension_semantics = [#tpu.dimension_semantics<parallel>], iteration_bounds = array<i64: 2>, scalar_prefetch = 0 : i64, scratch_operands = 0 : i64, tpu.core_type = #tpu.core_type<tc>, window_params = [{transform_indices = @transform_0, window_bounds = array<i64: 1, 64, 384>}, {pipeline_mode = #tpu.pipeline_mode<synchronous>, transform_indices = @transform_1, window_bounds = array<i64: 1, 384>}, {pipeline_mode = #tpu.pipeline_mode<synchronous>, transform_indices = @transform_2, window_bounds = array<i64: 1, 384>}, {pipeline_mode = #tpu.pipeline_mode<synchronous>, transform_indices = @transform_3, window_bounds = array<i64: 384, 768>}, {pipeline_mode = #tpu.pipeline_mode<synchronous>, transform_indices = @transform_4, window_bounds = array<i64: 384, 384>}, {pipeline_mode = #tpu.pipeline_mode<synchronous>, transform_indices = @transform_5, window_bounds = array<i64: 1, 384>}, {pipeline_mode = #tpu.pipeline_mode<synchronous>, transform_indices = @transform_6, window_bounds = array<i64: 1, 384>}, {pipeline_mode = #tpu.pipeline_mode<synchronous>, transform_indices = @transform_7, window_bounds = array<i64: 1, 384>}, {pipeline_mode = #tpu.pipeline_mode<synchronous>, transform_indices = @transform_8, window_bounds = array<i64: 384, 1536>}, {pipeline_mode = #tpu.pipeline_mode<synchronous>, transform_indices = @transform_9, window_bounds = array<i64: 1, 1536>}, {pipeline_mode = #tpu.pipeline_mode<synchronous>, transform_indices = @transform_10, window_bounds = array<i64: 1536, 384>}, {pipeline_mode = #tpu.pipeline_mode<synchronous>, transform_indices = @transform_11, window_bounds = array<i64: 1, 384>}, {transform_indices = @transform_12, window_bounds = array<i64: 1, 64, 384>}]} {
    %c0 = arith.constant 0 : index
    %c0_0 = arith.constant 0 : index
    %c0_1 = arith.constant 0 : index
    %0 = vector.load %arg1[%c0, %c0_0, %c0_1] : memref<1x64x384xf32, #tpu.memory_space<vmem>>, vector<1x64x384xf32>
    %1 = vector.shape_cast %0 : vector<1x64x384xf32> to vector<64x384xf32>
    %c0_2 = arith.constant 0 : index
    %c0_3 = arith.constant 0 : index
    %2 = vector.load %arg2[%c0_2, %c0_3] : memref<1x384xf32, #tpu.memory_space<vmem>>, vector<1x384xf32>
    %c0_4 = arith.constant 0 : index
    %c0_5 = arith.constant 0 : index
    %3 = vector.load %arg3[%c0_4, %c0_5] : memref<1x384xf32, #tpu.memory_space<vmem>>, vector<1x384xf32>
    %cst = arith.constant dense<0.000000e+00> : vector<64xf32>
    %4 = vector.multi_reduction <add>, %1, %cst [1] : vector<64x384xf32> to vector<64xf32>
    %5 = vector.shape_cast %4 : vector<64xf32> to vector<64x1xf32>
    %cst_6 = arith.constant 3.840000e+02 : f32
    %6 = vector.broadcast %cst_6 : f32 to vector<64x1xf32>
    %7 = arith.divf %5, %6 : vector<64x1xf32>
    %8 = vector.broadcast %7 : vector<64x1xf32> to vector<64x384xf32>
    %9 = arith.subf %1, %8 : vector<64x384xf32>
    %10 = arith.mulf %9, %9 : vector<64x384xf32>
    %cst_7 = arith.constant dense<0.000000e+00> : vector<64xf32>
    %11 = vector.multi_reduction <add>, %10, %cst_7 [1] : vector<64x384xf32> to vector<64xf32>
    %12 = vector.shape_cast %11 : vector<64xf32> to vector<64x1xf32>
    %cst_8 = arith.constant 3.840000e+02 : f32
    %13 = vector.broadcast %cst_8 : f32 to vector<64x1xf32>
    %14 = arith.divf %12, %13 : vector<64x1xf32>
    %cst_9 = arith.constant 9.99999974E-6 : f32
    %15 = vector.broadcast %cst_9 : f32 to vector<64x1xf32>
    %16 = arith.addf %14, %15 : vector<64x1xf32>
    %17 = math.rsqrt %16 : vector<64x1xf32>
    %18 = vector.broadcast %17 : vector<64x1xf32> to vector<64x384xf32>
    %19 = arith.mulf %9, %18 : vector<64x384xf32>
    %20 = vector.broadcast %2 : vector<1x384xf32> to vector<64x384xf32>
    %21 = arith.mulf %19, %20 : vector<64x384xf32>
    %22 = vector.broadcast %3 : vector<1x384xf32> to vector<64x384xf32>
    %23 = arith.addf %21, %22 : vector<64x384xf32>
    %24 = arith.truncf %23 : vector<64x384xf32> to vector<64x384xbf16>
    %c0_10 = arith.constant 0 : index
    %c0_11 = arith.constant 0 : index
    %25 = vector.load %arg4[%c0_10, %c0_11] : memref<384x768xbf16, #tpu.memory_space<vmem>>, vector<384x768xbf16>
    %cst_12 = arith.constant dense<0.000000e+00> : vector<64x768xf32>
    %26 = tpu.matmul %24, %25, %cst_12 {dimension_numbers = #tpu.dot_dimension_numbers<[1], [0], [0], [1], [0, 0, 1, 1], [], []>} : vector<64x384xbf16>, vector<384x768xbf16>, vector<64x768xf32> -> vector<64x768xf32>
    %27 = tpu.iota {dimensions = array<i32: 0>} : vector<64x64xi32>
    %28 = tpu.iota {dimensions = array<i32: 1>} : vector<64x64xi32>
    %29 = arith.cmpi sle, %28, %27 : vector<64x64xi32>
    %cst_13 = arith.constant 0.000000e+00 : f32
    %cst_14 = arith.constant 0xFF800000 : f32
    %30 = vector.broadcast %cst_13 : f32 to vector<64x64xf32>
    %31 = vector.broadcast %cst_14 : f32 to vector<64x64xf32>
    %32 = arith.select %29, %30, %31 : vector<64x64xi1>, vector<64x64xf32>
    %cst_15 = arith.constant 0.000000e+00 : f32
    %33 = vector.broadcast %cst_15 : f32 to vector<64x384xf32>
    %34 = vector.extract_strided_slice %26 {offsets = [0, 0], sizes = [64, 64], strides = [1, 1]} : vector<64x768xf32> to vector<64x64xf32>
    %35 = arith.truncf %34 : vector<64x64xf32> to vector<64x64xbf16>
    %36 = vector.extract_strided_slice %26 {offsets = [0, 384], sizes = [64, 64], strides = [1, 1]} : vector<64x768xf32> to vector<64x64xf32>
    %37 = arith.truncf %36 : vector<64x64xf32> to vector<64x64xbf16>
    %cst_16 = arith.constant dense<0.000000e+00> : vector<64x64xf32>
    %38 = tpu.matmul %35, %35, %cst_16 {dimension_numbers = #tpu.dot_dimension_numbers<[1], [1], [0], [0], [0, 0, 1, 0], [], []>} : vector<64x64xbf16>, vector<64x64xbf16>, vector<64x64xf32> -> vector<64x64xf32>
    %cst_17 = arith.constant 1.250000e-01 : f32
    %39 = vector.broadcast %cst_17 : f32 to vector<64x64xf32>
    %40 = arith.mulf %38, %39 : vector<64x64xf32>
    %41 = arith.addf %40, %32 : vector<64x64xf32>
    %cst_18 = arith.constant dense<0xFF800000> : vector<64xf32>
    %42 = vector.multi_reduction <maximumf>, %41, %cst_18 [1] : vector<64x64xf32> to vector<64xf32>
    %43 = vector.shape_cast %42 : vector<64xf32> to vector<64x1xf32>
    %44 = vector.broadcast %43 : vector<64x1xf32> to vector<64x64xf32>
    %45 = arith.subf %41, %44 : vector<64x64xf32>
    %46 = math.exp %45 : vector<64x64xf32>
    %cst_19 = arith.constant dense<0.000000e+00> : vector<64xf32>
    %47 = vector.multi_reduction <add>, %46, %cst_19 [1] : vector<64x64xf32> to vector<64xf32>
    %48 = vector.shape_cast %47 : vector<64xf32> to vector<64x1xf32>
    %49 = tpu.reciprocal %48 {approx = true} : vector<64x1xf32> -> vector<64x1xf32>
    %50 = vector.broadcast %49 : vector<64x1xf32> to vector<64x64xf32>
    %51 = arith.mulf %46, %50 : vector<64x64xf32>
    %52 = arith.truncf %51 : vector<64x64xf32> to vector<64x64xbf16>
    %cst_20 = arith.constant dense<0.000000e+00> : vector<64x64xf32>
    %53 = tpu.matmul %52, %37, %cst_20 {dimension_numbers = #tpu.dot_dimension_numbers<[1], [0], [0], [1], [0, 0, 1, 1], [], []>} : vector<64x64xbf16>, vector<64x64xbf16>, vector<64x64xf32> -> vector<64x64xf32>
    %54 = arith.truncf %53 : vector<64x64xf32> to vector<64x64xbf16>
    %c0_21 = arith.constant 0 : index
    %c0_22 = arith.constant 0 : index
    %55 = vector.load %arg5[%c0_21, %c0_22] : memref<384x384xbf16, #tpu.memory_space<vmem>>, vector<64x384xbf16>
    %cst_23 = arith.constant dense<0.000000e+00> : vector<64x384xf32>
    %56 = tpu.matmul %54, %55, %cst_23 {dimension_numbers = #tpu.dot_dimension_numbers<[1], [0], [0], [1], [0, 0, 1, 1], [], []>} : vector<64x64xbf16>, vector<64x384xbf16>, vector<64x384xf32> -> vector<64x384xf32>
    %57 = arith.addf %33, %56 : vector<64x384xf32>
    %58 = vector.extract_strided_slice %26 {offsets = [0, 64], sizes = [64, 64], strides = [1, 1]} : vector<64x768xf32> to vector<64x64xf32>
    %59 = arith.truncf %58 : vector<64x64xf32> to vector<64x64xbf16>
    %60 = vector.extract_strided_slice %26 {offsets = [0, 448], sizes = [64, 64], strides = [1, 1]} : vector<64x768xf32> to vector<64x64xf32>
    %61 = arith.truncf %60 : vector<64x64xf32> to vector<64x64xbf16>
    %cst_24 = arith.constant dense<0.000000e+00> : vector<64x64xf32>
    %62 = tpu.matmul %59, %59, %cst_24 {dimension_numbers = #tpu.dot_dimension_numbers<[1], [1], [0], [0], [0, 0, 1, 0], [], []>} : vector<64x64xbf16>, vector<64x64xbf16>, vector<64x64xf32> -> vector<64x64xf32>
    %cst_25 = arith.constant 1.250000e-01 : f32
    %63 = vector.broadcast %cst_25 : f32 to vector<64x64xf32>
    %64 = arith.mulf %62, %63 : vector<64x64xf32>
    %65 = arith.addf %64, %32 : vector<64x64xf32>
    %cst_26 = arith.constant dense<0xFF800000> : vector<64xf32>
    %66 = vector.multi_reduction <maximumf>, %65, %cst_26 [1] : vector<64x64xf32> to vector<64xf32>
    %67 = vector.shape_cast %66 : vector<64xf32> to vector<64x1xf32>
    %68 = vector.broadcast %67 : vector<64x1xf32> to vector<64x64xf32>
    %69 = arith.subf %65, %68 : vector<64x64xf32>
    %70 = math.exp %69 : vector<64x64xf32>
    %cst_27 = arith.constant dense<0.000000e+00> : vector<64xf32>
    %71 = vector.multi_reduction <add>, %70, %cst_27 [1] : vector<64x64xf32> to vector<64xf32>
    %72 = vector.shape_cast %71 : vector<64xf32> to vector<64x1xf32>
    %73 = tpu.reciprocal %72 {approx = true} : vector<64x1xf32> -> vector<64x1xf32>
    %74 = vector.broadcast %73 : vector<64x1xf32> to vector<64x64xf32>
    %75 = arith.mulf %70, %74 : vector<64x64xf32>
    %76 = arith.truncf %75 : vector<64x64xf32> to vector<64x64xbf16>
    %cst_28 = arith.constant dense<0.000000e+00> : vector<64x64xf32>
    %77 = tpu.matmul %76, %61, %cst_28 {dimension_numbers = #tpu.dot_dimension_numbers<[1], [0], [0], [1], [0, 0, 1, 1], [], []>} : vector<64x64xbf16>, vector<64x64xbf16>, vector<64x64xf32> -> vector<64x64xf32>
    %78 = arith.truncf %77 : vector<64x64xf32> to vector<64x64xbf16>
    %c64 = arith.constant 64 : index
    %c0_29 = arith.constant 0 : index
    %79 = vector.load %arg5[%c64, %c0_29] : memref<384x384xbf16, #tpu.memory_space<vmem>>, vector<64x384xbf16>
    %cst_30 = arith.constant dense<0.000000e+00> : vector<64x384xf32>
    %80 = tpu.matmul %78, %79, %cst_30 {dimension_numbers = #tpu.dot_dimension_numbers<[1], [0], [0], [1], [0, 0, 1, 1], [], []>} : vector<64x64xbf16>, vector<64x384xbf16>, vector<64x384xf32> -> vector<64x384xf32>
    %81 = arith.addf %57, %80 : vector<64x384xf32>
    %82 = vector.extract_strided_slice %26 {offsets = [0, 128], sizes = [64, 64], strides = [1, 1]} : vector<64x768xf32> to vector<64x64xf32>
    %83 = arith.truncf %82 : vector<64x64xf32> to vector<64x64xbf16>
    %84 = vector.extract_strided_slice %26 {offsets = [0, 512], sizes = [64, 64], strides = [1, 1]} : vector<64x768xf32> to vector<64x64xf32>
    %85 = arith.truncf %84 : vector<64x64xf32> to vector<64x64xbf16>
    %cst_31 = arith.constant dense<0.000000e+00> : vector<64x64xf32>
    %86 = tpu.matmul %83, %83, %cst_31 {dimension_numbers = #tpu.dot_dimension_numbers<[1], [1], [0], [0], [0, 0, 1, 0], [], []>} : vector<64x64xbf16>, vector<64x64xbf16>, vector<64x64xf32> -> vector<64x64xf32>
    %cst_32 = arith.constant 1.250000e-01 : f32
    %87 = vector.broadcast %cst_32 : f32 to vector<64x64xf32>
    %88 = arith.mulf %86, %87 : vector<64x64xf32>
    %89 = arith.addf %88, %32 : vector<64x64xf32>
    %cst_33 = arith.constant dense<0xFF800000> : vector<64xf32>
    %90 = vector.multi_reduction <maximumf>, %89, %cst_33 [1] : vector<64x64xf32> to vector<64xf32>
    %91 = vector.shape_cast %90 : vector<64xf32> to vector<64x1xf32>
    %92 = vector.broadcast %91 : vector<64x1xf32> to vector<64x64xf32>
    %93 = arith.subf %89, %92 : vector<64x64xf32>
    %94 = math.exp %93 : vector<64x64xf32>
    %cst_34 = arith.constant dense<0.000000e+00> : vector<64xf32>
    %95 = vector.multi_reduction <add>, %94, %cst_34 [1] : vector<64x64xf32> to vector<64xf32>
    %96 = vector.shape_cast %95 : vector<64xf32> to vector<64x1xf32>
    %97 = tpu.reciprocal %96 {approx = true} : vector<64x1xf32> -> vector<64x1xf32>
    %98 = vector.broadcast %97 : vector<64x1xf32> to vector<64x64xf32>
    %99 = arith.mulf %94, %98 : vector<64x64xf32>
    %100 = arith.truncf %99 : vector<64x64xf32> to vector<64x64xbf16>
    %cst_35 = arith.constant dense<0.000000e+00> : vector<64x64xf32>
    %101 = tpu.matmul %100, %85, %cst_35 {dimension_numbers = #tpu.dot_dimension_numbers<[1], [0], [0], [1], [0, 0, 1, 1], [], []>} : vector<64x64xbf16>, vector<64x64xbf16>, vector<64x64xf32> -> vector<64x64xf32>
    %102 = arith.truncf %101 : vector<64x64xf32> to vector<64x64xbf16>
    %c128 = arith.constant 128 : index
    %c0_36 = arith.constant 0 : index
    %103 = vector.load %arg5[%c128, %c0_36] : memref<384x384xbf16, #tpu.memory_space<vmem>>, vector<64x384xbf16>
    %cst_37 = arith.constant dense<0.000000e+00> : vector<64x384xf32>
    %104 = tpu.matmul %102, %103, %cst_37 {dimension_numbers = #tpu.dot_dimension_numbers<[1], [0], [0], [1], [0, 0, 1, 1], [], []>} : vector<64x64xbf16>, vector<64x384xbf16>, vector<64x384xf32> -> vector<64x384xf32>
    %105 = arith.addf %81, %104 : vector<64x384xf32>
    %106 = vector.extract_strided_slice %26 {offsets = [0, 192], sizes = [64, 64], strides = [1, 1]} : vector<64x768xf32> to vector<64x64xf32>
    %107 = arith.truncf %106 : vector<64x64xf32> to vector<64x64xbf16>
    %108 = vector.extract_strided_slice %26 {offsets = [0, 576], sizes = [64, 64], strides = [1, 1]} : vector<64x768xf32> to vector<64x64xf32>
    %109 = arith.truncf %108 : vector<64x64xf32> to vector<64x64xbf16>
    %cst_38 = arith.constant dense<0.000000e+00> : vector<64x64xf32>
    %110 = tpu.matmul %107, %107, %cst_38 {dimension_numbers = #tpu.dot_dimension_numbers<[1], [1], [0], [0], [0, 0, 1, 0], [], []>} : vector<64x64xbf16>, vector<64x64xbf16>, vector<64x64xf32> -> vector<64x64xf32>
    %cst_39 = arith.constant 1.250000e-01 : f32
    %111 = vector.broadcast %cst_39 : f32 to vector<64x64xf32>
    %112 = arith.mulf %110, %111 : vector<64x64xf32>
    %113 = arith.addf %112, %32 : vector<64x64xf32>
    %cst_40 = arith.constant dense<0xFF800000> : vector<64xf32>
    %114 = vector.multi_reduction <maximumf>, %113, %cst_40 [1] : vector<64x64xf32> to vector<64xf32>
    %115 = vector.shape_cast %114 : vector<64xf32> to vector<64x1xf32>
    %116 = vector.broadcast %115 : vector<64x1xf32> to vector<64x64xf32>
    %117 = arith.subf %113, %116 : vector<64x64xf32>
    %118 = math.exp %117 : vector<64x64xf32>
    %cst_41 = arith.constant dense<0.000000e+00> : vector<64xf32>
    %119 = vector.multi_reduction <add>, %118, %cst_41 [1] : vector<64x64xf32> to vector<64xf32>
    %120 = vector.shape_cast %119 : vector<64xf32> to vector<64x1xf32>
    %121 = tpu.reciprocal %120 {approx = true} : vector<64x1xf32> -> vector<64x1xf32>
    %122 = vector.broadcast %121 : vector<64x1xf32> to vector<64x64xf32>
    %123 = arith.mulf %118, %122 : vector<64x64xf32>
    %124 = arith.truncf %123 : vector<64x64xf32> to vector<64x64xbf16>
    %cst_42 = arith.constant dense<0.000000e+00> : vector<64x64xf32>
    %125 = tpu.matmul %124, %109, %cst_42 {dimension_numbers = #tpu.dot_dimension_numbers<[1], [0], [0], [1], [0, 0, 1, 1], [], []>} : vector<64x64xbf16>, vector<64x64xbf16>, vector<64x64xf32> -> vector<64x64xf32>
    %126 = arith.truncf %125 : vector<64x64xf32> to vector<64x64xbf16>
    %c192 = arith.constant 192 : index
    %c0_43 = arith.constant 0 : index
    %127 = vector.load %arg5[%c192, %c0_43] : memref<384x384xbf16, #tpu.memory_space<vmem>>, vector<64x384xbf16>
    %cst_44 = arith.constant dense<0.000000e+00> : vector<64x384xf32>
    %128 = tpu.matmul %126, %127, %cst_44 {dimension_numbers = #tpu.dot_dimension_numbers<[1], [0], [0], [1], [0, 0, 1, 1], [], []>} : vector<64x64xbf16>, vector<64x384xbf16>, vector<64x384xf32> -> vector<64x384xf32>
    %129 = arith.addf %105, %128 : vector<64x384xf32>
    %130 = vector.extract_strided_slice %26 {offsets = [0, 256], sizes = [64, 64], strides = [1, 1]} : vector<64x768xf32> to vector<64x64xf32>
    %131 = arith.truncf %130 : vector<64x64xf32> to vector<64x64xbf16>
    %132 = vector.extract_strided_slice %26 {offsets = [0, 640], sizes = [64, 64], strides = [1, 1]} : vector<64x768xf32> to vector<64x64xf32>
    %133 = arith.truncf %132 : vector<64x64xf32> to vector<64x64xbf16>
    %cst_45 = arith.constant dense<0.000000e+00> : vector<64x64xf32>
    %134 = tpu.matmul %131, %131, %cst_45 {dimension_numbers = #tpu.dot_dimension_numbers<[1], [1], [0], [0], [0, 0, 1, 0], [], []>} : vector<64x64xbf16>, vector<64x64xbf16>, vector<64x64xf32> -> vector<64x64xf32>
    %cst_46 = arith.constant 1.250000e-01 : f32
    %135 = vector.broadcast %cst_46 : f32 to vector<64x64xf32>
    %136 = arith.mulf %134, %135 : vector<64x64xf32>
    %137 = arith.addf %136, %32 : vector<64x64xf32>
    %cst_47 = arith.constant dense<0xFF800000> : vector<64xf32>
    %138 = vector.multi_reduction <maximumf>, %137, %cst_47 [1] : vector<64x64xf32> to vector<64xf32>
    %139 = vector.shape_cast %138 : vector<64xf32> to vector<64x1xf32>
    %140 = vector.broadcast %139 : vector<64x1xf32> to vector<64x64xf32>
    %141 = arith.subf %137, %140 : vector<64x64xf32>
    %142 = math.exp %141 : vector<64x64xf32>
    %cst_48 = arith.constant dense<0.000000e+00> : vector<64xf32>
    %143 = vector.multi_reduction <add>, %142, %cst_48 [1] : vector<64x64xf32> to vector<64xf32>
    %144 = vector.shape_cast %143 : vector<64xf32> to vector<64x1xf32>
    %145 = tpu.reciprocal %144 {approx = true} : vector<64x1xf32> -> vector<64x1xf32>
    %146 = vector.broadcast %145 : vector<64x1xf32> to vector<64x64xf32>
    %147 = arith.mulf %142, %146 : vector<64x64xf32>
    %148 = arith.truncf %147 : vector<64x64xf32> to vector<64x64xbf16>
    %cst_49 = arith.constant dense<0.000000e+00> : vector<64x64xf32>
    %149 = tpu.matmul %148, %133, %cst_49 {dimension_numbers = #tpu.dot_dimension_numbers<[1], [0], [0], [1], [0, 0, 1, 1], [], []>} : vector<64x64xbf16>, vector<64x64xbf16>, vector<64x64xf32> -> vector<64x64xf32>
    %150 = arith.truncf %149 : vector<64x64xf32> to vector<64x64xbf16>
    %c256 = arith.constant 256 : index
    %c0_50 = arith.constant 0 : index
    %151 = vector.load %arg5[%c256, %c0_50] : memref<384x384xbf16, #tpu.memory_space<vmem>>, vector<64x384xbf16>
    %cst_51 = arith.constant dense<0.000000e+00> : vector<64x384xf32>
    %152 = tpu.matmul %150, %151, %cst_51 {dimension_numbers = #tpu.dot_dimension_numbers<[1], [0], [0], [1], [0, 0, 1, 1], [], []>} : vector<64x64xbf16>, vector<64x384xbf16>, vector<64x384xf32> -> vector<64x384xf32>
    %153 = arith.addf %129, %152 : vector<64x384xf32>
    %154 = vector.extract_strided_slice %26 {offsets = [0, 320], sizes = [64, 64], strides = [1, 1]} : vector<64x768xf32> to vector<64x64xf32>
    %155 = arith.truncf %154 : vector<64x64xf32> to vector<64x64xbf16>
    %156 = vector.extract_strided_slice %26 {offsets = [0, 704], sizes = [64, 64], strides = [1, 1]} : vector<64x768xf32> to vector<64x64xf32>
    %157 = arith.truncf %156 : vector<64x64xf32> to vector<64x64xbf16>
    %cst_52 = arith.constant dense<0.000000e+00> : vector<64x64xf32>
    %158 = tpu.matmul %155, %155, %cst_52 {dimension_numbers = #tpu.dot_dimension_numbers<[1], [1], [0], [0], [0, 0, 1, 0], [], []>} : vector<64x64xbf16>, vector<64x64xbf16>, vector<64x64xf32> -> vector<64x64xf32>
    %cst_53 = arith.constant 1.250000e-01 : f32
    %159 = vector.broadcast %cst_53 : f32 to vector<64x64xf32>
    %160 = arith.mulf %158, %159 : vector<64x64xf32>
    %161 = arith.addf %160, %32 : vector<64x64xf32>
    %cst_54 = arith.constant dense<0xFF800000> : vector<64xf32>
    %162 = vector.multi_reduction <maximumf>, %161, %cst_54 [1] : vector<64x64xf32> to vector<64xf32>
    %163 = vector.shape_cast %162 : vector<64xf32> to vector<64x1xf32>
    %164 = vector.broadcast %163 : vector<64x1xf32> to vector<64x64xf32>
    %165 = arith.subf %161, %164 : vector<64x64xf32>
    %166 = math.exp %165 : vector<64x64xf32>
    %cst_55 = arith.constant dense<0.000000e+00> : vector<64xf32>
    %167 = vector.multi_reduction <add>, %166, %cst_55 [1] : vector<64x64xf32> to vector<64xf32>
    %168 = vector.shape_cast %167 : vector<64xf32> to vector<64x1xf32>
    %169 = tpu.reciprocal %168 {approx = true} : vector<64x1xf32> -> vector<64x1xf32>
    %170 = vector.broadcast %169 : vector<64x1xf32> to vector<64x64xf32>
    %171 = arith.mulf %166, %170 : vector<64x64xf32>
    %172 = arith.truncf %171 : vector<64x64xf32> to vector<64x64xbf16>
    %cst_56 = arith.constant dense<0.000000e+00> : vector<64x64xf32>
    %173 = tpu.matmul %172, %157, %cst_56 {dimension_numbers = #tpu.dot_dimension_numbers<[1], [0], [0], [1], [0, 0, 1, 1], [], []>} : vector<64x64xbf16>, vector<64x64xbf16>, vector<64x64xf32> -> vector<64x64xf32>
    %174 = arith.truncf %173 : vector<64x64xf32> to vector<64x64xbf16>
    %c320 = arith.constant 320 : index
    %c0_57 = arith.constant 0 : index
    %175 = vector.load %arg5[%c320, %c0_57] : memref<384x384xbf16, #tpu.memory_space<vmem>>, vector<64x384xbf16>
    %cst_58 = arith.constant dense<0.000000e+00> : vector<64x384xf32>
    %176 = tpu.matmul %174, %175, %cst_58 {dimension_numbers = #tpu.dot_dimension_numbers<[1], [0], [0], [1], [0, 0, 1, 1], [], []>} : vector<64x64xbf16>, vector<64x384xbf16>, vector<64x384xf32> -> vector<64x384xf32>
    %177 = arith.addf %153, %176 : vector<64x384xf32>
    %178 = arith.addf %1, %177 : vector<64x384xf32>
    %c0_59 = arith.constant 0 : index
    %c0_60 = arith.constant 0 : index
    %179 = vector.load %arg6[%c0_59, %c0_60] : memref<1x384xf32, #tpu.memory_space<vmem>>, vector<1x384xf32>
    %180 = vector.broadcast %179 : vector<1x384xf32> to vector<64x384xf32>
    %181 = arith.addf %178, %180 : vector<64x384xf32>
    %c0_61 = arith.constant 0 : index
    %c0_62 = arith.constant 0 : index
    %182 = vector.load %arg7[%c0_61, %c0_62] : memref<1x384xf32, #tpu.memory_space<vmem>>, vector<1x384xf32>
    %c0_63 = arith.constant 0 : index
    %c0_64 = arith.constant 0 : index
    %183 = vector.load %arg8[%c0_63, %c0_64] : memref<1x384xf32, #tpu.memory_space<vmem>>, vector<1x384xf32>
    %cst_65 = arith.constant dense<0.000000e+00> : vector<64xf32>
    %184 = vector.multi_reduction <add>, %181, %cst_65 [1] : vector<64x384xf32> to vector<64xf32>
    %185 = vector.shape_cast %184 : vector<64xf32> to vector<64x1xf32>
    %cst_66 = arith.constant 3.840000e+02 : f32
    %186 = vector.broadcast %cst_66 : f32 to vector<64x1xf32>
    %187 = arith.divf %185, %186 : vector<64x1xf32>
    %188 = vector.broadcast %187 : vector<64x1xf32> to vector<64x384xf32>
    %189 = arith.subf %181, %188 : vector<64x384xf32>
    %190 = arith.mulf %189, %189 : vector<64x384xf32>
    %cst_67 = arith.constant dense<0.000000e+00> : vector<64xf32>
    %191 = vector.multi_reduction <add>, %190, %cst_67 [1] : vector<64x384xf32> to vector<64xf32>
    %192 = vector.shape_cast %191 : vector<64xf32> to vector<64x1xf32>
    %cst_68 = arith.constant 3.840000e+02 : f32
    %193 = vector.broadcast %cst_68 : f32 to vector<64x1xf32>
    %194 = arith.divf %192, %193 : vector<64x1xf32>
    %cst_69 = arith.constant 9.99999974E-6 : f32
    %195 = vector.broadcast %cst_69 : f32 to vector<64x1xf32>
    %196 = arith.addf %194, %195 : vector<64x1xf32>
    %197 = math.rsqrt %196 : vector<64x1xf32>
    %198 = vector.broadcast %197 : vector<64x1xf32> to vector<64x384xf32>
    %199 = arith.mulf %189, %198 : vector<64x384xf32>
    %200 = vector.broadcast %182 : vector<1x384xf32> to vector<64x384xf32>
    %201 = arith.mulf %199, %200 : vector<64x384xf32>
    %202 = vector.broadcast %183 : vector<1x384xf32> to vector<64x384xf32>
    %203 = arith.addf %201, %202 : vector<64x384xf32>
    %204 = arith.truncf %203 : vector<64x384xf32> to vector<64x384xbf16>
    %c0_70 = arith.constant 0 : index
    %c0_71 = arith.constant 0 : index
    %205 = vector.load %arg9[%c0_70, %c0_71] : memref<384x1536xbf16, #tpu.memory_space<vmem>>, vector<384x1536xbf16>
    %cst_72 = arith.constant dense<0.000000e+00> : vector<64x1536xf32>
    %206 = tpu.matmul %204, %205, %cst_72 {dimension_numbers = #tpu.dot_dimension_numbers<[1], [0], [0], [1], [0, 0, 1, 1], [], []>} : vector<64x384xbf16>, vector<384x1536xbf16>, vector<64x1536xf32> -> vector<64x1536xf32>
    %c0_73 = arith.constant 0 : index
    %c0_74 = arith.constant 0 : index
    %207 = vector.load %arg10[%c0_73, %c0_74] : memref<1x1536xf32, #tpu.memory_space<vmem>>, vector<1x1536xf32>
    %208 = vector.broadcast %207 : vector<1x1536xf32> to vector<64x1536xf32>
    %209 = arith.addf %206, %208 : vector<64x1536xf32>
    %cst_75 = arith.constant 0.000000e+00 : f32
    %210 = vector.broadcast %cst_75 : f32 to vector<64x1536xf32>
    %211 = arith.maximumf %209, %210 : vector<64x1536xf32>
    %212 = arith.truncf %211 : vector<64x1536xf32> to vector<64x1536xbf16>
    %c0_76 = arith.constant 0 : index
    %c0_77 = arith.constant 0 : index
    %213 = vector.load %arg11[%c0_76, %c0_77] : memref<1536x384xbf16, #tpu.memory_space<vmem>>, vector<1536x384xbf16>
    %cst_78 = arith.constant dense<0.000000e+00> : vector<64x384xf32>
    %214 = tpu.matmul %212, %213, %cst_78 {dimension_numbers = #tpu.dot_dimension_numbers<[1], [0], [0], [1], [0, 0, 1, 1], [], []>} : vector<64x1536xbf16>, vector<1536x384xbf16>, vector<64x384xf32> -> vector<64x384xf32>
    %c0_79 = arith.constant 0 : index
    %c0_80 = arith.constant 0 : index
    %215 = vector.load %arg12[%c0_79, %c0_80] : memref<1x384xf32, #tpu.memory_space<vmem>>, vector<1x384xf32>
    %216 = vector.broadcast %215 : vector<1x384xf32> to vector<64x384xf32>
    %217 = arith.addf %214, %216 : vector<64x384xf32>
    %218 = arith.addf %181, %217 : vector<64x384xf32>
    %c0_81 = arith.constant 0 : index
    %c0_82 = arith.constant 0 : index
    %c0_83 = arith.constant 0 : index
    %219 = vector.load %arg13[%c0_81, %c0_82, %c0_83] : memref<1x64x384xf32, #tpu.memory_space<vmem>>, vector<1x64x384xf32>
    %220 = vector.shape_cast %219 : vector<1x64x384xf32> to vector<64x384xf32>
    %221 = vector.shape_cast %218 : vector<64x384xf32> to vector<1x64x384xf32>
    tpu.vector_store %arg13[%c0_81, %c0_82, %c0_83], %221 {strides = array<i32>} : memref<1x64x384xf32, #tpu.memory_space<vmem>>, vector<1x64x384xf32>,
    return
  }
  func.func @transform_0(%arg0: i32) -> (i32, i32, i32) {
    %c0_i32 = arith.constant 0 : i32
    %c0_i32_0 = arith.constant 0 : i32
    %c0_i32_1 = arith.constant 0 : i32
    return %arg0, %c0_i32, %c0_i32_0 : i32, i32, i32
  }
  func.func @transform_1(%arg0: i32) -> (i32, i32) {
    %c0_i32 = arith.constant 0 : i32
    %c0_i32_0 = arith.constant 0 : i32
    %c0_i32_1 = arith.constant 0 : i32
    return %c0_i32, %c0_i32_0 : i32, i32
  }
  func.func @transform_2(%arg0: i32) -> (i32, i32) {
    %c0_i32 = arith.constant 0 : i32
    %c0_i32_0 = arith.constant 0 : i32
    %c0_i32_1 = arith.constant 0 : i32
    return %c0_i32, %c0_i32_0 : i32, i32
  }
  func.func @transform_3(%arg0: i32) -> (i32, i32) {
    %c0_i32 = arith.constant 0 : i32
    %c0_i32_0 = arith.constant 0 : i32
    %c0_i32_1 = arith.constant 0 : i32
    return %c0_i32, %c0_i32_0 : i32, i32
  }
  func.func @transform_4(%arg0: i32) -> (i32, i32) {
    %c0_i32 = arith.constant 0 : i32
    %c0_i32_0 = arith.constant 0 : i32
    %c0_i32_1 = arith.constant 0 : i32
    return %c0_i32, %c0_i32_0 : i32, i32
  }
  func.func @transform_5(%arg0: i32) -> (i32, i32) {
    %c0_i32 = arith.constant 0 : i32
    %c0_i32_0 = arith.constant 0 : i32
    %c0_i32_1 = arith.constant 0 : i32
    return %c0_i32, %c0_i32_0 : i32, i32
  }
  func.func @transform_6(%arg0: i32) -> (i32, i32) {
    %c0_i32 = arith.constant 0 : i32
    %c0_i32_0 = arith.constant 0 : i32
    %c0_i32_1 = arith.constant 0 : i32
    return %c0_i32, %c0_i32_0 : i32, i32
  }
  func.func @transform_7(%arg0: i32) -> (i32, i32) {
    %c0_i32 = arith.constant 0 : i32
    %c0_i32_0 = arith.constant 0 : i32
    %c0_i32_1 = arith.constant 0 : i32
    return %c0_i32, %c0_i32_0 : i32, i32
  }
  func.func @transform_8(%arg0: i32) -> (i32, i32) {
    %c0_i32 = arith.constant 0 : i32
    %c0_i32_0 = arith.constant 0 : i32
    %c0_i32_1 = arith.constant 0 : i32
    return %c0_i32, %c0_i32_0 : i32, i32
  }
  func.func @transform_9(%arg0: i32) -> (i32, i32) {
    %c0_i32 = arith.constant 0 : i32
    %c0_i32_0 = arith.constant 0 : i32
    %c0_i32_1 = arith.constant 0 : i32
    return %c0_i32, %c0_i32_0 : i32, i32
  }
  func.func @transform_10(%arg0: i32) -> (i32, i32) {
    %c0_i32 = arith.constant 0 : i32
    %c0_i32_0 = arith.constant 0 : i32
    %c0_i32_1 = arith.constant 0 : i32
    return %c0_i32, %c0_i32_0 : i32, i32
  }
  func.func @transform_11(%arg0: i32) -> (i32, i32) {
    %c0_i32 = arith.constant 0 : i32
    %c0_i32_0 = arith.constant 0 : i32
    %c0_i32_1 = arith.constant 0 : i32
    return %c0_i32, %c0_i32_0 : i32, i32
  }
  func.func @transform_12(%arg0: i32) -> (i32, i32, i32) {
    %c0_i32 = arith.constant 0 : i32
    %c0_i32_0 = arith.constant 0 : i32
    %c0_i32_1 = arith.constant 0 : i32
    return %arg0, %c0_i32, %c0_i32_0 : i32, i32, i32
  }
}

</mosaic_0001>

<bundles_post_ra>
// kernel: _lambda_.13
= control target key start
LH: loop header
LB: loop body
LE: loop exit
PB: predicated region body
PF: predicated region fallthrough
CT: control target
= control target key end

     0   :  { %10 = vsyncpa [#allocation3], 0  ;;  %s2135_s0 = inlined_call_operand.hbm [shape: f32[128,384], index: 0, kind: input, shape index: {}]   ;;  %s2136_s1 = inlined_call_operand.hbm [shape: f32[1,384], index: 1, kind: input, shape index: {}]   ;;  %s2137_s2 = inlined_call_operand.hbm [shape: f32[1,384], index: 2, kind: input, shape index: {}]   ;;  %s2138_s3 = inlined_call_operand.hbm [shape: bf16[384,128], index: 3, kind: input, shape index: {}]   ;;  %s2139_s4 = inlined_call_operand.hbm [shape: f32[1,128], index: 4, kind: input, shape index: {}]   ;;  %s2140_s5 = inlined_call_operand.hbm [shape: f32[128,128], index: 5, kind: output, shape index: {}]  }
   0x1   :  { %11 = vsyncpa [#allocation6], 0 }
   0x2   :  { %12 = vsyncpa [#allocation9], 0 }
   0x3   :  { %13 = vsyncpa [#allocation4], 0  ;;  %s1396_s18 = smov [#allocation5]   ;;  %s1397_s20 = smov [#allocation8]  }
   0x4   :  { %s32_s19 = sshll.u32 %s1396_s18, 4  ;;  %s51_s21 = sshll.u32 %s1397_s20, 4  ;;  %s33_s19 = int_to_ptr.vmem [resolvable:$true] %s32_s19  ;;  %s1438_s21 = int_to_ptr.vmem [resolvable:$true] %s51_s21 }
   0x5   :  { %s1256_s24 = scalar_lea.hbm %s2136_s1, 48 }
   0x6   :  { %p1257_p0 = scmp.ne.s32.totalorder %s2136_s1, %s1256_s24  ;;  %p1260_p1 = scmp.lt.u32.totalorder %s1256_s24, %s2136_s1 }
   0x8   :  { %p1262_p2 = pnand %p1260_p1, %p1257_p0 }
   0xa   :  { %1265 = shalt.err (!%p1262_p2)
}
   0xb   :  { %s1266_s29 = scalar_lea.vmem %s33_s19, 48  ;;  %s1270_s30 = scalar_lea.vmem %s33_s19, 64 }
   0xc   :  { %p1267_p3 = scmp.ne.s32.totalorder %s33_s19, %s1266_s29  ;;  %p1271_p4 = scmp.lt.s32.totalorder %s33_s19, %s33_s19 }
   0xd   :  { %p1272_p5 = scmp.lt.s32.totalorder %s1270_s30, %s1266_s29 }
   0xf   :  { %p1273_p6 = por %p1272_p5, %p1271_p4 }
  0x11   :  { %p1274_p7 = pnand %p1273_p6, %p1267_p3 }
  0x13   :  { %1277 = shalt.err (!%p1274_p7)
}
  0x14   :  { %35 = dma.hbm_to_vmem [thread:$0]  %s2136_s1, 48, %s33_s19, [#allocation6]  }
  0x15   :  { %s1278_s10 = scalar_lea.hbm %s2138_s3, 3072 }
  0x16   :  { %p1279_p8 = scmp.ne.s32.totalorder %s2138_s3, %s1278_s10  ;;  %p1282_p9 = scmp.lt.u32.totalorder %s1278_s10, %s2138_s3 }
  0x18   :  { %p1284_p10 = pnand %p1282_p9, %p1279_p8 }
  0x1a   :  { %1287 = shalt.err (!%p1284_p10)
}
  0x1b   :  { %s1288_s15 = scalar_lea.vmem %s1438_s21, 3072  ;;  %p1293_p12 = scmp.lt.s32.totalorder %s1438_s21, %s1438_s21 }
  0x1c   :  { %p1289_p11 = scmp.ne.s32.totalorder %s1438_s21, %s1288_s15  ;;  %p1294_p13 = scmp.lt.s32.totalorder %s1288_s15, %s1288_s15 }
  0x1e   :  { %p1295_p0 = por %p1294_p13, %p1293_p12 }
  0x20   :  { %p1296_p1 = pnand %p1295_p0, %p1289_p11 }
  0x22   :  { %1299 = shalt.err (!%p1296_p1)
}
  0x23   :  { %s1398_s1 = smov 64   ;;  %s1399_s16 = smov 4  }
  0x24   :  { %57 = dma.hbm_to_vmem [thread:$0]  %s2138_s3, 3072, %s1438_s21, [#allocation9], %s1398_s1, %s1398_s1, %s1399_s16  }
  0x25   :  { %s1400_s19 = smov [#allocation2]   ;;  %s1300_s24 = scalar_lea.hbm %s2135_s0, 6144 }
  0x26   :  { %s19_s20 = sshll.u32 %s1400_s19, 4  ;;  %p1301_p2 = scmp.ne.s32.totalorder %s2135_s0, %s1300_s24  ;;  %s20_s20 = int_to_ptr.vmem [resolvable:$true] %s19_s20 }
  0x27   :  { %p1304_p3 = scmp.lt.u32.totalorder %s1300_s24, %s2135_s0 }
  0x29   :  { %p1306_p4 = pnand %p1304_p3, %p1301_p2 }
  0x2b   :  { %1309 = shalt.err (!%p1306_p4)
}
  0x2c   :  { %s1310_s29 = scalar_lea.vmem %s20_s20, 6144  ;;  %p1315_p6 = scmp.lt.s32.totalorder %s20_s20, %s20_s20 }
  0x2d   :  { %p1311_p5 = scmp.ne.s32.totalorder %s20_s20, %s1310_s29  ;;  %p1316_p7 = scmp.lt.s32.totalorder %s1310_s29, %s1310_s29 }
  0x2f   :  { %p1317_p8 = por %p1316_p7, %p1315_p6 }
  0x31   :  { %p1318_p9 = pnand %p1317_p8, %p1311_p5 }
  0x33   :  { %1321 = shalt.err (!%p1318_p9)
}
  0x34   :  { %s1401_s3 = smov 384   ;;  %s1402_s21 = smov 24  }
  0x35   :  { %25 = dma.hbm_to_vmem [thread:$0]  %s2135_s0, 6144, %s20_s20, [#allocation3], %s1401_s3, %s1401_s3, %s1402_s21  }
  0x36   :  { %s1403_s7 = smov [#allocation7]   ;;  %s1404_s9 = smov [#allocation10]  }
  0x37   :  { %s42_s8 = sshll.u32 %s1403_s7, 4  ;;  %s64_s10 = sshll.u32 %s1404_s9, 4  ;;  %s43_s8 = int_to_ptr.vmem [resolvable:$true] %s42_s8  ;;  %s65_s10 = int_to_ptr.vmem [resolvable:$true] %s64_s10 }
  0x38   :  { %s1322_s13 = scalar_lea.hbm %s2137_s2, 48 }
  0x39   :  { %p1323_p10 = scmp.ne.s32.totalorder %s2137_s2, %s1322_s13  ;;  %p1326_p11 = scmp.lt.u32.totalorder %s1322_s13, %s2137_s2 }
  0x3b   :  { %p1328_p12 = pnand %p1326_p11, %p1323_p10 }
  0x3d   :  { %1331 = shalt.err (!%p1328_p12)
}
  0x3e   :  { %s1332_s0 = scalar_lea.vmem %s43_s8, 48  ;;  %s1336_s17 = scalar_lea.vmem %s43_s8, 64 }
  0x3f   :  { %p1333_p13 = scmp.ne.s32.totalorder %s43_s8, %s1332_s0  ;;  %p1337_p0 = scmp.lt.s32.totalorder %s43_s8, %s43_s8 }
  0x40   :  { %p1338_p1 = scmp.lt.s32.totalorder %s1336_s17, %s1332_s0 }
  0x42   :  { %p1339_p2 = por %p1338_p1, %p1337_p0 }
  0x44   :  { %p1340_p3 = pnand %p1339_p2, %p1333_p13 }
  0x46   :  { %1343 = shalt.err (!%p1340_p3)
}
  0x47   :  { %45 = dma.hbm_to_vmem [thread:$0]  %s2137_s2, 48, %s43_s8, [#allocation6]  }
  0x48   :  { %s1344_s23 = scalar_lea.hbm %s2139_s4, 16 }
  0x49   :  { %p1345_p4 = scmp.ne.s32.totalorder %s2139_s4, %s1344_s23  ;;  %p1348_p5 = scmp.lt.u32.totalorder %s1344_s23, %s2139_s4 }
  0x4b   :  { %p1350_p6 = pnand %p1348_p5, %p1345_p4 }
  0x4d   :  { %1353 = shalt.err (!%p1350_p6)
}
  0x4e   :  { %s1354_s28 = scalar_lea.vmem %s65_s10, 16  ;;  %s1358_s29 = scalar_lea.vmem %s65_s10, 32 }
  0x4f   :  { %p1355_p7 = scmp.ne.s32.totalorder %s65_s10, %s1354_s28  ;;  %p1359_p8 = scmp.lt.s32.totalorder %s65_s10, %s65_s10 }
  0x50   :  { %p1360_p9 = scmp.lt.s32.totalorder %s1358_s29, %s1354_s28 }
  0x52   :  { %p1361_p10 = por %p1360_p9, %p1359_p8 }
  0x54   :  { %p1362_p11 = pnand %p1361_p10, %p1355_p7 }
  0x56   :  { %1365 = shalt.err (!%p1362_p11)
}
  0x57   :  { %67 = dma.hbm_to_vmem [thread:$0]  %s2139_s4, 16, %s65_s10, [#allocation9]  }
  0x58   :  { %1388 = dma.done.wait [#allocation3], 6144  }
  0x59   :  { %1389 = vsyncadd [#allocation3], 4294961152 }
  0x5a   :  { %1390 = dma.done.wait [#allocation6], 96  }
  0x5b   :  { %1391 = vsyncadd [#allocation6], 4294967200 }
  0x5c   :  { %1392 = dma.done.wait [#allocation9], 3088  }
  0x5d   :  { %1393 = vsyncadd [#allocation9], 4294964208  ;;  %v1505_v0 = vld [vmem:[#allocation2] sm:$0xff]  ;;  %v1507_v1 = vld [vmem:[#allocation2 + $0x8] sm:$0xff]  ;;  %s1405_s4 = smov [#allocation11]  }
  0x5e   :  { %v1509_v2 = vld [vmem:[#allocation2 + $0x10] sm:$0xff]  ;;  %v134_v3 = vadd.f32 %v1507_v1, %v1505_v0  ;;  %v1515_v5 = vld [vmem:[#allocation2 + $0x38] sm:$0xff]  ;;  %v1517_v6 = vld [vmem:[#allocation2 + $0x40] sm:$0xff]  ;;  %s1037_s21 = sshll.u32 %s1405_s4, 4  ;;  %s1038_s21 = int_to_ptr.vmem [resolvable:$true] %s1037_s21 }
  0x5f   :  { %v1513_v4 = vld [vmem:[#allocation2 + $0x30] sm:$0xff]  ;;  %v1521_v8 = vld [vmem:[#allocation2 + $0x18] sm:$0xff]  ;;  %v1523_v9 = vld [vmem:[#allocation2 + $0x20] sm:$0xff]  ;;  %s1366_s30 = scalar_lea.vmem %s1038_s21, 2048  ;;  %p1371_p13 = scmp.lt.s32.totalorder %s1038_s21, %s1038_s21 }
  0x60   :  { %v142_v7 = vadd.f32 %v1515_v5, %v1513_v4  ;;  %v1525_v10 = vld [vmem:[#allocation2 + $0x28] sm:$0xff]  ;;  %v135_v11 = vadd.f32 %v134_v3, %v1509_v2  ;;  %v138_v12 = vadd.f32 %v1523_v9, %v1521_v8  ;;  %v1532_v14 = vld [vmem:[#allocation2 + $0x50] sm:$0xff]  ;;  %v1534_v15 = vld [vmem:[#allocation2 + $0x58] sm:$0xff]  ;;  %p1367_p12 = scmp.ne.s32.totalorder %s1038_s21, %s1366_s30  ;;  %p1372_p0 = scmp.lt.s32.totalorder %s1366_s30, %s1366_s30 }
  0x61   :  { %v1530_v13 = vld [vmem:[#allocation2 + $0x48] sm:$0xff]  ;;  %v1539_v18 = vld [vmem:[#allocation2 + $0x60] sm:$0xff]  ;;  %v1546_v22 = vld [vmem:[#allocation2 + $0x78] sm:$0xff] }
  0x62   :  { %v143_v16 = vadd.f32 %v142_v7, %v1517_v6  ;;  %v146_v17 = vadd.f32 %v1532_v14, %v1530_v13  ;;  %v1541_v19 = vld [vmem:[#allocation2 + $0x68] sm:$0xff]  ;;  %136 = vadd.xlane.f32.xlu0 %v135_v11  ;;  %v139_v20 = vadd.f32 %v138_v12, %v1525_v10  ;;  %v1548_v23 = vld [vmem:[#allocation2 + $0x80] sm:$0xff]  ;;  %v1551_v25 = vld [vmem:[#allocation2 + $0x70] sm:$0xff]  ;;  %p1373_p1 = por %p1372_p0, %p1371_p13 }
  0x63   :  { %v150_v21 = vadd.f32 %v1541_v19, %v1539_v18  ;;  %v154_v26 = vadd.f32 %v1548_v23, %v1546_v22  ;;  %v1555_v27 = vld [vmem:[#allocation2 + $0x90] sm:$0xff]  ;;  %v1557_v28 = vld [vmem:[#allocation2 + $0x98] sm:$0xff]  ;;  %v1559_v29 = vld [vmem:[#allocation2 + $0x88] sm:$0xff] }
  0x64   :  { %144 = vadd.xlane.f32.xlu1 %v143_v16  ;;  %v147_v24 = vadd.f32 %v146_v17, %v1534_v15  ;;  %v1561_v30 = vld [vmem:[#allocation2 + $0xa8] sm:$0xff]  ;;  %v1563_v31 = vld [vmem:[#allocation2 + $0xb0] sm:$0xff]  ;;  %v158_v33 = vadd.f32 %v1557_v28, %v1555_v27  ;;  %v1569_v35 = vld [vmem:[#allocation2 + $0xa0] sm:$0xff]  ;;  %p1374_p2 = pnand %p1373_p1, %p1367_p12 }
  0x65   :  { %v151_v32 = vadd.f32 %v150_v21, %v1551_v25  ;;  %v155_v34 = vadd.f32 %v154_v26, %v1559_v29  ;;  %v162_v36 = vadd.f32 %v1563_v31, %v1561_v30  ;;  %v1573_v37 = vld [vmem:[#allocation2 + $0xc0] sm:$0xff]  ;;  %v1575_v38 = vld [vmem:[#allocation2 + $0xc8] sm:$0xff]  ;;  %v1577_v39 = vld [vmem:[#allocation2 + $0xb8] sm:$0xff] }
  0x66   :  { %140 = vadd.xlane.f32.xlu0 %v139_v20  ;;  %v1579_v40 = vld [vmem:[#allocation2 + $0xd8] sm:$0xff]  ;;  %v1581_v41 = vld [vmem:[#allocation2 + $0xe0] sm:$0xff]  ;;  %v159_v42 = vadd.f32 %v158_v33, %v1569_v35  ;;  %v166_v43 = vadd.f32 %v1575_v38, %v1573_v37  ;;  %v1587_v45 = vld [vmem:[#allocation2 + $0xd0] sm:$0xff] }
  0x67   :  { %v163_v44 = vadd.f32 %v162_v36, %v1577_v39  ;;  %v170_v46 = vadd.f32 %v1581_v41, %v1579_v40  ;;  %v1591_v47 = vld [vmem:[#allocation2 + $0xf0] sm:$0xff]  ;;  %v1593_v48 = vld [vmem:[#allocation2 + $0xf8] sm:$0xff]  ;;  %v1595_v49 = vld [vmem:[#allocation2 + $0xe8] sm:$0xff] }
  0x68   :  { %148 = vadd.xlane.f32.xlu1 %v147_v24  ;;  %v1597_v50 = vld [vmem:[#allocation2 + $0x108] sm:$0xff]  ;;  %v1599_v51 = vld [vmem:[#allocation2 + $0x110] sm:$0xff]  ;;  %v1601_v52 = vld [vmem:[#allocation2 + $0x100] sm:$0xff]  ;;  %v167_v55 = vadd.f32 %v166_v43, %v1587_v45  ;;  %v174_v56 = vadd.f32 %v1593_v48, %v1591_v47 }
  0x69   :  { %v1603_v53 = vld [vmem:[#allocation2 + $0x120] sm:$0xff]  ;;  %v1605_v54 = vld [vmem:[#allocation2 + $0x128] sm:$0xff]  ;;  %v1610_v57 = vld [vmem:[#allocation2 + $0x118] sm:$0xff]  ;;  %v171_v60 = vadd.f32 %v170_v46, %v1595_v49  ;;  %v178_v61 = vadd.f32 %v1599_v51, %v1597_v50 }
  0x6a   :  { %152 = vadd.xlane.f32.xlu0 %v151_v32  ;;  %v1612_v58 = vld [vmem:[#allocation2 + $0x138] sm:$0xff]  ;;  %v1614_v59 = vld [vmem:[#allocation2 + $0x140] sm:$0xff]  ;;  %v1619_v62 = vld [vmem:[#allocation2 + $0x130] sm:$0xff]  ;;  %v175_v7 = vadd.f32 %v174_v56, %v1601_v52  ;;  %v182_v11 = vadd.f32 %v1605_v54, %v1603_v53 }
  0x6b   :  { %v1621_v63 = vld [vmem:[#allocation2 + $0x150] sm:$0xff]  ;;  %v1623_v3 = vld [vmem:[#allocation2 + $0x158] sm:$0xff]  ;;  %v1628_v12 = vld [vmem:[#allocation2 + $0x148] sm:$0xff]  ;;  %v179_v20 = vadd.f32 %v178_v61, %v1610_v57  ;;  %v186_v21 = vadd.f32 %v1614_v59, %v1612_v58 }
  0x6c   :  { %156 = vadd.xlane.f32.xlu1 %v155_v34  ;;  %v1630_v16 = vld [vmem:[#allocation2 + $0x168] sm:$0xff]  ;;  %v1632_v17 = vld [vmem:[#allocation2 + $0x170] sm:$0xff]  ;;  %v1637_v24 = vld [vmem:[#allocation2 + $0x160] sm:$0xff]  ;;  %v183_v26 = vadd.f32 %v182_v11, %v1619_v62  ;;  %v190_v32 = vadd.f32 %v1623_v3, %v1621_v63 }
  0x6d   :  { %v1642_v33 = vld [vmem:[#allocation2 + $0x178] sm:$0xff]  ;;  %v187_v34 = vadd.f32 %v186_v21, %v1628_v12  ;;  %v194_v36 = vadd.f32 %v1632_v17, %v1630_v16  ;;  %v1201_v46 = vld [vmem:[#allocation8] sm:$0xff]  }
  0x6e   :  { %160 = vadd.xlane.f32.xlu0 %v159_v42  ;;  %v191_v42 = vadd.f32 %v190_v32, %v1637_v24 }
  0x6f   :  { %v195_v43 = vadd.f32 %v194_v36, %v1642_v33 }
  0x70   :  { %164 = vadd.xlane.f32.xlu1 %v163_v44  ;;  %v1200_v44 = vld [vmem:[#allocation8 + $0x40] sm:$0xff]  }
  0x71   :  { %1076 = vmatprep.subr.bf16.mxu0 %v1200_v44 }
  0x72   :  { %168 = vadd.xlane.f32.xlu0 %v167_v55  ;;  %v1202_v55 = vld [vmem:[#allocation8 + $0x80] sm:$0xff]   ;;  %1077 = vmatpush3.bf16.msra.mxu0 %v1201_v46 }
  0x73   :  { %1156 = vmatprep.subr.bf16.mxu1 %v1202_v55 }
  0x74   :  { %172 = vadd.xlane.f32.xlu1 %v171_v60  ;;  %1157 = vmatpush3.bf16.msra.mxu1 %v1202_v55 }
  0x76   :  { %176 = vadd.xlane.f32.xlu0 %v175_v7 }
  0x78   :  { %180 = vadd.xlane.f32.xlu1 %v179_v20 }
  0x7a   :  { %184 = vadd.xlane.f32.xlu0 %v183_v26 }
  0x7c   :  { %188 = vadd.xlane.f32.xlu1 %v187_v34 }
  0x7e   :  { %192 = vadd.xlane.f32.xlu0 %v191_v42 }
  0x80   :  { %196 = vadd.xlane.f32.xlu1 %v195_v43 }
  0xef   :  { %v137_v56 = vpop.xlane.xlu0 %136 }
  0xf0   :  { %v199_v60 = vmul.f32 0.0026041667, %v137_v56 }
  0xf1   :  { %v145_v61 = vpop.xlane.xlu1 %144 }
  0xf2   :  { %v201_v7 = vmul.f32 0.0026041667, %v145_v61  ;;  %v1650_v11 = vsub.f32 %v1505_v0, %v199_v60  ;;  %v1653_v20 = vsub.f32 %v1507_v1, %v199_v60  ;;  %v1656_v21 = vsub.f32 %v1509_v2, %v199_v60 }
  0xf3   :  { %v141_v36 = vpop.xlane.xlu0 %140 }
  0xf4   :  { %v1659_v26 = vsub.f32 %v1513_v4, %v201_v7  ;;  %v1662_v32 = vsub.f32 %v1515_v5, %v201_v7  ;;  %v1665_v34 = vsub.f32 %v1517_v6, %v201_v7  ;;  %v200_v42 = vmul.f32 0.0026041667, %v141_v36 }
  0xf5   :  { %v149_v43 = vpop.xlane.xlu1 %148  ;;  %v263_v0 = vmul.f32 %v1650_v11, %v1650_v11  ;;  %v264_v1 = vmul.f32 %v1653_v20, %v1653_v20  ;;  %v265_v2 = vmul.f32 %v1656_v21, %v1656_v21 }
  0xf6   :  { %2150 = vst [vmem:[#allocation16_spill] sm:$0xff] %v1659_v26  ;;  %2151 = vst [vmem:[#allocation17_spill] sm:$0xff] %v1662_v32  ;;  %v202_v4 = vmul.f32 0.0026041667, %v149_v43  ;;  %v269_v5 = vmul.f32 %v1659_v26, %v1659_v26  ;;  %v270_v6 = vmul.f32 %v1662_v32, %v1662_v32  ;;  %v271_v44 = vmul.f32 %v1665_v34, %v1665_v34 }
  0xf7   :  { %2152 = vst [vmem:[#allocation18_spill] sm:$0xff] %v1665_v34  ;;  %v1680_v46 = vsub.f32 %v1521_v8, %v200_v42  ;;  %v1683_v55 = vsub.f32 %v1523_v9, %v200_v42  ;;  %v1686_v56 = vsub.f32 %v1525_v10, %v200_v42  ;;  %v311_v60 = vadd.f32 %v264_v1, %v263_v0  ;;  %v153_v43 = vpop.xlane.xlu0 %152 }
  0xf8   :  { %v1689_v61 = vsub.f32 %v1530_v13, %v202_v4  ;;  %v1692_v7 = vsub.f32 %v1532_v14, %v202_v4  ;;  %v1695_v36 = vsub.f32 %v1534_v15, %v202_v4  ;;  %v319_v26 = vadd.f32 %v270_v6, %v269_v5 }
  0xf9   :  { %v203_v8 = vmul.f32 0.0026041667, %v153_v43  ;;  %v312_v34 = vadd.f32 %v311_v60, %v265_v2  ;;  %v157_v32 = vpop.xlane.xlu1 %156  ;;  %v266_v9 = vmul.f32 %v1680_v46, %v1680_v46  ;;  %v267_v10 = vmul.f32 %v1683_v55, %v1683_v55 }
  0xfa   :  { %v204_v42 = vmul.f32 0.0026041667, %v157_v32  ;;  %v320_v13 = vadd.f32 %v319_v26, %v271_v44  ;;  %v268_v14 = vmul.f32 %v1686_v56, %v1686_v56  ;;  %v272_v15 = vmul.f32 %v1689_v61, %v1689_v61 }
  0xfb   :  { %v1706_v0 = vsub.f32 %v1539_v18, %v203_v8  ;;  %v1709_v1 = vsub.f32 %v1541_v19, %v203_v8  ;;  %v1712_v2 = vsub.f32 %v1551_v25, %v203_v8  ;;  %313 = vadd.xlane.f32.xlu0 %v312_v34  ;;  %v315_v4 = vadd.f32 %v267_v10, %v266_v9  ;;  %v161_v6 = vpop.xlane.xlu0 %160 }
  0xfc   :  { %v1715_v32 = vsub.f32 %v1546_v22, %v204_v42  ;;  %v1718_v26 = vsub.f32 %v1548_v23, %v204_v42  ;;  %v1721_v5 = vsub.f32 %v1559_v29, %v204_v42  ;;  %v273_v18 = vmul.f32 %v1692_v7, %v1692_v7 }
  0xfd   :  { %v205_v19 = vmul.f32 0.0026041667, %v161_v6  ;;  %v316_v44 = vadd.f32 %v315_v4, %v268_v14  ;;  %v165_v60 = vpop.xlane.xlu1 %164  ;;  %v274_v25 = vmul.f32 %v1695_v36, %v1695_v36  ;;  %v275_v22 = vmul.f32 %v1706_v0, %v1706_v0 }
  0xfe   :  { %v206_v34 = vmul.f32 0.0026041667, %v165_v60  ;;  %v323_v43 = vadd.f32 %v273_v18, %v272_v15  ;;  %v276_v23 = vmul.f32 %v1709_v1, %v1709_v1  ;;  %v277_v29 = vmul.f32 %v1712_v2, %v1712_v2 }
  0xff   :  { %v1734_v8 = vsub.f32 %v1555_v27, %v205_v19  ;;  %v1737_v9 = vsub.f32 %v1557_v28, %v205_v19  ;;  %v1740_v10 = vsub.f32 %v1569_v35, %v205_v19  ;;  %321 = vadd.xlane.f32.xlu0 %v320_v13  ;;  %317 = vadd.xlane.f32.xlu1 %v316_v44  ;;  %v169_v4 = vpop.xlane.xlu0 %168 }
 0x100   :  { %v1743_v42 = vsub.f32 %v1561_v30, %v206_v34  ;;  %v1746_v14 = vsub.f32 %v1563_v31, %v206_v34  ;;  %v1749_v15 = vsub.f32 %v1577_v39, %v206_v34  ;;  %v324_v27 = vadd.f32 %v323_v43, %v274_v25 }
 0x101   :  { %v207_v6 = vmul.f32 0.0026041667, %v169_v4  ;;  %v327_v18 = vadd.f32 %v276_v23, %v275_v22  ;;  %v173_v28 = vpop.xlane.xlu1 %172  ;;  %v278_v35 = vmul.f32 %v1715_v32, %v1715_v32  ;;  %v279_v13 = vmul.f32 %v1718_v26, %v1718_v26 }
 0x102   :  { %v208_v19 = vmul.f32 0.0026041667, %v173_v28  ;;  %v280_v30 = vmul.f32 %v1721_v5, %v1721_v5  ;;  %v281_v31 = vmul.f32 %v1734_v8, %v1734_v8  ;;  %v282_v39 = vmul.f32 %v1737_v9, %v1737_v9 }
 0x103   :  { %v1762_v44 = vsub.f32 %v1573_v37, %v207_v6  ;;  %v1765_v60 = vsub.f32 %v1575_v38, %v207_v6  ;;  %v1768_v25 = vsub.f32 %v1587_v45, %v207_v6  ;;  %325 = vadd.xlane.f32.xlu1 %v324_v27  ;;  %v328_v22 = vadd.f32 %v327_v18, %v277_v29  ;;  %v177_v4 = vpop.xlane.xlu0 %176 }
 0x104   :  { %v1771_v34 = vsub.f32 %v1579_v40, %v208_v19  ;;  %v1774_v43 = vsub.f32 %v1581_v41, %v208_v19  ;;  %v1777_v23 = vsub.f32 %v1595_v49, %v208_v19  ;;  %v331_v37 = vadd.f32 %v279_v13, %v278_v35 }
 0x105   :  { %329 = vadd.xlane.f32.xlu0 %v328_v22  ;;  %v209_v28 = vmul.f32 0.0026041667, %v177_v4  ;;  %v283_v38 = vmul.f32 %v1740_v10, %v1740_v10  ;;  %v335_v45 = vadd.f32 %v282_v39, %v281_v31  ;;  %v181_v6 = vpop.xlane.xlu1 %180  ;;  %v284_v29 = vmul.f32 %v1743_v42, %v1743_v42 }
 0x106   :  { %v332_v40 = vadd.f32 %v331_v37, %v280_v30  ;;  %v210_v27 = vmul.f32 0.0026041667, %v181_v6  ;;  %v285_v41 = vmul.f32 %v1746_v14, %v1746_v14  ;;  %v286_v49 = vmul.f32 %v1749_v15, %v1749_v15 }
 0x107   :  { %v1788_v18 = vsub.f32 %v1591_v47, %v209_v28  ;;  %v1791_v35 = vsub.f32 %v1593_v48, %v209_v28  ;;  %v1794_v13 = vsub.f32 %v1601_v52, %v209_v28  ;;  %v336_v19 = vadd.f32 %v335_v45, %v283_v38  ;;  %v185_v22 = vpop.xlane.xlu0 %184 }
 0x108   :  { %333 = vadd.xlane.f32.xlu1 %v332_v40  ;;  %v1797_v30 = vsub.f32 %v1597_v50, %v210_v27  ;;  %v1800_v31 = vsub.f32 %v1599_v51, %v210_v27  ;;  %v1803_v39 = vsub.f32 %v1610_v57, %v210_v27  ;;  %v339_v47 = vadd.f32 %v285_v41, %v284_v29 }
 0x109   :  { %337 = vadd.xlane.f32.xlu0 %v336_v19  ;;  %v211_v4 = vmul.f32 0.0026041667, %v185_v22  ;;  %v287_v48 = vmul.f32 %v1762_v44, %v1762_v44  ;;  %v288_v52 = vmul.f32 %v1765_v60, %v1765_v60  ;;  %v289_v50 = vmul.f32 %v1768_v25, %v1768_v25  ;;  %v189_v37 = vpop.xlane.xlu1 %188 }
 0x10a   :  { %v340_v28 = vadd.f32 %v339_v47, %v286_v49  ;;  %v212_v51 = vmul.f32 0.0026041667, %v189_v37  ;;  %v290_v57 = vmul.f32 %v1771_v34, %v1771_v34  ;;  %v291_v38 = vmul.f32 %v1774_v43, %v1774_v43 }
 0x10b   :  { %v1816_v45 = vsub.f32 %v1603_v53, %v211_v4  ;;  %v1819_v6 = vsub.f32 %v1605_v54, %v211_v4  ;;  %v1822_v29 = vsub.f32 %v1619_v62, %v211_v4  ;;  %v343_v40 = vadd.f32 %v288_v52, %v287_v48  ;;  %v193_v19 = vpop.xlane.xlu0 %192  ;;  %v1203_v54 = vld [vmem:[#allocation8 + $0x48] sm:$0xff]  }
 0x10c   :  { %341 = vadd.xlane.f32.xlu1 %v340_v28  ;;  %v1825_v27 = vsub.f32 %v1612_v58, %v212_v51  ;;  %v1828_v41 = vsub.f32 %v1614_v59, %v212_v51  ;;  %v1831_v49 = vsub.f32 %v1628_v12, %v212_v51  ;;  %v292_v53 = vmul.f32 %v1777_v23, %v1777_v23  ;;  %v1204_v58 = vld [vmem:[#allocation8 + $0x8] sm:$0xff]  }
 0x10d   :  { %2153 = vst [vmem:[#allocation19_spill] sm:$0xff] %v1816_v45  ;;  %v344_v22 = vadd.f32 %v343_v40, %v289_v50  ;;  %v213_v47 = vmul.f32 0.0026041667, %v193_v19  ;;  %v347_v62 = vadd.f32 %v291_v38, %v290_v57  ;;  %v293_v4 = vmul.f32 %v1788_v18, %v1788_v18  ;;  %v197_v48 = vpop.xlane.xlu1 %196  ;;  %1078 = vmatprep.subr.bf16.mxu0 %v1203_v54  ;;  %v1205_v28 = vld [vmem:[#allocation8 + $0x88] sm:$0xff]  }
 0x10e   :  { %2154 = vst [vmem:[#allocation20_spill] sm:$0xff] %v1825_v27  ;;  %v294_v59 = vmul.f32 %v1791_v35, %v1791_v35  ;;  %v295_v12 = vmul.f32 %v1794_v13, %v1794_v13  ;;  %v214_v52 = vmul.f32 0.0026041667, %v197_v48  ;;  %v296_v37 = vmul.f32 %v1797_v30, %v1797_v30  ;;  %1079 = vmatpush3.bf16.msra.mxu0 %v1204_v58 }
 0x10f   :  { %345 = vadd.xlane.f32.xlu0 %v344_v22  ;;  %v1844_v50 = vsub.f32 %v1621_v63, %v213_v47  ;;  %v1847_v51 = vsub.f32 %v1623_v3, %v213_v47  ;;  %v1850_v57 = vsub.f32 %v1637_v24, %v213_v47  ;;  %v348_v38 = vadd.f32 %v347_v62, %v292_v53  ;;  %v1206_v63 = vld [vmem:[#allocation8 + $0x50] sm:$0xff]  }
 0x110   :  { %v351_v40 = vadd.f32 %v294_v59, %v293_v4  ;;  %v1853_v19 = vsub.f32 %v1630_v16, %v214_v52  ;;  %v1856_v48 = vsub.f32 %v1632_v17, %v214_v52  ;;  %v1859_v54 = vsub.f32 %v1642_v33, %v214_v52  ;;  %1158 = vmatprep.subr.bf16.mxu1 %v1205_v28  ;;  %v1207_v62 = vld [vmem:[#allocation8 + $0x10] sm:$0xff]  }
 0x111   :  { %2155 = vst [vmem:[#allocation21_spill] sm:$0xff] %v1844_v50  ;;  %2156 = vst [vmem:[#allocation22_spill] sm:$0xff] %v1847_v51  ;;  %349 = vadd.xlane.f32.xlu1 %v348_v38  ;;  %v297_v3 = vmul.f32 %v1800_v31, %v1800_v31  ;;  %v298_v24 = vmul.f32 %v1803_v39, %v1803_v39  ;;  %v299_v53 = vmul.f32 %v1816_v45, %v1816_v45  ;;  %v1208_v4 = vld [vmem:[#allocation8 + $0x90] sm:$0xff]  }
 0x112   :  { %2157 = vst [vmem:[#allocation23_spill] sm:$0xff] %v1853_v19  ;;  %2158 = vst [vmem:[#allocation24_spill] sm:$0xff] %v1856_v48  ;;  %v300_v16 = vmul.f32 %v1819_v6, %v1819_v6  ;;  %v352_v17 = vadd.f32 %v351_v40, %v295_v12  ;;  %v301_v33 = vmul.f32 %v1822_v29, %v1822_v29  ;;  %1080 = vmatprep.subr.bf16.mxu0 %v1206_v63  ;;  %v1210_v63 = vld [vmem:[#allocation8 + $0x18] sm:$0xff]  }
 0x113   :  { %v302_v22 = vmul.f32 %v1825_v27, %v1825_v27  ;;  %v303_v47 = vmul.f32 %v1828_v41, %v1828_v41  ;;  %v355_v58 = vadd.f32 %v297_v3, %v296_v37  ;;  %v304_v52 = vmul.f32 %v1831_v49, %v1831_v49  ;;  %v1209_v37 = vld [vmem:[#allocation8 + $0x58] sm:$0xff]   ;;  %1159 = vmatpush3.bf16.msra.mxu1 %v1205_v28 }
 0x114   :  { %v359_v59 = vadd.f32 %v300_v16, %v299_v53  ;;  %v305_v12 = vmul.f32 %v1844_v50, %v1844_v50  ;;  %353 = vadd.xlane.f32.xlu0 %v352_v17  ;;  %v306_v40 = vmul.f32 %v1847_v51, %v1847_v51  ;;  %v307_v45 = vmul.f32 %v1850_v57, %v1850_v57  ;;  %v1211_v51 = vld [vmem:[#allocation8 + $0x98] sm:$0xff]  }
 0x115   :  { %v363_v38 = vadd.f32 %v303_v47, %v302_v22  ;;  %v308_v27 = vmul.f32 %v1853_v19, %v1853_v19  ;;  %v356_v3 = vadd.f32 %v355_v58, %v298_v24  ;;  %v309_v16 = vmul.f32 %v1856_v48, %v1856_v48  ;;  %1081 = vmatpush3.bf16.msra.mxu0 %v1207_v62  ;;  %v1212_v24 = vld [vmem:[#allocation8 + $0x60] sm:$0xff]   ;;  %v1215_v58 = vld [vmem:[#allocation8 + $0x68] sm:$0xff]  }
 0x116   :  { %v360_v53 = vadd.f32 %v359_v59, %v301_v33  ;;  %v367_v50 = vadd.f32 %v306_v40, %v305_v12  ;;  %1160 = vmatprep.subr.bf16.mxu1 %v1208_v4  ;;  %v310_v22 = vmul.f32 %v1859_v54, %v1859_v54  ;;  %1082 = vmatprep.subr.bf16.mxu0 %v1209_v37  ;;  %v1213_v33 = vld [vmem:[#allocation8 + $0x20] sm:$0xff]   ;;  %v1216_v59 = vld [vmem:[#allocation8 + $0x28] sm:$0xff]   ;;  %v472_v40 = vlaneseq }
 0x117   :  { %357 = vadd.xlane.f32.xlu1 %v356_v3  ;;  %v364_v17 = vadd.f32 %v363_v38, %v304_v52  ;;  %v371_v47 = vadd.f32 %v309_v16, %v308_v27  ;;  %1161 = vmatpush3.bf16.msra.mxu1 %v1208_v4  ;;  %v1214_v62 = vld [vmem:[#allocation8 + $0xa0] sm:$0xff]   ;;  %v1217_v27 = vld [vmem:[#allocation8 + $0xa8] sm:$0xff]   ;;  %v1218_v52 = vld [vmem:[#allocation8 + $0x70] sm:$0xff]  }
 0x118   :  { %361 = vadd.xlane.f32.xlu0 %v360_v53  ;;  %v368_v19 = vadd.f32 %v367_v50, %v307_v45  ;;  %1162 = vmatprep.subr.bf16.mxu1 %v1211_v51  ;;  %v1219_v45 = vld [vmem:[#allocation8 + $0x30] sm:$0xff]   ;;  %v1221_v4 = vld [vmem:[#allocation8 + $0x78] sm:$0xff]  }
 0x119   :  { %1083 = vmatpush3.bf16.msra.mxu0 %v1210_v63  ;;  %v372_v28 = vadd.f32 %v371_v47, %v310_v22  ;;  %v1220_v50 = vld [vmem:[#allocation8 + $0xb0] sm:$0xff]  }
 0x11a   :  { %1084 = vmatprep.subr.bf16.mxu0 %v1212_v24 }
 0x11b   :  { %365 = vadd.xlane.f32.xlu1 %v364_v17  ;;  %1163 = vmatpush3.bf16.msra.mxu1 %v1211_v51  ;;  %v1223_v51 = vld [vmem:[#allocation8 + $0xb8] sm:$0xff]   ;;  %v473_v17 = vshrl.u32 %v472_v40, 7 }
 0x11c   :  { %369 = vadd.xlane.f32.xlu0 %v368_v19  ;;  %1164 = vmatprep.subr.bf16.mxu1 %v1214_v62  ;;  %v1222_v19 = vld [vmem:[#allocation8 + $0x38] sm:$0xff]  }
 0x11d   :  { %1085 = vmatpush3.bf16.msra.mxu0 %v1213_v33 }
 0x11e   :  { %1086 = vmatprep.subr.bf16.mxu0 %v1215_v58  ;;  %v482_v58 = vsub.s32 2, %v473_v17 }
 0x11f   :  { %373 = vadd.xlane.f32.xlu1 %v372_v28  ;;  %1165 = vmatpush3.bf16.msra.mxu1 %v1214_v62  ;;  %v478_v62 = vsub.s32 1, %v473_v17 }
 0x120   :  { %1166 = vmatprep.subr.bf16.mxu1 %v1217_v27 }
 0x121   :  { %1087 = vmatpush3.bf16.msra.mxu0 %v1216_v59  ;;  %v474_v59 = vsub.s32 0, %v473_v17 }
 0x122   :  { %1088 = vmatprep.subr.bf16.mxu0 %v1218_v52 }
 0x123   :  { %1167 = vmatpush3.bf16.msra.mxu1 %v1217_v27 }
 0x124   :  { %1168 = vmatprep.subr.bf16.mxu1 %v1220_v50 }
 0x125   :  { %1089 = vmatpush3.bf16.msra.mxu0 %v1219_v45  ;;  %v132_v45 = vld [vmem:[#allocation5] sm:$0x7] }
 0x126   :  { %1090 = vmatprep.subr.bf16.mxu0 %v1221_v4  ;;  %v1891_v40 = vrot.slane %v132_v45, %v482_v58 }
 0x127   :  { %1169 = vmatpush3.bf16.msra.mxu1 %v1220_v50  ;;  %v133_v50 = vld [vmem:[#allocation7] sm:$0x7] }
 0x128   :  { %1170 = vmatprep.subr.bf16.mxu1 %v1223_v51 }
 0x129   :  { %1091 = vmatpush3.bf16.msra.mxu0 %v1222_v19 }
 0x12b   :  { %1171 = vmatpush3.bf16.msra.mxu1 %v1223_v51 }
 0x188   :  { %v314_v12 = vpop.xlane.xlu0 %313 }
 0x189   :  { %v375_v38 = vmul.f32 0.0026041667, %v314_v12 }
 0x18b   :  { %v391_v37 = vadd.f32 1e-05, %v375_v38  ;;  %v1889_v38 = vrot.slane %v132_v45, %v478_v62 }
 0x18c   :  { %v318_v3 = vpop.xlane.xlu1 %317  ;;  %v322_v53 = vpop.xlane.xlu0 %321 }
 0x18d   :  { %1224 = vrsqrt.f32 %v391_v37  ;;  %v376_v16 = vmul.f32 0.0026041667, %v318_v3  ;;  %v377_v63 = vmul.f32 0.0026041667, %v322_v53  ;;  %v1893_v53 = vrot.slane %v133_v50, %v478_v62 }
 0x18f   :  { %v392_v22 = vadd.f32 1e-05, %v376_v16  ;;  %v393_v47 = vadd.f32 1e-05, %v377_v63  ;;  %v1895_v16 = vrot.slane %v132_v45, %v474_v59 }
 0x190   :  { %v326_v24 = vpop.xlane.xlu1 %325 }
 0x191   :  { %1226 = vrsqrt.f32 %v392_v22  ;;  %v378_v33 = vmul.f32 0.0026041667, %v326_v24 }
 0x192   :  { %1228 = vrsqrt.f32 %v393_v47  ;;  %v330_v28 = vpop.xlane.xlu0 %329 }
 0x193   :  { %v394_v27 = vadd.f32 1e-05, %v378_v33  ;;  %v379_v52 = vmul.f32 0.0026041667, %v330_v28  ;;  %v1900_v28 = vrot.slane %v133_v50, %v482_v58 }
 0x195   :  { %1230 = vrsqrt.f32 %v394_v27  ;;  %v395_v4 = vadd.f32 1e-05, %v379_v52  ;;  %v334_v19 = vpop.xlane.xlu1 %333  ;;  %v1902_v27 = vrot.slane %v133_v50, %v474_v59 }
 0x196   :  { %v380_v51 = vmul.f32 0.0026041667, %v334_v19  ;;  %v338_v12 = vpop.xlane.xlu0 %337 }
 0x197   :  { %v1225_v37 = vpop.eup %1224  ;;  %1232 = vrsqrt.f32 %v395_v4  ;;  %v381_v3 = vmul.f32 0.0026041667, %v338_v12 }
 0x198   :  { %v396_v63 = vadd.f32 1e-05, %v380_v51  ;;  %v424_v17 = vmul.f32 %v1225_v37, %v1653_v20  ;;  %v425_v22 = vmul.f32 %v1225_v37, %v1656_v21  ;;  %v423_v47 = vmul.f32 %v1225_v37, %v1650_v11 }
 0x199   :  { %v397_v24 = vadd.f32 1e-05, %v381_v3  ;;  %v342_v33 = vpop.xlane.xlu1 %341 }
 0x19a   :  { %1234 = vrsqrt.f32 %v396_v63  ;;  %v382_v52 = vmul.f32 0.0026041667, %v342_v33  ;;  %v488_v62 = vmul.f32 %v1889_v38, %v424_v17  ;;  %v489_v45 = vmul.f32 %v1891_v40, %v425_v22 }
 0x19b   :  { %v1227_v4 = vpop.eup %1226  ;;  %1236 = vrsqrt.f32 %v397_v24  ;;  %v487_v20 = vmul.f32 %v1895_v16, %v423_v47  ;;  %v2159_v47 = vld [vmem:[#allocation17_spill] sm:$0xff] }
 0x19c   :  { %v1229_v19 = vpop.eup %1228  ;;  %v398_v21 = vadd.f32 1e-05, %v382_v52  ;;  %v346_v51 = vpop.xlane.xlu0 %345  ;;  %v427_v11 = vmul.f32 %v1227_v4, %v1683_v55  ;;  %v552_v58 = vadd.f32 %v1893_v53, %v488_v62  ;;  %v428_v59 = vmul.f32 %v1227_v4, %v1686_v56  ;;  %v2160_v62 = vld [vmem:[#allocation18_spill] sm:$0xff] }
 0x19d   :  { %v383_v50 = vmul.f32 0.0026041667, %v346_v51  ;;  %v553_v12 = vadd.f32 %v1900_v28, %v489_v45  ;;  %v426_v37 = vmul.f32 %v1227_v4, %v1680_v46  ;;  %v551_v3 = vadd.f32 %v1902_v27, %v487_v20 }
 0x19e   :  { %1238 = vrsqrt.f32 %v398_v21  ;;  %v350_v63 = vpop.xlane.xlu1 %349  ;;  %v491_v17 = vmul.f32 %v1889_v38, %v427_v11  ;;  %v492_v22 = vmul.f32 %v1891_v40, %v428_v59  ;;  %v430_v24 = vmul.f32 %v1229_v19, %v2159_v47 }
 0x19f   :  { %v1231_v55 = vpop.eup %1230  ;;  %v399_v33 = vadd.f32 1e-05, %v383_v50  ;;  %v384_v52 = vmul.f32 0.0026041667, %v350_v63  ;;  %v490_v56 = vmul.f32 %v1895_v16, %v426_v37  ;;  %v431_v51 = vmul.f32 %v1229_v19, %v2160_v62 }
 0x1a0   :  { %v555_v45 = vadd.f32 %v1893_v53, %v491_v17  ;;  %v556_v46 = vadd.f32 %v1900_v28, %v492_v22  ;;  %v433_v4 = vmul.f32 %v1231_v55, %v1692_v7  ;;  %v494_v20 = vmul.f32 %v1889_v38, %v430_v24 }
 0x1a1   :  { %v1922_v21 = vpop.eup %1232  ;;  %1240 = vrsqrt.f32 %v399_v33  ;;  %v400_v11 = vadd.f32 1e-05, %v384_v52  ;;  %v354_v59 = vpop.xlane.xlu0 %353  ;;  %v554_v50 = vadd.f32 %v1902_v27, %v490_v56  ;;  %v434_v63 = vmul.f32 %v1231_v55, %v1695_v36 }
 0x1a2   :  { %v385_v37 = vmul.f32 0.0026041667, %v354_v59  ;;  %v600_v47 = vpack.c.bf16 %v555_v45, %v552_v58  ;;  %v601_v62 = vpack.c.bf16 %v556_v46, %v553_v12  ;;  %v497_v17 = vmul.f32 %v1889_v38, %v433_v4  ;;  %v2161_v4 = vld [vmem:[#allocation16_spill] sm:$0xff] }
 0x1a3   :  { %1242 = vrsqrt.f32 %v400_v11  ;;  %v599_v22 = vpack.c.bf16 %v554_v50, %v551_v3  ;;  %v558_v7 = vadd.f32 %v1893_v53, %v494_v20  ;;  %v495_v24 = vmul.f32 %v1891_v40, %v431_v51 }
 0x1a4   :  { %v1929_v48 = vpop.eup %1234  ;;  %v401_v33 = vadd.f32 1e-05, %v385_v37  ;;  %v358_v52 = vpop.xlane.xlu1 %357  ;;  %854 = vmatprep.mubr.bf16.mxu0 %v600_v47  ;;  %1172 = vmatprep.mubr.bf16.mxu1 %v601_v62  ;;  %v561_v56 = vadd.f32 %v1893_v53, %v497_v17  ;;  %v498_v36 = vmul.f32 %v1891_v40, %v434_v63  ;;  %v437_v58 = vmul.f32 %v1922_v21, %v1712_v2 }
 0x1a5   :  { %v1935_v12 = vpop.eup %1236  ;;  %v386_v3 = vmul.f32 0.0026041667, %v358_v52  ;;  %v362_v45 = vpop.xlane.xlu0 %361  ;;  %855 = vmatmul.mubr.bf16.vlgmr.msra.gmra.mrb[0].mxu0 %v599_v22  ;;  %v559_v51 = vadd.f32 %v1900_v28, %v495_v24  ;;  %v440_v46 = vmul.f32 %v1929_v48, %v1721_v5  ;;  %v429_v20 = vmul.f32 %v1229_v19, %v2161_v4 }
 0x1a6   :  { %1244 = vrsqrt.f32 %v401_v33  ;;  %v387_v11 = vmul.f32 0.0026041667, %v362_v45  ;;  %v603_v59 = vpack.c.bf16 %v561_v56, %v558_v7  ;;  %v562_v50 = vadd.f32 %v1900_v28, %v498_v36 }
 0x1a7   :  { %v402_v63 = vadd.f32 1e-05, %v386_v3  ;;  %v501_v2 = vmul.f32 %v1891_v40, %v437_v58  ;;  %v504_v37 = vmul.f32 %v1891_v40, %v440_v46  ;;  %v432_v47 = vmul.f32 %v1231_v55, %v1689_v61 }
 0x1a8   :  { %v1945_v62 = vpop.eup %1238  ;;  %v403_v17 = vadd.f32 1e-05, %v387_v11  ;;  %v366_v22 = vpop.xlane.xlu1 %365  ;;  %862 = vmatprep.mubr.bf16.mxu0 %v603_v59  ;;  %v604_v5 = vpack.c.bf16 %v562_v50, %v559_v51  ;;  %v493_v19 = vmul.f32 %v1895_v16, %v429_v20  ;;  %v436_v7 = vmul.f32 %v1922_v21, %v1709_v1 }
 0x1a9   :  { %1246 = vrsqrt.f32 %v402_v63  ;;  %v388_v24 = vmul.f32 0.0026041667, %v366_v22  ;;  %v370_v33 = vpop.xlane.xlu0 %369  ;;  %v565_v52 = vadd.f32 %v1900_v28, %v501_v2  ;;  %v568_v56 = vadd.f32 %v1900_v28, %v504_v37 }
 0x1aa   :  { %1248 = vrsqrt.f32 %v403_v17  ;;  %v389_v61 = vmul.f32 0.0026041667, %v370_v33  ;;  %1173 = vmatmul.mubr.bf16.vlgmr.msra.gmra.mrb[0].mxu1 %v604_v5  ;;  %v496_v55 = vmul.f32 %v1895_v16, %v432_v47  ;;  %v557_v36 = vadd.f32 %v1902_v27, %v493_v19 }
 0x1ab   :  { %v1954_v58 = vpop.eup %1240  ;;  %v404_v3 = vadd.f32 1e-05, %v388_v24  ;;  %v607_v45 = vpack.c.bf16 %v568_v56, %v565_v52  ;;  %v439_v1 = vmul.f32 %v1929_v48, %v1718_v26  ;;  %v500_v51 = vmul.f32 %v1889_v38, %v436_v7 }
 0x1ac   :  { %v405_v46 = vadd.f32 1e-05, %v389_v61  ;;  %v374_v4 = vpop.xlane.xlu1 %373  ;;  %v560_v20 = vadd.f32 %v1902_v27, %v496_v55  ;;  %v443_v11 = vmul.f32 %v1935_v12, %v1740_v10  ;;  %v446_v59 = vmul.f32 %v1945_v62, %v1749_v15 }
 0x1ad   :  { %v1964_v50 = vpop.eup %1242  ;;  %1250 = vrsqrt.f32 %v404_v3  ;;  %v390_v63 = vmul.f32 0.0026041667, %v374_v4  ;;  %1176 = vmatprep.mubr.bf16.mxu1 %v607_v45  ;;  %v503_v2 = vmul.f32 %v1889_v38, %v439_v1  ;;  %v564_v26 = vadd.f32 %v1893_v53, %v500_v51 }
 0x1ae   :  { %1252 = vrsqrt.f32 %v405_v46  ;;  %v602_v37 = vpack.c.bf16 %v560_v20, %v557_v36  ;;  %v507_v47 = vmul.f32 %v1891_v40, %v443_v11  ;;  %v510_v17 = vmul.f32 %v1891_v40, %v446_v59 }
 0x1af   :  { %v406_v22 = vadd.f32 1e-05, %v390_v63  ;;  %v567_v10 = vadd.f32 %v1893_v53, %v503_v2  ;;  %v449_v15 = vmul.f32 %v1954_v58, %v1768_v25  ;;  %v452_v5 = vmul.f32 %v1964_v50, %v1777_v23 }
 0x1b0   :  { %v1975_v19 = vpop.eup %1244  ;;  %863 = vmatmul.mubr.bf16.gmra.mrb[4].mxu0 %v602_v37  ;;  %v571_v7 = vadd.f32 %v1900_v28, %v507_v47  ;;  %v574_v24 = vadd.f32 %v1900_v28, %v510_v17  ;;  %v435_v33 = vmul.f32 %v1922_v21, %v1706_v0  ;;  %v438_v52 = vmul.f32 %v1929_v48, %v1715_v32 }
 0x1b1   :  { %1254 = vrsqrt.f32 %v406_v22  ;;  %v606_v56 = vpack.c.bf16 %v567_v10, %v564_v26  ;;  %v513_v25 = vmul.f32 %v1891_v40, %v449_v15  ;;  %v516_v61 = vmul.f32 %v1891_v40, %v452_v5 }
 0x1b2   :  { %v610_v23 = vpack.c.bf16 %v574_v24, %v571_v7  ;;  %v499_v55 = vmul.f32 %v1895_v16, %v435_v33  ;;  %v502_v36 = vmul.f32 %v1895_v16, %v438_v52  ;;  %v442_v3 = vmul.f32 %v1935_v12, %v1737_v9 }
 0x1b3   :  { %v1989_v45 = vpop.eup %1246  ;;  %870 = vmatprep.mubr.bf16.mxu0 %v606_v56  ;;  %v577_v0 = vadd.f32 %v1900_v28, %v513_v25  ;;  %v580_v32 = vadd.f32 %v1900_v28, %v516_v61  ;;  %v445_v48 = vmul.f32 %v1945_v62, %v1746_v14  ;;  %v455_v21 = vmul.f32 %v1975_v19, %v1794_v13 }
 0x1b4   :  { %v1997_v1 = vpop.eup %1248  ;;  %1177 = vmatmul.mubr.bf16.gmra.mrb[4].mxu1 %v610_v23  ;;  %v563_v51 = vadd.f32 %v1902_v27, %v499_v55  ;;  %v566_v9 = vadd.f32 %v1902_v27, %v502_v36  ;;  %v506_v46 = vmul.f32 %v1889_v38, %v442_v3  ;;  %v458_v4 = vmul.f32 %v1989_v45, %v1803_v39 }
 0x1b5   :  { %v613_v20 = vpack.c.bf16 %v580_v32, %v577_v0  ;;  %v509_v11 = vmul.f32 %v1889_v38, %v445_v48  ;;  %v519_v14 = vmul.f32 %v1891_v40, %v455_v21  ;;  %v461_v13 = vmul.f32 %v1997_v1, %v1822_v29 }
 0x1b6   :  { %v605_v59 = vpack.c.bf16 %v566_v9, %v563_v51  ;;  %v570_v63 = vadd.f32 %v1893_v53, %v506_v46  ;;  %v522_v2 = vmul.f32 %v1891_v40, %v458_v4  ;;  %v441_v26 = vmul.f32 %v1935_v12, %v1734_v8 }
 0x1b7   :  { %v2012_v37 = vpop.eup %1250  ;;  %1180 = vmatprep.mubr.bf16.mxu1 %v613_v20  ;;  %v573_v39 = vadd.f32 %v1893_v53, %v509_v11  ;;  %v583_v47 = vadd.f32 %v1900_v28, %v519_v14  ;;  %v525_v17 = vmul.f32 %v1891_v40, %v461_v13  ;;  %v444_v29 = vmul.f32 %v1945_v62, %v1743_v42 }
 0x1b8   :  { %v2019_v22 = vpop.eup %1252  ;;  %871 = vmatmul.mubr.bf16.gmra.mrb[8].mxu0 %v605_v59  ;;  %v586_v10 = vadd.f32 %v1900_v28, %v522_v2  ;;  %v464_v8 = vmul.f32 %v2012_v37, %v1831_v49  ;;  %v505_v12 = vmul.f32 %v1895_v16, %v441_v26  ;;  %v448_v15 = vmul.f32 %v1954_v58, %v1765_v60 }
 0x1b9   :  { %v609_v5 = vpack.c.bf16 %v573_v39, %v570_v63  ;;  %v508_v7 = vmul.f32 %v1895_v16, %v444_v29  ;;  %v451_v24 = vmul.f32 %v1964_v50, %v1774_v43  ;;  %v589_v33 = vadd.f32 %v1900_v28, %v525_v17 }
 0x1ba   :  { %v616_v42 = vpack.c.bf16 %v586_v10, %v583_v47  ;;  %v528_v62 = vmul.f32 %v1891_v40, %v464_v8  ;;  %v512_v52 = vmul.f32 %v1889_v38, %v448_v15  ;;  %v569_v49 = vadd.f32 %v1902_v27, %v505_v12  ;;  %v2164_v10 = vld [vmem:[#allocation19_spill] sm:$0xff]  ;;  %v2165_v15 = vld [vmem:[#allocation22_spill] sm:$0xff] }
 0x1bb   :  { %v2033_v56 = vpop.eup %1254  ;;  %878 = vmatprep.mubr.bf16.mxu0 %v609_v5  ;;  %v572_v60 = vadd.f32 %v1902_v27, %v508_v7  ;;  %v515_v25 = vmul.f32 %v1889_v38, %v451_v24  ;;  %v467_v61 = vmul.f32 %v2019_v22, %v1850_v57  ;;  %v447_v55 = vmul.f32 %v1954_v58, %v1762_v44 }
 0x1bc   :  { %1181 = vmatmul.mubr.bf16.gmra.mrb[8].mxu1 %v616_v42  ;;  %v592_v43 = vadd.f32 %v1900_v28, %v528_v62  ;;  %v470_v23 = vmul.f32 %v2033_v56, %v1859_v54  ;;  %v450_v36 = vmul.f32 %v1964_v50, %v1771_v34  ;;  %v576_v0 = vadd.f32 %v1893_v53, %v512_v52 }
 0x1bd   :  { %v608_v3 = vpack.c.bf16 %v572_v60, %v569_v49  ;;  %v579_v32 = vadd.f32 %v1893_v53, %v515_v25  ;;  %v531_v48 = vmul.f32 %v1891_v40, %v467_v61  ;;  %v454_v54 = vmul.f32 %v1975_v19, %v1791_v35  ;;  %v2167_v61 = vld [vmem:[#allocation21_spill] sm:$0xff] }
 0x1be   :  { %v619_v57 = vpack.c.bf16 %v592_v43, %v589_v33  ;;  %v534_v21 = vmul.f32 %v1891_v40, %v470_v23  ;;  %v514_v51 = vmul.f32 %v1895_v16, %v450_v36  ;;  %v457_v44 = vmul.f32 %v1989_v45, %v1800_v31 }
 0x1bf   :  { %v612_v9 = vpack.c.bf16 %v579_v32, %v576_v0  ;;  %v595_v34 = vadd.f32 %v1900_v28, %v531_v48  ;;  %v511_v50 = vmul.f32 %v1895_v16, %v447_v55  ;;  %v518_v40 = vmul.f32 %v1889_v38, %v454_v54 }
 0x1c0   :  { %1184 = vmatprep.mubr.bf16.mxu1 %v619_v57  ;;  %879 = vmatmul.mubr.bf16.gmra.mrb[12].mxu0 %v608_v3  ;;  %v598_v58 = vadd.f32 %v1900_v28, %v534_v21  ;;  %v521_v46 = vmul.f32 %v1889_v38, %v457_v44  ;;  %v578_v35 = vadd.f32 %v1902_v27, %v514_v51  ;;  %v2105_v21 = vld [vmem:[#allocation10] ss:$0 sm:$0xff] }
 0x1c1   :  { %886 = vmatprep.mubr.bf16.mxu0 %v612_v9  ;;  %v456_v20 = vmul.f32 %v1989_v45, %v1797_v30  ;;  %v463_v11 = vmul.f32 %v2012_v37, %v1828_v41  ;;  %v575_v28 = vadd.f32 %v1902_v27, %v511_v50  ;;  %v453_v14 = vmul.f32 %v1975_v19, %v1788_v18  ;;  %v2162_v18 = vld [vmem:[#allocation20_spill] sm:$0xff] }
 0x1c2   :  { %v622_v4 = vpack.c.bf16 %v598_v58, %v595_v34  ;;  %v585_v31 = vadd.f32 %v1893_v53, %v521_v46  ;;  %v582_v13 = vadd.f32 %v1893_v53, %v518_v40  ;;  %v460_v59 = vmul.f32 %v1997_v1, %v1819_v6  ;;  %v2163_v6 = vld [vmem:[#allocation24_spill] sm:$0xff] }
 0x1c3   :  { %v611_v63 = vpack.c.bf16 %v578_v35, %v575_v28  ;;  %v520_v2 = vmul.f32 %v1895_v16, %v456_v20  ;;  %v527_v45 = vmul.f32 %v1889_v38, %v463_v11  ;;  %v517_v41 = vmul.f32 %v1895_v16, %v453_v14 }
 0x1c4   :  { %1185 = vmatmul.mubr.bf16.gmra.mrb[12].mxu1 %v622_v4  ;;  %v615_v30 = vpack.c.bf16 %v585_v31, %v582_v13  ;;  %v524_v26 = vmul.f32 %v1889_v38, %v460_v59  ;;  %v462_v19 = vmul.f32 %v2012_v37, %v2162_v18  ;;  %v469_v17 = vmul.f32 %v2033_v56, %v2163_v6 }
 0x1c5   :  { %v584_v39 = vadd.f32 %v1902_v27, %v520_v2  ;;  %v591_v47 = vadd.f32 %v1893_v53, %v527_v45  ;;  %v581_v29 = vadd.f32 %v1902_v27, %v517_v41  ;;  %v459_v8 = vmul.f32 %v1997_v1, %v2164_v10  ;;  %v2166_v1 = vld [vmem:[#allocation23_spill] sm:$0xff] }
 0x1c6   :  { %v588_v12 = vadd.f32 %v1893_v53, %v524_v26  ;;  %v466_v5 = vmul.f32 %v2019_v22, %v2165_v15  ;;  %v526_v24 = vmul.f32 %v1895_v16, %v462_v19  ;;  %v533_v37 = vmul.f32 %v1889_v38, %v469_v17 }
 0x1c7   :  { %v614_v7 = vpack.c.bf16 %v584_v39, %v581_v29  ;;  %v523_v62 = vmul.f32 %v1895_v16, %v459_v8  ;;  %v468_v49 = vmul.f32 %v2033_v56, %v2166_v1  ;;  %v465_v43 = vmul.f32 %v2019_v22, %v2167_v61 }
 0x1c8   :  { %887 = vmatmul.mubr.bf16.gmra.mrb[16].mxu0 %v611_v63  ;;  %v618_v42 = vpack.c.bf16 %v591_v47, %v588_v12  ;;  %v530_v33 = vmul.f32 %v1889_v38, %v466_v5  ;;  %v590_v52 = vadd.f32 %v1902_v27, %v526_v24  ;;  %v597_v60 = vadd.f32 %v1893_v53, %v533_v37 }
 0x1c9   :  { %894 = vmatprep.mubr.bf16.mxu0 %v615_v30  ;;  %v587_v25 = vadd.f32 %v1902_v27, %v523_v62  ;;  %v532_v36 = vmul.f32 %v1895_v16, %v468_v49  ;;  %v529_v38 = vmul.f32 %v1895_v16, %v465_v43 }
 0x1ca   :  { %v594_v23 = vadd.f32 %v1893_v53, %v530_v33 }
 0x1cb   :  { %v617_v55 = vpack.c.bf16 %v590_v52, %v587_v25  ;;  %v596_v0 = vadd.f32 %v1902_v27, %v532_v36  ;;  %v593_v56 = vadd.f32 %v1902_v27, %v529_v38 }
 0x1cc   :  { %v621_v3 = vpack.c.bf16 %v597_v60, %v594_v23 }
 0x1cd   :  { %v620_v32 = vpack.c.bf16 %v596_v0, %v593_v56 }
 0x1d0   :  { %895 = vmatmul.mubr.bf16.gmra.mrb[20].mxu0 %v614_v7 }
 0x1d1   :  { %902 = vmatprep.mubr.bf16.mxu0 %v618_v42 }
 0x1d8   :  { %903 = vmatmul.mubr.bf16.gmra.mrb[24].mxu0 %v617_v55 }
 0x1d9   :  { %910 = vmatprep.mubr.bf16.mxu0 %v621_v3 }
 0x1e0   :  { %911 = vmatmul.mubr.bf16.gmra.mrb[28].mxu0 %v620_v32 }
 0x278   :  { %v1092_v48 = vpop.f32.mrb[0].mxu0 }
 0x279   :  { %v1093_v57 = vpop.f32.mrb[1].mxu0 }
 0x27a   :  { %v1094_v22 = vadd.f32 %v1093_v57, %v1092_v48  ;;  %v1095_v53 = vpop.f32.mrb[2].mxu0 }
 0x27b   :  { %v1096_v51 = vpop.f32.mrb[3].mxu0 }
 0x27c   :  { %v1097_v54 = vadd.f32 %v1096_v51, %v1095_v53  ;;  %v857_v9 = vadd.f32 %v1094_v22, %v2105_v21 }
 0x27d   :  { %v1174_v44 = vpop.f32.mrb[0].mxu1 }
 0x27e   :  { %v953_v34 = vpop.f32.mrb[1].mxu1  ;;  %v860_v16 = vadd.f32 %v1097_v54, %v2105_v21 }
 0x27f   :  { %v954_v58 = vadd.f32 %v953_v34, %v857_v9  ;;  %v1175_v50 = vpop.f32.mrb[2].mxu1 }
 0x280   :  { %v956_v40 = vpop.f32.mrb[3].mxu1 }
 0x281   :  { %1016 = vst [vmem:[#allocation11] sm:$0xff] %v954_v58  ;;  %v957_v27 = vadd.f32 %v956_v40, %v860_v16 }
 0x283   :  { %1017 = vst [vmem:[#allocation11 + $0x8] sm:$0xff] %v957_v27  ;;  %v1098_v46 = vpop.f32.mrb[4].mxu0 }
 0x284   :  { %v1099_v4 = vpop.f32.mrb[5].mxu0 }
 0x285   :  { %v1100_v35 = vadd.f32 %v1099_v4, %v1098_v46  ;;  %v1101_v20 = vpop.f32.mrb[6].mxu0 }
 0x286   :  { %v1102_v31 = vpop.f32.mrb[7].mxu0 }
 0x287   :  { %v865_v11 = vadd.f32 %v1100_v35, %v2105_v21  ;;  %v1103_v28 = vadd.f32 %v1102_v31, %v1101_v20  ;;  %v1178_v14 = vpop.f32.mrb[4].mxu1 }
 0x288   :  { %v969_v13 = vpop.f32.mrb[5].mxu1 }
 0x289   :  { %v962_v59 = vadd.f32 %v1174_v44, %v865_v11  ;;  %v868_v63 = vadd.f32 %v1103_v28, %v2105_v21  ;;  %v1179_v2 = vpop.f32.mrb[6].mxu1 }
 0x28a   :  { %v972_v30 = vpop.f32.mrb[7].mxu1 }
 0x28b   :  { %1018 = vst [vmem:[#allocation11 + $0x10] sm:$0xff] %v962_v59  ;;  %v965_v45 = vadd.f32 %v1175_v50, %v868_v63  ;;  %v1104_v41 = vpop.f32.mrb[8].mxu0 }
 0x28c   :  { %v1105_v26 = vpop.f32.mrb[9].mxu0 }
 0x28d   :  { %1019 = vst [vmem:[#allocation11 + $0x18] sm:$0xff] %v965_v45  ;;  %v1106_v39 = vadd.f32 %v1105_v26, %v1104_v41  ;;  %v1107_v18 = vpop.f32.mrb[10].mxu0 }
 0x28e   :  { %v1108_v19 = vpop.f32.mrb[11].mxu0 }
 0x28f   :  { %v873_v47 = vadd.f32 %v1106_v39, %v2105_v21  ;;  %v1109_v6 = vadd.f32 %v1108_v19, %v1107_v18  ;;  %v1182_v17 = vpop.f32.mrb[8].mxu1 }
 0x290   :  { %v985_v29 = vpop.f32.mrb[9].mxu1 }
 0x291   :  { %v970_v10 = vadd.f32 %v969_v13, %v873_v47  ;;  %v876_v8 = vadd.f32 %v1109_v6, %v2105_v21  ;;  %v1183_v12 = vpop.f32.mrb[10].mxu1 }
 0x292   :  { %v988_v15 = vpop.f32.mrb[11].mxu1 }
 0x293   :  { %1020 = vst [vmem:[#allocation11 + $0x20] sm:$0xff] %v970_v10  ;;  %v973_v5 = vadd.f32 %v972_v30, %v876_v8  ;;  %v1110_v7 = vpop.f32.mrb[12].mxu0 }
 0x294   :  { %v1111_v24 = vpop.f32.mrb[13].mxu0 }
 0x295   :  { %1021 = vst [vmem:[#allocation11 + $0x28] sm:$0xff] %v973_v5  ;;  %v1112_v42 = vadd.f32 %v1111_v24, %v1110_v7  ;;  %v1113_v37 = vpop.f32.mrb[14].mxu0 }
 0x296   :  { %v1114_v62 = vpop.f32.mrb[15].mxu0 }
 0x297   :  { %v881_v33 = vadd.f32 %v1112_v42, %v2105_v21  ;;  %v1115_v52 = vadd.f32 %v1114_v62, %v1113_v37  ;;  %v1186_v1 = vpop.f32.mrb[12].mxu1 }
 0x298   :  { %v1001_v49 = vpop.f32.mrb[13].mxu1 }
 0x299   :  { %v978_v60 = vadd.f32 %v1178_v14, %v881_v33  ;;  %v884_v25 = vadd.f32 %v1115_v52, %v2105_v21  ;;  %v1187_v61 = vpop.f32.mrb[14].mxu1 }
 0x29a   :  { %v1004_v43 = vpop.f32.mrb[15].mxu1 }
 0x29b   :  { %1022 = vst [vmem:[#allocation11 + $0x30] sm:$0xff] %v978_v60  ;;  %v981_v23 = vadd.f32 %v1179_v2, %v884_v25  ;;  %v1116_v55 = vpop.f32.mrb[16].mxu0 }
 0x29c   :  { %v1117_v36 = vpop.f32.mrb[17].mxu0 }
 0x29d   :  { %1023 = vst [vmem:[#allocation11 + $0x38] sm:$0xff] %v981_v23  ;;  %v1118_v3 = vadd.f32 %v1117_v36, %v1116_v55  ;;  %v1119_v38 = vpop.f32.mrb[18].mxu0 }
 0x29e   :  { %v1120_v0 = vpop.f32.mrb[19].mxu0 }
 0x29f   :  { %v889_v56 = vadd.f32 %v1118_v3, %v2105_v21  ;;  %v1121_v32 = vadd.f32 %v1120_v0, %v1119_v38 }
 0x2a1   :  { %v986_v48 = vadd.f32 %v985_v29, %v889_v56  ;;  %v892_v57 = vadd.f32 %v1121_v32, %v2105_v21 }
 0x2a3   :  { %1024 = vst [vmem:[#allocation11 + $0x40] sm:$0xff] %v986_v48  ;;  %v989_v22 = vadd.f32 %v988_v15, %v892_v57  ;;  %v1122_v53 = vpop.f32.mrb[20].mxu0 }
 0x2a4   :  { %v1123_v51 = vpop.f32.mrb[21].mxu0 }
 0x2a5   :  { %1025 = vst [vmem:[#allocation11 + $0x48] sm:$0xff] %v989_v22  ;;  %v1124_v54 = vadd.f32 %v1123_v51, %v1122_v53  ;;  %v1125_v9 = vpop.f32.mrb[22].mxu0 }
 0x2a6   :  { %v1126_v44 = vpop.f32.mrb[23].mxu0 }
 0x2a7   :  { %v897_v34 = vadd.f32 %v1124_v54, %v2105_v21  ;;  %v1127_v16 = vadd.f32 %v1126_v44, %v1125_v9 }
 0x2a9   :  { %v994_v58 = vadd.f32 %v1182_v17, %v897_v34  ;;  %v900_v50 = vadd.f32 %v1127_v16, %v2105_v21 }
 0x2ab   :  { %1026 = vst [vmem:[#allocation11 + $0x50] sm:$0xff] %v994_v58  ;;  %v997_v40 = vadd.f32 %v1183_v12, %v900_v50  ;;  %v1128_v27 = vpop.f32.mrb[24].mxu0 }
 0x2ac   :  { %v1129_v46 = vpop.f32.mrb[25].mxu0 }
 0x2ad   :  { %1027 = vst [vmem:[#allocation11 + $0x58] sm:$0xff] %v997_v40  ;;  %v1130_v4 = vadd.f32 %v1129_v46, %v1128_v27  ;;  %v1131_v35 = vpop.f32.mrb[26].mxu0 }
 0x2ae   :  { %v1132_v20 = vpop.f32.mrb[27].mxu0 }
 0x2af   :  { %v905_v31 = vadd.f32 %v1130_v4, %v2105_v21  ;;  %v1133_v11 = vadd.f32 %v1132_v20, %v1131_v35 }
 0x2b1   :  { %v1002_v28 = vadd.f32 %v1001_v49, %v905_v31  ;;  %v908_v14 = vadd.f32 %v1133_v11, %v2105_v21 }
 0x2b3   :  { %1028 = vst [vmem:[#allocation11 + $0x60] sm:$0xff] %v1002_v28  ;;  %v1005_v13 = vadd.f32 %v1004_v43, %v908_v14  ;;  %v1134_v59 = vpop.f32.mrb[28].mxu0 }
 0x2b4   :  { %v1135_v63 = vpop.f32.mrb[29].mxu0 }
 0x2b5   :  { %1029 = vst [vmem:[#allocation11 + $0x68] sm:$0xff] %v1005_v13  ;;  %v1136_v2 = vadd.f32 %v1135_v63, %v1134_v59  ;;  %v1137_v30 = vpop.f32.mrb[30].mxu0 }
 0x2b6   :  { %v1138_v45 = vpop.f32.mrb[31].mxu0 }
 0x2b7   :  { %v913_v41 = vadd.f32 %v1136_v2, %v2105_v21  ;;  %v1139_v26 = vadd.f32 %v1138_v45, %v1137_v30 }
 0x2b9   :  { %v1010_v39 = vadd.f32 %v1186_v1, %v913_v41  ;;  %v916_v18 = vadd.f32 %v1139_v26, %v2105_v21 }
 0x2bb   :  { %1030 = vst [vmem:[#allocation11 + $0x70] sm:$0xff] %v1010_v39  ;;  %v1013_v19 = vadd.f32 %v1187_v61, %v916_v18 }
 0x2bd   :  { %1031 = vst [vmem:[#allocation11 + $0x78] sm:$0xff] %v1013_v19 }
 0x2be   :  { %1377 = shalt.err (!%p1374_p2)
}
 0x2bf   :  { %s1378_s8 = scalar_lea.hbm %s2140_s5, 2048 }
 0x2c0   :  { %p1379_p3 = scmp.ne.s32.totalorder %s2140_s5, %s1378_s8  ;;  %p1382_p4 = scmp.lt.u32.totalorder %s1378_s8, %s2140_s5 }
 0x2c2   :  { %p1384_p5 = pnand %p1382_p4, %p1379_p3 }
 0x2c4   :  { %1387 = shalt.err (!%p1384_p5)
}
 0x2c5   :  { %s1406_s13 = smov 128   ;;  %s1407_s14 = smov 8  }
 0x2c6   :  { %1043 = dma.vmem_to_hbm [thread:$0]  %s1038_s21, 2048, %s2140_s5, [#allocation4], %s1406_s13, %s1406_s13, %s1407_s14  }
 0x2c7   :  { %1394 = dma.done.wait [#allocation4], 2048  }
 0x2c8   :  { %1395 = vsyncadd [#allocation4], 4294965248 }
 0x2c9   :  { %1047 = vsyncpa [#allocation3], 1 }
 0x2ca   :  { %1048 = vsyncpa [#allocation6], 1 }
 0x2cb   :  { %1049 = vsyncpa [#allocation9], 1 }
 0x2cc   :  { %1050 = vsyncpa [#allocation4], 1 }

// kernel: _lambda_.7
= control target key start
LH: loop header
LB: loop body
LE: loop exit
PB: predicated region body
PF: predicated region fallthrough
CT: control target
= control target key end

     0   :  { %s18099_s0 = inlined_call_operand.hbm [shape: f32[2,64,384], index: 0, kind: input, shape index: {}]   ;;  %s18100_s1 = inlined_call_operand.hbm [shape: f32[1,384], index: 1, kind: input, shape index: {}]   ;;  %s18101_s2 = inlined_call_operand.hbm [shape: f32[1,384], index: 2, kind: input, shape index: {}]   ;;  %s18102_s3 = inlined_call_operand.hbm [shape: bf16[384,768], index: 3, kind: input, shape index: {}]   ;;  %s18103_s4 = inlined_call_operand.hbm [shape: bf16[384,384], index: 4, kind: input, shape index: {}]   ;;  %s18104_s5 = inlined_call_operand.hbm [shape: f32[1,384], index: 5, kind: input, shape index: {}]   ;;  %s18105_s6 = inlined_call_operand.hbm [shape: f32[1,384], index: 6, kind: input, shape index: {}]   ;;  %s18106_s7 = inlined_call_operand.hbm [shape: f32[1,384], index: 7, kind: input, shape index: {}]   ;;  %s18107_s8 = inlined_call_operand.hbm [shape: bf16[384,1536], index: 8, kind: input, shape index: {}]   ;;  %s18108_s9 = inlined_call_operand.hbm [shape: f32[1,1536], index: 9, kind: input, shape index: {}]   ;;  %s18109_s10 = inlined_call_operand.hbm [shape: bf16[1536,384], index: 10, kind: input, shape index: {}]   ;;  %s18110_s11 = inlined_call_operand.hbm [shape: f32[1,384], index: 11, kind: input, shape index: {}]   ;;  %s18111_s12 = inlined_call_operand.hbm [shape: f32[2,64,384], index: 12, kind: output, shape index: {}]  }
   0x1   :  { %18134 = sst [smem:[#allocation43_spill]] %s18100_s1 }
   0x2   :  { %18135 = sst [smem:[#allocation44_spill]] %s18101_s2 }
   0x3   :  { %18136 = sst [smem:[#allocation45_spill]] %s18102_s3 }
   0x4   :  { %18137 = sst [smem:[#allocation46_spill]] %s18104_s5 }
   0x5   :  { %18138 = sst [smem:[#allocation47_spill]] %s18111_s12 }
   0x6   :  { %17 = vsyncpa [#allocation3], 0 }
   0x7   :  { %19 = vsyncpa [#allocation3 + $0x1], 0 }
   0x8   :  { %20 = vsyncpa [#allocation6], 0 }
   0x9   :  { %21 = vsyncpa [#allocation9], 0 }
   0xa   :  { %22 = vsyncpa [#allocation12], 0 }
   0xb   :  { %23 = vsyncpa [#allocation15], 0 }
   0xc   :  { %24 = vsyncpa [#allocation18], 0 }
   0xd   :  { %25 = vsyncpa [#allocation21], 0 }
   0xe   :  { %26 = vsyncpa [#allocation4], 0 }
   0xf   :  { %28 = vsyncpa [#allocation4 + $0x1], 0  ;;  %s15681_s21 = smov 0   ;;  %s15683_s22 = smov 0  }
  0x10   :  { %s15685_s23 = smov 0   ;;  %s15687_s24 = smov 0  }
  0x11 LB: > { %s15592_s25 = smov [#allocation5]   ;;  %s15702_s27 = sadd.s32 4294967295, %s15590_s24   ;;  %s15590_s24 = sphi %s15687_s24, %s18200_s24   ;;  %s15586_s23 = sphi %s15685_s23, %s18199_s23   ;;  %s15582_s22 = sphi %s15683_s22, %s18198_s22   ;;  %s15578_s21 = sphi %s15681_s21, %s18197_s21  }
  0x12   : > { %s335_s26 = sshll.u32 %s15592_s25, 4  ;;  %p11521_p0 = scmp.ge.s32.totalorder %s15590_s24, 1  ;;  %s15707_s26 = int_to_ptr.vmem [resolvable:$true] %s335_s26 }
  0x13   : > { %p18116_p1 = scmp.eq.s32.totalorder %s15702_s27, 0  ;;  %p322_p2 = scmp.lt.s32.totalorder %s15590_s24, 3 }
  0x14   : > { %s15593_s29 = smov [#allocation8]   ;;  %s15594_s14 = smov [#allocation11]  }
  0x15   : > { %p15709_p3 = pnand %p11521_p0, %p322_p2  ;;  %s356_s30 = sshll.u32 %s15593_s29, 4  ;;  %s15716_s30 = int_to_ptr.vmem [resolvable:$true] %s356_s30 }
  0x16   : > { %s383_s15 = sshll.u32 %s15594_s14, 4  ;;  %s18142_s1 = sld [smem:[#allocation43_spill]]  ;;  %s15724_s15 = int_to_ptr.vmem [resolvable:$true] %s383_s15 }
  0x17   : > { %s18139_s28 = scalar_select %p15709_p3, 1, 0 }
  0x18   : > { %p13642_p5 = pneg %p15709_p3 }
  0x19   : > { %18140 = sst [smem:[#allocation31_spill]] %s18139_s28 }
  0x1a   : > { %p15720_p6 = pnand %p13642_p5, %p18116_p1 }
  0x1c   : > { %s15162_s18 = scalar_lea.hbm %s18142_s1, 48  ;;  %p15734_p8 = pneg %p15720_p6 }
  0x1d   : > { %p15163_p7 = scmp.ne.s32.totalorder %s18142_s1, %s15162_s18  ;;  %p15169_p11 = scmp.lt.u32.totalorder %s15162_s18, %s18142_s1 }
  0x1f   : > { %p15165_p9 = pnand %p15734_p8, %p15163_p7 }
  0x21   : > { %p15166_p10 = pneg %p15165_p9 }
  0x23   : > { %p15171_p12 = pnand %p15169_p11, %p15166_p10 }
  0x25   : > { %15174 = shalt.err (!%p15171_p12)
}
  0x26   : > { %s15175_s16 = scalar_lea.vmem %s15707_s26, 48  ;;  %s15182_s17 = scalar_lea.vmem %s15707_s26, 64 }
  0x27   : > { %p15176_p13 = scmp.ne.s32.totalorder %s15707_s26, %s15175_s16  ;;  %p15183_p5 = scmp.lt.s32.totalorder %s15707_s26, %s15707_s26 }
  0x28   : > { %p15184_p7 = scmp.lt.s32.totalorder %s15182_s17, %s15175_s16 }
  0x29   : > { %p15178_p0 = pnand %p15176_p13, %p15734_p8 }
  0x2a   : > { %p15185_p9 = por %p15184_p7, %p15183_p5 }
  0x2b   : > { %p15179_p2 = pneg %p15178_p0 }
  0x2d   : > { %p15186_p4 = pnand %p15185_p9, %p15179_p2 }
  0x2f   : > { %15189 = shalt.err (!%p15186_p4)
}
  0x30   : > { %13645 = dma.hbm_to_vmem [thread:$0]  (!%p15720_p6), %s18142_s1, 48, %s15707_s26, [#allocation6]  }
  0x31   : > { %s18144_s3 = sld [smem:[#allocation45_spill]] }
  0x37   : > { %s15190_s14 = scalar_lea.hbm %s18144_s3, 18432 }
  0x38   : > { %p15191_p10 = scmp.ne.s32.totalorder %s18144_s3, %s15190_s14  ;;  %p15197_p4 = scmp.lt.u32.totalorder %s15190_s14, %s18144_s3 }
  0x3a   : > { %p15193_p11 = pnand %p15191_p10, %p15734_p8 }
  0x3c   : > { %p15194_p12 = pneg %p15193_p11 }
  0x3e   : > { %p15199_p13 = pnand %p15197_p4, %p15194_p12 }
  0x40   : > { %15202 = shalt.err (!%p15199_p13)
}
  0x41   : > { %s15203_s26 = scalar_lea.vmem %s15716_s30, 18432  ;;  %p15211_p7 = scmp.lt.s32.totalorder %s15716_s30, %s15716_s30 }
  0x42   : > { %p15204_p0 = scmp.ne.s32.totalorder %s15716_s30, %s15203_s26  ;;  %p15212_p9 = scmp.lt.s32.totalorder %s15203_s26, %s15203_s26 }
  0x44   : > { %p15206_p2 = pnand %p15204_p0, %p15734_p8  ;;  %p15213_p10 = por %p15212_p9, %p15211_p7 }
  0x46   : > { %p15207_p5 = pneg %p15206_p2 }
  0x48   : > { %p15214_p11 = pnand %p15213_p10, %p15207_p5 }
  0x4a   : > { %15217 = shalt.err (!%p15214_p11)
}
  0x4b   : > { %s18114_s12 = smov 384   ;;  %s18115_s28 = smov 24  }
  0x4c   : > { %13651 = dma.hbm_to_vmem [thread:$0]  (!%p15720_p6), %s18144_s3, 18432, %s15716_s30, [#allocation9], %s18114_s12, %s18114_s12, %s18115_s28  }
  0x4d   : > { %s18145_s5 = sld [smem:[#allocation46_spill]] }
  0x53   : > { %s15218_s14 = scalar_lea.hbm %s18145_s5, 48 }
  0x54   : > { %p15219_p12 = scmp.ne.s32.totalorder %s18145_s5, %s15218_s14  ;;  %p15225_p0 = scmp.lt.u32.totalorder %s15218_s14, %s18145_s5 }
  0x56   : > { %p15221_p4 = pnand %p15219_p12, %p15734_p8 }
  0x58   : > { %p15222_p13 = pneg %p15221_p4 }
  0x5a   : > { %p15227_p2 = pnand %p15225_p0, %p15222_p13 }
  0x5c   : > { %15230 = shalt.err (!%p15227_p2)
}
  0x5d   : > { %s15231_s30 = scalar_lea.vmem %s15724_s15, 48  ;;  %s15238_s18 = scalar_lea.vmem %s15724_s15, 64 }
  0x5e   : > { %p15232_p5 = scmp.ne.s32.totalorder %s15724_s15, %s15231_s30  ;;  %p15239_p10 = scmp.lt.s32.totalorder %s15724_s15, %s15724_s15 }
  0x5f   : > { %p15240_p11 = scmp.lt.s32.totalorder %s15238_s18, %s15231_s30 }
  0x60   : > { %p15234_p7 = pnand %p15232_p5, %p15734_p8 }
  0x61   : > { %p15241_p12 = por %p15240_p11, %p15239_p10 }
  0x62   : > { %p15235_p9 = pneg %p15234_p7 }
  0x64   : > { %p15242_p4 = pnand %p15241_p12, %p15235_p9 }
  0x66   : > { %15245 = shalt.err (!%p15242_p4)
}
  0x67   : > { %13657 = dma.hbm_to_vmem [thread:$0]  (!%p15720_p6), %s18145_s5, 48, %s15724_s15, [#allocation12]  }
  0x68   : > { %s15597_s20 = smov [#allocation14]   ;;  %s15598_s14 = smov [#allocation17]  }
  0x69   : > { %s405_s29 = sshll.u32 %s15597_s20, 4  ;;  %s429_s16 = sshll.u32 %s15598_s14, 4  ;;  %s406_s29 = int_to_ptr.vmem [resolvable:$true] %s405_s29  ;;  %s430_s16 = int_to_ptr.vmem [resolvable:$true] %s429_s16 }
  0x6a   : > { %s15246_s30 = scalar_lea.hbm %s18106_s7, 48 }
  0x6b   : > { %p15247_p13 = scmp.ne.s32.totalorder %s18106_s7, %s15246_s30  ;;  %p15253_p5 = scmp.lt.u32.totalorder %s15246_s30, %s18106_s7 }
  0x6d   : > { %p15249_p0 = pnand %p15247_p13, %p15734_p8 }
  0x6f   : > { %p15250_p2 = pneg %p15249_p0 }
  0x71   : > { %p15255_p7 = pnand %p15253_p5, %p15250_p2 }
  0x73   : > { %15258 = shalt.err (!%p15255_p7)
}
  0x74   : > { %s15259_s15 = scalar_lea.vmem %s406_s29, 48  ;;  %s15266_s19 = scalar_lea.vmem %s406_s29, 64 }
  0x75   : > { %p15260_p9 = scmp.ne.s32.totalorder %s406_s29, %s15259_s15  ;;  %p15267_p12 = scmp.lt.s32.totalorder %s406_s29, %s406_s29 }
  0x76   : > { %p15268_p4 = scmp.lt.s32.totalorder %s15266_s19, %s15259_s15 }
  0x77   : > { %p15262_p10 = pnand %p15260_p9, %p15734_p8 }
  0x78   : > { %p15269_p1 = por %p15268_p4, %p15267_p12 }
  0x79   : > { %p15263_p11 = pneg %p15262_p10 }
  0x7b   : > { %p15270_p3 = pnand %p15269_p1, %p15263_p11 }
  0x7d   : > { %15273 = shalt.err (!%p15270_p3)
}
  0x7e   : > { %13663 = dma.hbm_to_vmem [thread:$0]  (!%p15720_p6), %s18106_s7, 48, %s406_s29, [#allocation15]  }
  0x7f   : > { %s15274_s17 = scalar_lea.hbm %s18108_s9, 192 }
  0x80   : > { %p15275_p13 = scmp.ne.s32.totalorder %s18108_s9, %s15274_s17  ;;  %p15281_p3 = scmp.lt.u32.totalorder %s15274_s17, %s18108_s9 }
  0x82   : > { %p15277_p0 = pnand %p15275_p13, %p15734_p8 }
  0x84   : > { %p15278_p1 = pneg %p15277_p0 }
  0x86   : > { %p15283_p2 = pnand %p15281_p3, %p15278_p1 }
  0x88   : > { %15286 = shalt.err (!%p15283_p2)
}
  0x89   : > { %s15287_s15 = scalar_lea.vmem %s430_s16, 192  ;;  %p15295_p10 = scmp.lt.s32.totalorder %s430_s16, %s430_s16 }
  0x8a   : > { %p15288_p5 = scmp.ne.s32.totalorder %s430_s16, %s15287_s15  ;;  %p15296_p11 = scmp.lt.s32.totalorder %s15287_s15, %s15287_s15 }
  0x8c   : > { %p15290_p7 = pnand %p15288_p5, %p15734_p8  ;;  %p15297_p12 = por %p15296_p11, %p15295_p10 }
  0x8e   : > { %p15291_p9 = pneg %p15290_p7 }
  0x90   : > { %p15298_p4 = pnand %p15297_p12, %p15291_p9 }
  0x92   : > { %15301 = shalt.err (!%p15298_p4)
}
  0x93   : > { %13669 = dma.hbm_to_vmem [thread:$0]  (!%p15720_p6), %s18108_s9, 192, %s430_s16, [#allocation18]  }
  0x94   : > { %s15599_s12 = smov [#allocation7]   ;;  %s15600_s28 = smov [#allocation10]  }
  0x95   : > { %s346_s20 = sshll.u32 %s15599_s12, 4  ;;  %s369_s14 = sshll.u32 %s15600_s28, 4  ;;  %s347_s20 = int_to_ptr.vmem [resolvable:$true] %s346_s20  ;;  %s370_s14 = int_to_ptr.vmem [resolvable:$true] %s369_s14 }
  0x96   : > { %s18146_s2 = sld [smem:[#allocation44_spill]] }
  0x9c   : > { %s15302_s30 = scalar_lea.hbm %s18146_s2, 48 }
  0x9d   : > { %p15303_p13 = scmp.ne.s32.totalorder %s18146_s2, %s15302_s30  ;;  %p15309_p3 = scmp.lt.u32.totalorder %s15302_s30, %s18146_s2 }
  0x9f   : > { %p15305_p0 = pnand %p15303_p13, %p15734_p8 }
  0xa1   : > { %p15306_p1 = pneg %p15305_p0 }
  0xa3   : > { %p15311_p2 = pnand %p15309_p3, %p15306_p1 }
  0xa5   : > { %15314 = shalt.err (!%p15311_p2)
}
  0xa6   : > { %s15315_s16 = scalar_lea.vmem %s347_s20, 48  ;;  %s15322_s19 = scalar_lea.vmem %s347_s20, 64 }
  0xa7   : > { %p15316_p5 = scmp.ne.s32.totalorder %s347_s20, %s15315_s16  ;;  %p15323_p10 = scmp.lt.s32.totalorder %s347_s20, %s347_s20 }
  0xa8   : > { %p15324_p11 = scmp.lt.s32.totalorder %s15322_s19, %s15315_s16 }
  0xa9   : > { %p15318_p7 = pnand %p15316_p5, %p15734_p8 }
  0xaa   : > { %p15325_p12 = por %p15324_p11, %p15323_p10 }
  0xab   : > { %p15319_p9 = pneg %p15318_p7 }
  0xad   : > { %p15326_p4 = pnand %p15325_p12, %p15319_p9 }
  0xaf   : > { %15329 = shalt.err (!%p15326_p4)
}
  0xb0   : > { %13648 = dma.hbm_to_vmem [thread:$0]  (!%p15720_p6), %s18146_s2, 48, %s347_s20, [#allocation6]  }
  0xb1   : > { %s15330_s30 = scalar_lea.hbm %s18103_s4, 9216 }
  0xb2   : > { %p15331_p13 = scmp.ne.s32.totalorder %s18103_s4, %s15330_s30  ;;  %p15337_p3 = scmp.lt.u32.totalorder %s15330_s30, %s18103_s4 }
  0xb4   : > { %p15333_p0 = pnand %p15331_p13, %p15734_p8 }
  0xb6   : > { %p15334_p1 = pneg %p15333_p0 }
  0xb8   : > { %p15339_p2 = pnand %p15337_p3, %p15334_p1 }
  0xba   : > { %15342 = shalt.err (!%p15339_p2)
}
  0xbb   : > { %s15343_s16 = scalar_lea.vmem %s370_s14, 9216  ;;  %p15351_p10 = scmp.lt.s32.totalorder %s370_s14, %s370_s14 }
  0xbc   : > { %p15344_p5 = scmp.ne.s32.totalorder %s370_s14, %s15343_s16  ;;  %p15352_p11 = scmp.lt.s32.totalorder %s15343_s16, %s15343_s16 }
  0xbe   : > { %p15346_p7 = pnand %p15344_p5, %p15734_p8  ;;  %p15353_p12 = por %p15352_p11, %p15351_p10 }
  0xc0   : > { %p15347_p9 = pneg %p15346_p7 }
  0xc2   : > { %p15354_p4 = pnand %p15353_p12, %p15347_p9 }
  0xc4   : > { %15357 = shalt.err (!%p15354_p4)
}
  0xc5   : > { %s18118_s20 = smov 192   ;;  %s18119_s19 = smov 12  }
  0xc6   : > { %13654 = dma.hbm_to_vmem [thread:$0]  (!%p15720_p6), %s18103_s4, 9216, %s370_s14, [#allocation9], %s18118_s20, %s18118_s20, %s18119_s19  }
  0xc7   : > { %s15603_s17 = smov [#allocation13]   ;;  %s15604_s30 = smov [#allocation16]  }
  0xc8   : > { %s394_s26 = sshll.u32 %s15603_s17, 4  ;;  %s415_s18 = sshll.u32 %s15604_s30, 4  ;;  %s395_s26 = int_to_ptr.vmem [resolvable:$true] %s394_s26  ;;  %s416_s18 = int_to_ptr.vmem [resolvable:$true] %s415_s18 }
  0xc9   : > { %s15358_s29 = scalar_lea.hbm %s18105_s6, 48 }
  0xca   : > { %p15359_p13 = scmp.ne.s32.totalorder %s18105_s6, %s15358_s29  ;;  %p15365_p3 = scmp.lt.u32.totalorder %s15358_s29, %s18105_s6 }
  0xcc   : > { %p15361_p0 = pnand %p15359_p13, %p15734_p8 }
  0xce   : > { %p15362_p1 = pneg %p15361_p0 }
  0xd0   : > { %p15367_p2 = pnand %p15365_p3, %p15362_p1 }
  0xd2   : > { %15370 = shalt.err (!%p15367_p2)
}
  0xd3   : > { %s15371_s14 = scalar_lea.vmem %s395_s26, 48  ;;  %s15378_s12 = scalar_lea.vmem %s395_s26, 64 }
  0xd4   : > { %p15372_p5 = scmp.ne.s32.totalorder %s395_s26, %s15371_s14  ;;  %p15379_p10 = scmp.lt.s32.totalorder %s395_s26, %s395_s26 }
  0xd5   : > { %p15380_p11 = scmp.lt.s32.totalorder %s15378_s12, %s15371_s14 }
  0xd6   : > { %p15374_p7 = pnand %p15372_p5, %p15734_p8 }
  0xd7   : > { %p15381_p12 = por %p15380_p11, %p15379_p10 }
  0xd8   : > { %p15375_p9 = pneg %p15374_p7 }
  0xda   : > { %p15382_p4 = pnand %p15381_p12, %p15375_p9 }
  0xdc   : > { %15385 = shalt.err (!%p15382_p4)
}
  0xdd   : > { %13660 = dma.hbm_to_vmem [thread:$0]  (!%p15720_p6), %s18105_s6, 48, %s395_s26, [#allocation12]  }
  0xde   : > { %s15386_s17 = scalar_lea.hbm %s18107_s8, 36864 }
  0xdf   : > { %p15387_p13 = scmp.ne.s32.totalorder %s18107_s8, %s15386_s17  ;;  %p15393_p3 = scmp.lt.u32.totalorder %s15386_s17, %s18107_s8 }
  0xe1   : > { %p15389_p0 = pnand %p15387_p13, %p15734_p8 }
  0xe3   : > { %p15390_p1 = pneg %p15389_p0 }
  0xe5   : > { %p15395_p2 = pnand %p15393_p3, %p15390_p1 }
  0xe7   : > { %15398 = shalt.err (!%p15395_p2)
}
  0xe8   : > { %s15399_s16 = scalar_lea.vmem %s416_s18, 36864  ;;  %p15407_p10 = scmp.lt.s32.totalorder %s416_s18, %s416_s18 }
  0xe9   : > { %p15400_p5 = scmp.ne.s32.totalorder %s416_s18, %s15399_s16  ;;  %p15408_p11 = scmp.lt.s32.totalorder %s15399_s16, %s15399_s16 }
  0xeb   : > { %p15402_p7 = pnand %p15400_p5, %p15734_p8  ;;  %p15409_p12 = por %p15408_p11, %p15407_p10 }
  0xed   : > { %p15403_p9 = pneg %p15402_p7 }
  0xef   : > { %p15410_p4 = pnand %p15409_p12, %p15403_p9 }
  0xf1   : > { %15413 = shalt.err (!%p15410_p4)
}
  0xf2   : > { %s15605_s26 = smov 768   ;;  %s15606_s14 = smov 48  }
  0xf3   : > { %13666 = dma.hbm_to_vmem [thread:$0]  (!%p15720_p6), %s18107_s8, 36864, %s416_s18, [#allocation15], %s15605_s26, %s15605_s26, %s15606_s14  }
  0xf4   : > { %s15607_s28 = smov [#allocation19]   ;;  %s15608_s5 = smov [#allocation20]  }
  0xf5   : > { %s439_s3 = sshll.u32 %s15607_s28, 4  ;;  %s453_s17 = sshll.u32 %s15608_s5, 4  ;;  %s440_s3 = int_to_ptr.vmem [resolvable:$true] %s439_s3  ;;  %s454_s17 = int_to_ptr.vmem [resolvable:$true] %s453_s17 }
  0xf6   : > { %s15414_s15 = scalar_lea.hbm %s18109_s10, 36864 }
  0xf7   : > { %p15415_p13 = scmp.ne.s32.totalorder %s18109_s10, %s15414_s15  ;;  %p15421_p3 = scmp.lt.u32.totalorder %s15414_s15, %s18109_s10 }
  0xf9   : > { %p15417_p0 = pnand %p15415_p13, %p15734_p8 }
  0xfb   : > { %p15418_p1 = pneg %p15417_p0 }
  0xfd   : > { %p15423_p2 = pnand %p15421_p3, %p15418_p1 }
  0xff   : > { %15426 = shalt.err (!%p15423_p2)
}
 0x100   : > { %s15427_s18 = scalar_lea.vmem %s440_s3, 36864  ;;  %p15435_p10 = scmp.lt.s32.totalorder %s440_s3, %s440_s3 }
 0x101   : > { %p15428_p5 = scmp.ne.s32.totalorder %s440_s3, %s15427_s18  ;;  %p15436_p11 = scmp.lt.s32.totalorder %s15427_s18, %s15427_s18 }
 0x103   : > { %p15430_p7 = pnand %p15428_p5, %p15734_p8  ;;  %p15437_p12 = por %p15436_p11, %p15435_p10 }
 0x105   : > { %p15431_p9 = pneg %p15430_p7 }
 0x107   : > { %p15438_p4 = pnand %p15437_p12, %p15431_p9 }
 0x109   : > { %15441 = shalt.err (!%p15438_p4)
}
 0x10a   : > { %s18147_s26 = smov 12   ;;  %s18148_s14 = smov 192  }
 0x10b   : > { %13672 = dma.hbm_to_vmem [thread:$0]  (!%p15720_p6), %s18109_s10, 36864, %s440_s3, [#allocation18], %s18148_s14, %s18148_s14, %s18147_s26  }
 0x10c   : > { %s15442_s28 = scalar_lea.hbm %s18110_s11, 48 }
 0x10d   : > { %p15443_p13 = scmp.ne.s32.totalorder %s18110_s11, %s15442_s28  ;;  %p15449_p3 = scmp.lt.u32.totalorder %s15442_s28, %s18110_s11 }
 0x10f   : > { %p15445_p0 = pnand %p15443_p13, %p15734_p8 }
 0x111   : > { %p15446_p1 = pneg %p15445_p0 }
 0x113   : > { %p15451_p2 = pnand %p15449_p3, %p15446_p1 }
 0x115   : > { %15454 = shalt.err (!%p15451_p2)
}
 0x116   : > { %s15455_s29 = scalar_lea.vmem %s454_s17, 48  ;;  %s15462_s3 = scalar_lea.vmem %s454_s17, 64 }
 0x117   : > { %p15456_p5 = scmp.ne.s32.totalorder %s454_s17, %s15455_s29  ;;  %p15463_p10 = scmp.lt.s32.totalorder %s454_s17, %s454_s17 }
 0x118   : > { %p15464_p11 = scmp.lt.s32.totalorder %s15462_s3, %s15455_s29 }
 0x119   : > { %p15458_p7 = pnand %p15456_p5, %p15734_p8 }
 0x11a   : > { %p15465_p12 = por %p15464_p11, %p15463_p10 }
 0x11b   : > { %p15459_p9 = pneg %p15458_p7 }
 0x11d   : > { %p15466_p4 = pnand %p15465_p12, %p15459_p9 }
 0x11f   : > { %15469 = shalt.err (!%p15466_p4)
}
 0x120   : > { %13675 = dma.hbm_to_vmem [thread:$0]  (!%p15720_p6), %s18110_s11, 48, %s454_s17, [#allocation21]  }
 0x121   : > { %s11520_s25 = sadd.s32 4294967294, %s15590_s24   ;;  %s15958_s13 = sadd.s32 1, %s15590_s24  }
 0x122   : > { %s41_s26 = sadd.s32 1, %s15586_s23  ;;  %s38_s14 = ssub.s32 %s15590_s24, %s15958_s13 }
 0x123   : > { %p48_p8 = scmp.ne.s32.totalorder %s15586_s23, %s15582_s22  ;;  %p39_p13 = scmp.eq.s32.totalorder %s38_s14, 0 }
 0x124   : > { %p49_p0 = scmp.eq.s32.totalorder %s15590_s24, 0  ;;  %p54_p1 = scmp.ne.s32.totalorder %s15582_s22, %s15578_s21 }
 0x125   : > { %p309_p3 = scmp.eq.s32.totalorder %s15702_s27, 1  ;;  %p18149_p5 = scmp.eq.s32.totalorder %s15702_s27, 0 }
 0x126   : > { %s15970_s20 = scalar_select %p39_p13, %s15586_s23, %s41_s26  }
 0x127   : > { %p50_p2 = por %p49_p0, %p48_p8  ;;  %p15974_p7 = por %p18149_p5, %p54_p1 }
 0x128   : > { %p15978_p6 = por %p309_p3, %p48_p8  ;;  %p315_p9 = scmp.eq.s32.totalorder %s11520_s25, 1 }
 0x129   : > { %p13695_p10 = scmp.lt.s32.totalorder %s15590_s24, 2  ;;  %s464_s12 = sand.u32 1, %s15586_s23  }
 0x12a   : > { %s18151_s17 = scalar_select %p15978_p6, 1, 0 }
 0x12b   : > { %p15984_p11 = por %p315_p9, %p54_p1  ;;  %s13590_s28 = smul.u32 192, %s464_s12 }
 0x12c   : > { %p15988_p12 = pnand %p13695_p10, %p50_p2  ;;  %s13591_s30 = smul.u32 3072, %s15590_s24 }
 0x12d   : > { %s18152_s2 = scalar_select %p15984_p11, 1, 0 }
 0x12e   : > { %s15996_s29 = scalar_lea.hbm %s18099_s0, %s13591_s30  ;;  %s468_s3 = scalar_lea.vmem [#allocation2], %s13590_s28 }
 0x12f   : > { %s475_s16 = sshll.u32 %s468_s3, 4  ;;  %s16000_s18 = scalar_lea.sflag [#allocation3], %s464_s12  ;;  %s15998_s16 = int_to_ptr.vmem [resolvable:$true] %s475_s16 }
 0x130   : > { %s15470_s25 = scalar_lea.hbm %s15996_s29, 3072  ;;  %p15472_p8 = pneg %p15988_p12 }
 0x131   : > { %p15471_p4 = scmp.ne.s32.totalorder %s15996_s29, %s15470_s25  ;;  %s15475_s30 = scalar_lea.hbm %s18099_s0, 6144 }
 0x132   : > { %p15476_p1 = scmp.lt.u32.totalorder %s15996_s29, %s18099_s0  ;;  %p15477_p3 = scmp.lt.u32.totalorder %s15475_s30, %s15470_s25 }
 0x133   : > { %p15473_p13 = pnand %p15472_p8, %p15471_p4  ;;  %p15479_p5 = scmp.lt.u32.totalorder %s15470_s25, %s15996_s29 }
 0x134   : > { %p15478_p2 = por %p15477_p3, %p15476_p1 }
 0x135   : > { %p15474_p0 = pneg %p15473_p13 }
 0x136   : > { %p15480_p9 = por %p15479_p5, %p15478_p2 }
 0x138   : > { %p15481_p10 = pnand %p15480_p9, %p15474_p0 }
 0x13a   : > { %15484 = shalt.err (!%p15481_p10)
}
 0x13b   : > { %s15485_s12 = scalar_lea.vmem %s15998_s16, 3072  ;;  %s15609_s28 = smov [#allocation2]  }
 0x13c   : > { %p15486_p4 = scmp.ne.s32.totalorder %s15998_s16, %s15485_s12  ;;  %s15490_s3 = sshll.u32 %s15609_s28, 4  ;;  %s15491_s3 = int_to_ptr.vmem [resolvable:$false] %s15490_s3 }
 0x13d   : > { %s15492_s26 = scalar_lea.vmem %s15491_s3, 6144  ;;  %p15493_p6 = scmp.lt.s32.totalorder %s15998_s16, %s15491_s3 }
 0x13e   : > { %p15488_p13 = pnand %p15486_p4, %p15472_p8  ;;  %p15494_p1 = scmp.lt.s32.totalorder %s15492_s26, %s15485_s12 }
 0x140   : > { %p15489_p11 = pneg %p15488_p13  ;;  %p15495_p3 = por %p15494_p1, %p15493_p6 }
 0x142   : > { %p15496_p2 = pnand %p15495_p3, %p15489_p11 }
 0x144   : > { %15499 = shalt.err (!%p15496_p2)
}
 0x145   : > { %s18154_s25 = smov 24   ;;  %s18155_s14 = smov 384  }
 0x146   : > { %13679 = dma.hbm_to_vmem [thread:$0]  (!%p15988_p12), %s15996_s29, 3072, %s15998_s16, %s16000_s18, %s18155_s14, %s18155_s14, %s18154_s25  }
 0x147   : > { %s18156_s30 = sld [smem:[#allocation31_spill]] }
 0x14d   : > { %p18157_p8 = scmp.ne.s32.totalorder %s18156_s30, 0 }
 0x14f   : > { %487 = sbr.rel (%p18157_p8) target bundleno = 7058 (0x1b92), region = 68 }
 0x156   : > { %s16034_s1 = sand.u32 1, %s15582_s22  }
 0x157   : > { %s13592_s15 = smul.u32 192, %s16034_s1  ;;  %s490_s12 = scalar_lea.sflag [#allocation3], %s16034_s1 }
 0x159   : > { %s16040_s5 = scalar_lea.vmem [#allocation2], %s13592_s15 }
 0x15a   : > { %15545 = dma.done.wait (%p15974_p7), %s490_s12, 3072  }
 0x15b   : > { %15547 = vsyncadd (%p15974_p7), %s490_s12, 4294964224  ;;  %p18158_p6 = scmp.eq.s32.totalorder %s15702_s27, 0 }
 0x15d   : > { %15549 = dma.done.wait (%p18158_p6), [#allocation6], 96   ;;  %p18159_p11 = pmov %p18158_p6 }
 0x15e   : > { %p18160_p12 = pmov %p18158_p6 }
 0x15f   : > { %15551 = vsyncadd (%p18159_p11), [#allocation6], 4294967200 }
 0x160   : > { %15553 = dma.done.wait (%p18160_p12), [#allocation9], 27648   ;;  %p18161_p0 = pmov %p18158_p6 }
 0x162   : > { %15555 = vsyncadd (%p18161_p0), [#allocation9], 4294939648  ;;  %p18162_p5 = pmov %p18161_p0 }
 0x163   : > { %p18163_p9 = pmov %p18161_p0 }
 0x164   : > { %15557 = dma.done.wait (%p18162_p5), [#allocation12], 96  }
 0x165   : > { %15559 = vsyncadd (%p18163_p9), [#allocation12], 4294967200  ;;  %p18164_p7 = pmov %p18161_p0 }
 0x166   : > { %p18165_p10 = pmov %p18161_p0 }
 0x167   : > { %15561 = dma.done.wait (%p18164_p7), [#allocation15], 36912  }
 0x168   : > { %15563 = vsyncadd (%p18165_p10), [#allocation15], 4294930384  ;;  %p18166_p4 = pmov %p18161_p0 }
 0x169   : > { %p18167_p13 = pmov %p18161_p0 }
 0x16a   : > { %15565 = dma.done.wait (%p18166_p4), [#allocation18], 37056  }
 0x16b   : > { %15567 = vsyncadd (%p18167_p13), [#allocation18], 4294930240  ;;  %p18168_p1 = pmov %p18161_p0 }
 0x16c   : > { %p18169_p3 = pmov %p18161_p0 }
 0x16d   : > { %15569 = dma.done.wait (%p18168_p1), [#allocation21], 48  }
 0x16e   : > { %15571 = vsyncadd (%p18169_p3), [#allocation21], 4294967248  ;;  %v579_v0 = vld [vmem:[%s16040_s5] sm:$0xff]  ;;  %v580_v1 = vld [vmem:[%s16040_s5 + $0x8] sm:$0xff]  ;;  %vm2203_vm0 = vcmask 523264   ;;  %s15612_s19 = smov 64  }
 0x16f   : > { %v581_v2 = vld [vmem:[%s16040_s5 + $0x10] sm:$0xff]  ;;  %v605_v3 = vadd.f32 %v580_v1, %v579_v0  ;;  %v586_v5 = vld [vmem:[%s16040_s5 + $0x38] sm:$0xff]  ;;  %v587_v6 = vld [vmem:[%s16040_s5 + $0x40] sm:$0xff]  ;;  %s17995_s29 = scalar_lea.vmem [#allocation22], %s13592_s15  ;;  %s13593_s16 = smul.u32 3072, %s15702_s27 }
 0x170   : > { %v585_v4 = vld [vmem:[%s16040_s5 + $0x30] sm:$0xff]  ;;  %v582_v8 = vld [vmem:[%s16040_s5 + $0x18] sm:$0xff]  ;;  %v583_v9 = vld [vmem:[%s16040_s5 + $0x20] sm:$0xff]  ;;  %s11342_s18 = sshll.u32 %s17995_s29, 4  ;;  %s18192_s26 = sld [smem:[#allocation47_spill]]  ;;  %s18053_s18 = int_to_ptr.vmem [resolvable:$true] %s11342_s18 }
 0x171   : > { %v613_v7 = vadd.f32 %v586_v5, %v585_v4  ;;  %v584_v10 = vld [vmem:[%s16040_s5 + $0x28] sm:$0xff]  ;;  %v606_v11 = vadd.f32 %v605_v3, %v581_v2  ;;  %v609_v12 = vadd.f32 %v583_v9, %v582_v8  ;;  %v589_v14 = vld [vmem:[%s16040_s5 + $0x50] sm:$0xff]  ;;  %v590_v15 = vld [vmem:[%s16040_s5 + $0x58] sm:$0xff]  ;;  %s11329_s25 = scalar_lea.sflag [#allocation4], %s16034_s1  ;;  %s15500_s14 = scalar_lea.vmem %s18053_s18, 3072 }
 0x172   : > { %v588_v13 = vld [vmem:[%s16040_s5 + $0x48] sm:$0xff]  ;;  %v591_v18 = vld [vmem:[%s16040_s5 + $0x60] sm:$0xff]  ;;  %v594_v22 = vld [vmem:[%s16040_s5 + $0x78] sm:$0xff]  ;;  %p15501_p2 = scmp.ne.s32.totalorder %s18053_s18, %s15500_s14  ;;  %p18194_p8 = scmp.ne.s32.totalorder %s18151_s17, 0 }
 0x173   : > { %v614_v16 = vadd.f32 %v613_v7, %v587_v6  ;;  %v617_v17 = vadd.f32 %v589_v14, %v588_v13  ;;  %v592_v19 = vld [vmem:[%s16040_s5 + $0x68] sm:$0xff]  ;;  %607 = vadd.xlane.f32.xlu0 %v606_v11  ;;  %v610_v20 = vadd.f32 %v609_v12, %v584_v10  ;;  %v595_v23 = vld [vmem:[%s16040_s5 + $0x80] sm:$0xff]  ;;  %v593_v25 = vld [vmem:[%s16040_s5 + $0x70] sm:$0xff]  ;;  %s15613_s30 = smov [#allocation22]  }
 0x174   : > { %v621_v21 = vadd.f32 %v592_v19, %v591_v18  ;;  %v625_v26 = vadd.f32 %v595_v23, %v594_v22  ;;  %v597_v27 = vld [vmem:[%s16040_s5 + $0x90] sm:$0xff]  ;;  %v598_v28 = vld [vmem:[%s16040_s5 + $0x98] sm:$0xff]  ;;  %v596_v29 = vld [vmem:[%s16040_s5 + $0x88] sm:$0xff]  ;;  %p15502_p6 = pnand %p15501_p2, %p18194_p8  ;;  %s15504_s15 = sshll.u32 %s15613_s30, 4  ;;  %s15505_s15 = int_to_ptr.vmem [resolvable:$false] %s15504_s15 }
 0x175   : > { %615 = vadd.xlane.f32.xlu1 %v614_v16  ;;  %v618_v24 = vadd.f32 %v617_v17, %v590_v15  ;;  %v600_v30 = vld [vmem:[%s16040_s5 + $0xa8] sm:$0xff]  ;;  %v601_v31 = vld [vmem:[%s16040_s5 + $0xb0] sm:$0xff]  ;;  %v599_v32 = vld [vmem:[%s16040_s5 + $0xa0] sm:$0xff]  ;;  %v629_v34 = vadd.f32 %v598_v28, %v597_v27  ;;  %s15506_s12 = scalar_lea.vmem %s15505_s15, 6144  ;;  %p15507_p12 = scmp.lt.s32.totalorder %s18053_s18, %s15505_s15 }
 0x176   : > { %v622_v33 = vadd.f32 %v621_v21, %v593_v25  ;;  %v602_v35 = vld [vmem:[%s16040_s5 + $0xb8] sm:$0xff]  ;;  %v626_v36 = vadd.f32 %v625_v26, %v596_v29  ;;  %v633_v37 = vadd.f32 %v601_v31, %v600_v30  ;;  %v13762_v40 = vld [vmem:[#allocation8 + $0x4] ss:$24 sps:$4 sm:$0xff]   ;;  %v13764_v41 = vld [vmem:[#allocation8] ss:$24 sps:$4 sm:$0xff]   ;;  %s18049_s27 = scalar_lea.hbm %s18192_s26, %s13593_s16  ;;  %p15503_p11 = pneg %p15502_p6 }
 0x177   : > { %611 = vadd.xlane.f32.xlu0 %v610_v20  ;;  %v630_v38 = vadd.f32 %v629_v34, %v599_v32  ;;  %v13765_v42 = vld [vmem:[#allocation8 + $0x14] ss:$24 sps:$4 sm:$0xff]   ;;  %v13767_v43 = vld [vmem:[#allocation8 + $0x10] ss:$24 sps:$4 sm:$0xff]   ;;  %1730 = vmatprep.subr.bf16.mxu1 %v13762_v40  ;;  %v13771_v45 = vld [vmem:[#allocation8 + $0x44] ss:$24 sps:$4 sm:$0xff]   ;;  %p15508_p0 = scmp.lt.s32.totalorder %s15506_s12, %s15500_s14 }
 0x178   : > { %v634_v39 = vadd.f32 %v633_v37, %v602_v35  ;;  %v13768_v44 = vld [vmem:[#allocation8 + $0x34] ss:$24 sps:$4 sm:$0xff]   ;;  %2022 = vmatprep.subr.bf16.mxu0 %v13765_v42  ;;  %1731 = vmatpush1.bf16.msra.mxu1 %v13764_v41  ;;  %v13770_v46 = vld [vmem:[#allocation8 + $0x30] ss:$24 sps:$4 sm:$0xff]   ;;  %v13773_v47 = vld [vmem:[#allocation8 + $0x40] ss:$24 sps:$4 sm:$0xff]  }
 0x179   : > { %619 = vadd.xlane.f32.xlu1 %v618_v24  ;;  %2023 = vmatpush1.bf16.msra.mxu0 %v13767_v43  ;;  %v13774_v48 = vld [vmem:[#allocation8 + $0x64] ss:$24 sps:$4 sm:$0xff]   ;;  %v13777_v49 = vld [vmem:[#allocation8 + $0x74] ss:$24 sps:$4 sm:$0xff]   ;;  %v13776_v50 = vld [vmem:[#allocation8 + $0x60] ss:$24 sps:$4 sm:$0xff]   ;;  %p15509_p5 = por %p15508_p0, %p15507_p12 }
 0x17a   : > { %1732 = vmatprep.subr.bf16.mxu1 %v13768_v44  ;;  %2024 = vmatprep.subr.bf16.mxu0 %v13771_v45  ;;  %v13779_v51 = vld [vmem:[#allocation8 + $0x70] ss:$24 sps:$4 sm:$0xff]   ;;  %v13780_v52 = vld [vmem:[#allocation8 + $0x94] ss:$24 sps:$4 sm:$0xff]   ;;  %v13783_v53 = vld [vmem:[#allocation8 + $0xa4] ss:$24 sps:$4 sm:$0xff]  }
 0x17b   : > { %623 = vadd.xlane.f32.xlu0 %v622_v33  ;;  %v13782_v54 = vld [vmem:[#allocation8 + $0x90] ss:$24 sps:$4 sm:$0xff]   ;;  %v13785_v55 = vld [vmem:[#allocation8 + $0xa0] ss:$24 sps:$4 sm:$0xff]   ;;  %v13786_v56 = vld [vmem:[#allocation8 + $0xc4] ss:$24 sps:$4 sm:$0xff]   ;;  %p15510_p9 = pnand %p15509_p5, %p15503_p11 }
 0x17c   : > { %1733 = vmatpush1.bf16.msra.mxu1 %v13770_v46  ;;  %v13789_v57 = vld [vmem:[#allocation8 + $0xd4] ss:$24 sps:$4 sm:$0xff]   ;;  %v13788_v58 = vld [vmem:[#allocation8 + $0xc0] ss:$24 sps:$4 sm:$0xff]   ;;  %v13791_v59 = vld [vmem:[#allocation8 + $0xd0] ss:$24 sps:$4 sm:$0xff]  }
 0x17d   : > { %627 = vadd.xlane.f32.xlu1 %v626_v36  ;;  %2025 = vmatpush1.bf16.msra.mxu0 %v13773_v47  ;;  %v13792_v60 = vld [vmem:[#allocation8 + $0xf4] ss:$24 sps:$4 sm:$0xff]   ;;  %v13795_v61 = vld [vmem:[#allocation8 + $0x104] ss:$24 sps:$4 sm:$0xff]   ;;  %v13794_v62 = vld [vmem:[#allocation8 + $0xf0] ss:$24 sps:$4 sm:$0xff]  }
 0x17e   : > { %1734 = vmatprep.subr.bf16.mxu1 %v13774_v48  ;;  %2026 = vmatprep.subr.bf16.mxu0 %v13777_v49  ;;  %v13797_v63 = vld [vmem:[#allocation8 + $0x100] ss:$24 sps:$4 sm:$0xff]   ;;  %v13798_v0 = vld [vmem:[#allocation8 + $0x124] ss:$24 sps:$4 sm:$0xff]   ;;  %v13801_v1 = vld [vmem:[#allocation8 + $0x134] ss:$24 sps:$4 sm:$0xff]  }
 0x17f   : > { %631 = vadd.xlane.f32.xlu0 %v630_v38  ;;  %v13800_v2 = vld [vmem:[#allocation8 + $0x120] ss:$24 sps:$4 sm:$0xff]   ;;  %v13803_v3 = vld [vmem:[#allocation8 + $0x130] ss:$24 sps:$4 sm:$0xff]   ;;  %v13804_v4 = vld [vmem:[#allocation8 + $0x154] ss:$24 sps:$4 sm:$0xff]  }
 0x180   : > { %1735 = vmatpush1.bf16.msra.mxu1 %v13776_v50  ;;  %v13807_v5 = vld [vmem:[#allocation8 + $0x164] ss:$24 sps:$4 sm:$0xff]   ;;  %v13806_v6 = vld [vmem:[#allocation8 + $0x150] ss:$24 sps:$4 sm:$0xff]   ;;  %v13809_v7 = vld [vmem:[#allocation8 + $0x160] ss:$24 sps:$4 sm:$0xff]  }
 0x181   : > { %635 = vadd.xlane.f32.xlu1 %v634_v39  ;;  %2027 = vmatpush1.bf16.msra.mxu0 %v13779_v51  ;;  %v13810_v8 = vld [vmem:[#allocation8 + $0x184] ss:$24 sps:$4 sm:$0xff]   ;;  %v13813_v9 = vld [vmem:[#allocation8 + $0x194] ss:$24 sps:$4 sm:$0xff]   ;;  %v13812_v10 = vld [vmem:[#allocation8 + $0x180] ss:$24 sps:$4 sm:$0xff]  }
 0x182   : > { %1736 = vmatprep.subr.bf16.mxu1 %v13780_v52  ;;  %2028 = vmatprep.subr.bf16.mxu0 %v13783_v53  ;;  %v13815_v11 = vld [vmem:[#allocation8 + $0x190] ss:$24 sps:$4 sm:$0xff]   ;;  %v13816_v12 = vld [vmem:[#allocation8 + $0x1b4] ss:$24 sps:$4 sm:$0xff]   ;;  %v15114_v17 = vld [vmem:[%s16040_s5] sm:$0xff] }
 0x183   : > { %v15115_v19 = vld [vmem:[%s16040_s5 + $0x8] sm:$0xff]  ;;  %v15116_v21 = vld [vmem:[%s16040_s5 + $0x10] sm:$0xff]  ;;  %v15118_v25 = vld [vmem:[%s16040_s5 + $0x38] sm:$0xff] }
 0x184   : > { %1737 = vmatpush1.bf16.msra.mxu1 %v13782_v54  ;;  %v15117_v23 = vld [vmem:[%s16040_s5 + $0x30] sm:$0xff]  ;;  %v15119_v28 = vld [vmem:[%s16040_s5 + $0x40] sm:$0xff]  ;;  %v15120_v39 = vld [vmem:[%s16040_s5 + $0x18] sm:$0xff] }
 0x185   : > { %2029 = vmatpush1.bf16.msra.mxu0 %v13785_v55  ;;  %1738 = vmatprep.subr.bf16.mxu1 %v13786_v56  ;;  %v15121_v41 = vld [vmem:[%s16040_s5 + $0x20] sm:$0xff]  ;;  %v15122_v44 = vld [vmem:[%s16040_s5 + $0x28] sm:$0xff]  ;;  %v15124_v48 = vld [vmem:[%s16040_s5 + $0x50] sm:$0xff] }
 0x186   : > { %2030 = vmatprep.subr.bf16.mxu0 %v13789_v57  ;;  %v15123_v46 = vld [vmem:[%s16040_s5 + $0x48] sm:$0xff]  ;;  %v15125_v52 = vld [vmem:[%s16040_s5 + $0x58] sm:$0xff] }
 0x188   : > { %1739 = vmatpush1.bf16.msra.mxu1 %v13788_v58 }
 0x189   : > { %2031 = vmatpush1.bf16.msra.mxu0 %v13791_v59  ;;  %1740 = vmatprep.subr.bf16.mxu1 %v13792_v60 }
 0x18a   : > { %2032 = vmatprep.subr.bf16.mxu0 %v13795_v61 }
 0x18c   : > { %1741 = vmatpush1.bf16.msra.mxu1 %v13794_v62 }
 0x18d   : > { %2033 = vmatpush1.bf16.msra.mxu0 %v13797_v63  ;;  %1742 = vmatprep.subr.bf16.mxu1 %v13798_v0  ;;  %v15126_v63 = vld [vmem:[%s16040_s5 + $0x60] sm:$0xff] }
 0x18e   : > { %2034 = vmatprep.subr.bf16.mxu0 %v13801_v1  ;;  %v15127_v1 = vld [vmem:[%s16040_s5 + $0x68] sm:$0xff] }
 0x190   : > { %1743 = vmatpush1.bf16.msra.mxu1 %v13800_v2 }
 0x191   : > { %2035 = vmatpush1.bf16.msra.mxu0 %v13803_v3  ;;  %1744 = vmatprep.subr.bf16.mxu1 %v13804_v4 }
 0x192   : > { %2036 = vmatprep.subr.bf16.mxu0 %v13807_v5  ;;  %v15128_v5 = vld [vmem:[%s16040_s5 + $0x78] sm:$0xff] }
 0x194   : > { %1745 = vmatpush1.bf16.msra.mxu1 %v13806_v6 }
 0x195   : > { %2037 = vmatpush1.bf16.msra.mxu0 %v13809_v7  ;;  %1746 = vmatprep.subr.bf16.mxu1 %v13810_v8  ;;  %v15129_v7 = vld [vmem:[%s16040_s5 + $0x80] sm:$0xff] }
 0x196   : > { %2038 = vmatprep.subr.bf16.mxu0 %v13813_v9 }
 0x198   : > { %1747 = vmatpush1.bf16.msra.mxu1 %v13812_v10 }
 0x199   : > { %2039 = vmatpush1.bf16.msra.mxu0 %v13815_v11  ;;  %1748 = vmatprep.subr.bf16.mxu1 %v13816_v12  ;;  %v15130_v11 = vld [vmem:[%s16040_s5 + $0x70] sm:$0xff] }
 0x200   : > { %v608_v13 = vpop.xlane.xlu0 %607 }
 0x201   : > { %v638_v14 = vmul.f32 0.0026041667, %v608_v13 }
 0x202   : > { %v616_v15 = vpop.xlane.xlu1 %615 }
 0x203   : > { %v640_v16 = vmul.f32 0.0026041667, %v616_v15  ;;  %v16095_v18 = vsub.f32 %v15114_v17, %v638_v14  ;;  %v16098_v20 = vsub.f32 %v15115_v19, %v638_v14  ;;  %v16101_v22 = vsub.f32 %v15116_v21, %v638_v14 }
 0x204   : > { %v612_v27 = vpop.xlane.xlu0 %611 }
 0x205   : > { %v16104_v24 = vsub.f32 %v15117_v23, %v640_v16  ;;  %v16107_v26 = vsub.f32 %v15118_v25, %v640_v16  ;;  %v16110_v29 = vsub.f32 %v15119_v28, %v640_v16  ;;  %v639_v30 = vmul.f32 0.0026041667, %v612_v27  ;;  %v15131_v25 = vld [vmem:[%s16040_s5 + $0x88] sm:$0xff]  ;;  %v15132_v28 = vld [vmem:[%s16040_s5 + $0x90] sm:$0xff] }
 0x206   : > { %v620_v31 = vpop.xlane.xlu1 %619  ;;  %v670_v32 = vmul.f32 %v16095_v18, %v16095_v18  ;;  %v671_v33 = vmul.f32 %v16098_v20, %v16098_v20  ;;  %v672_v34 = vmul.f32 %v16101_v22, %v16101_v22 }
 0x207   : > { %v641_v35 = vmul.f32 0.0026041667, %v620_v31  ;;  %v676_v36 = vmul.f32 %v16104_v24, %v16104_v24  ;;  %v677_v37 = vmul.f32 %v16107_v26, %v16107_v26  ;;  %v678_v38 = vmul.f32 %v16110_v29, %v16110_v29  ;;  %v15133_v31 = vld [vmem:[%s16040_s5 + $0x98] sm:$0xff] }
 0x208   : > { %v16125_v40 = vsub.f32 %v15120_v39, %v639_v30  ;;  %v16128_v42 = vsub.f32 %v15121_v41, %v639_v30  ;;  %v694_v43 = vadd.f32 %v671_v33, %v670_v32  ;;  %v16131_v45 = vsub.f32 %v15122_v44, %v639_v30  ;;  %v624_v50 = vpop.xlane.xlu0 %623  ;;  %v15136_v44 = vld [vmem:[%s16040_s5 + $0xa0] sm:$0xff] }
 0x209   : > { %v16134_v47 = vsub.f32 %v15123_v46, %v641_v35  ;;  %v16137_v49 = vsub.f32 %v15124_v48, %v641_v35  ;;  %v702_v51 = vadd.f32 %v677_v37, %v676_v36  ;;  %v16140_v53 = vsub.f32 %v15125_v52, %v641_v35  ;;  %v15135_v36 = vld [vmem:[%s16040_s5 + $0xb0] sm:$0xff]  ;;  %v15137_v52 = vld [vmem:[%s16040_s5 + $0xb8] sm:$0xff] }
 0x20a   : > { %v642_v54 = vmul.f32 0.0026041667, %v624_v50  ;;  %v695_v55 = vadd.f32 %v694_v43, %v672_v34  ;;  %v628_v56 = vpop.xlane.xlu1 %627  ;;  %v673_v57 = vmul.f32 %v16125_v40, %v16125_v40  ;;  %v674_v58 = vmul.f32 %v16128_v42, %v16128_v42  ;;  %v15134_v34 = vld [vmem:[%s16040_s5 + $0xa8] sm:$0xff] }
 0x20b   : > { %v643_v59 = vmul.f32 0.0026041667, %v628_v56  ;;  %v703_v60 = vadd.f32 %v702_v51, %v678_v38  ;;  %v675_v61 = vmul.f32 %v16131_v45, %v16131_v45  ;;  %v679_v62 = vmul.f32 %v16134_v47, %v16134_v47 }
 0x20c   : > { %v16151_v0 = vsub.f32 %v15126_v63, %v642_v54  ;;  %v16154_v2 = vsub.f32 %v15127_v1, %v642_v54  ;;  %696 = vadd.xlane.f32.xlu0 %v695_v55  ;;  %v698_v3 = vadd.f32 %v674_v58, %v673_v57  ;;  %v680_v4 = vmul.f32 %v16137_v49, %v16137_v49  ;;  %v632_v9 = vpop.xlane.xlu0 %631 }
 0x20d   : > { %v16159_v6 = vsub.f32 %v15128_v5, %v643_v59  ;;  %v16162_v8 = vsub.f32 %v15129_v7, %v643_v59  ;;  %v681_v10 = vmul.f32 %v16140_v53, %v16140_v53  ;;  %v16167_v12 = vsub.f32 %v15130_v11, %v642_v54  ;;  %v13821_v5 = vld [vmem:[#allocation8 + $0x1c0] ss:$24 sps:$4 sm:$0xff]   ;;  %v13822_v7 = vld [vmem:[#allocation8 + $0x1e4] ss:$24 sps:$4 sm:$0xff]   ;;  %v13827_v11 = vld [vmem:[#allocation8 + $0x1f0] ss:$24 sps:$4 sm:$0xff]  }
 0x20e   : > { %v644_v13 = vmul.f32 0.0026041667, %v632_v9  ;;  %v699_v14 = vadd.f32 %v698_v3, %v675_v61  ;;  %v636_v15 = vpop.xlane.xlu1 %635  ;;  %v706_v16 = vadd.f32 %v680_v4, %v679_v62  ;;  %v682_v17 = vmul.f32 %v16151_v0, %v16151_v0  ;;  %v13818_v3 = vld [vmem:[#allocation8 + $0x1b0] ss:$24 sps:$4 sm:$0xff]   ;;  %v13819_v4 = vld [vmem:[#allocation8 + $0x1c4] ss:$24 sps:$4 sm:$0xff]  }
 0x20f   : > { %v645_v19 = vmul.f32 0.0026041667, %v636_v15  ;;  %v683_v21 = vmul.f32 %v16154_v2, %v16154_v2  ;;  %v684_v23 = vmul.f32 %v16167_v12, %v16167_v12  ;;  %v16176_v27 = vsub.f32 %v15131_v25, %v643_v59  ;;  %1749 = vmatpush1.bf16.msra.mxu1 %v13818_v3  ;;  %2040 = vmatprep.subr.bf16.mxu0 %v13819_v4  ;;  %v13824_v9 = vld [vmem:[#allocation8 + $0x1e0] ss:$24 sps:$4 sm:$0xff]   ;;  %v13831_v15 = vld [vmem:[#allocation8 + $0x224] ss:$24 sps:$4 sm:$0xff]  }
 0x210   : > { %v16179_v30 = vsub.f32 %v15132_v28, %v644_v13  ;;  %v16182_v32 = vsub.f32 %v15133_v31, %v644_v13  ;;  %704 = vadd.xlane.f32.xlu0 %v703_v60  ;;  %700 = vadd.xlane.f32.xlu1 %v699_v14  ;;  %v707_v33 = vadd.f32 %v706_v16, %v681_v10  ;;  %v13825_v10 = vld [vmem:[#allocation8 + $0x1f4] ss:$24 sps:$4 sm:$0xff]   ;;  %v13830_v14 = vld [vmem:[#allocation8 + $0x210] ss:$24 sps:$4 sm:$0xff]   ;;  %v13833_v16 = vld [vmem:[#allocation8 + $0x220] ss:$24 sps:$4 sm:$0xff]  }
 0x211   : > { %v16185_v35 = vsub.f32 %v15134_v34, %v645_v19  ;;  %v16188_v37 = vsub.f32 %v15135_v36, %v645_v19  ;;  %v710_v38 = vadd.f32 %v683_v21, %v682_v17  ;;  %v685_v39 = vmul.f32 %v16159_v6, %v16159_v6  ;;  %2041 = vmatpush1.bf16.msra.mxu0 %v13821_v5  ;;  %v13834_v17 = vld [vmem:[#allocation8 + $0x244] ss:$24 sps:$4 sm:$0xff]   ;;  %v13837_v21 = vld [vmem:[#allocation8 + $0x254] ss:$24 sps:$4 sm:$0xff]   ;;  %v13842_v28 = vld [vmem:[#allocation8 + $0x270] ss:$24 sps:$4 sm:$0xff]  }
 0x212   : > { %v686_v41 = vmul.f32 %v16162_v8, %v16162_v8  ;;  %v687_v43 = vmul.f32 %v16176_v27, %v16176_v27  ;;  %v16197_v46 = vsub.f32 %v15136_v44, %v644_v13  ;;  %v688_v48 = vmul.f32 %v16179_v30, %v16179_v30  ;;  %1750 = vmatprep.subr.bf16.mxu1 %v13822_v7  ;;  %v13828_v13 = vld [vmem:[#allocation8 + $0x214] ss:$24 sps:$4 sm:$0xff]   ;;  %v13843_v31 = vld [vmem:[#allocation8 + $0x284] ss:$24 sps:$4 sm:$0xff]   ;;  %v13848_v36 = vld [vmem:[#allocation8 + $0x2a0] ss:$24 sps:$4 sm:$0xff]  }
 0x213   : > { %v711_v50 = vadd.f32 %v710_v38, %v684_v23  ;;  %v689_v51 = vmul.f32 %v16182_v32, %v16182_v32  ;;  %v16204_v54 = vsub.f32 %v15137_v52, %v645_v19  ;;  %v691_v55 = vmul.f32 %v16185_v35, %v16185_v35  ;;  %1751 = vmatpush1.bf16.msra.mxu1 %v13824_v9  ;;  %v13836_v19 = vld [vmem:[#allocation8 + $0x240] ss:$24 sps:$4 sm:$0xff]   ;;  %v13839_v23 = vld [vmem:[#allocation8 + $0x250] ss:$24 sps:$4 sm:$0xff]   ;;  %v13840_v25 = vld [vmem:[#allocation8 + $0x274] ss:$24 sps:$4 sm:$0xff]  }
 0x214   : > { %708 = vadd.xlane.f32.xlu1 %v707_v33  ;;  %v714_v56 = vadd.f32 %v686_v41, %v685_v39  ;;  %v690_v57 = vmul.f32 %v16197_v46, %v16197_v46  ;;  %v692_v58 = vmul.f32 %v16188_v37, %v16188_v37  ;;  %2042 = vmatprep.subr.bf16.mxu0 %v13825_v10  ;;  %v13845_v33 = vld [vmem:[#allocation8 + $0x280] ss:$24 sps:$4 sm:$0xff]   ;;  %v13846_v34 = vld [vmem:[#allocation8 + $0x2a4] ss:$24 sps:$4 sm:$0xff]   ;;  %v13849_v38 = vld [vmem:[#allocation8 + $0x2b4] ss:$24 sps:$4 sm:$0xff]   ;;  %v775_v52 = vlaneseq }
 0x215   : > { %712 = vadd.xlane.f32.xlu0 %v711_v50  ;;  %v718_v59 = vadd.f32 %v689_v51, %v688_v48  ;;  %v693_v60 = vmul.f32 %v16204_v54, %v16204_v54  ;;  %2043 = vmatpush1.bf16.msra.mxu0 %v13827_v11  ;;  %v13851_v39 = vld [vmem:[#allocation8 + $0x2b0] ss:$24 sps:$4 sm:$0xff]   ;;  %v13852_v41 = vld [vmem:[#allocation8 + $0x2d4] ss:$24 sps:$4 sm:$0xff]   ;;  %v13855_v44 = vld [vmem:[#allocation8 + $0x2e4] ss:$24 sps:$4 sm:$0xff]  }
 0x216   : > { %v715_v61 = vadd.f32 %v714_v56, %v687_v43  ;;  %v722_v62 = vadd.f32 %v692_v58, %v691_v55  ;;  %1752 = vmatprep.subr.bf16.mxu1 %v13828_v13  ;;  %2044 = vmatprep.subr.bf16.mxu0 %v13831_v15  ;;  %v13854_v43 = vld [vmem:[#allocation8 + $0x2d0] ss:$24 sps:$4 sm:$0xff]   ;;  %v13857_v48 = vld [vmem:[#allocation8 + $0x2e0] ss:$24 sps:$4 sm:$0xff]   ;;  %v13860_v50 = vld [vmem:[#allocation8 + $0x304] ss:$24 sps:$4 sm:$0xff]  }
 0x217   : > { %v719_v63 = vadd.f32 %v718_v59, %v690_v57  ;;  %1753 = vmatpush1.bf16.msra.mxu1 %v13830_v14  ;;  %v13863_v51 = vld [vmem:[#allocation8 + $0x314] ss:$24 sps:$4 sm:$0xff]   ;;  %v16215_v57 = vshrl.u32 %v775_v52, 7  ;;  %v16223_v11 = vld [vmem:[#allocation5] sm:$0x7] }
 0x218   : > { %716 = vadd.xlane.f32.xlu1 %v715_v61  ;;  %v723_v1 = vadd.f32 %v722_v62, %v693_v60  ;;  %1754 = vmatprep.subr.bf16.mxu1 %v13834_v17 }
 0x219   : > { %720 = vadd.xlane.f32.xlu0 %v719_v63  ;;  %2045 = vmatpush1.bf16.msra.mxu0 %v13833_v16  ;;  %v16218_v63 = vsub.s32 1, %v16215_v57 }
 0x21a   : > { %2046 = vmatprep.subr.bf16.mxu0 %v13837_v21  ;;  %v16225_v21 = vld [vmem:[#allocation7] sm:$0x7] }
 0x21b   : > { %1755 = vmatpush1.bf16.msra.mxu1 %v13836_v19 }
 0x21c   : > { %724 = vadd.xlane.f32.xlu1 %v723_v1  ;;  %1756 = vmatprep.subr.bf16.mxu1 %v13840_v25  ;;  %v16221_v1 = vsub.s32 0, %v16215_v57 }
 0x21d   : > { %2047 = vmatpush1.bf16.msra.mxu0 %v13839_v23 }
 0x21e   : > { %2048 = vmatprep.subr.bf16.mxu0 %v13843_v31  ;;  %v16235_v31 = vrot.slane %v16223_v11, %v16221_v1 }
 0x21f   : > { %1757 = vmatpush1.bf16.msra.mxu1 %v13842_v28  ;;  %v16231_v28 = vrot.slane %v16223_v11, %v16218_v63 }
 0x220   : > { %1758 = vmatprep.subr.bf16.mxu1 %v13846_v34 }
 0x221   : > { %2049 = vmatpush1.bf16.msra.mxu0 %v13845_v33 }
 0x222   : > { %2050 = vmatprep.subr.bf16.mxu0 %v13849_v38 }
 0x223   : > { %1759 = vmatpush1.bf16.msra.mxu1 %v13848_v36 }
 0x224   : > { %1760 = vmatprep.subr.bf16.mxu1 %v13852_v41  ;;  %v16243_v41 = vrot.slane %v16225_v21, %v16218_v63 }
 0x225   : > { %2051 = vmatpush1.bf16.msra.mxu0 %v13851_v39 }
 0x226   : > { %2052 = vmatprep.subr.bf16.mxu0 %v13855_v44 }
 0x227   : > { %1761 = vmatpush1.bf16.msra.mxu1 %v13854_v43 }
 0x228   : > { %1803 = vmatprep.subr.bf16.mxu1 %v13860_v50 }
 0x229   : > { %2053 = vmatpush1.bf16.msra.mxu0 %v13857_v48 }
 0x22a   : > { %2095 = vmatprep.subr.bf16.mxu0 %v13863_v51  ;;  %v16251_v51 = vrot.slane %v16225_v21, %v16221_v1 }
 0x299   : > { %v697_v55 = vpop.xlane.xlu0 %696 }
 0x29a   : > { %v726_v56 = vmul.f32 0.0026041667, %v697_v55 }
 0x29c   : > { %v734_v58 = vadd.f32 1e-05, %v726_v56 }
 0x29d   : > { %v701_v59 = vpop.xlane.xlu1 %700  ;;  %v705_v60 = vpop.xlane.xlu0 %704 }
 0x29e   : > { %14890 = vrsqrt.f32 %v734_v58  ;;  %v727_v61 = vmul.f32 0.0026041667, %v701_v59  ;;  %v728_v62 = vmul.f32 0.0026041667, %v705_v60 }
 0x2a0   : > { %v735_v3 = vadd.f32 1e-05, %v727_v61  ;;  %v736_v4 = vadd.f32 1e-05, %v728_v62 }
 0x2a1   : > { %v709_v5 = vpop.xlane.xlu1 %708 }
 0x2a2   : > { %14892 = vrsqrt.f32 %v735_v3  ;;  %v729_v7 = vmul.f32 0.0026041667, %v709_v5  ;;  %v713_v9 = vpop.xlane.xlu0 %712 }
 0x2a3   : > { %14894 = vrsqrt.f32 %v736_v4  ;;  %v730_v10 = vmul.f32 0.0026041667, %v713_v9  ;;  %v13858_v4 = vld [vmem:[#allocation8 + $0x300] ss:$24 sps:$4 sm:$0xff]  }
 0x2a4   : > { %v737_v13 = vadd.f32 1e-05, %v729_v7 }
 0x2a5   : > { %v738_v14 = vadd.f32 1e-05, %v730_v10  ;;  %v717_v15 = vpop.xlane.xlu1 %716  ;;  %v13866_v10 = vld [vmem:[#allocation8 + $0x334] ss:$24 sps:$4 sm:$0xff]  }
 0x2a6   : > { %14896 = vrsqrt.f32 %v737_v13  ;;  %v731_v16 = vmul.f32 0.0026041667, %v717_v15  ;;  %v721_v17 = vpop.xlane.xlu0 %720  ;;  %v13869_v13 = vld [vmem:[#allocation8 + $0x344] ss:$24 sps:$4 sm:$0xff]  }
 0x2a7   : > { %14898 = vrsqrt.f32 %v738_v14  ;;  %v732_v19 = vmul.f32 0.0026041667, %v721_v17 }
 0x2a8   : > { %v16227_v23 = vpop.eup %14890  ;;  %v739_v25 = vadd.f32 1e-05, %v731_v16 }
 0x2a9   : > { %v740_v33 = vadd.f32 1e-05, %v732_v19  ;;  %v725_v34 = vpop.xlane.xlu1 %724  ;;  %v751_v36 = vmul.f32 %v16227_v23, %v16098_v20  ;;  %v750_v38 = vmul.f32 %v16227_v23, %v16095_v18 }
 0x2aa   : > { %14900 = vrsqrt.f32 %v739_v25  ;;  %v733_v39 = vmul.f32 0.0026041667, %v725_v34  ;;  %v13867_v34 = vld [vmem:[#allocation8 + $0x340] ss:$24 sps:$4 sm:$0xff]  }
 0x2ab   : > { %v791_v48 = vmul.f32 %v16231_v28, %v751_v36  ;;  %v790_v50 = vmul.f32 %v16235_v31, %v750_v38  ;;  %14902 = vrsqrt.f32 %v740_v33  ;;  %v13864_v33 = vld [vmem:[#allocation8 + $0x330] ss:$24 sps:$4 sm:$0xff]  }
 0x2ac   : > { %v16245_v43 = vpop.eup %14892  ;;  %v741_v44 = vadd.f32 1e-05, %v733_v39  ;;  %v13875_v39 = vld [vmem:[#allocation8 + $0x374] ss:$24 sps:$4 sm:$0xff]  }
 0x2ad   : > { %v16253_v20 = vpop.eup %14894  ;;  %v754_v18 = vmul.f32 %v16245_v43, %v16128_v42  ;;  %v753_v55 = vmul.f32 %v16245_v43, %v16125_v40  ;;  %v831_v61 = vadd.f32 %v16243_v41, %v791_v48  ;;  %v830_v62 = vadd.f32 %v16251_v51, %v790_v50 }
 0x2ae   : > { %14904 = vrsqrt.f32 %v741_v44  ;;  %v757_v56 = vmul.f32 %v16253_v20, %v16107_v26  ;;  %v13861_v26 = vld [vmem:[#allocation8 + $0x310] ss:$24 sps:$4 sm:$0xff]   ;;  %v756_v14 = vmul.f32 %v16253_v20, %v16104_v24 }
 0x2af   : > { %v794_v58 = vmul.f32 %v16231_v28, %v754_v18  ;;  %v793_v59 = vmul.f32 %v16235_v31, %v753_v55 }
 0x2b0   : > { %v16263_v60 = vpop.eup %14896  ;;  %v797_v3 = vmul.f32 %v16231_v28, %v757_v56  ;;  %v796_v38 = vmul.f32 %v16235_v31, %v756_v14  ;;  %v13884_v14 = vld [vmem:[#allocation8 + $0x3c4] ss:$24 sps:$4 sm:$0xff]  }
 0x2b1   : > { %v16268_v42 = vpop.eup %14898  ;;  %v834_v40 = vadd.f32 %v16243_v41, %v794_v58  ;;  %v833_v5 = vadd.f32 %v16251_v51, %v793_v59  ;;  %v760_v7 = vmul.f32 %v16263_v60, %v16137_v49  ;;  %v759_v9 = vmul.f32 %v16263_v60, %v16134_v47  ;;  %v13870_v58 = vld [vmem:[#allocation8 + $0x360] ss:$24 sps:$4 sm:$0xff]  }
 0x2b2   : > { %v763_v19 = vmul.f32 %v16268_v42, %v16154_v2  ;;  %v837_v47 = vadd.f32 %v16243_v41, %v797_v3  ;;  %v13872_v2 = vld [vmem:[#allocation8 + $0x364] ss:$24 sps:$4 sm:$0xff]   ;;  %v13873_v3 = vld [vmem:[#allocation8 + $0x370] ss:$24 sps:$4 sm:$0xff]  }
 0x2b3   : > { %v16278_v15 = vpack.c.bf16 %v834_v40, %v831_v61  ;;  %v16280_v16 = vpack.c.bf16 %v833_v5, %v830_v62  ;;  %v800_v17 = vmul.f32 %v16231_v28, %v760_v7  ;;  %v799_v49 = vmul.f32 %v16235_v31, %v759_v9  ;;  %v13881_v5 = vld [vmem:[#allocation8 + $0x3a4] ss:$24 sps:$4 sm:$0xff]  }
 0x2b4   : > { %v16285_v25 = vpop.eup %14900  ;;  %v803_v50 = vmul.f32 %v16231_v28, %v763_v19  ;;  %v836_v62 = vadd.f32 %v16251_v51, %v796_v38  ;;  %v762_v40 = vmul.f32 %v16268_v42, %v16151_v0  ;;  %v13890_v38 = vld [vmem:[#allocation8 + $0x3f4] ss:$24 sps:$4 sm:$0xff]  }
 0x2b5   : > { %1762 = vmatprep.mubr.bf16.mxu1 %v16278_v15  ;;  %2054 = vmatprep.mubr.bf16.mxu0 %v16278_v15  ;;  %v840_v24 = vadd.f32 %v16243_v41, %v800_v17  ;;  %v766_v36 = vmul.f32 %v16285_v25, %v16162_v8  ;;  %v16297_v44 = vpop.eup %14902  ;;  %v839_v8 = vadd.f32 %v16251_v51, %v799_v49 }
 0x2b6   : > { %1763 = vmatmul.mubr.bf16.vlgmr.msra.gmra.mrb[0].mxu1 %v16280_v16  ;;  %2055 = vmatmul.mubr.bf16.vlgmr.msra.gmra.mrb[0].mxu0 %v16280_v16  ;;  %v765_v56 = vmul.f32 %v16285_v25, %v16159_v6  ;;  %v843_v6 = vadd.f32 %v16243_v41, %v803_v50  ;;  %v802_v17 = vmul.f32 %v16235_v31, %v762_v40 }
 0x2b7   : > { %1804 = vmatpush1.bf16.msra.mxu1 %v13858_v4  ;;  %2096 = vmatpush1.bf16.msra.mxu0 %v13861_v26  ;;  %v16299_v48 = vpack.c.bf16 %v840_v24, %v837_v47  ;;  %v806_v18 = vmul.f32 %v16231_v28, %v766_v36  ;;  %v13878_v4 = vld [vmem:[#allocation8 + $0x394] ss:$24 sps:$4 sm:$0xff]   ;;  %v769_v26 = vmul.f32 %v16297_v44, %v16182_v32  ;;  %v13882_v24 = vld [vmem:[#allocation8 + $0x3c0] ss:$24 sps:$4 sm:$0xff]   ;;  %v13885_v36 = vld [vmem:[#allocation8 + $0x3d0] ss:$24 sps:$4 sm:$0xff]  }
 0x2b8   : > { %v16303_v55 = vpop.eup %14904  ;;  %1805 = vmatprep.subr.bf16.mxu1 %v13866_v10  ;;  %2097 = vmatprep.subr.bf16.mxu0 %v13869_v13  ;;  %v16319_v7 = vpack.c.bf16 %v839_v8, %v836_v62  ;;  %v13876_v10 = vld [vmem:[#allocation8 + $0x390] ss:$24 sps:$4 sm:$0xff]   ;;  %v13879_v13 = vld [vmem:[#allocation8 + $0x3a0] ss:$24 sps:$4 sm:$0xff]   ;;  %v13887_v32 = vld [vmem:[#allocation8 + $0x3d4] ss:$24 sps:$4 sm:$0xff]   ;;  %v755_v62 = vmul.f32 %v16245_v43, %v16131_v45 }
 0x2b9   : > { %1772 = vmatprep.mubr.bf16.mxu1 %v16299_v48  ;;  %2064 = vmatprep.mubr.bf16.mxu0 %v16299_v48  ;;  %v846_v59 = vadd.f32 %v16243_v41, %v806_v18  ;;  %v772_v61 = vmul.f32 %v16303_v55, %v16188_v37  ;;  %v805_v37 = vmul.f32 %v16235_v31, %v765_v56  ;;  %v13888_v8 = vld [vmem:[#allocation8 + $0x3f0] ss:$24 sps:$4 sm:$0xff]   ;;  %v16345_v56 = vsub.s32 2, %v16215_v57 }
 0x2ba   : > { %v809_v19 = vmul.f32 %v16231_v28, %v769_v26  ;;  %v771_v47 = vmul.f32 %v16303_v55, %v16185_v35  ;;  %v13905_v26 = vld [vmem:[#allocation8 + $0x464] ss:$24 sps:$4 sm:$0xff]   ;;  %v13900_v43 = vld [vmem:[#allocation8 + $0x450] ss:$24 sps:$4 sm:$0xff]  }
 0x2bb   : > { %1806 = vmatpush1.bf16.msra.mxu1 %v13864_v33  ;;  %2098 = vmatpush1.bf16.msra.mxu0 %v13867_v34  ;;  %v16322_v9 = vpack.c.bf16 %v846_v59, %v843_v6  ;;  %v812_v0 = vmul.f32 %v16231_v28, %v772_v61  ;;  %v845_v49 = vadd.f32 %v16251_v51, %v805_v37  ;;  %v13899_v59 = vld [vmem:[#allocation8 + $0x434] ss:$24 sps:$4 sm:$0xff]   ;;  %v13897_v6 = vld [vmem:[#allocation8 + $0x430] ss:$24 sps:$4 sm:$0xff]  }
 0x2bc   : > { %1807 = vmatprep.subr.bf16.mxu1 %v13872_v2  ;;  %2099 = vmatprep.subr.bf16.mxu0 %v13875_v39  ;;  %v842_v34 = vadd.f32 %v16251_v51, %v802_v17  ;;  %v768_v2 = vmul.f32 %v16297_v44, %v16179_v30  ;;  %v849_v28 = vadd.f32 %v16243_v41, %v809_v19  ;;  %v13893_v39 = vld [vmem:[#allocation8 + $0x404] ss:$24 sps:$4 sm:$0xff]   ;;  %v13891_v30 = vld [vmem:[#allocation8 + $0x400] ss:$24 sps:$4 sm:$0xff]  }
 0x2bd   : > { %v852_v33 = vadd.f32 %v16243_v41, %v812_v0  ;;  %v811_v35 = vmul.f32 %v16235_v31, %v771_v47  ;;  %v13896_v41 = vld [vmem:[#allocation8 + $0x424] ss:$24 sps:$4 sm:$0xff]   ;;  %v16357_v40 = vrot.slane %v16223_v11, %v16345_v56  ;;  %v16367_v11 = vrot.slane %v16225_v21, %v16345_v56  ;;  %v13909_v47 = vld [vmem:[#allocation8 + $0x38] ss:$24 sps:$4 sm:$0xff]  }
 0x2be   : > { %1773 = vmatmul.mubr.bf16.gmra.mrb[4].mxu1 %v16319_v7  ;;  %2065 = vmatmul.mubr.bf16.gmra.mrb[4].mxu0 %v16319_v7  ;;  %v16339_v50 = vpack.c.bf16 %v845_v49, %v842_v34  ;;  %v761_v21 = vmul.f32 %v16263_v60, %v16140_v53  ;;  %v13911_v17 = vld [vmem:[#allocation8 + $0x3c] ss:$24 sps:$4 sm:$0xff]   ;;  %v13914_v53 = vld [vmem:[#allocation8 + $0x6c] ss:$24 sps:$4 sm:$0xff]   ;;  %v13912_v34 = vld [vmem:[#allocation8 + $0x68] ss:$24 sps:$4 sm:$0xff]  }
 0x2bf   : > { %1808 = vmatpush1.bf16.msra.mxu1 %v13870_v58  ;;  %1782 = vmatprep.mubr.bf16.mxu1 %v16322_v9  ;;  %v16342_v18 = vpack.c.bf16 %v852_v33, %v849_v28  ;;  %v808_v58 = vmul.f32 %v16235_v31, %v768_v2  ;;  %v851_v61 = vadd.f32 %v16251_v51, %v811_v35  ;;  %v13917_v2 = vld [vmem:[#allocation8 + $0x9c] ss:$24 sps:$4 sm:$0xff]  }
 0x2c0   : > { %2074 = vmatprep.mubr.bf16.mxu0 %v16322_v9  ;;  %2100 = vmatpush1.bf16.msra.mxu0 %v13873_v3  ;;  %v13894_v3 = vld [vmem:[#allocation8 + $0x420] ss:$24 sps:$4 sm:$0xff]   ;;  %v795_v45 = vmul.f32 %v16357_v40, %v755_v62  ;;  %v801_v49 = vmul.f32 %v16357_v40, %v761_v21  ;;  %v764_v33 = vmul.f32 %v16268_v42, %v16167_v12  ;;  %v13920_v12 = vld [vmem:[#allocation8 + $0xcc] ss:$24 sps:$4 sm:$0xff]  }
 0x2c1   : > { %1809 = vmatprep.subr.bf16.mxu1 %v13878_v4  ;;  %2101 = vmatprep.subr.bf16.mxu0 %v13881_v5  ;;  %v848_v31 = vadd.f32 %v16251_v51, %v808_v58  ;;  %v13902_v4 = vld [vmem:[#allocation8 + $0x454] ss:$24 sps:$4 sm:$0xff]   ;;  %v752_v5 = vmul.f32 %v16227_v23, %v16101_v22  ;;  %v13903_v51 = vld [vmem:[#allocation8 + $0x460] ss:$24 sps:$4 sm:$0xff]   ;;  %v770_v35 = vmul.f32 %v16297_v44, %v16197_v46 }
 0x2c2   : > { %v13908_v22 = vld [vmem:[#allocation8 + $0xc] ss:$24 sps:$4 sm:$0xff]   ;;  %v835_v0 = vadd.f32 %v16367_v11, %v795_v45  ;;  %v13936_v45 = vld [vmem:[#allocation8 + $0x1e8] ss:$24 sps:$4 sm:$0xff]  }
 0x2c3   : > { %1810 = vmatpush1.bf16.msra.mxu1 %v13876_v10  ;;  %v16362_v37 = vpack.c.bf16 %v851_v61, %v848_v31  ;;  %v792_v23 = vmul.f32 %v16357_v40, %v752_v5  ;;  %v18121_v10 = vmov 0   ;;  %v13926_v46 = vld [vmem:[#allocation8 + $0x12c] ss:$24 sps:$4 sm:$0xff]   ;;  %v13924_v61 = vld [vmem:[#allocation8 + $0x128] ss:$24 sps:$4 sm:$0xff]  }
 0x2c4   : > { %2102 = vmatpush1.bf16.msra.mxu0 %v13879_v13  ;;  %1811 = vmatprep.subr.bf16.mxu1 %v13884_v14  ;;  %v13906_v13 = vld [vmem:[#allocation8 + $0x8] ss:$24 sps:$4 sm:$0xff]   ;;  %v13932_v31 = vld [vmem:[#allocation8 + $0x18c] ss:$24 sps:$4 sm:$0xff]   ;;  %v13933_v5 = vld [vmem:[#allocation8 + $0x1b8] ss:$24 sps:$4 sm:$0xff]  }
 0x2c5   : > { %2103 = vmatprep.subr.bf16.mxu0 %v13887_v32  ;;  %v832_v14 = vadd.f32 %v16367_v11, %v792_v23  ;;  %v758_v32 = vmul.f32 %v16253_v20, %v16110_v29  ;;  %v841_v29 = vadd.f32 %v16367_v11, %v801_v49  ;;  %v767_v20 = vmul.f32 %v16285_v25, %v16176_v27  ;;  %v13915_v27 = vld [vmem:[#allocation8 + $0x98] ss:$24 sps:$4 sm:$0xff]   ;;  %v13948_v21 = vld [vmem:[#allocation8 + $0x2a8] ss:$24 sps:$4 sm:$0xff]   ;;  %v13959_v49 = vld [vmem:[#allocation8 + $0x33c] ss:$24 sps:$4 sm:$0xff]  }
 0x2c6   : > { %1783 = vmatmul.mubr.bf16.gmra.mrb[8].mxu1 %v16339_v50  ;;  %2075 = vmatmul.mubr.bf16.gmra.mrb[8].mxu0 %v16339_v50  ;;  %v773_v25 = vmul.f32 %v16303_v55, %v16204_v54  ;;  %v13921_v54 = vld [vmem:[#allocation8 + $0xf8] ss:$24 sps:$4 sm:$0xff]  }
 0x2c7   : > { %1812 = vmatpush1.bf16.msra.mxu1 %v13882_v24  ;;  %1792 = vmatprep.mubr.bf16.mxu1 %v16342_v18  ;;  %v16380_v19 = vpack.c.bf16 %v835_v0, %v832_v14  ;;  %v798_v60 = vmul.f32 %v16357_v40, %v758_v32  ;;  %v807_v28 = vmul.f32 %v16357_v40, %v767_v20  ;;  %v13945_v23 = vld [vmem:[#allocation8 + $0x278] ss:$24 sps:$4 sm:$0xff]   ;;  %v13950_v0 = vld [vmem:[#allocation8 + $0x2ac] ss:$24 sps:$4 sm:$0xff]   ;;  %v13954_v32 = vld [vmem:[#allocation8 + $0x308] ss:$24 sps:$4 sm:$0xff]  }
 0x2c8   : > { %2084 = vmatprep.mubr.bf16.mxu0 %v16342_v18  ;;  %2104 = vmatpush1.bf16.msra.mxu0 %v13885_v36  ;;  %v813_v58 = vmul.f32 %v16357_v40, %v773_v25  ;;  %v13951_v14 = vld [vmem:[#allocation8 + $0x2d8] ss:$24 sps:$4 sm:$0xff]  }
 0x2c9   : > { %1813 = vmatprep.subr.bf16.mxu1 %v13890_v38  ;;  %2105 = vmatprep.subr.bf16.mxu0 %v13893_v39  ;;  %v838_v24 = vadd.f32 %v16367_v11, %v798_v60  ;;  %v804_v38 = vmul.f32 %v16357_v40, %v764_v33  ;;  %v847_v42 = vadd.f32 %v16367_v11, %v807_v28  ;;  %v13960_v60 = vld [vmem:[#allocation8 + $0x368] ss:$24 sps:$4 sm:$0xff]   ;;  %v13963_v20 = vld [vmem:[#allocation8 + $0x398] ss:$24 sps:$4 sm:$0xff]  }
 0x2ca   : > { %v853_v44 = vadd.f32 %v16367_v11, %v813_v58  ;;  %v13969_v33 = vld [vmem:[#allocation8 + $0x3f8] ss:$24 sps:$4 sm:$0xff]  }
 0x2cb   : > { %1814 = vmatpush1.bf16.msra.mxu1 %v13888_v8  ;;  %v16394_v36 = vpack.c.bf16 %v841_v29, %v838_v24  ;;  %v844_v39 = vadd.f32 %v16367_v11, %v804_v38  ;;  %v13918_v8 = vld [vmem:[#allocation8 + $0xc8] ss:$24 sps:$4 sm:$0xff]   ;;  %v13965_v29 = vld [vmem:[#allocation8 + $0x39c] ss:$24 sps:$4 sm:$0xff]   ;;  %v13968_v24 = vld [vmem:[#allocation8 + $0x3cc] ss:$24 sps:$4 sm:$0xff]  }
 0x2cc   : > { %2106 = vmatpush1.bf16.msra.mxu0 %v13891_v30  ;;  %1815 = vmatprep.subr.bf16.mxu1 %v13896_v41  ;;  %v13923_v41 = vld [vmem:[#allocation8 + $0xfc] ss:$24 sps:$4 sm:$0xff]  }
 0x2cd   : > { %2107 = vmatprep.subr.bf16.mxu0 %v13899_v59  ;;  %v16408_v30 = vpack.c.bf16 %v847_v42, %v844_v39  ;;  %v810_v59 = vmul.f32 %v16357_v40, %v770_v35  ;;  %v13927_v40 = vld [vmem:[#allocation8 + $0x158] ss:$24 sps:$4 sm:$0xff]  }
 0x2ce   : > { %1793 = vmatmul.mubr.bf16.gmra.mrb[12].mxu1 %v16362_v37  ;;  %2085 = vmatmul.mubr.bf16.gmra.mrb[12].mxu0 %v16362_v37 }
 0x2cf   : > { %1816 = vmatpush1.bf16.msra.mxu1 %v13894_v3  ;;  %1835 = vmatprep.mubr.bf16.mxu1 %v18121_v10  ;;  %v850_v55 = vadd.f32 %v16367_v11, %v810_v59  ;;  %v13929_v3 = vld [vmem:[#allocation8 + $0x15c] ss:$24 sps:$4 sm:$0xff]   ;;  %v13939_v11 = vld [vmem:[#allocation8 + $0x218] ss:$24 sps:$4 sm:$0xff]  }
 0x2d0   : > { %2108 = vmatpush1.bf16.msra.mxu0 %v13897_v6  ;;  %1817 = vmatprep.subr.bf16.mxu1 %v13902_v4  ;;  %v13930_v6 = vld [vmem:[#allocation8 + $0x188] ss:$24 sps:$4 sm:$0xff]   ;;  %v13935_v4 = vld [vmem:[#allocation8 + $0x1bc] ss:$24 sps:$4 sm:$0xff]  }
 0x2d1   : > { %2109 = vmatprep.subr.bf16.mxu0 %v13905_v26  ;;  %2127 = vmatprep.mubr.bf16.mxu0 %v18121_v10  ;;  %v16418_v62 = vpack.c.bf16 %v853_v44, %v850_v55  ;;  %v13938_v26 = vld [vmem:[#allocation8 + $0x1ec] ss:$24 sps:$4 sm:$0xff]  }
 0x2d3   : > { %1818 = vmatpush1.bf16.msra.mxu1 %v13900_v43  ;;  %v13941_v43 = vld [vmem:[#allocation8 + $0x21c] ss:$24 sps:$4 sm:$0xff]  }
 0x2d4   : > { %2110 = vmatpush1.bf16.msra.mxu0 %v13903_v51  ;;  %1876 = vmatprep.subr.bf16.mxu1 %v13908_v22  ;;  %v13944_v51 = vld [vmem:[#allocation8 + $0x24c] ss:$24 sps:$4 sm:$0xff]   ;;  %v13947_v22 = vld [vmem:[#allocation8 + $0x27c] ss:$24 sps:$4 sm:$0xff]  }
 0x2d6   : > { %1836 = vmatmul.mubr.bf16.vlgmr.msra.gmra.mrb[0].mxu1 %v16380_v19 }
 0x2d7   : > { %1877 = vmatpush1.bf16.msra.mxu1 %v13906_v13  ;;  %2128 = vmatmul.mubr.bf16.vlgmr.msra.gmra.mrb[0].mxu0 %v16380_v19  ;;  %v13953_v13 = vld [vmem:[#allocation8 + $0x2dc] ss:$24 sps:$4 sm:$0xff]  }
 0x2d8   : > { %1878 = vmatprep.subr.bf16.mxu1 %v13911_v17  ;;  %1845 = vmatprep.mubr.bf16.mxu1 %v18121_v10  ;;  %v13956_v17 = vld [vmem:[#allocation8 + $0x30c] ss:$24 sps:$4 sm:$0xff]  }
 0x2d9   : > { %2137 = vmatprep.mubr.bf16.mxu0 %v18121_v10 }
 0x2db   : > { %1879 = vmatpush1.bf16.msra.mxu1 %v13909_v47  ;;  %v13957_v47 = vld [vmem:[#allocation8 + $0x338] ss:$24 sps:$4 sm:$0xff]  }
 0x2dc   : > { %1880 = vmatprep.subr.bf16.mxu1 %v13914_v53  ;;  %v13962_v53 = vld [vmem:[#allocation8 + $0x36c] ss:$24 sps:$4 sm:$0xff]  }
 0x2de   : > { %1846 = vmatmul.mubr.bf16.gmra.mrb[4].mxu1 %v16394_v36 }
 0x2df   : > { %1881 = vmatpush1.bf16.msra.mxu1 %v13912_v34  ;;  %2138 = vmatmul.mubr.bf16.gmra.mrb[4].mxu0 %v16394_v36  ;;  %v13974_v34 = vld [vmem:[#allocation8 + $0x42c] ss:$24 sps:$4 sm:$0xff]  }
 0x2e0   : > { %1882 = vmatprep.subr.bf16.mxu1 %v13917_v2  ;;  %1855 = vmatprep.mubr.bf16.mxu1 %v18121_v10  ;;  %v13975_v2 = vld [vmem:[#allocation8 + $0x458] ss:$24 sps:$4 sm:$0xff]  }
 0x2e1   : > { %2147 = vmatprep.mubr.bf16.mxu0 %v18121_v10 }
 0x2e3   : > { %1883 = vmatpush1.bf16.msra.mxu1 %v13915_v27 }
 0x2e4   : > { %1884 = vmatprep.subr.bf16.mxu1 %v13920_v12 }
 0x2e6   : > { %1856 = vmatmul.mubr.bf16.gmra.mrb[8].mxu1 %v16408_v30 }
 0x2e7   : > { %1885 = vmatpush1.bf16.msra.mxu1 %v13918_v8  ;;  %2148 = vmatmul.mubr.bf16.gmra.mrb[8].mxu0 %v16408_v30 }
 0x2e8   : > { %1886 = vmatprep.subr.bf16.mxu1 %v13923_v41  ;;  %1865 = vmatprep.mubr.bf16.mxu1 %v18121_v10 }
 0x2e9   : > { %2157 = vmatprep.mubr.bf16.mxu0 %v18121_v10 }
 0x2eb   : > { %1887 = vmatpush1.bf16.msra.mxu1 %v13921_v54 }
 0x2ec   : > { %1888 = vmatprep.subr.bf16.mxu1 %v13926_v46 }
 0x2ee   : > { %1866 = vmatmul.mubr.bf16.gmra.mrb[12].mxu1 %v16418_v62 }
 0x2ef   : > { %1889 = vmatpush1.bf16.msra.mxu1 %v13924_v61  ;;  %2158 = vmatmul.mubr.bf16.gmra.mrb[12].mxu0 %v16418_v62 }
 0x2f0   : > { %1908 = vmatprep.mubr.bf16.mxu1 %v16278_v15  ;;  %1890 = vmatprep.subr.bf16.mxu1 %v13929_v3  ;;  %v13942_v15 = vld [vmem:[#allocation8 + $0x248] ss:$24 sps:$4 sm:$0xff]  }
 0x2f3   : > { %1891 = vmatpush1.bf16.msra.mxu1 %v13927_v40 }
 0x2f4   : > { %1892 = vmatprep.subr.bf16.mxu1 %v13932_v31 }
 0x2f7   : > { %1893 = vmatpush1.bf16.msra.mxu1 %v13930_v6 }
 0x2f8   : > { %1894 = vmatprep.subr.bf16.mxu1 %v13935_v4 }
 0x2fb   : > { %1895 = vmatpush1.bf16.msra.mxu1 %v13933_v5 }
 0x2fc   : > { %1896 = vmatprep.subr.bf16.mxu1 %v13938_v26 }
 0x2ff   : > { %1897 = vmatpush1.bf16.msra.mxu1 %v13936_v45 }
 0x300   : > { %1898 = vmatprep.subr.bf16.mxu1 %v13941_v43 }
 0x303   : > { %1899 = vmatpush1.bf16.msra.mxu1 %v13939_v11 }
 0x304   : > { %1900 = vmatprep.subr.bf16.mxu1 %v13944_v51 }
 0x307   : > { %1901 = vmatpush1.bf16.msra.mxu1 %v13942_v15 }
 0x308   : > { %1902 = vmatprep.subr.bf16.mxu1 %v13947_v22 }
 0x30b   : > { %1903 = vmatpush1.bf16.msra.mxu1 %v13945_v23 }
 0x30c   : > { %1904 = vmatprep.subr.bf16.mxu1 %v13950_v0 }
 0x30f   : > { %1905 = vmatpush1.bf16.msra.mxu1 %v13948_v21 }
 0x310   : > { %1906 = vmatprep.subr.bf16.mxu1 %v13953_v13 }
 0x313   : > { %1907 = vmatpush1.bf16.msra.mxu1 %v13951_v14 }
 0x314   : > { %1949 = vmatprep.subr.bf16.mxu1 %v13956_v17 }
 0x316   : > { %1909 = vmatmul.mubr.bf16.vlgmr.msra.gmra.mrb[16].mxu1 %v16280_v16  ;;  %v13966_v16 = vld [vmem:[#allocation8 + $0x3c8] ss:$24 sps:$4 sm:$0xff]  }
 0x317   : > { %1918 = vmatprep.mubr.bf16.mxu1 %v16299_v48  ;;  %1950 = vmatpush1.bf16.msra.mxu1 %v13954_v32  ;;  %v13971_v48 = vld [vmem:[#allocation8 + $0x3fc] ss:$24 sps:$4 sm:$0xff]  }
 0x318   : > { %1951 = vmatprep.subr.bf16.mxu1 %v13959_v49 }
 0x31b   : > { %1952 = vmatpush1.bf16.msra.mxu1 %v13957_v47 }
 0x31c   : > { %1953 = vmatprep.subr.bf16.mxu1 %v13962_v53 }
 0x31e   : > { %1919 = vmatmul.mubr.bf16.gmra.mrb[20].mxu1 %v16319_v7  ;;  %v13972_v7 = vld [vmem:[#allocation8 + $0x428] ss:$24 sps:$4 sm:$0xff]  }
 0x31f   : > { %1928 = vmatprep.mubr.bf16.mxu1 %v16322_v9  ;;  %1954 = vmatpush1.bf16.msra.mxu1 %v13960_v60  ;;  %v13977_v9 = vld [vmem:[#allocation8 + $0x45c] ss:$24 sps:$4 sm:$0xff]  }
 0x320   : > { %1955 = vmatprep.subr.bf16.mxu1 %v13965_v29 }
 0x323   : > { %1956 = vmatpush1.bf16.msra.mxu1 %v13963_v20 }
 0x324   : > { %1957 = vmatprep.subr.bf16.mxu1 %v13968_v24 }
 0x326   : > { %1929 = vmatmul.mubr.bf16.gmra.mrb[24].mxu1 %v16339_v50 }
 0x327   : > { %1938 = vmatprep.mubr.bf16.mxu1 %v16342_v18  ;;  %1958 = vmatpush1.bf16.msra.mxu1 %v13966_v16 }
 0x328   : > { %1959 = vmatprep.subr.bf16.mxu1 %v13971_v48 }
 0x32b   : > { %1960 = vmatpush1.bf16.msra.mxu1 %v13969_v33 }
 0x32c   : > { %1961 = vmatprep.subr.bf16.mxu1 %v13974_v34 }
 0x32e   : > { %1939 = vmatmul.mubr.bf16.gmra.mrb[28].mxu1 %v16362_v37 }
 0x32f   : > { %1962 = vmatpush1.bf16.msra.mxu1 %v13972_v7  ;;  %1981 = vmatprep.mubr.bf16.mxu1 %v18121_v10 }
 0x330   : > { %1963 = vmatprep.subr.bf16.mxu1 %v13977_v9 }
 0x333   : > { %1964 = vmatpush1.bf16.msra.mxu1 %v13975_v2 }
 0x336   : > { %1982 = vmatmul.mubr.bf16.vlgmr.msra.gmra.mrb[16].mxu1 %v16380_v19 }
 0x337   : > { %1991 = vmatprep.mubr.bf16.mxu1 %v18121_v10 }
 0x33e   : > { %1992 = vmatmul.mubr.bf16.gmra.mrb[20].mxu1 %v16394_v36 }
 0x33f   : > { %2001 = vmatprep.mubr.bf16.mxu1 %v18121_v10 }
 0x346   : > { %2002 = vmatmul.mubr.bf16.gmra.mrb[24].mxu1 %v16408_v30 }
 0x347   : > { %2011 = vmatprep.mubr.bf16.mxu1 %v18121_v10 }
 0x34e   : > { %2012 = vmatmul.mubr.bf16.gmra.mrb[28].mxu1 %v16418_v62 }
 0x3a9   : > { %v1837_v50 = vpop.f32.mrb[0].mxu1 }
 0x3aa   : > { %v2129_v18 = vpop.f32.mrb[0].mxu0  ;;  %v1839_v37 = vpop.f32.mrb[1].mxu1 }
 0x3ab   : > { %v2131_v28 = vpop.f32.mrb[1].mxu0  ;;  %v1841_v38 = vpop.f32.mrb[2].mxu1 }
 0x3ac   : > { %v16438_v27 = vpack.c.bf16 %v1841_v38, %v1837_v50  ;;  %v2133_v19 = vpop.f32.mrb[2].mxu0  ;;  %v1843_v12 = vpop.f32.mrb[3].mxu1 }
 0x3ad   : > { %v16440_v42 = vpack.c.bf16 %v2133_v19, %v2129_v18  ;;  %v16442_v36 = vpack.c.bf16 %v1843_v12, %v1839_v37  ;;  %v2135_v25 = vpop.f32.mrb[3].mxu0 }
 0x3ae   : > { %v16444_v39 = vpack.c.bf16 %v2135_v25, %v2131_v28  ;;  %13566 = vmatprep.subr.msk.bf16.mxu1 %vm2203_vm0, %v16438_v27  ;;  %12830 = vmatprep.mubr.msk.bf16.mxu1 %vm2203_vm0, %v16438_v27  ;;  %v2205_v35 = vsel %vm2203_vm0, %v16438_v27, 0 }
 0x3af   : > { %12823 = vmatpush3.bf16.xpose.msra.mxu1 %v2205_v35 }
 0x3b1   : > { %v1847_v8 = vpop.f32.mrb[4].mxu1 }
 0x3b2   : > { %v2139_v30 = vpop.f32.mrb[4].mxu0  ;;  %v1849_v41 = vpop.f32.mrb[5].mxu1 }
 0x3b3   : > { %v2141_v58 = vpop.f32.mrb[5].mxu0  ;;  %v1851_v59 = vpop.f32.mrb[6].mxu1 }
 0x3b4   : > { %v16452_v54 = vpack.c.bf16 %v1851_v59, %v1847_v8  ;;  %v2143_v46 = vpop.f32.mrb[6].mxu0  ;;  %v1853_v44 = vpop.f32.mrb[7].mxu1 }
 0x3b5   : > { %v16454_v55 = vpack.c.bf16 %v2143_v46, %v2139_v30  ;;  %v16456_v61 = vpack.c.bf16 %v1853_v44, %v1849_v41  ;;  %v2145_v62 = vpop.f32.mrb[7].mxu0 }
 0x3b6   : > { %v16458_v3 = vpack.c.bf16 %v2145_v62, %v2141_v58  ;;  %13567 = vmatprep.subr.msk.bf16.mxu1 %vm2203_vm0, %v16452_v54  ;;  %v2208_v40 = vsel %vm2203_vm0, %v16452_v54, 0 }
 0x3b7   : > { %12825 = vmatpush3.bf16.xpose.msra.mxu1 %v2208_v40 }
 0x3b9   : > { %v1857_v31 = vpop.f32.mrb[8].mxu1 }
 0x3ba   : > { %v2149_v6 = vpop.f32.mrb[8].mxu0  ;;  %v1859_v4 = vpop.f32.mrb[9].mxu1 }
 0x3bb   : > { %v2151_v5 = vpop.f32.mrb[9].mxu0  ;;  %v1861_v26 = vpop.f32.mrb[10].mxu1 }
 0x3bc   : > { %v16464_v45 = vpack.c.bf16 %v1861_v26, %v1857_v31  ;;  %v2153_v43 = vpop.f32.mrb[10].mxu0  ;;  %v1863_v11 = vpop.f32.mrb[11].mxu1  ;;  %v2178_v31 = vand.u32 127, %v775_v52 }
 0x3bd   : > { %v16466_v51 = vpack.c.bf16 %v2153_v43, %v2149_v6  ;;  %v16468_v15 = vpack.c.bf16 %v1863_v11, %v1859_v4  ;;  %v2155_v22 = vpop.f32.mrb[11].mxu0  ;;  %v2170_v6 = vadd.s32 8, %v16215_v57  ;;  %v2171_v4 = vadd.s32 16, %v16215_v57 }
 0x3be   : > { %v16470_v23 = vpack.c.bf16 %v2155_v22, %v2151_v5  ;;  %13568 = vmatprep.subr.msk.bf16.mxu1 %vm2203_vm0, %v16464_v45  ;;  %v2211_v0 = vsel %vm2203_vm0, %v16464_v45, 0  ;;  %vm2179_vm1 = vcmp.le.s32.totalorder %v2178_v31, %v16215_v57  ;;  %v2172_v5 = vadd.s32 24, %v16215_v57 }
 0x3bf   : > { %12827 = vmatpush3.bf16.xpose.msra.mxu1 %v2211_v0  ;;  %vm2180_vm2 = vcmp.le.s32.totalorder %v2178_v31, %v2170_v6  ;;  %vm2181_vm3 = vcmp.le.s32.totalorder %v2178_v31, %v2171_v4  ;;  %v15611_v11 = vmov -inf   ;;  %v2173_v0 = vadd.s32 32, %v16215_v57 }
 0x3c0   : > { %v16523_v22 = vsel %vm2179_vm1, 0.0, %v15611_v11  ;;  %vm2182_vm4 = vcmp.le.s32.totalorder %v2178_v31, %v2172_v5 }
 0x3c1   : > { %v1867_v21 = vpop.f32.mrb[12].mxu1  ;;  %vm2183_vm5 = vcmp.le.s32.totalorder %v2178_v31, %v2173_v0 }
 0x3c2   : > { %v2159_v13 = vpop.f32.mrb[12].mxu0  ;;  %v1869_v14 = vpop.f32.mrb[13].mxu1 }
 0x3c3   : > { %v2161_v17 = vpop.f32.mrb[13].mxu0  ;;  %v1871_v32 = vpop.f32.mrb[14].mxu1 }
 0x3c4   : > { %v16476_v49 = vpack.c.bf16 %v1871_v32, %v1867_v21  ;;  %v2163_v47 = vpop.f32.mrb[14].mxu0  ;;  %v1873_v53 = vpop.f32.mrb[15].mxu1  ;;  %v16528_v32 = vsel %vm2181_vm3, 0.0, %v15611_v11 }
 0x3c5   : > { %v16478_v60 = vpack.c.bf16 %v2163_v47, %v2159_v13  ;;  %v16480_v29 = vpack.c.bf16 %v1873_v53, %v1869_v14  ;;  %v2165_v20 = vpop.f32.mrb[15].mxu0  ;;  %v2174_v47 = vadd.s32 40, %v16215_v57 }
 0x3c6   : > { %v16482_v24 = vpack.c.bf16 %v2165_v20, %v2161_v17  ;;  %13569 = vmatprep.subr.msk.bf16.mxu1 %vm2203_vm0, %v16476_v49  ;;  %v2214_v16 = vsel %vm2203_vm0, %v16476_v49, 0  ;;  %v16526_v17 = vsel %vm2180_vm2, 0.0, %v15611_v11 }
 0x3c7   : > { %12829 = vmatpush3.bf16.xpose.msra.mxu1 %v2214_v16  ;;  %vm2184_vm6 = vcmp.le.s32.totalorder %v2178_v31, %v2174_v47 }
 0x3c8   : > { %v16544_v6 = vsel %vm2184_vm6, 0.0, %v15611_v11 }
 0x3ce   : > { %12831 = vmatmul.mubr.msk.bf16.vlgmr.msra.gmra.mrb[32].mxu1 %vm2203_vm0, %v16452_v54 }
 0x3cf   : > { %12834 = vmatprep.mubr.msk.bf16.mxu1 %vm2203_vm0, %v16464_v45 }
 0x3d6   : > { %12835 = vmatmul.mubr.msk.bf16.gmra.mrb[36].mxu1 %vm2203_vm0, %v16476_v49 }
 0x409   : > { %v1983_v48 = vpop.f32.mrb[16].mxu1 }
 0x40a   : > { %v1985_v33 = vpop.f32.mrb[17].mxu1 }
 0x40b   : > { %v1987_v34 = vpop.f32.mrb[18].mxu1 }
 0x40c   : > { %v16494_v7 = vpack.c.bf16 %v1987_v34, %v1983_v48  ;;  %v1989_v9 = vpop.f32.mrb[19].mxu1  ;;  %v2175_v48 = vadd.s32 48, %v16215_v57 }
 0x40d   : > { %v16496_v2 = vpack.c.bf16 %v1989_v9, %v1985_v33  ;;  %v16533_v33 = vsel %vm2182_vm4, 0.0, %v15611_v11 }
 0x40e   : > { %vm2185_vm7 = vcmp.le.s32.totalorder %v2178_v31, %v2175_v48 }
 0x40f   : > { %12838 = vmatprep.subr.bf16.mxu1 %v16496_v2  ;;  %v16546_v4 = vsel %vm2185_vm7, 0.0, %v15611_v11 }
 0x410   : > { %12839 = vmatpush3.bf16.msra.mxu1 %v16496_v2 }
 0x411   : > { %v1993_v50 = vpop.f32.mrb[20].mxu1 }
 0x412   : > { %v1995_v18 = vpop.f32.mrb[21].mxu1 }
 0x413   : > { %v1997_v37 = vpop.f32.mrb[22].mxu1 }
 0x414   : > { %v16500_v28 = vpack.c.bf16 %v1997_v37, %v1993_v50  ;;  %v1999_v38 = vpop.f32.mrb[23].mxu1 }
 0x415   : > { %v16502_v19 = vpack.c.bf16 %v1999_v38, %v1995_v18  ;;  %v2176_v18 = vadd.s32 56, %v16215_v57 }
 0x417   : > { %12840 = vmatprep.subr.bf16.mxu1 %v16502_v19  ;;  %vm2186_vm8 = vcmp.le.s32.totalorder %v2178_v31, %v2176_v18 }
 0x418   : > { %12841 = vmatpush3.bf16.msra.mxu1 %v16502_v19 }
 0x419   : > { %v2003_v12 = vpop.f32.mrb[24].mxu1 }
 0x41a   : > { %v2005_v25 = vpop.f32.mrb[25].mxu1 }
 0x41b   : > { %v2007_v35 = vpop.f32.mrb[26].mxu1 }
 0x41c   : > { %v16506_v8 = vpack.c.bf16 %v2007_v35, %v2003_v12  ;;  %v2009_v30 = vpop.f32.mrb[27].mxu1  ;;  %v16541_v35 = vsel %vm2183_vm5, 0.0, %v15611_v11 }
 0x41d   : > { %v16508_v41 = vpack.c.bf16 %v2009_v30, %v2005_v25 }
 0x41f   : > { %12842 = vmatprep.subr.bf16.mxu1 %v16508_v41 }
 0x420   : > { %12843 = vmatpush3.bf16.msra.mxu1 %v16508_v41 }
 0x421   : > { %v2013_v58 = vpop.f32.mrb[28].mxu1 }
 0x422   : > { %v2015_v59 = vpop.f32.mrb[29].mxu1 }
 0x423   : > { %v2017_v46 = vpop.f32.mrb[30].mxu1 }
 0x424   : > { %v16512_v44 = vpack.c.bf16 %v2017_v46, %v2013_v58  ;;  %v2019_v62 = vpop.f32.mrb[31].mxu1 }
 0x425   : > { %v16514_v40 = vpack.c.bf16 %v2019_v62, %v2015_v59 }
 0x427   : > { %12844 = vmatprep.subr.bf16.mxu1 %v16514_v40 }
 0x428   : > { %12845 = vmatpush3.bf16.msra.mxu1 %v16514_v40 }
 0x4a1   : > { %v12832_v26 = vpop.f32.mrb[32].mxu1 }
 0x4a2   : > { %v2250_v43 = vpop.f32.mrb[33].mxu1  ;;  %v2283_v21 = vmul.f32 0.125, %v12832_v26 }
 0x4a3   : > { %v2281_v13 = vmul.f32 0.125, %v2250_v43  ;;  %v12833_v52 = vpop.f32.mrb[34].mxu1 }
 0x4a4   : > { %v2253_v14 = vpop.f32.mrb[35].mxu1  ;;  %v2284_v53 = vmul.f32 0.125, %v12833_v52  ;;  %v2291_v50 = vadd.f32 %v2283_v21, %v16528_v32  ;;  %v16550_v21 = vsel %vm2186_vm8, 0.0, %v15611_v11 }
 0x4a5   : > { %v2282_v20 = vmul.f32 0.125, %v2253_v14  ;;  %v2289_v16 = vadd.f32 %v2281_v13, %v16523_v22 }
 0x4a6   : > { %v2292_v12 = vadd.f32 %v2284_v53, %v16533_v33  ;;  %v2303_v46 = vsel %vm2203_vm0, %v2291_v50, -inf }
 0x4a7   : > { %v2297_v34 = vsel %vm2203_vm0, %v2289_v16, -inf  ;;  %v2290_v9 = vadd.f32 %v2282_v20, %v16526_v17 }
 0x4a8   : > { %2298 = vmax.xlane.f32.xlu0 %v2297_v34  ;;  %v2306_v43 = vsel %vm2203_vm0, %v2292_v12, -inf }
 0x4a9   : > { %v12836_v37 = vpop.f32.mrb[36].mxu1  ;;  %v2300_v38 = vsel %vm2203_vm0, %v2290_v9, -inf }
 0x4aa   : > { %2301 = vmax.xlane.f32.xlu1 %v2300_v38  ;;  %v2266_v25 = vpop.f32.mrb[37].mxu1  ;;  %v2287_v30 = vmul.f32 0.125, %v12836_v37 }
 0x4ab   : > { %v2285_v58 = vmul.f32 0.125, %v2266_v25  ;;  %v12837_v59 = vpop.f32.mrb[38].mxu1 }
 0x4ac   : > { %2304 = vmax.xlane.f32.xlu0 %v2303_v46  ;;  %v2269_v62 = vpop.f32.mrb[39].mxu1  ;;  %v2288_v5 = vmul.f32 0.125, %v12837_v59  ;;  %v2295_v31 = vadd.f32 %v2287_v30, %v16546_v4 }
 0x4ad   : > { %v2286_v26 = vmul.f32 0.125, %v2269_v62  ;;  %v2293_v0 = vadd.f32 %v2285_v58, %v16541_v35 }
 0x4ae   : > { %2307 = vmax.xlane.f32.xlu1 %v2306_v43  ;;  %v2296_v47 = vadd.f32 %v2288_v5, %v16550_v21  ;;  %v2315_v53 = vsel %vm2203_vm0, %v2295_v31, -inf }
 0x4af   : > { %v2309_v13 = vsel %vm2203_vm0, %v2293_v0, -inf  ;;  %v2294_v52 = vadd.f32 %v2286_v26, %v16544_v6 }
 0x4b0   : > { %2310 = vmax.xlane.f32.xlu0 %v2309_v13  ;;  %v2318_v20 = vsel %vm2203_vm0, %v2296_v47, -inf }
 0x4b1   : > { %v2312_v14 = vsel %vm2203_vm0, %v2294_v52, -inf }
 0x4b2   : > { %2313 = vmax.xlane.f32.xlu1 %v2312_v14 }
 0x4b4   : > { %2316 = vmax.xlane.f32.xlu0 %v2315_v53 }
 0x4b6   : > { %2319 = vmax.xlane.f32.xlu1 %v2318_v20 }
 0x535   : > { %v2299_v11 = vpop.xlane.xlu0 %2298 }
 0x536   : > { %v2321_v48 = vsub.f32 %v2289_v16, %v2299_v11 }
 0x537   : > { %v2302_v34 = vpop.xlane.xlu1 %2301 }
 0x538   : > { %v2322_v37 = vsub.f32 %v2290_v9, %v2302_v34  ;;  %v2329_v25 = vmul.f32 1.442695, %v2321_v48 }
 0x539   : > { %v2305_v18 = vpop.xlane.xlu0 %2304 }
 0x53a   : > { %v2323_v38 = vsub.f32 %v2291_v50, %v2305_v18  ;;  %v2331_v62 = vmul.f32 1.442695, %v2322_v37 }
 0x53b   : > { %v2308_v30 = vpop.xlane.xlu1 %2307 }
 0x53c   : > { %v2333_v58 = vmul.f32 1.442695, %v2323_v38  ;;  %v2324_v59 = vsub.f32 %v2292_v12, %v2308_v30 }
 0x53d   : > { %v2311_v46 = vpop.xlane.xlu0 %2310 }
 0x53e   : > { %14906 = vpow2.f32 %v2333_v58  ;;  %v2335_v5 = vmul.f32 1.442695, %v2324_v59  ;;  %v2325_v26 = vsub.f32 %v2293_v0, %v2311_v46 }
 0x53f   : > { %14908 = vpow2.f32 %v2329_v25  ;;  %v2314_v38 = vpop.xlane.xlu1 %2313 }
 0x540   : > { %14910 = vpow2.f32 %v2335_v5  ;;  %v2337_v14 = vmul.f32 1.442695, %v2325_v26  ;;  %v2326_v58 = vsub.f32 %v2294_v52, %v2314_v38 }
 0x541   : > { %v2317_v43 = vpop.xlane.xlu0 %2316  ;;  %14912 = vpow2.f32 %v2331_v62 }
 0x542   : > { %v2327_v13 = vsub.f32 %v2295_v31, %v2317_v43  ;;  %v2339_v46 = vmul.f32 1.442695, %v2326_v58 }
 0x543   : > { %v2320_v25 = vpop.xlane.xlu1 %2319 }
 0x544   : > { %v2341_v16 = vmul.f32 1.442695, %v2327_v13  ;;  %v2328_v30 = vsub.f32 %v2296_v47, %v2320_v25 }
 0x546   : > { %14914 = vpow2.f32 %v2341_v16  ;;  %v2343_v59 = vmul.f32 1.442695, %v2328_v30 }
 0x547   : > { %14916 = vpow2.f32 %v2337_v14 }
 0x548   : > { %v14907_v53 = vpop.eup %14906  ;;  %14918 = vpow2.f32 %v2343_v59 }
 0x549   : > { %v14909_v9 = vpop.eup %14908  ;;  %v2351_v50 = vsel %vm2203_vm0, %v14907_v53, 0.0  ;;  %14920 = vpow2.f32 %v2339_v46 }
 0x54a   : > { %v14911_v20 = vpop.eup %14910  ;;  %2352 = vadd.xlane.f32.xlu0 %v2351_v50  ;;  %v2345_v48 = vsel %vm2203_vm0, %v14909_v9, 0.0 }
 0x54b   : > { %v2354_v12 = vsel %vm2203_vm0, %v14911_v20, 0.0  ;;  %v14913_v11 = vpop.eup %14912 }
 0x54c   : > { %2355 = vadd.xlane.f32.xlu1 %v2354_v12  ;;  %v2348_v0 = vsel %vm2203_vm0, %v14913_v11, 0.0 }
 0x54e   : > { %2346 = vadd.xlane.f32.xlu0 %v2345_v48 }
 0x550   : > { %v16563_v31 = vpop.eup %14914  ;;  %2349 = vadd.xlane.f32.xlu1 %v2348_v0 }
 0x551   : > { %v2363_v34 = vsel %vm2203_vm0, %v16563_v31, 0.0  ;;  %v16567_v18 = vpop.eup %14916 }
 0x552   : > { %2364 = vadd.xlane.f32.xlu0 %v2363_v34  ;;  %v2357_v37 = vsel %vm2203_vm0, %v16567_v18, 0.0  ;;  %v14919_v62 = vpop.eup %14918 }
 0x553   : > { %v2366_v5 = vsel %vm2203_vm0, %v14919_v62, 0.0  ;;  %v14921_v26 = vpop.eup %14920 }
 0x556   : > { %2358 = vadd.xlane.f32.xlu0 %v2357_v37 }
 0x561   : > { %2492 = vrot.lane.b32.xlu1 %v16452_v54, %s15612_s19  ;;  %v2360_v54 = vsel %vm2203_vm0, %v14921_v26, 0.0 }
 0x565   : > { %2494 = vrot.lane.b32.xlu1 %v16464_v45, %s15612_s19 }
 0x56c   : > { %2490 = vrot.lane.b32.xlu0 %v16438_v27, %s15612_s19 }
 0x589   : > { %2367 = vadd.xlane.f32.xlu1 %v2366_v5 }
 0x58d   : > { %2361 = vadd.xlane.f32.xlu1 %v2360_v54 }
 0x59e   : > { %2496 = vrot.lane.b32.xlu1 %v16476_v49, %s15612_s19 }
 0x5d7   : > { %v2353_v45 = vpop.xlane.xlu0 %2352 }
 0x5d9   : > { %v2356_v27 = vpop.xlane.xlu1 %2355 }
 0x5da   : > { %14922 = vrcp.f32 %v2356_v27 }
 0x5db   : > { %v2347_v47 = vpop.xlane.xlu0 %2346 }
 0x5dc   : > { %14924 = vrcp.f32 %v2347_v47 }
 0x5dd   : > { %14926 = vrcp.f32 %v2353_v45  ;;  %v2350_v52 = vpop.xlane.xlu1 %2349 }
 0x5de   : > { %14928 = vrcp.f32 %v2350_v52 }
 0x5df   : > { %v2365_v43 = vpop.xlane.xlu0 %2364 }
 0x5e1   : > { %v2493_v58 = vpop.permute.xlu1 %2492 }
 0x5e2   : > { %v2502_v59 = vsel %vm2203_vm0, %v2493_v58, 0 }
 0x5e3   : > { %v2359_v13 = vpop.xlane.xlu0 %2358 }
 0x5e4   : > { %v14923_v14 = vpop.eup %14922 }
 0x5e5   : > { %v2380_v0 = vmul.f32 %v14923_v14, %v14911_v20  ;;  %v2495_v20 = vpop.permute.xlu1 %2494 }
 0x5e6   : > { %v14925_v16 = vpop.eup %14924 }
 0x5e7   : > { %v14927_v50 = vpop.eup %14926  ;;  %v2491_v12 = vpop.permute.xlu0 %2490  ;;  %v2377_v34 = vmul.f32 %v14925_v16, %v14909_v9 }
 0x5e8   : > { %v14929_v48 = vpop.eup %14928  ;;  %13570 = vmatprep.subr.msk.bf16.mxu1 %vm2203_vm0, %v2491_v12  ;;  %v2379_v37 = vmul.f32 %v14927_v50, %v14907_v53  ;;  %v2499_v30 = vsel %vm2203_vm0, %v2491_v12, 0  ;;  %v2505_v53 = vsel %vm2203_vm0, %v2495_v20, 0 }
 0x5e9   : > { %v2378_v49 = vmul.f32 %v14929_v48, %v14913_v11 }
 0x5ea   : > { %v2386_v25 = vpack.c.bf16 %v2380_v0, %v2379_v37 }
 0x5eb   : > { %v2385_v38 = vpack.c.bf16 %v2378_v49, %v2377_v34 }
 0x5ed   : > { %12846 = vmatprep.mubr.msk.bf16.mxu1 %vm2203_vm0, %v2385_v38 }
 0x5ee   : > { %12847 = vmatmul.mubr.msk.bf16.vlgmr.msra.gmra.mrb[40].mxu1 %vm2203_vm0, %v2386_v25 }
 0x5ef   : > { %12855 = vmatpush3.bf16.xpose.msra.mxu1 %v2499_v30 }
 0x5f0   : > { %13571 = vmatprep.subr.msk.bf16.mxu1 %vm2203_vm0, %v2493_v58 }
 0x5f7   : > { %12857 = vmatpush3.bf16.xpose.msra.mxu1 %v2502_v59 }
 0x5f8   : > { %13572 = vmatprep.subr.msk.bf16.mxu1 %vm2203_vm0, %v2495_v20 }
 0x5ff   : > { %12859 = vmatpush3.bf16.xpose.msra.mxu1 %v2505_v53 }
 0x616   : > { %v2368_v9 = vpop.xlane.xlu1 %2367 }
 0x617   : > { %14930 = vrcp.f32 %v2368_v9 }
 0x618   : > { %14932 = vrcp.f32 %v2359_v13 }
 0x619   : > { %14934 = vrcp.f32 %v2365_v43 }
 0x61a   : > { %v2362_v11 = vpop.xlane.xlu1 %2361 }
 0x61b   : > { %14936 = vrcp.f32 %v2362_v11 }
 0x61e   : > { %v2497_v46 = vpop.permute.xlu1 %2496 }
 0x61f   : > { %13573 = vmatprep.subr.msk.bf16.mxu1 %vm2203_vm0, %v2497_v46  ;;  %v2508_v5 = vsel %vm2203_vm0, %v2497_v46, 0 }
 0x620   : > { %12861 = vmatpush3.bf16.xpose.msra.mxu1 %v2508_v5 }
 0x621   : > { %v14931_v54 = vpop.eup %14930 }
 0x622   : > { %v14933_v45 = vpop.eup %14932  ;;  %v2384_v52 = vmul.f32 %v14931_v54, %v14919_v62 }
 0x623   : > { %v14935_v27 = vpop.eup %14934  ;;  %v2381_v14 = vmul.f32 %v14933_v45, %v16567_v18 }
 0x624   : > { %v2383_v50 = vmul.f32 %v14935_v27, %v16563_v31 }
 0x625   : > { %v14937_v47 = vpop.eup %14936 }
 0x626   : > { %v2382_v16 = vmul.f32 %v14937_v47, %v14921_v26  ;;  %v2388_v43 = vpack.c.bf16 %v2384_v52, %v2383_v50 }
 0x628   : > { %v2387_v13 = vpack.c.bf16 %v2382_v16, %v2381_v14 }
 0x62a   : > { %12850 = vmatprep.mubr.msk.bf16.mxu1 %vm2203_vm0, %v2387_v13 }
 0x62b   : > { %12851 = vmatmul.mubr.msk.bf16.gmra.mrb[44].mxu1 %vm2203_vm0, %v2388_v43 }
 0x62c   : > { %12862 = vmatprep.mubr.msk.bf16.mxu1 %vm2203_vm0, %v2491_v12 }
 0x633   : > { %12863 = vmatmul.mubr.msk.bf16.vlgmr.msra.gmra.mrb[48].mxu1 %vm2203_vm0, %v2493_v58 }
 0x634   : > { %12866 = vmatprep.mubr.msk.bf16.mxu1 %vm2203_vm0, %v2495_v20 }
 0x63b   : > { %12867 = vmatmul.mubr.msk.bf16.gmra.mrb[52].mxu1 %vm2203_vm0, %v2497_v46 }
 0x6c1   : > { %v12848_v62 = vpop.f32.mrb[40].mxu1 }
 0x6c2   : > { %v2435_v48 = vpop.f32.mrb[41].mxu1 }
 0x6c3   : > { %v12849_v18 = vpop.f32.mrb[42].mxu1 }
 0x6c4   : > { %v16599_v26 = vpack.c.bf16 %v12849_v18, %v12848_v62  ;;  %v2438_v31 = vpop.f32.mrb[43].mxu1 }
 0x6c5   : > { %v16601_v0 = vpack.c.bf16 %v2438_v31, %v2435_v48 }
 0x6fe   : > { %v12852_v34 = vpop.f32.mrb[44].mxu1 }
 0x6ff   : > { %v2451_v49 = vpop.f32.mrb[45].mxu1 }
 0x700   : > { %v12853_v37 = vpop.f32.mrb[46].mxu1 }
 0x701   : > { %v16603_v38 = vpack.c.bf16 %v12853_v37, %v12852_v34  ;;  %v2454_v12 = vpop.f32.mrb[47].mxu1 }
 0x702   : > { %v16605_v25 = vpack.c.bf16 %v2454_v12, %v2451_v49 }
 0x706   : > { %v12864_v30 = vpop.f32.mrb[48].mxu1 }
 0x707   : > { %v2544_v58 = vpop.f32.mrb[49].mxu1  ;;  %v2577_v59 = vmul.f32 0.125, %v12864_v30 }
 0x708   : > { %v2575_v20 = vmul.f32 0.125, %v2544_v58  ;;  %v12865_v53 = vpop.f32.mrb[50].mxu1 }
 0x709   : > { %v2547_v9 = vpop.f32.mrb[51].mxu1  ;;  %v2578_v5 = vmul.f32 0.125, %v12865_v53  ;;  %v2585_v27 = vadd.f32 %v2577_v59, %v16528_v32 }
 0x70a   : > { %v2576_v11 = vmul.f32 0.125, %v2547_v9  ;;  %v2583_v46 = vadd.f32 %v2575_v20, %v16523_v22 }
 0x70b   : > { %v2597_v13 = vsel %vm2203_vm0, %v2585_v27, -inf  ;;  %v2586_v43 = vadd.f32 %v2578_v5, %v16533_v33 }
 0x70c   : > { %v2591_v54 = vsel %vm2203_vm0, %v2583_v46, -inf  ;;  %v2584_v45 = vadd.f32 %v2576_v11, %v16526_v17 }
 0x70d   : > { %2592 = vmax.xlane.f32.xlu0 %v2591_v54  ;;  %v2600_v49 = vsel %vm2203_vm0, %v2586_v43, -inf }
 0x70e   : > { %v12868_v47 = vpop.f32.mrb[52].mxu1  ;;  %v2594_v52 = vsel %vm2203_vm0, %v2584_v45, -inf }
 0x70f   : > { %2595 = vmax.xlane.f32.xlu1 %v2594_v52  ;;  %v2560_v14 = vpop.f32.mrb[53].mxu1  ;;  %v2581_v34 = vmul.f32 0.125, %v12868_v47 }
 0x710   : > { %v2579_v16 = vmul.f32 0.125, %v2560_v14  ;;  %v12869_v50 = vpop.f32.mrb[54].mxu1 }
 0x711   : > { %v2582_v62 = vmul.f32 0.125, %v12869_v50  ;;  %2598 = vmax.xlane.f32.xlu0 %v2597_v13  ;;  %v2563_v48 = vpop.f32.mrb[55].mxu1  ;;  %v2589_v59 = vadd.f32 %v2581_v34, %v16546_v4 }
 0x712   : > { %v2580_v18 = vmul.f32 0.125, %v2563_v48  ;;  %v2587_v37 = vadd.f32 %v2579_v16, %v16541_v35 }
 0x713   : > { %v16615_v31 = vadd.f32 %v2582_v62, %v16550_v21  ;;  %v2609_v53 = vsel %vm2203_vm0, %v2589_v59, -inf }
 0x714   : > { %v2588_v30 = vadd.f32 %v2580_v18, %v16544_v6  ;;  %v2603_v58 = vsel %vm2203_vm0, %v2587_v37, -inf }
 0x715   : > { %2601 = vmax.xlane.f32.xlu0 %v2600_v49  ;;  %v2612_v12 = vsel %vm2203_vm0, %v16615_v31, -inf }
 0x716   : > { %2613 = vmax.xlane.f32.xlu1 %v2612_v12  ;;  %v2606_v20 = vsel %vm2203_vm0, %v2588_v30, -inf }
 0x719   : > { %2604 = vmax.xlane.f32.xlu0 %v2603_v58 }
 0x71a   : > { %2607 = vmax.xlane.f32.xlu1 %v2606_v20 }
 0x71d   : > { %2610 = vmax.xlane.f32.xlu0 %v2609_v53 }
 0x79a   : > { %v2593_v9 = vpop.xlane.xlu0 %2592 }
 0x79b   : > { %v2615_v11 = vsub.f32 %v2583_v46, %v2593_v9 }
 0x79c   : > { %v2596_v5 = vpop.xlane.xlu1 %2595 }
 0x79d   : > { %v2623_v52 = vmul.f32 1.442695, %v2615_v11  ;;  %v2616_v14 = vsub.f32 %v2584_v45, %v2596_v5 }
 0x79e   : > { %v2599_v54 = vpop.xlane.xlu0 %2598 }
 0x79f   : > { %v2617_v47 = vsub.f32 %v2585_v27, %v2599_v54  ;;  %v2625_v62 = vmul.f32 1.442695, %v2616_v14 }
 0x7a1   : > { %v2627_v16 = vmul.f32 1.442695, %v2617_v47 }
 0x7a2   : > { %v2602_v50 = vpop.xlane.xlu0 %2601 }
 0x7a3   : > { %14938 = vpow2.f32 %v2627_v16  ;;  %v2618_v13 = vsub.f32 %v2586_v43, %v2602_v50 }
 0x7a4   : > { %14940 = vpow2.f32 %v2623_v52  ;;  %v2614_v52 = vpop.xlane.xlu1 %2613 }
 0x7a5   : > { %v2629_v48 = vmul.f32 1.442695, %v2618_v13  ;;  %v2622_v14 = vsub.f32 %v16615_v31, %v2614_v52  ;;  %v13982_v31 = vld [vmem:[#allocation10 + $0x80] ss:$12 sps:$4 sm:$0xff]  }
 0x7a6   : > { %v2605_v18 = vpop.xlane.xlu0 %2604 }
 0x7a7   : > { %14942 = vpow2.f32 %v2629_v48  ;;  %v2619_v34 = vsub.f32 %v2587_v37, %v2605_v18  ;;  %v2637_v50 = vmul.f32 1.442695, %v2622_v14 }
 0x7a8   : > { %14944 = vpow2.f32 %v2625_v62  ;;  %v2608_v16 = vpop.xlane.xlu1 %2607 }
 0x7a9   : > { %v2631_v46 = vmul.f32 1.442695, %v2619_v34  ;;  %v2620_v13 = vsub.f32 %v2588_v30, %v2608_v16  ;;  %v13989_v30 = vld [vmem:[#allocation10 + $0x98] ss:$12 sps:$4 sm:$0xff]  }
 0x7aa   : > { %v2611_v49 = vpop.xlane.xlu0 %2610 }
 0x7ab   : > { %v2621_v12 = vsub.f32 %v2589_v59, %v2611_v49  ;;  %v2633_v62 = vmul.f32 1.442695, %v2620_v13 }
 0x7ad   : > { %v16626_v58 = vpop.eup %14938  ;;  %v2635_v20 = vmul.f32 1.442695, %v2621_v12 }
 0x7ae   : > { %v2645_v45 = vsel %vm2203_vm0, %v16626_v58, 0.0  ;;  %v14941_v27 = vpop.eup %14940 }
 0x7af   : > { %14946 = vpow2.f32 %v2635_v20  ;;  %2646 = vadd.xlane.f32.xlu0 %v2645_v45  ;;  %v2639_v53 = vsel %vm2203_vm0, %v14941_v27, 0.0 }
 0x7b0   : > { %14948 = vpow2.f32 %v2631_v46 }
 0x7b1   : > { %v16630_v43 = vpop.eup %14942  ;;  %14950 = vpow2.f32 %v2637_v50 }
 0x7b2   : > { %v2648_v37 = vsel %vm2203_vm0, %v16630_v43, 0.0  ;;  %v14945_v9 = vpop.eup %14944  ;;  %14952 = vpow2.f32 %v2633_v62  ;;  %v13981_v62 = vld [vmem:[#allocation10 + $0x64] ss:$12 sps:$4 sm:$0xff]  }
 0x7b3   : > { %2640 = vadd.xlane.f32.xlu0 %v2639_v53  ;;  %2649 = vadd.xlane.f32.xlu1 %v2648_v37  ;;  %v2642_v59 = vsel %vm2203_vm0, %v14945_v9, 0.0 }
 0x7b7   : > { %2643 = vadd.xlane.f32.xlu1 %v2642_v59 }
 0x7b9   : > { %v16636_v11 = vpop.eup %14946 }
 0x7ba   : > { %v2657_v5 = vsel %vm2203_vm0, %v16636_v11, 0.0  ;;  %v16640_v54 = vpop.eup %14948 }
 0x7bb   : > { %2658 = vadd.xlane.f32.xlu0 %v2657_v5  ;;  %v2651_v47 = vsel %vm2203_vm0, %v16640_v54, 0.0  ;;  %v16651_v48 = vpop.eup %14950 }
 0x7bc   : > { %v16655_v18 = vpop.eup %14952 }
 0x7bf   : > { %2652 = vadd.xlane.f32.xlu0 %v2651_v47 }
 0x7c8   : > { %2689 = vrot.lane.b32.xlu1 %v16502_v19, %s15612_s19  ;;  %v2660_v19 = vsel %vm2203_vm0, %v16651_v48, 0.0 }
 0x7cc   : > { %2691 = vrot.lane.b32.xlu1 %v16508_v41, %s15612_s19  ;;  %v2654_v41 = vsel %vm2203_vm0, %v16655_v18, 0.0 }
 0x7d5   : > { %2687 = vrot.lane.b32.xlu0 %v16496_v2, %s15612_s19  ;;  %v13978_v2 = vld [vmem:[#allocation10 + $0x68] ss:$12 sps:$4 sm:$0xff]  }
 0x7d6   : > { %12886 = vmatprep.subr.bf16.mxu0 %v13978_v2 }
 0x7d7   : > { %12887 = vmatpush3.bf16.msra.mxu0 %v13978_v2  ;;  %v13979_v2 = vld [vmem:[#allocation10 + $0x60] ss:$12 sps:$4 sm:$0xff]  }
 0x7d8   : > { %12888 = vmatprep.subr.bf16.mxu0 %v13982_v31 }
 0x7db   : > { %12889 = vmatpush3.bf16.msra.mxu0 %v13982_v31 }
 0x7dc   : > { %12890 = vmatprep.subr.bf16.mxu0 %v13989_v30 }
 0x7df   : > { %12891 = vmatpush3.bf16.msra.mxu0 %v13989_v30  ;;  %v13985_v30 = vld [vmem:[#allocation10 + $0x7c] ss:$12 sps:$4 sm:$0xff]  }
 0x7f0   : > { %2661 = vadd.xlane.f32.xlu1 %v2660_v19 }
 0x7f4   : > { %2655 = vadd.xlane.f32.xlu1 %v2654_v41 }
 0x805   : > { %2693 = vrot.lane.b32.xlu1 %v16514_v40, %s15612_s19 }
 0x83c   : > { %v2647_v34 = vpop.xlane.xlu0 %2646 }
 0x840   : > { %v2641_v49 = vpop.xlane.xlu0 %2640  ;;  %v2650_v12 = vpop.xlane.xlu1 %2649 }
 0x841   : > { %14954 = vrcp.f32 %v2641_v49 }
 0x844   : > { %v2644_v46 = vpop.xlane.xlu1 %2643 }
 0x845   : > { %14956 = vrcp.f32 %v2644_v46  ;;  %v13983_v46 = vld [vmem:[#allocation10 + $0x78] ss:$12 sps:$4 sm:$0xff]  }
 0x846   : > { %14958 = vrcp.f32 %v2650_v12 }
 0x847   : > { %14960 = vrcp.f32 %v2647_v34 }
 0x848   : > { %v2659_v20 = vpop.xlane.xlu0 %2658  ;;  %v2690_v40 = vpop.permute.xlu1 %2689 }
 0x84b   : > { %v14955_v53 = vpop.eup %14954 }
 0x84c   : > { %v2653_v45 = vpop.xlane.xlu0 %2652  ;;  %v2671_v5 = vmul.f32 %v14955_v53, %v14941_v27  ;;  %v2692_v14 = vpop.permute.xlu1 %2691 }
 0x84f   : > { %v14957_v37 = vpop.eup %14956 }
 0x850   : > { %v2688_v59 = vpop.permute.xlu0 %2687  ;;  %v2672_v47 = vmul.f32 %v14957_v37, %v14945_v9  ;;  %v14959_v50 = vpop.eup %14958 }
 0x851   : > { %12870 = vmatprep.subr.bf16.mxu1 %v2688_v59  ;;  %v14961_v27 = vpop.eup %14960  ;;  %v2674_v9 = vmul.f32 %v14959_v50, %v16630_v43 }
 0x852   : > { %12871 = vmatpush3.bf16.msra.mxu1 %v2688_v59  ;;  %v2679_v52 = vpack.c.bf16 %v2672_v47, %v2671_v5  ;;  %v2673_v41 = vmul.f32 %v14961_v27, %v16626_v58  ;;  %v13986_v59 = vld [vmem:[#allocation10 + $0x90] ss:$12 sps:$4 sm:$0xff]   ;;  %v13992_v47 = vld [vmem:[#allocation10 + $0xac] ss:$12 sps:$4 sm:$0xff]  }
 0x853   : > { %12872 = vmatprep.subr.bf16.mxu1 %v2690_v40  ;;  %v13994_v27 = vld [vmem:[#allocation10] ss:$12 sps:$4 sm:$0xff]  }
 0x854   : > { %12878 = vmatprep.mubr.msk.bf16.mxu1 %vm2203_vm0, %v2679_v52  ;;  %v2680_v31 = vpack.c.bf16 %v2674_v9, %v2673_v41  ;;  %v13998_v41 = vld [vmem:[#allocation10 + $0x18] ss:$12 sps:$4 sm:$0xff]  }
 0x856   : > { %12873 = vmatpush3.bf16.msra.mxu1 %v2690_v40 }
 0x857   : > { %12874 = vmatprep.subr.bf16.mxu1 %v2692_v14 }
 0x85a   : > { %12875 = vmatpush3.bf16.msra.mxu1 %v2692_v14 }
 0x87d   : > { %v2662_v16 = vpop.xlane.xlu1 %2661 }
 0x87e   : > { %14962 = vrcp.f32 %v2662_v16 }
 0x87f   : > { %14964 = vrcp.f32 %v2653_v45  ;;  %v13988_v45 = vld [vmem:[#allocation10 + $0x94] ss:$12 sps:$4 sm:$0xff]  }
 0x880   : > { %14966 = vrcp.f32 %v2659_v20 }
 0x881   : > { %v2656_v13 = vpop.xlane.xlu1 %2655 }
 0x882   : > { %14968 = vrcp.f32 %v2656_v13 }
 0x885   : > { %v2694_v19 = vpop.permute.xlu1 %2693 }
 0x886   : > { %12876 = vmatprep.subr.bf16.mxu1 %v2694_v19 }
 0x887   : > { %12877 = vmatpush3.bf16.msra.mxu1 %v2694_v19  ;;  %v14001_v19 = vld [vmem:[#allocation10 + $0x20] ss:$12 sps:$4 sm:$0xff]  }
 0x888   : > { %2872 = vmatprep.subr.bf16.mxu1 %v13981_v62  ;;  %v14963_v34 = vpop.eup %14962  ;;  %v14000_v62 = vld [vmem:[#allocation10 + $0x1c] ss:$12 sps:$4 sm:$0xff]  }
 0x889   : > { %v14965_v49 = vpop.eup %14964  ;;  %v2678_v43 = vmul.f32 %v14963_v34, %v16651_v48  ;;  %v13990_v48 = vld [vmem:[#allocation10 + $0xa8] ss:$12 sps:$4 sm:$0xff]   ;;  %v14005_v34 = vld [vmem:[#allocation10 + $0x38] ss:$12 sps:$4 sm:$0xff]  }
 0x88a   : > { %12879 = vmatmul.mubr.msk.bf16.vlgmr.msra.gmra.mrb[56].mxu1 %vm2203_vm0, %v2680_v31  ;;  %v14967_v12 = vpop.eup %14966  ;;  %v2675_v58 = vmul.f32 %v14965_v49, %v16640_v54  ;;  %v13993_v54 = vld [vmem:[#allocation10 + $0xb0] ss:$12 sps:$4 sm:$0xff]   ;;  %v14004_v31 = vld [vmem:[#allocation10 + $0x34] ss:$12 sps:$4 sm:$0xff]  }
 0x88b   : > { %2873 = vmatpush1.bf16.msra.mxu1 %v13979_v2  ;;  %v2677_v37 = vmul.f32 %v14967_v12, %v16636_v11  ;;  %12892 = vmatprep.subr.bf16.mxu0 %v13993_v54  ;;  %v13997_v11 = vld [vmem:[#allocation10 + $0x8] ss:$12 sps:$4 sm:$0xff]  }
 0x88c   : > { %v14969_v20 = vpop.eup %14968  ;;  %2874 = vmatprep.subr.bf16.mxu1 %v13985_v30  ;;  %12893 = vmatpush3.bf16.msra.mxu0 %v13993_v54 }
 0x88d   : > { %v2676_v53 = vmul.f32 %v14969_v20, %v16655_v18  ;;  %v2682_v5 = vpack.c.bf16 %v2678_v43, %v2677_v37  ;;  %v13996_v18 = vld [vmem:[#allocation10 + $0x4] ss:$12 sps:$4 sm:$0xff]   ;;  %12902 = vmatprep.subr.bf16.mxu0 %v13997_v11  ;;  %v3233_v37 = vsel %vm2203_vm0, %v16442_v36, 0 }
 0x88e   : > { %v14002_v20 = vld [vmem:[#allocation10 + $0x30] ss:$12 sps:$4 sm:$0xff]  }
 0x88f   : > { %v2681_v40 = vpack.c.bf16 %v2676_v53, %v2675_v58  ;;  %2875 = vmatpush1.bf16.msra.mxu1 %v13983_v46  ;;  %v14009_v58 = vld [vmem:[#allocation10 + $0x50] ss:$12 sps:$4 sm:$0xff]   ;;  %v14006_v53 = vld [vmem:[#allocation10 + $0x48] ss:$12 sps:$4 sm:$0xff]  }
 0x890   : > { %2876 = vmatprep.subr.bf16.mxu1 %v13988_v45  ;;  %v14008_v45 = vld [vmem:[#allocation10 + $0x4c] ss:$12 sps:$4 sm:$0xff]  }
 0x891   : > { %12882 = vmatprep.mubr.msk.bf16.mxu1 %vm2203_vm0, %v2681_v40  ;;  %v3236_v40 = vsel %vm2203_vm0, %v16456_v61, 0 }
 0x892   : > { %12883 = vmatmul.mubr.msk.bf16.gmra.mrb[60].mxu1 %vm2203_vm0, %v2682_v5 }
 0x893   : > { %2877 = vmatpush1.bf16.msra.mxu1 %v13986_v59  ;;  %2904 = vmatprep.mubr.bf16.mxu1 %v18121_v10  ;;  %v3239_v59 = vsel %vm2203_vm0, %v16468_v15, 0 }
 0x894   : > { %2878 = vmatprep.subr.bf16.mxu1 %v13992_v47 }
 0x897   : > { %2879 = vmatpush1.bf16.msra.mxu1 %v13990_v48 }
 0x898   : > { %3086 = vmatprep.subr.bf16.mxu1 %v13996_v18 }
 0x95d   : > { %v12880_v52 = vpop.f32.mrb[56].mxu1 }
 0x95e   : > { %v2745_v14 = vpop.f32.mrb[57].mxu1 }
 0x95f   : > { %v12881_v16 = vpop.f32.mrb[58].mxu1 }
 0x960   : > { %v2777_v50 = vpack.c.bf16 %v12881_v16, %v12880_v52  ;;  %v2748_v13 = vpop.f32.mrb[59].mxu1 }
 0x961   : > { %v2776_v9 = vpack.c.bf16 %v2748_v13, %v2745_v14 }
 0x963   : > { %11719 = vmatmul.mubr.msk.bf16.vlgmr.msra.gmra.mrb[64].mxu1 %vm2203_vm0, %v2776_v9  ;;  %12894 = vmatprep.mubr.msk.bf16.mxu0 %vm2203_vm0, %v2776_v9 }
 0x964   : > { %3087 = vmatpush1.bf16.msra.mxu1 %v13994_v27  ;;  %12895 = vmatmul.mubr.msk.bf16.vlgmr.msra.gmra.mrb[16].mxu0 %vm2203_vm0, %v2777_v50 }
 0x965   : > { %12903 = vmatpush3.bf16.msra.mxu0 %v13997_v11  ;;  %v12884_v2 = vpop.f32.mrb[60].mxu1  ;;  %3088 = vmatprep.subr.bf16.mxu1 %v14000_v62 }
 0x966   : > { %v2761_v30 = vpop.f32.mrb[61].mxu1  ;;  %12904 = vmatprep.subr.bf16.mxu0 %v14001_v19  ;;  %2914 = vmatprep.mubr.bf16.mxu1 %v18121_v10 }
 0x967   : > { %v12885_v49 = vpop.f32.mrb[62].mxu1 }
 0x968   : > { %v2779_v12 = vpack.c.bf16 %v12885_v49, %v12884_v2  ;;  %3089 = vmatpush1.bf16.msra.mxu1 %v13998_v41  ;;  %v2764_v46 = vpop.f32.mrb[63].mxu1 }
 0x969   : > { %v2778_v43 = vpack.c.bf16 %v2764_v46, %v2761_v30  ;;  %12905 = vmatpush3.bf16.msra.mxu0 %v14001_v19  ;;  %3090 = vmatprep.subr.bf16.mxu1 %v14004_v31 }
 0x96a   : > { %12906 = vmatprep.subr.bf16.mxu0 %v14005_v34 }
 0x96b   : > { %11720 = vmatmul.mubr.msk.bf16.gmra.mrb[68].mxu1 %vm2203_vm0, %v2777_v50  ;;  %12898 = vmatprep.mubr.msk.bf16.mxu0 %vm2203_vm0, %v2778_v43 }
 0x96c   : > { %3091 = vmatpush1.bf16.msra.mxu1 %v14002_v20  ;;  %12899 = vmatmul.mubr.msk.bf16.gmra.mrb[20].mxu0 %vm2203_vm0, %v2779_v12 }
 0x96d   : > { %12907 = vmatpush3.bf16.msra.mxu0 %v14005_v34  ;;  %12910 = vmatprep.mubr.msk.bf16.mxu0 %vm2203_vm0, %v16601_v0 }
 0x96e   : > { %3092 = vmatprep.subr.bf16.mxu1 %v14008_v45  ;;  %12908 = vmatprep.subr.bf16.mxu0 %v14009_v58 }
 0x96f   : > { %2924 = vmatprep.mubr.bf16.mxu1 %v18121_v10 }
 0x970   : > { %3093 = vmatpush1.bf16.msra.mxu1 %v14006_v53 }
 0x971   : > { %12909 = vmatpush3.bf16.msra.mxu0 %v14009_v58  ;;  %12934 = vmatprep.subr.bf16.mxu1 %v16440_v42 }
 0x972   : > { %13574 = vmatprep.subr.msk.bf16.mxu0 %vm2203_vm0, %v16442_v36 }
 0x973   : > { %11721 = vmatmul.mubr.msk.bf16.gmra.mrb[72].mxu1 %vm2203_vm0, %v2778_v43 }
 0x974   : > { %12911 = vmatmul.mubr.msk.bf16.vlgmr.msra.gmra.mrb[16].mxu0 %vm2203_vm0, %v16599_v26  ;;  %2934 = vmatprep.mubr.bf16.mxu1 %v18121_v10 }
 0x975   : > { %12914 = vmatprep.mubr.msk.bf16.mxu0 %vm2203_vm0, %v16605_v25 }
 0x97a   : > { %12919 = vmatpush3.bf16.xpose.msra.mxu0 %v3233_v37 }
 0x97b   : > { %13575 = vmatprep.subr.msk.bf16.mxu0 %vm2203_vm0, %v16456_v61  ;;  %11722 = vmatmul.mubr.msk.bf16.gmra.mrb[76].mxu1 %vm2203_vm0, %v2779_v12 }
 0x97c   : > { %12915 = vmatmul.mubr.msk.bf16.gmra.mrb[20].mxu0 %vm2203_vm0, %v16603_v38  ;;  %3118 = vmatprep.mubr.bf16.mxu1 %v18121_v10 }
 0x97d   : > { %12926 = vmatprep.mubr.msk.bf16.mxu0 %vm2203_vm0, %v16442_v36 }
 0x982   : > { %12921 = vmatpush3.bf16.xpose.msra.mxu0 %v3236_v40 }
 0x983   : > { %13576 = vmatprep.subr.msk.bf16.mxu0 %vm2203_vm0, %v16468_v15  ;;  %11739 = vmatmul.mubr.msk.bf16.vlgmr.msra.gmra.mrb[64].mxu1 %vm2203_vm0, %v16601_v0  ;;  %v3242_v0 = vsel %vm2203_vm0, %v16480_v29, 0 }
 0x984   : > { %12935 = vmatpush3.bf16.msra.mxu1 %v16440_v42  ;;  %3128 = vmatprep.mubr.bf16.mxu1 %v18121_v10 }
 0x985   : > { %12936 = vmatprep.subr.bf16.mxu1 %v16454_v55 }
 0x988   : > { %12937 = vmatpush3.bf16.msra.mxu1 %v16454_v55 }
 0x989   : > { %12938 = vmatprep.subr.bf16.mxu1 %v16466_v51 }
 0x98a   : > { %12923 = vmatpush3.bf16.xpose.msra.mxu0 %v3239_v59 }
 0x98b   : > { %13577 = vmatprep.subr.msk.bf16.mxu0 %vm2203_vm0, %v16480_v29  ;;  %11740 = vmatmul.mubr.msk.bf16.gmra.mrb[68].mxu1 %vm2203_vm0, %v16599_v26 }
 0x98c   : > { %12939 = vmatpush3.bf16.msra.mxu1 %v16466_v51  ;;  %3138 = vmatprep.mubr.bf16.mxu1 %v18121_v10 }
 0x98d   : > { %12940 = vmatprep.subr.bf16.mxu1 %v16478_v60 }
 0x990   : > { %12941 = vmatpush3.bf16.msra.mxu1 %v16478_v60 }
 0x992   : > { %12925 = vmatpush3.bf16.xpose.msra.mxu0 %v3242_v0 }
 0x993   : > { %11741 = vmatmul.mubr.msk.bf16.gmra.mrb[72].mxu1 %vm2203_vm0, %v16605_v25 }
 0x994   : > { %3148 = vmatprep.mubr.bf16.mxu1 %v18121_v10 }
 0x999   : > { %12927 = vmatmul.mubr.msk.bf16.vlgmr.msra.gmra.mrb[24].mxu0 %vm2203_vm0, %v16456_v61 }
 0x99a   : > { %12930 = vmatprep.mubr.msk.bf16.mxu0 %vm2203_vm0, %v16468_v15 }
 0x99b   : > { %11742 = vmatmul.mubr.msk.bf16.gmra.mrb[76].mxu1 %vm2203_vm0, %v16603_v38 }
 0x9a1   : > { %12931 = vmatmul.mubr.msk.bf16.gmra.mrb[28].mxu0 %vm2203_vm0, %v16480_v29 }
 0xa6c   : > { %v12928_v26 = vpop.f32.mrb[24].mxu0 }
 0xa6d   : > { %v3278_v5 = vpop.f32.mrb[25].mxu0  ;;  %v3311_v48 = vmul.f32 0.125, %v12928_v26 }
 0xa6e   : > { %v3309_v47 = vmul.f32 0.125, %v3278_v5  ;;  %v12929_v54 = vpop.f32.mrb[26].mxu0 }
 0xa6f   : > { %v3281_v25 = vpop.f32.mrb[27].mxu0  ;;  %v3312_v52 = vmul.f32 0.125, %v12929_v54  ;;  %v3319_v50 = vadd.f32 %v3311_v48, %v16528_v32 }
 0xa70   : > { %v3310_v18 = vmul.f32 0.125, %v3281_v25  ;;  %v3317_v11 = vadd.f32 %v3309_v47, %v16523_v22 }
 0xa71   : > { %v3331_v19 = vsel %vm2203_vm0, %v3319_v50, -inf  ;;  %v3320_v41 = vadd.f32 %v3312_v52, %v16533_v33 }
 0xa72   : > { %v3325_v14 = vsel %vm2203_vm0, %v3317_v11, -inf  ;;  %v3318_v16 = vadd.f32 %v3310_v18, %v16526_v17 }
 0xa73   : > { %3326 = vmax.xlane.f32.xlu0 %v3325_v14  ;;  %v3334_v49 = vsel %vm2203_vm0, %v3320_v41, -inf }
 0xa74   : > { %v12932_v38 = vpop.f32.mrb[28].mxu0  ;;  %v3328_v13 = vsel %vm2203_vm0, %v3318_v16, -inf }
 0xa75   : > { %3329 = vmax.xlane.f32.xlu1 %v3328_v13  ;;  %v3294_v27 = vpop.f32.mrb[29].mxu0  ;;  %v3315_v34 = vmul.f32 0.125, %v12932_v38 }
 0xa76   : > { %v3313_v9 = vmul.f32 0.125, %v3294_v27  ;;  %v12933_v62 = vpop.f32.mrb[30].mxu0 }
 0xa77   : > { %3332 = vmax.xlane.f32.xlu0 %v3331_v19  ;;  %v3297_v2 = vpop.f32.mrb[31].mxu0  ;;  %v3316_v31 = vmul.f32 0.125, %v12933_v62  ;;  %v3323_v58 = vadd.f32 %v3315_v34, %v16546_v4 }
 0xa78   : > { %v3314_v30 = vmul.f32 0.125, %v3297_v2  ;;  %v3321_v46 = vadd.f32 %v3313_v9, %v16541_v35 }
 0xa79   : > { %v3324_v43 = vadd.f32 %v3316_v31, %v16550_v21  ;;  %v3343_v37 = vsel %vm2203_vm0, %v3323_v58, -inf }
 0xa7a   : > { %v3322_v12 = vadd.f32 %v3314_v30, %v16544_v6  ;;  %v3337_v45 = vsel %vm2203_vm0, %v3321_v46, -inf }
 0xa7b   : > { %3335 = vmax.xlane.f32.xlu0 %v3334_v49  ;;  %v3346_v53 = vsel %vm2203_vm0, %v3324_v43, -inf }
 0xa7c   : > { %v3340_v20 = vsel %vm2203_vm0, %v3322_v12, -inf }
 0xa7d   : > { %3341 = vmax.xlane.f32.xlu1 %v3340_v20 }
 0xa7f   : > { %3338 = vmax.xlane.f32.xlu0 %v3337_v45 }
 0xa81   : > { %3347 = vmax.xlane.f32.xlu1 %v3346_v53 }
 0xa83   : > { %3344 = vmax.xlane.f32.xlu0 %v3343_v37 }
 0xb00   : > { %v3327_v40 = vpop.xlane.xlu0 %3326 }
 0xb01   : > { %v3349_v59 = vsub.f32 %v3317_v11, %v3327_v40 }
 0xb02   : > { %v3330_v0 = vpop.xlane.xlu1 %3329 }
 0xb03   : > { %v3357_v26 = vmul.f32 1.442695, %v3349_v59  ;;  %v3350_v5 = vsub.f32 %v3318_v16, %v3330_v0 }
 0xb04   : > { %v3333_v48 = vpop.xlane.xlu0 %3332 }
 0xb05   : > { %14970 = vpow2.f32 %v3357_v26  ;;  %v3359_v47 = vmul.f32 1.442695, %v3350_v5  ;;  %v3351_v54 = vsub.f32 %v3319_v50, %v3333_v48  ;;  %v14010_v48 = vld [vmem:[#allocation10 + $0xc8] ss:$12 sps:$4 sm:$0xff]  }
 0xb06   : > { %12950 = vmatprep.subr.bf16.mxu0 %v14010_v48 }
 0xb07   : > { %14972 = vpow2.f32 %v3359_v47  ;;  %v3361_v25 = vmul.f32 1.442695, %v3351_v54  ;;  %12951 = vmatpush3.bf16.msra.mxu0 %v14010_v48  ;;  %v14011_v47 = vld [vmem:[#allocation10 + $0xe0] ss:$12 sps:$4 sm:$0xff]   ;;  %v14012_v54 = vld [vmem:[#allocation10 + $0xf8] ss:$12 sps:$4 sm:$0xff]  }
 0xb08   : > { %v3336_v18 = vpop.xlane.xlu0 %3335  ;;  %12952 = vmatprep.subr.bf16.mxu0 %v14011_v47 }
 0xb09   : > { %14974 = vpow2.f32 %v3361_v25  ;;  %v3352_v52 = vsub.f32 %v3320_v41, %v3336_v18  ;;  %v14013_v25 = vld [vmem:[#allocation10 + $0x110] ss:$12 sps:$4 sm:$0xff]  }
 0xb0a   : > { %v3342_v14 = vpop.xlane.xlu1 %3341  ;;  %v14016_v18 = vld [vmem:[#allocation10 + $0xc4] ss:$12 sps:$4 sm:$0xff]  }
 0xb0b   : > { %v3363_v38 = vmul.f32 1.442695, %v3352_v52  ;;  %v3354_v13 = vsub.f32 %v3322_v12, %v3342_v14  ;;  %12953 = vmatpush3.bf16.msra.mxu0 %v14011_v47  ;;  %3590 = vmatprep.subr.bf16.mxu1 %v14016_v18 }
 0xb0c   : > { %v3339_v27 = vpop.xlane.xlu0 %3338  ;;  %12954 = vmatprep.subr.bf16.mxu0 %v14012_v54 }
 0xb0d   : > { %14976 = vpow2.f32 %v3363_v38  ;;  %v3367_v9 = vmul.f32 1.442695, %v3354_v13  ;;  %v3353_v62 = vsub.f32 %v3321_v46, %v3339_v27 }
 0xb0e   : > { %v3348_v11 = vpop.xlane.xlu1 %3347 }
 0xb0f   : > { %v16751_v19 = vpop.eup %14970  ;;  %14978 = vpow2.f32 %v3367_v9  ;;  %v3365_v16 = vmul.f32 1.442695, %v3353_v62  ;;  %v3356_v2 = vsub.f32 %v3324_v43, %v3348_v11  ;;  %12955 = vmatpush3.bf16.msra.mxu0 %v14012_v54  ;;  %v14020_v54 = vld [vmem:[#allocation10 + $0xf0] ss:$12 sps:$4 sm:$0xff]  }
 0xb10   : > { %v3345_v31 = vpop.xlane.xlu0 %3344  ;;  %v3373_v50 = vsel %vm2203_vm0, %v16751_v19, 0.0  ;;  %12956 = vmatprep.subr.bf16.mxu0 %v14013_v25 }
 0xb11   : > { %v14973_v30 = vpop.eup %14972  ;;  %14980 = vpow2.f32 %v3365_v16  ;;  %v3371_v41 = vmul.f32 1.442695, %v3356_v2  ;;  %v3355_v34 = vsub.f32 %v3323_v58, %v3345_v31  ;;  %3374 = vadd.xlane.f32.xlu0 %v3373_v50 }
 0xb12   : > { %v3376_v49 = vsel %vm2203_vm0, %v14973_v30, 0.0 }
 0xb13   : > { %v16756_v12 = vpop.eup %14974  ;;  %14982 = vpow2.f32 %v3371_v41  ;;  %v3369_v46 = vmul.f32 1.442695, %v3355_v34  ;;  %3377 = vadd.xlane.f32.xlu1 %v3376_v49  ;;  %12957 = vmatpush3.bf16.msra.mxu0 %v14013_v25  ;;  %v14014_v49 = vld [vmem:[#allocation10 + $0xc0] ss:$12 sps:$4 sm:$0xff]  }
 0xb14   : > { %v3379_v20 = vsel %vm2203_vm0, %v16756_v12, 0.0 }
 0xb15   : > { %14984 = vpow2.f32 %v3369_v46  ;;  %3380 = vadd.xlane.f32.xlu0 %v3379_v20  ;;  %v14019_v20 = vld [vmem:[#allocation10 + $0xdc] ss:$12 sps:$4 sm:$0xff]  }
 0xb17   : > { %v14977_v43 = vpop.eup %14976 }
 0xb18   : > { %v3382_v45 = vsel %vm2203_vm0, %v14977_v43, 0.0 }
 0xb19   : > { %v16761_v53 = vpop.eup %14978  ;;  %3383 = vadd.xlane.f32.xlu1 %v3382_v45 }
 0xb1a   : > { %v3388_v40 = vsel %vm2203_vm0, %v16761_v53, 0.0 }
 0xb1b   : > { %v16763_v58 = vpop.eup %14980 }
 0xb1c   : > { %v3385_v37 = vsel %vm2203_vm0, %v16763_v58, 0.0 }
 0xb1d   : > { %v16769_v59 = vpop.eup %14982  ;;  %3386 = vadd.xlane.f32.xlu0 %v3385_v37  ;;  %3389 = vadd.xlane.f32.xlu1 %v3388_v40  ;;  %v14017_v40 = vld [vmem:[#allocation10 + $0xd8] ss:$12 sps:$4 sm:$0xff]  }
 0xb1e   : > { %v3394_v5 = vsel %vm2203_vm0, %v16769_v59, 0.0 }
 0xb1f   : > { %v16771_v0 = vpop.eup %14984 }
 0xb20   : > { %v3391_v26 = vsel %vm2203_vm0, %v16771_v0, 0.0 }
 0xb21   : > { %3392 = vadd.xlane.f32.xlu0 %v3391_v26  ;;  %3395 = vadd.xlane.f32.xlu1 %v3394_v5  ;;  %v14022_v26 = vld [vmem:[#allocation10 + $0xf4] ss:$12 sps:$4 sm:$0xff]  }
 0xb32   : > { %3758 = vrot.lane.b32.xlu1 %v16456_v61, %s15612_s19 }
 0xb36   : > { %3760 = vrot.lane.b32.xlu1 %v16468_v15, %s15612_s19 }
 0xb37   : > { %3756 = vrot.lane.b32.xlu0 %v16442_v36, %s15612_s19 }
 0xb3a   : > { %3762 = vrot.lane.b32.xlu1 %v16480_v29, %s15612_s19 }
 0xb9e   : > { %v3375_v61 = vpop.xlane.xlu0 %3374 }
 0xb9f   : > { %14986 = vrcp.f32 %v3375_v61 }
 0xba0   : > { %v3378_v52 = vpop.xlane.xlu1 %3377 }
 0xba1   : > { %14988 = vrcp.f32 %v3378_v52 }
 0xba2   : > { %v3381_v15 = vpop.xlane.xlu0 %3380 }
 0xba3   : > { %14990 = vrcp.f32 %v3381_v15 }
 0xba6   : > { %v3384_v14 = vpop.xlane.xlu1 %3383 }
 0xba7   : > { %14992 = vrcp.f32 %v3384_v14 }
 0xba9   : > { %v14987_v36 = vpop.eup %14986 }
 0xbaa   : > { %v3387_v38 = vpop.xlane.xlu0 %3386  ;;  %v3390_v13 = vpop.xlane.xlu1 %3389  ;;  %v3405_v29 = vmul.f32 %v14987_v36, %v16751_v19 }
 0xbab   : > { %v14989_v27 = vpop.eup %14988  ;;  %14994 = vrcp.f32 %v3387_v38 }
 0xbac   : > { %14996 = vrcp.f32 %v3390_v13  ;;  %v3406_v9 = vmul.f32 %v14989_v27, %v14973_v30 }
 0xbad   : > { %v14991_v2 = vpop.eup %14990 }
 0xbae   : > { %v3393_v62 = vpop.xlane.xlu0 %3392  ;;  %v3396_v11 = vpop.xlane.xlu1 %3395  ;;  %v3413_v16 = vpack.c.bf16 %v3406_v9, %v3405_v29  ;;  %v3407_v50 = vmul.f32 %v14991_v2, %v16756_v12 }
 0xbaf   : > { %14998 = vrcp.f32 %v3393_v62 }
 0xbb0   : > { %15000 = vrcp.f32 %v3396_v11  ;;  %12942 = vmatprep.mubr.msk.bf16.mxu1 %vm2203_vm0, %v3413_v16 }
 0xbb1   : > { %v14993_v31 = vpop.eup %14992 }
 0xbb2   : > { %v3408_v41 = vmul.f32 %v14993_v31, %v14977_v43  ;;  %v3757_v34 = vpop.permute.xlu0 %3756  ;;  %v3759_v36 = vpop.permute.xlu1 %3758 }
 0xbb3   : > { %13578 = vmatprep.subr.msk.bf16.mxu0 %vm2203_vm0, %v3757_v34  ;;  %v3768_v11 = vsel %vm2203_vm0, %v3759_v36, 0 }
 0xbb4   : > { %v3414_v46 = vpack.c.bf16 %v3408_v41, %v3407_v50  ;;  %v14026_v50 = vld [vmem:[#allocation10 + $0x128] ss:$12 sps:$4 sm:$0xff]  }
 0xbb5   : > { %v14995_v19 = vpop.eup %14994 }
 0xbb6   : > { %v14997_v30 = vpop.eup %14996  ;;  %12943 = vmatmul.mubr.msk.bf16.vlgmr.msra.gmra.mrb[80].mxu1 %vm2203_vm0, %v3414_v46  ;;  %v3409_v45 = vmul.f32 %v14995_v19, %v16763_v58  ;;  %v14025_v58 = vld [vmem:[#allocation10 + $0x10c] ss:$12 sps:$4 sm:$0xff]   ;;  %v3761_v16 = vpop.permute.xlu1 %3760  ;;  %v14029_v46 = vld [vmem:[#allocation10 + $0x170] ss:$12 sps:$4 sm:$0xff]  }
 0xbb7   : > { %v3410_v37 = vmul.f32 %v14997_v30, %v16761_v53  ;;  %3591 = vmatpush1.bf16.msra.mxu1 %v14014_v49  ;;  %v14023_v53 = vld [vmem:[#allocation10 + $0x108] ss:$12 sps:$4 sm:$0xff]   ;;  %v3771_v2 = vsel %vm2203_vm0, %v3761_v16, 0  ;;  %v14028_v49 = vld [vmem:[#allocation10 + $0x158] ss:$12 sps:$4 sm:$0xff]  }
 0xbb8   : > { %3592 = vmatprep.subr.bf16.mxu1 %v14019_v20 }
 0xbb9   : > { %v14999_v12 = vpop.eup %14998  ;;  %v3415_v43 = vpack.c.bf16 %v3410_v37, %v3409_v45 }
 0xbba   : > { %v15001_v5 = vpop.eup %15000  ;;  %v3411_v48 = vmul.f32 %v14999_v12, %v16771_v0  ;;  %v3763_v31 = vpop.permute.xlu1 %3762 }
 0xbbb   : > { %12946 = vmatprep.mubr.msk.bf16.mxu1 %vm2203_vm0, %v3415_v43  ;;  %v3412_v47 = vmul.f32 %v15001_v5, %v16769_v59  ;;  %3593 = vmatpush1.bf16.msra.mxu1 %v14017_v40  ;;  %v3765_v59 = vsel %vm2203_vm0, %v3757_v34, 0  ;;  %v3774_v41 = vsel %vm2203_vm0, %v3763_v31, 0 }
 0xbbc   : > { %3594 = vmatprep.subr.bf16.mxu1 %v14022_v26 }
 0xbbd   : > { %v3416_v25 = vpack.c.bf16 %v3412_v47, %v3411_v48 }
 0xbbf   : > { %12947 = vmatmul.mubr.msk.bf16.gmra.mrb[84].mxu1 %vm2203_vm0, %v3416_v25 }
 0xbc0   : > { %3595 = vmatpush1.bf16.msra.mxu1 %v14020_v54  ;;  %3622 = vmatprep.mubr.bf16.mxu1 %v18121_v10 }
 0xbc1   : > { %3596 = vmatprep.subr.bf16.mxu1 %v14025_v58 }
 0xbc4   : > { %3597 = vmatpush1.bf16.msra.mxu1 %v14023_v53 }
 0xc89   : > { %v12944_v18 = vpop.f32.mrb[80].mxu1 }
 0xc8a   : > { %v3463_v61 = vpop.f32.mrb[81].mxu1 }
 0xc8b   : > { %v12945_v0 = vpop.f32.mrb[82].mxu1 }
 0xc8c   : > { %v3495_v52 = vpack.c.bf16 %v12945_v0, %v12944_v18  ;;  %v3466_v15 = vpop.f32.mrb[83].mxu1 }
 0xc8d   : > { %v3494_v14 = vpack.c.bf16 %v3466_v15, %v3463_v61 }
 0xc8f   : > { %11767 = vmatmul.mubr.msk.bf16.vlgmr.msra.gmra.mrb[64].mxu1 %vm2203_vm0, %v3494_v14  ;;  %12958 = vmatprep.mubr.msk.bf16.mxu0 %vm2203_vm0, %v3494_v14 }
 0xc90   : > { %12959 = vmatmul.mubr.msk.bf16.vlgmr.msra.gmra.mrb[16].mxu0 %vm2203_vm0, %v3495_v52  ;;  %3632 = vmatprep.mubr.bf16.mxu1 %v18121_v10 }
 0xc91   : > { %12967 = vmatpush3.bf16.xpose.msra.mxu0 %v3765_v59 }
 0xc92   : > { %v12948_v38 = vpop.f32.mrb[84].mxu1  ;;  %13579 = vmatprep.subr.msk.bf16.mxu0 %vm2203_vm0, %v3759_v36 }
 0xc93   : > { %v3479_v13 = vpop.f32.mrb[85].mxu1 }
 0xc94   : > { %v12949_v27 = vpop.f32.mrb[86].mxu1 }
 0xc95   : > { %v3497_v29 = vpack.c.bf16 %v12949_v27, %v12948_v38  ;;  %v3482_v9 = vpop.f32.mrb[87].mxu1 }
 0xc96   : > { %v3496_v62 = vpack.c.bf16 %v3482_v9, %v3479_v13 }
 0xc97   : > { %11768 = vmatmul.mubr.msk.bf16.gmra.mrb[68].mxu1 %vm2203_vm0, %v3495_v52 }
 0xc98   : > { %12962 = vmatprep.mubr.msk.bf16.mxu0 %vm2203_vm0, %v3496_v62  ;;  %3642 = vmatprep.mubr.bf16.mxu1 %v18121_v10 }
 0xc99   : > { %12963 = vmatmul.mubr.msk.bf16.gmra.mrb[20].mxu0 %vm2203_vm0, %v3497_v29 }
 0xc9a   : > { %12969 = vmatpush3.bf16.xpose.msra.mxu0 %v3768_v11  ;;  %12974 = vmatprep.mubr.msk.bf16.mxu0 %vm2203_vm0, %v3757_v34  ;;  %v14027_v34 = vld [vmem:[#allocation10 + $0x140] ss:$12 sps:$4 sm:$0xff]  }
 0xc9b   : > { %13580 = vmatprep.subr.msk.bf16.mxu0 %vm2203_vm0, %v3761_v16 }
 0xc9f   : > { %11769 = vmatmul.mubr.msk.bf16.gmra.mrb[72].mxu1 %vm2203_vm0, %v3496_v62 }
 0xca0   : > { %3652 = vmatprep.mubr.bf16.mxu1 %v18121_v10 }
 0xca2   : > { %12971 = vmatpush3.bf16.xpose.msra.mxu0 %v3771_v2 }
 0xca3   : > { %13581 = vmatprep.subr.msk.bf16.mxu0 %vm2203_vm0, %v3763_v31 }
 0xca7   : > { %11770 = vmatmul.mubr.msk.bf16.gmra.mrb[76].mxu1 %vm2203_vm0, %v3497_v29 }
 0xcaa   : > { %12973 = vmatpush3.bf16.xpose.msra.mxu0 %v3774_v41 }
 0xcab   : > { %12998 = vmatprep.subr.bf16.mxu0 %v14026_v50 }
 0xcb1   : > { %12975 = vmatmul.mubr.msk.bf16.vlgmr.msra.gmra.mrb[32].mxu0 %vm2203_vm0, %v3759_v36 }
 0xcb2   : > { %12978 = vmatprep.mubr.msk.bf16.mxu0 %vm2203_vm0, %v3761_v16  ;;  %12999 = vmatpush3.bf16.msra.mxu0 %v14026_v50 }
 0xcb3   : > { %13000 = vmatprep.subr.bf16.mxu0 %v14027_v34 }
 0xcb6   : > { %13001 = vmatpush3.bf16.msra.mxu0 %v14027_v34 }
 0xcb7   : > { %13002 = vmatprep.subr.bf16.mxu0 %v14028_v49 }
 0xcb9   : > { %12979 = vmatmul.mubr.msk.bf16.gmra.mrb[36].mxu0 %vm2203_vm0, %v3763_v31 }
 0xcba   : > { %13003 = vmatpush3.bf16.msra.mxu0 %v14028_v49 }
 0xcbb   : > { %13004 = vmatprep.subr.bf16.mxu0 %v14029_v46 }
 0xcbe   : > { %13005 = vmatpush3.bf16.msra.mxu0 %v14029_v46 }
 0xcbf   : > { %13582 = vmatprep.subr.msk.bf16.mxu0 %vm2203_vm0, %v16494_v7 }
 0xd84   : > { %v12976_v20 = vpop.f32.mrb[32].mxu0 }
 0xd85   : > { %v3810_v19 = vpop.f32.mrb[33].mxu0  ;;  %v3843_v30 = vmul.f32 0.125, %v12976_v20 }
 0xd86   : > { %v3841_v45 = vmul.f32 0.125, %v3810_v19  ;;  %v12977_v37 = vpop.f32.mrb[34].mxu0 }
 0xd87   : > { %v3813_v40 = vpop.f32.mrb[35].mxu0  ;;  %v3844_v43 = vmul.f32 0.125, %v12977_v37  ;;  %v3851_v47 = vadd.f32 %v3843_v30, %v16528_v32 }
 0xd88   : > { %v3842_v26 = vmul.f32 0.125, %v3813_v40  ;;  %v3849_v12 = vadd.f32 %v3841_v45, %v16523_v22 }
 0xd89   : > { %v3863_v61 = vsel %vm2203_vm0, %v3851_v47, -inf  ;;  %v3852_v0 = vadd.f32 %v3844_v43, %v16533_v33 }
 0xd8a   : > { %v3857_v5 = vsel %vm2203_vm0, %v3849_v12, -inf  ;;  %v3850_v48 = vadd.f32 %v3842_v26, %v16526_v17 }
 0xd8b   : > { %3858 = vmax.xlane.f32.xlu0 %v3857_v5  ;;  %v3866_v38 = vsel %vm2203_vm0, %v3852_v0, -inf }
 0xd8c   : > { %v12980_v54 = vpop.f32.mrb[36].mxu0  ;;  %v3860_v25 = vsel %vm2203_vm0, %v3850_v48, -inf }
 0xd8d   : > { %3861 = vmax.xlane.f32.xlu1 %v3860_v25  ;;  %v3826_v53 = vpop.f32.mrb[37].mxu0  ;;  %v3847_v36 = vmul.f32 0.125, %v12980_v54 }
 0xd8e   : > { %v3845_v58 = vmul.f32 0.125, %v3826_v53  ;;  %v12981_v18 = vpop.f32.mrb[38].mxu0 }
 0xd8f   : > { %v3848_v52 = vmul.f32 0.125, %v12981_v18  ;;  %3864 = vmax.xlane.f32.xlu0 %v3863_v61  ;;  %v3829_v15 = vpop.f32.mrb[39].mxu0  ;;  %v3855_v62 = vadd.f32 %v3847_v36, %v16546_v4 }
 0xd90   : > { %v3846_v14 = vmul.f32 0.125, %v3829_v15  ;;  %v3853_v13 = vadd.f32 %v3845_v58, %v16541_v35 }
 0xd91   : > { %v16829_v59 = vadd.f32 %v3848_v52, %v16550_v21  ;;  %v3875_v16 = vsel %vm2203_vm0, %v3855_v62, -inf }
 0xd92   : > { %v3854_v29 = vadd.f32 %v3846_v14, %v16544_v6  ;;  %v3869_v9 = vsel %vm2203_vm0, %v3853_v13, -inf }
 0xd93   : > { %3867 = vmax.xlane.f32.xlu0 %v3866_v38  ;;  %v3878_v27 = vsel %vm2203_vm0, %v16829_v59, -inf }
 0xd94   : > { %3879 = vmax.xlane.f32.xlu1 %v3878_v27  ;;  %v3872_v11 = vsel %vm2203_vm0, %v3854_v29, -inf }
 0xd97   : > { %3870 = vmax.xlane.f32.xlu0 %v3869_v9 }
 0xd98   : > { %3873 = vmax.xlane.f32.xlu1 %v3872_v11 }
 0xd9b   : > { %3876 = vmax.xlane.f32.xlu0 %v3875_v16 }
 0xda9   : > { %3955 = vrot.lane.b32.xlu1 %v16454_v55, %s15612_s19 }
 0xdad   : > { %3957 = vrot.lane.b32.xlu1 %v16466_v51, %s15612_s19 }
 0xe18   : > { %v3859_v2 = vpop.xlane.xlu0 %3858 }
 0xe19   : > { %v3881_v31 = vsub.f32 %v3849_v12, %v3859_v2 }
 0xe1a   : > { %v3862_v50 = vpop.xlane.xlu1 %3861 }
 0xe1b   : > { %v3889_v49 = vmul.f32 1.442695, %v3881_v31  ;;  %v3882_v46 = vsub.f32 %v3850_v48, %v3862_v50 }
 0xe1c   : > { %v3865_v41 = vpop.xlane.xlu0 %3864 }
 0xe1d   : > { %v3883_v34 = vsub.f32 %v3851_v47, %v3865_v41  ;;  %v3891_v45 = vmul.f32 1.442695, %v3882_v46 }
 0xe1f   : > { %v3893_v20 = vmul.f32 1.442695, %v3883_v34 }
 0xe20   : > { %v3868_v19 = vpop.xlane.xlu0 %3867 }
 0xe21   : > { %15002 = vpow2.f32 %v3893_v20  ;;  %v3884_v30 = vsub.f32 %v3852_v0, %v3868_v19  ;;  %v3880_v18 = vpop.xlane.xlu1 %3879 }
 0xe22   : > { %15004 = vpow2.f32 %v3889_v49  ;;  %v3888_v36 = vsub.f32 %v16829_v59, %v3880_v18  ;;  %v14036_v18 = vld [vmem:[#allocation10 + $0x150] ss:$12 sps:$4 sm:$0xff]  }
 0xe23   : > { %v3895_v37 = vmul.f32 1.442695, %v3884_v30 }
 0xe24   : > { %v3871_v40 = vpop.xlane.xlu0 %3870 }
 0xe25   : > { %15006 = vpow2.f32 %v3895_v37  ;;  %v3885_v55 = vsub.f32 %v3853_v13, %v3871_v40  ;;  %v3874_v52 = vpop.xlane.xlu1 %3873  ;;  %v3903_v13 = vmul.f32 1.442695, %v3888_v36  ;;  %v14032_v37 = vld [vmem:[#allocation10 + $0x124] ss:$12 sps:$4 sm:$0xff]  }
 0xe26   : > { %15008 = vpow2.f32 %v3891_v45  ;;  %v3886_v15 = vsub.f32 %v3854_v29, %v3874_v52 }
 0xe27   : > { %v3897_v26 = vmul.f32 1.442695, %v3885_v55 }
 0xe28   : > { %v3877_v61 = vpop.xlane.xlu0 %3876  ;;  %v3899_v38 = vmul.f32 1.442695, %v3886_v15 }
 0xe29   : > { %15010 = vpow2.f32 %v3897_v26  ;;  %v3887_v0 = vsub.f32 %v3855_v62, %v3877_v61  ;;  %v3956_v62 = vpop.permute.xlu1 %3955 }
 0xe2b   : > { %v16844_v51 = vpop.eup %15002  ;;  %v3901_v14 = vmul.f32 1.442695, %v3887_v0 }
 0xe2c   : > { %v3911_v12 = vsel %vm2203_vm0, %v16844_v51, 0.0  ;;  %v15005_v43 = vpop.eup %15004 }
 0xe2d   : > { %3912 = vadd.xlane.f32.xlu0 %v3911_v12  ;;  %v3905_v48 = vsel %vm2203_vm0, %v15005_v43, 0.0  ;;  %15012 = vpow2.f32 %v3901_v14  ;;  %v3958_v11 = vpop.permute.xlu1 %3957 }
 0xe2e   : > { %15014 = vpow2.f32 %v3899_v38 }
 0xe2f   : > { %v15007_v5 = vpop.eup %15006  ;;  %15016 = vpow2.f32 %v3903_v13 }
 0xe30   : > { %v3914_v47 = vsel %vm2203_vm0, %v15007_v5, 0.0  ;;  %v15009_v54 = vpop.eup %15008 }
 0xe31   : > { %3906 = vadd.xlane.f32.xlu0 %v3905_v48  ;;  %3915 = vadd.xlane.f32.xlu1 %v3914_v47  ;;  %v3908_v25 = vsel %vm2203_vm0, %v15009_v54, 0.0  ;;  %v14030_v48 = vld [vmem:[#allocation10 + $0x120] ss:$12 sps:$4 sm:$0xff]  }
 0xe33   : > { %v16851_v53 = vpop.eup %15010 }
 0xe34   : > { %v3917_v58 = vsel %vm2203_vm0, %v16851_v53, 0.0 }
 0xe35   : > { %3909 = vadd.xlane.f32.xlu1 %v3908_v25  ;;  %v14035_v25 = vld [vmem:[#allocation10 + $0x13c] ss:$12 sps:$4 sm:$0xff]  }
 0xe37   : > { %v16860_v27 = vpop.eup %15012 }
 0xe38   : > { %v16864_v9 = vpop.eup %15014 }
 0xe39   : > { %3918 = vadd.xlane.f32.xlu1 %v3917_v58  ;;  %v16868_v29 = vpop.eup %15016  ;;  %v14033_v58 = vld [vmem:[#allocation10 + $0x138] ss:$12 sps:$4 sm:$0xff]  }
 0xe3a   : > { %v3926_v59 = vsel %vm2203_vm0, %v16868_v29, 0.0 }
 0xe47   : > { %3953 = vrot.lane.b32.xlu0 %v16440_v42, %s15612_s19  ;;  %v3923_v42 = vsel %vm2203_vm0, %v16860_v27, 0.0 }
 0xe4a   : > { %3959 = vrot.lane.b32.xlu1 %v16478_v60, %s15612_s19  ;;  %v3920_v60 = vsel %vm2203_vm0, %v16864_v9, 0.0 }
 0xe66   : > { %3924 = vadd.xlane.f32.xlu0 %v3923_v42 }
 0xe6a   : > { %3921 = vadd.xlane.f32.xlu0 %v3920_v60 }
 0xe6e   : > { %3927 = vadd.xlane.f32.xlu0 %v3926_v59 }
 0xeba   : > { %v3913_v16 = vpop.xlane.xlu0 %3912 }
 0xebe   : > { %v3907_v2 = vpop.xlane.xlu0 %3906  ;;  %v3916_v31 = vpop.xlane.xlu1 %3915 }
 0xebf   : > { %15018 = vrcp.f32 %v3916_v31 }
 0xec0   : > { %15020 = vrcp.f32 %v3907_v2 }
 0xec1   : > { %15022 = vrcp.f32 %v3913_v16 }
 0xec2   : > { %v3954_v50 = vpop.permute.xlu0 %3953  ;;  %v3910_v41 = vpop.xlane.xlu1 %3909 }
 0xec3   : > { %15024 = vrcp.f32 %v3910_v41  ;;  %12982 = vmatprep.subr.bf16.mxu1 %v3954_v50  ;;  %v4318_v41 = vsel %vm2203_vm0, %v16512_v44, 0 }
 0xec4   : > { %12983 = vmatpush3.bf16.msra.mxu1 %v3954_v50  ;;  %v4315_v50 = vsel %vm2203_vm0, %v16506_v8, 0 }
 0xec5   : > { %12984 = vmatprep.subr.bf16.mxu1 %v3956_v62 }
 0xec6   : > { %v3919_v34 = vpop.xlane.xlu1 %3918 }
 0xec7   : > { %15026 = vrcp.f32 %v3919_v34 }
 0xec8   : > { %12985 = vmatpush3.bf16.msra.mxu1 %v3956_v62 }
 0xec9   : > { %12986 = vmatprep.subr.bf16.mxu1 %v3958_v11  ;;  %v15019_v49 = vpop.eup %15018 }
 0xeca   : > { %v15021_v46 = vpop.eup %15020  ;;  %v3960_v19 = vpop.permute.xlu1 %3959  ;;  %v3940_v45 = vmul.f32 %v15019_v49, %v15007_v5  ;;  %v14038_v5 = vld [vmem:[#allocation10 + $0x154] ss:$12 sps:$4 sm:$0xff]  }
 0xecb   : > { %v15023_v20 = vpop.eup %15022  ;;  %v3937_v40 = vmul.f32 %v15021_v46, %v15005_v43  ;;  %v14041_v43 = vld [vmem:[#allocation10 + $0x16c] ss:$12 sps:$4 sm:$0xff]  }
 0xecc   : > { %12987 = vmatpush3.bf16.msra.mxu1 %v3958_v11  ;;  %v3939_v26 = vmul.f32 %v15023_v20, %v16844_v51  ;;  %v14039_v51 = vld [vmem:[#allocation10 + $0x168] ss:$12 sps:$4 sm:$0xff]  }
 0xecd   : > { %v15025_v30 = vpop.eup %15024  ;;  %12988 = vmatprep.subr.bf16.mxu1 %v3960_v19 }
 0xece   : > { %v3938_v55 = vmul.f32 %v15025_v30, %v15009_v54  ;;  %v3946_v47 = vpack.c.bf16 %v3940_v45, %v3939_v26 }
 0xed0   : > { %12989 = vmatpush3.bf16.msra.mxu1 %v3960_v19  ;;  %v3945_v12 = vpack.c.bf16 %v3938_v55, %v3937_v40 }
 0xed1   : > { %4138 = vmatprep.subr.bf16.mxu1 %v14032_v37  ;;  %v15027_v52 = vpop.eup %15026 }
 0xed2   : > { %12990 = vmatprep.mubr.msk.bf16.mxu1 %vm2203_vm0, %v3945_v12  ;;  %v3941_v14 = vmul.f32 %v15027_v52, %v16851_v53 }
 0xed3   : > { %12991 = vmatmul.mubr.msk.bf16.vlgmr.msra.gmra.mrb[88].mxu1 %vm2203_vm0, %v3946_v47 }
 0xed4   : > { %4139 = vmatpush1.bf16.msra.mxu1 %v14030_v48 }
 0xed5   : > { %4140 = vmatprep.subr.bf16.mxu1 %v14035_v25 }
 0xed8   : > { %4141 = vmatpush1.bf16.msra.mxu1 %v14033_v58 }
 0xed9   : > { %4142 = vmatprep.subr.bf16.mxu1 %v14038_v5 }
 0xedc   : > { %4143 = vmatpush1.bf16.msra.mxu1 %v14036_v18 }
 0xedd   : > { %4144 = vmatprep.subr.bf16.mxu1 %v14041_v43 }
 0xee0   : > { %4145 = vmatpush1.bf16.msra.mxu1 %v14039_v51 }
 0xee1   : > { %13030 = vmatprep.subr.bf16.mxu1 %v16444_v39 }
 0xef3   : > { %v3925_v54 = vpop.xlane.xlu0 %3924 }
 0xef7   : > { %v3922_v61 = vpop.xlane.xlu0 %3921 }
 0xef8   : > { %15028 = vrcp.f32 %v3922_v61 }
 0xef9   : > { %15030 = vrcp.f32 %v3925_v54 }
 0xefb   : > { %v3928_v0 = vpop.xlane.xlu0 %3927 }
 0xefc   : > { %15032 = vrcp.f32 %v3928_v0 }
 0xf02   : > { %v15029_v15 = vpop.eup %15028 }
 0xf03   : > { %v3942_v36 = vmul.f32 %v15029_v15, %v16864_v9  ;;  %v15031_v38 = vpop.eup %15030 }
 0xf04   : > { %v3943_v60 = vmul.f32 %v15031_v38, %v16860_v27  ;;  %v4309_v27 = vsel %vm2203_vm0, %v16494_v7, 0 }
 0xf05   : > { %v3947_v13 = vpack.c.bf16 %v3942_v36, %v3941_v14 }
 0xf06   : > { %v15033_v42 = vpop.eup %15032 }
 0xf07   : > { %12994 = vmatprep.mubr.msk.bf16.mxu1 %vm2203_vm0, %v3947_v13  ;;  %v3944_v59 = vmul.f32 %v15033_v42, %v16868_v29  ;;  %v4312_v29 = vsel %vm2203_vm0, %v16500_v28, 0 }
 0xf09   : > { %v3948_v62 = vpack.c.bf16 %v3944_v59, %v3943_v60 }
 0xf0b   : > { %12995 = vmatmul.mubr.msk.bf16.gmra.mrb[92].mxu1 %vm2203_vm0, %v3948_v62 }
 0xf0c   : > { %4170 = vmatprep.mubr.bf16.mxu1 %v18121_v10 }
 0xfa6   : > { %v12992_v11 = vpop.f32.mrb[88].mxu1 }
 0xfa7   : > { %v4011_v16 = vpop.f32.mrb[89].mxu1 }
 0xfa8   : > { %v12993_v2 = vpop.f32.mrb[90].mxu1 }
 0xfa9   : > { %v4043_v53 = vpack.c.bf16 %v12993_v2, %v12992_v11  ;;  %v4014_v31 = vpop.f32.mrb[91].mxu1 }
 0xfaa   : > { %v4042_v9 = vpack.c.bf16 %v4014_v31, %v4011_v16 }
 0xfac   : > { %11795 = vmatmul.mubr.msk.bf16.vlgmr.msra.gmra.mrb[64].mxu1 %vm2203_vm0, %v4042_v9  ;;  %13006 = vmatprep.mubr.msk.bf16.mxu0 %vm2203_vm0, %v4042_v9 }
 0xfad   : > { %13031 = vmatpush3.bf16.msra.mxu1 %v16444_v39  ;;  %13007 = vmatmul.mubr.msk.bf16.vlgmr.msra.gmra.mrb[16].mxu0 %vm2203_vm0, %v4043_v53 }
 0xfae   : > { %13015 = vmatpush3.bf16.xpose.msra.mxu0 %v4309_v27  ;;  %13032 = vmatprep.subr.bf16.mxu1 %v16458_v3 }
 0xfaf   : > { %13583 = vmatprep.subr.msk.bf16.mxu0 %vm2203_vm0, %v16500_v28  ;;  %4180 = vmatprep.mubr.bf16.mxu1 %v18121_v10 }
 0xfb1   : > { %13033 = vmatpush3.bf16.msra.mxu1 %v16458_v3 }
 0xfb2   : > { %13034 = vmatprep.subr.bf16.mxu1 %v16470_v23 }
 0xfb4   : > { %11796 = vmatmul.mubr.msk.bf16.gmra.mrb[68].mxu1 %vm2203_vm0, %v4043_v53 }
 0xfb5   : > { %13035 = vmatpush3.bf16.msra.mxu1 %v16470_v23  ;;  %4190 = vmatprep.mubr.bf16.mxu1 %v18121_v10 }
 0xfb6   : > { %13017 = vmatpush3.bf16.xpose.msra.mxu0 %v4312_v29  ;;  %13036 = vmatprep.subr.bf16.mxu1 %v16482_v24 }
 0xfb7   : > { %13584 = vmatprep.subr.msk.bf16.mxu0 %vm2203_vm0, %v16506_v8 }
 0xfb9   : > { %13037 = vmatpush3.bf16.msra.mxu1 %v16482_v24 }
 0xfbe   : > { %13019 = vmatpush3.bf16.xpose.msra.mxu0 %v4315_v50 }
 0xfbf   : > { %13585 = vmatprep.subr.msk.bf16.mxu0 %vm2203_vm0, %v16512_v44 }
 0xfc6   : > { %13021 = vmatpush3.bf16.xpose.msra.mxu0 %v4318_v41 }
 0xfde   : > { %v12996_v34 = vpop.f32.mrb[92].mxu1 }
 0xfdf   : > { %v4027_v49 = vpop.f32.mrb[93].mxu1 }
 0xfe0   : > { %v12997_v46 = vpop.f32.mrb[94].mxu1 }
 0xfe1   : > { %v4045_v20 = vpack.c.bf16 %v12997_v46, %v12996_v34  ;;  %v4030_v19 = vpop.f32.mrb[95].mxu1 }
 0xfe2   : > { %v4044_v30 = vpack.c.bf16 %v4030_v19, %v4027_v49 }
 0xfe4   : > { %11797 = vmatmul.mubr.msk.bf16.gmra.mrb[72].mxu1 %vm2203_vm0, %v4044_v30  ;;  %13010 = vmatprep.mubr.msk.bf16.mxu0 %vm2203_vm0, %v4044_v30 }
 0xfe5   : > { %13011 = vmatmul.mubr.msk.bf16.gmra.mrb[20].mxu0 %vm2203_vm0, %v4045_v20  ;;  %4200 = vmatprep.mubr.bf16.mxu1 %v18121_v10 }
 0xfe6   : > { %13022 = vmatprep.mubr.msk.bf16.mxu0 %vm2203_vm0, %v16494_v7 }
 0xfec   : > { %11798 = vmatmul.mubr.msk.bf16.gmra.mrb[76].mxu1 %vm2203_vm0, %v4045_v20 }
 0xfed   : > { %13023 = vmatmul.mubr.msk.bf16.vlgmr.msra.gmra.mrb[40].mxu0 %vm2203_vm0, %v16500_v28 }
 0xfee   : > { %13026 = vmatprep.mubr.msk.bf16.mxu0 %vm2203_vm0, %v16506_v8 }
 0xff5   : > { %13027 = vmatmul.mubr.msk.bf16.gmra.mrb[44].mxu0 %vm2203_vm0, %v16512_v44 }
0x10c0   : > { %v13024_v45 = vpop.f32.mrb[40].mxu0 }
0x10c1   : > { %v4387_v37 = vmul.f32 0.125, %v13024_v45  ;;  %v4354_v40 = vpop.f32.mrb[41].mxu0 }
0x10c2   : > { %v4385_v55 = vmul.f32 0.125, %v4354_v40  ;;  %v13025_v26 = vpop.f32.mrb[42].mxu0 }
0x10c3   : > { %v4357_v12 = vpop.f32.mrb[43].mxu0  ;;  %v4395_v48 = vadd.f32 %v4387_v37, %v16528_v32  ;;  %v4388_v18 = vmul.f32 0.125, %v13025_v26 }
0x10c4   : > { %v4393_v47 = vadd.f32 %v4385_v55, %v16523_v22  ;;  %v4386_v25 = vmul.f32 0.125, %v4357_v12 }
0x10c5   : > { %v4407_v58 = vsel %vm2203_vm0, %v4395_v48, -inf  ;;  %v4396_v14 = vadd.f32 %v4388_v18, %v16533_v33 }
0x10c6   : > { %4408 = vmax.xlane.f32.xlu0 %v4407_v58  ;;  %v4394_v43 = vadd.f32 %v4386_v25, %v16526_v17  ;;  %v4401_v54 = vsel %vm2203_vm0, %v4393_v47, -inf }
0x10c7   : > { %v4410_v59 = vsel %vm2203_vm0, %v4396_v14, -inf }
0x10c8   : > { %v13028_v5 = vpop.f32.mrb[44].mxu0  ;;  %v4404_v38 = vsel %vm2203_vm0, %v4394_v43, -inf }
0x10c9   : > { %v4370_v51 = vpop.f32.mrb[45].mxu0  ;;  %v4391_v36 = vmul.f32 0.125, %v13028_v5 }
0x10ca   : > { %v4389_v61 = vmul.f32 0.125, %v4370_v51  ;;  %4402 = vmax.xlane.f32.xlu0 %v4401_v54  ;;  %v13029_v0 = vpop.f32.mrb[46].mxu0 }
0x10cb   : > { %v4373_v52 = vpop.f32.mrb[47].mxu0  ;;  %v4399_v42 = vadd.f32 %v4391_v36, %v16546_v4  ;;  %v4392_v62 = vmul.f32 0.125, %v13029_v0 }
0x10cc   : > { %v4397_v15 = vadd.f32 %v4389_v61, %v16541_v35  ;;  %v4390_v60 = vmul.f32 0.125, %v4373_v52 }
0x10cd   : > { %v4419_v16 = vsel %vm2203_vm0, %v4399_v42, -inf  ;;  %v4400_v2 = vadd.f32 %v4392_v62, %v16550_v21 }
0x10ce   : > { %4405 = vmax.xlane.f32.xlu0 %v4404_v38  ;;  %v4413_v13 = vsel %vm2203_vm0, %v4397_v15, -inf  ;;  %v4398_v11 = vadd.f32 %v4390_v60, %v16544_v6 }
0x10cf   : > { %4414 = vmax.xlane.f32.xlu1 %v4413_v13  ;;  %v4422_v31 = vsel %vm2203_vm0, %v4400_v2, -inf }
0x10d0   : > { %v4416_v53 = vsel %vm2203_vm0, %v4398_v11, -inf }
0x10d2   : > { %4411 = vmax.xlane.f32.xlu0 %v4410_v59 }
0x10d6   : > { %4420 = vmax.xlane.f32.xlu0 %v4419_v16 }
0x10da   : > { %4417 = vmax.xlane.f32.xlu0 %v4416_v53  ;;  %v14043_v53 = vld [vmem:[#allocation10 + $0x1a0] ss:$12 sps:$4 sm:$0xff]  }
0x10de   : > { %4423 = vmax.xlane.f32.xlu0 %v4422_v31  ;;  %v14044_v31 = vld [vmem:[#allocation10 + $0x1b8] ss:$12 sps:$4 sm:$0xff]  }
0x1153   : > { %v4409_v9 = vpop.xlane.xlu0 %4408 }
0x1154   : > { %v4427_v27 = vsub.f32 %v4395_v48, %v4409_v9  ;;  %v14045_v9 = vld [vmem:[#allocation10 + $0x1d0] ss:$12 sps:$4 sm:$0xff]  }
0x1156   : > { %v4437_v29 = vmul.f32 1.442695, %v4427_v27  ;;  %v14048_v27 = vld [vmem:[#allocation10 + $0x184] ss:$12 sps:$4 sm:$0xff]  }
0x1157   : > { %v4403_v50 = vpop.xlane.xlu0 %4402  ;;  %4666 = vmatprep.subr.bf16.mxu1 %v14048_v27 }
0x1158   : > { %15034 = vpow2.f32 %v4437_v29  ;;  %v4425_v41 = vsub.f32 %v4393_v47, %v4403_v50 }
0x115a   : > { %v4433_v34 = vmul.f32 1.442695, %v4425_v41 }
0x115b   : > { %v4406_v49 = vpop.xlane.xlu0 %4405 }
0x115c   : > { %15036 = vpow2.f32 %v4433_v34  ;;  %v4426_v46 = vsub.f32 %v4394_v43, %v4406_v49  ;;  %v4415_v20 = vpop.xlane.xlu1 %4414 }
0x115d   : > { %v4429_v30 = vsub.f32 %v4397_v15, %v4415_v20 }
0x115e   : > { %v4435_v19 = vmul.f32 1.442695, %v4426_v46 }
0x115f   : > { %v4412_v45 = vpop.xlane.xlu0 %4411  ;;  %v4441_v55 = vmul.f32 1.442695, %v4429_v30 }
0x1160   : > { %15038 = vpow2.f32 %v4435_v19  ;;  %v4428_v37 = vsub.f32 %v4396_v14, %v4412_v45 }
0x1162   : > { %v16939_v40 = vpop.eup %15034  ;;  %v4439_v26 = vmul.f32 1.442695, %v4428_v37 }
0x1163   : > { %v4421_v12 = vpop.xlane.xlu0 %4420  ;;  %v4455_v48 = vsel %vm2203_vm0, %v16939_v40, 0.0 }
0x1164   : > { %15040 = vpow2.f32 %v4439_v26  ;;  %v4431_v47 = vsub.f32 %v4399_v42, %v4421_v12  ;;  %4456 = vadd.xlane.f32.xlu0 %v4455_v48  ;;  %v14046_v48 = vld [vmem:[#allocation10 + $0x180] ss:$12 sps:$4 sm:$0xff]  }
0x1165   : > { %15042 = vpow2.f32 %v4441_v55 }
0x1166   : > { %v16943_v25 = vpop.eup %15036  ;;  %v4445_v58 = vmul.f32 1.442695, %v4431_v47 }
0x1167   : > { %v4418_v5 = vpop.xlane.xlu0 %4417  ;;  %v4449_v18 = vsel %vm2203_vm0, %v16943_v25, 0.0 }
0x1168   : > { %15044 = vpow2.f32 %v4445_v58  ;;  %v4430_v43 = vsub.f32 %v4398_v11, %v4418_v5  ;;  %4450 = vadd.xlane.f32.xlu0 %v4449_v18  ;;  %v14051_v58 = vld [vmem:[#allocation10 + $0x19c] ss:$12 sps:$4 sm:$0xff]   ;;  %v14049_v5 = vld [vmem:[#allocation10 + $0x198] ss:$12 sps:$4 sm:$0xff]   ;;  %v14054_v18 = vld [vmem:[#allocation10 + $0x1b4] ss:$12 sps:$4 sm:$0xff]  }
0x116a   : > { %v15039_v51 = vpop.eup %15038  ;;  %v4443_v54 = vmul.f32 1.442695, %v4430_v43 }
0x116b   : > { %v4424_v61 = vpop.xlane.xlu0 %4423  ;;  %v4452_v0 = vsel %vm2203_vm0, %v15039_v51, 0.0 }
0x116c   : > { %15046 = vpow2.f32 %v4443_v54  ;;  %v4432_v52 = vsub.f32 %v4400_v2, %v4424_v61  ;;  %4453 = vadd.xlane.f32.xlu0 %v4452_v0  ;;  %v14042_v2 = vld [vmem:[#allocation10 + $0x188] ss:$12 sps:$4 sm:$0xff]   ;;  %v14052_v61 = vld [vmem:[#allocation10 + $0x1b0] ss:$12 sps:$4 sm:$0xff]  }
0x116d   : > { %13046 = vmatprep.subr.bf16.mxu0 %v14042_v2 }
0x116e   : > { %v15041_v15 = vpop.eup %15040  ;;  %v4447_v14 = vmul.f32 1.442695, %v4432_v52  ;;  %13047 = vmatpush3.bf16.msra.mxu0 %v14042_v2 }
0x116f   : > { %v4458_v36 = vsel %vm2203_vm0, %v15041_v15, 0.0  ;;  %v16949_v38 = vpop.eup %15042  ;;  %13048 = vmatprep.subr.bf16.mxu0 %v14043_v53 }
0x1170   : > { %15048 = vpow2.f32 %v4447_v14  ;;  %4459 = vadd.xlane.f32.xlu0 %v4458_v36  ;;  %v4461_v60 = vsel %vm2203_vm0, %v16949_v38, 0.0 }
0x1172   : > { %v16951_v13 = vpop.eup %15044  ;;  %13049 = vmatpush3.bf16.msra.mxu0 %v14043_v53 }
0x1173   : > { %v4467_v42 = vsel %vm2203_vm0, %v16951_v13, 0.0  ;;  %13050 = vmatprep.subr.bf16.mxu0 %v14044_v31 }
0x1174   : > { %4468 = vadd.xlane.f32.xlu1 %v4467_v42  ;;  %4462 = vadd.xlane.f32.xlu0 %v4461_v60  ;;  %v14057_v42 = vld [vmem:[#allocation10 + $0x1cc] ss:$12 sps:$4 sm:$0xff]  }
0x1176   : > { %v16957_v59 = vpop.eup %15046  ;;  %13051 = vmatpush3.bf16.msra.mxu0 %v14044_v31 }
0x1177   : > { %v4464_v62 = vsel %vm2203_vm0, %v16957_v59, 0.0  ;;  %13052 = vmatprep.subr.bf16.mxu0 %v14045_v9 }
0x1178   : > { %4465 = vadd.xlane.f32.xlu0 %v4464_v62 }
0x117a   : > { %v16961_v11 = vpop.eup %15048  ;;  %13053 = vmatpush3.bf16.msra.mxu0 %v14045_v9 }
0x117b   : > { %v4470_v16 = vsel %vm2203_vm0, %v16961_v11, 0.0 }
0x117c   : > { %4471 = vadd.xlane.f32.xlu0 %v4470_v16 }
0x1185   : > { %4832 = vrot.lane.b32.xlu1 %v16494_v7, %s15612_s19 }
0x1189   : > { %4836 = vrot.lane.b32.xlu1 %v16506_v8, %s15612_s19 }
0x118d   : > { %4838 = vrot.lane.b32.xlu1 %v16512_v44, %s15612_s19 }
0x1192   : > { %4834 = vrot.lane.b32.xlu0 %v16500_v28, %s15612_s19 }
0x11f1   : > { %v4457_v29 = vpop.xlane.xlu0 %4456 }
0x11f5   : > { %v4451_v50 = vpop.xlane.xlu0 %4450 }
0x11f6   : > { %15050 = vrcp.f32 %v4451_v50 }
0x11f9   : > { %v4454_v7 = vpop.xlane.xlu0 %4453 }
0x11fa   : > { %15052 = vrcp.f32 %v4454_v7 }
0x11fb   : > { %15054 = vrcp.f32 %v4457_v29 }
0x11fd   : > { %v4460_v8 = vpop.xlane.xlu0 %4459 }
0x11fe   : > { %15056 = vrcp.f32 %v4460_v8 }
0x1200   : > { %v15051_v49 = vpop.eup %15050 }
0x1201   : > { %v4469_v41 = vpop.xlane.xlu1 %4468  ;;  %v4463_v34 = vpop.xlane.xlu0 %4462  ;;  %v4481_v28 = vmul.f32 %v15051_v49, %v16943_v25 }
0x1202   : > { %15058 = vrcp.f32 %v4463_v34 }
0x1204   : > { %v15053_v46 = vpop.eup %15052 }
0x1205   : > { %v16973_v44 = vpop.permute.xlu1 %4832  ;;  %v4466_v20 = vpop.xlane.xlu0 %4465  ;;  %v4482_v19 = vmul.f32 %v15053_v46, %v15039_v51 }
0x1206   : > { %v15055_v30 = vpop.eup %15054  ;;  %15060 = vrcp.f32 %v4466_v20  ;;  %13586 = vmatprep.subr.msk.bf16.mxu0 %vm2203_vm0, %v16973_v44 }
0x1207   : > { %v4489_v45 = vpack.c.bf16 %v4482_v19, %v4481_v28  ;;  %15062 = vrcp.f32 %v4469_v41  ;;  %v4483_v55 = vmul.f32 %v15055_v30, %v16939_v40 }
0x1208   : > { %v15057_v37 = vpop.eup %15056 }
0x1209   : > { %v4484_v26 = vmul.f32 %v15057_v37, %v15041_v15  ;;  %v4472_v12 = vpop.xlane.xlu0 %4471  ;;  %13038 = vmatprep.mubr.msk.bf16.mxu1 %vm2203_vm0, %v4489_v45  ;;  %v4837_v8 = vpop.permute.xlu1 %4836 }
0x120a   : > { %15064 = vrcp.f32 %v4472_v12  ;;  %v4847_v34 = vsel %vm2203_vm0, %v4837_v8, 0 }
0x120b   : > { %v4490_v47 = vpack.c.bf16 %v4484_v26, %v4483_v55 }
0x120c   : > { %v15059_v25 = vpop.eup %15058 }
0x120d   : > { %13039 = vmatmul.mubr.msk.bf16.vlgmr.msra.gmra.mrb[96].mxu1 %vm2203_vm0, %v4490_v47  ;;  %v4485_v51 = vmul.f32 %v15059_v25, %v16949_v38  ;;  %v14055_v38 = vld [vmem:[#allocation10 + $0x1c8] ss:$12 sps:$4 sm:$0xff]   ;;  %v4839_v49 = vpop.permute.xlu1 %4838 }
0x120e   : > { %4667 = vmatpush1.bf16.msra.mxu1 %v14046_v48  ;;  %v4850_v46 = vsel %vm2203_vm0, %v4839_v49, 0 }
0x120f   : > { %4668 = vmatprep.subr.bf16.mxu1 %v14051_v58 }
0x1210   : > { %v15061_v43 = vpop.eup %15060 }
0x1211   : > { %v4486_v40 = vmul.f32 %v15061_v43, %v16957_v59  ;;  %v15063_v54 = vpop.eup %15062 }
0x1212   : > { %4669 = vmatpush1.bf16.msra.mxu1 %v14049_v5  ;;  %v4487_v15 = vmul.f32 %v15063_v54, %v16951_v13  ;;  %v4841_v13 = vsel %vm2203_vm0, %v16973_v44, 0 }
0x1213   : > { %v4491_v0 = vpack.c.bf16 %v4486_v40, %v4485_v51  ;;  %4670 = vmatprep.subr.bf16.mxu1 %v14054_v18 }
0x1214   : > { %v15065_v52 = vpop.eup %15064 }
0x1215   : > { %13042 = vmatprep.mubr.msk.bf16.mxu1 %vm2203_vm0, %v4491_v0  ;;  %v4488_v14 = vmul.f32 %v15065_v52, %v16961_v11  ;;  %v4835_v11 = vpop.permute.xlu0 %4834 }
0x1216   : > { %4671 = vmatpush1.bf16.msra.mxu1 %v14052_v61  ;;  %v4844_v7 = vsel %vm2203_vm0, %v4835_v11, 0 }
0x1217   : > { %v4492_v36 = vpack.c.bf16 %v4488_v14, %v4487_v15  ;;  %4672 = vmatprep.subr.bf16.mxu1 %v14057_v42 }
0x1219   : > { %13043 = vmatmul.mubr.msk.bf16.gmra.mrb[100].mxu1 %vm2203_vm0, %v4492_v36 }
0x121a   : > { %4698 = vmatprep.mubr.bf16.mxu1 %v18121_v10  ;;  %4673 = vmatpush1.bf16.msra.mxu1 %v14055_v38 }
0x12e0   : > { %v13040_v60 = vpop.f32.mrb[96].mxu1 }
0x12e1   : > { %v4539_v59 = vpop.f32.mrb[97].mxu1 }
0x12e2   : > { %v13041_v62 = vpop.f32.mrb[98].mxu1 }
0x12e3   : > { %v4571_v16 = vpack.c.bf16 %v13041_v62, %v13040_v60  ;;  %v4542_v2 = vpop.f32.mrb[99].mxu1 }
0x12e4   : > { %v4570_v53 = vpack.c.bf16 %v4542_v2, %v4539_v59 }
0x12e6   : > { %11823 = vmatmul.mubr.msk.bf16.vlgmr.msra.gmra.mrb[64].mxu1 %vm2203_vm0, %v4570_v53  ;;  %13054 = vmatprep.mubr.msk.bf16.mxu0 %vm2203_vm0, %v4570_v53 }
0x12e7   : > { %13055 = vmatmul.mubr.msk.bf16.vlgmr.msra.gmra.mrb[16].mxu0 %vm2203_vm0, %v4571_v16  ;;  %4708 = vmatprep.mubr.bf16.mxu1 %v18121_v10 }
0x12e8   : > { %13063 = vmatpush3.bf16.xpose.msra.mxu0 %v4841_v13 }
0x12e9   : > { %13587 = vmatprep.subr.msk.bf16.mxu0 %vm2203_vm0, %v4835_v11 }
0x12ec   : > { %v13044_v31 = vpop.f32.mrb[100].mxu1 }
0x12ed   : > { %v4555_v9 = vpop.f32.mrb[101].mxu1 }
0x12ee   : > { %v13045_v27 = vpop.f32.mrb[102].mxu1  ;;  %11824 = vmatmul.mubr.msk.bf16.gmra.mrb[68].mxu1 %vm2203_vm0, %v4571_v16 }
0x12ef   : > { %v4573_v29 = vpack.c.bf16 %v13045_v27, %v13044_v31  ;;  %v4558_v50 = vpop.f32.mrb[103].mxu1  ;;  %4718 = vmatprep.mubr.bf16.mxu1 %v18121_v10 }
0x12f0   : > { %v4572_v41 = vpack.c.bf16 %v4558_v50, %v4555_v9  ;;  %13065 = vmatpush3.bf16.xpose.msra.mxu0 %v4844_v7 }
0x12f1   : > { %13588 = vmatprep.subr.msk.bf16.mxu0 %vm2203_vm0, %v4837_v8 }
0x12f2   : > { %13058 = vmatprep.mubr.msk.bf16.mxu0 %vm2203_vm0, %v4572_v41 }
0x12f3   : > { %13059 = vmatmul.mubr.msk.bf16.gmra.mrb[20].mxu0 %vm2203_vm0, %v4573_v29 }
0x12f4   : > { %13070 = vmatprep.mubr.msk.bf16.mxu0 %vm2203_vm0, %v16973_v44 }
0x12f6   : > { %11825 = vmatmul.mubr.msk.bf16.gmra.mrb[72].mxu1 %vm2203_vm0, %v4572_v41 }
0x12f7   : > { %4728 = vmatprep.mubr.bf16.mxu1 %v18121_v10 }
0x12f8   : > { %13067 = vmatpush3.bf16.xpose.msra.mxu0 %v4847_v34 }
0x12f9   : > { %13589 = vmatprep.subr.msk.bf16.mxu0 %vm2203_vm0, %v4839_v49 }
0x12fe   : > { %11826 = vmatmul.mubr.msk.bf16.gmra.mrb[76].mxu1 %vm2203_vm0, %v4573_v29 }
0x1300   : > { %13069 = vmatpush3.bf16.xpose.msra.mxu0 %v4850_v46 }
0x1307   : > { %13071 = vmatmul.mubr.msk.bf16.vlgmr.msra.gmra.mrb[48].mxu0 %vm2203_vm0, %v4835_v11 }
0x1308   : > { %13074 = vmatprep.mubr.msk.bf16.mxu0 %vm2203_vm0, %v4837_v8 }
0x130f   : > { %13075 = vmatmul.mubr.msk.bf16.gmra.mrb[52].mxu0 %vm2203_vm0, %v4839_v49 }
0x13da   : > { %v13072_v44 = vpop.f32.mrb[48].mxu0 }
0x13db   : > { %v4886_v20 = vpop.f32.mrb[49].mxu0  ;;  %v4919_v28 = vmul.f32 0.125, %v13072_v44 }
0x13dc   : > { %v4917_v19 = vmul.f32 0.125, %v4886_v20  ;;  %v13073_v30 = vpop.f32.mrb[50].mxu0 }
0x13dd   : > { %v4889_v45 = vpop.f32.mrb[51].mxu0  ;;  %v4920_v26 = vmul.f32 0.125, %v13073_v30  ;;  %v4927_v12 = vadd.f32 %v4919_v28, %v16528_v32 }
0x13de   : > { %v4925_v37 = vadd.f32 %v4917_v19, %v16523_v22  ;;  %v4918_v55 = vmul.f32 0.125, %v4889_v45 }
0x13df   : > { %v4928_v5 = vadd.f32 %v4920_v26, %v16533_v33  ;;  %v4939_v22 = vsel %vm2203_vm0, %v4927_v12, -inf }
0x13e0   : > { %v4926_v48 = vadd.f32 %v4918_v55, %v16526_v17  ;;  %v4933_v47 = vsel %vm2203_vm0, %v4925_v37, -inf }
0x13e1   : > { %4934 = vmax.xlane.f32.xlu0 %v4933_v47  ;;  %v4942_v61 = vsel %vm2203_vm0, %v4928_v5, -inf }
0x13e2   : > { %v13076_v58 = vpop.f32.mrb[52].mxu0  ;;  %v4936_v25 = vsel %vm2203_vm0, %v4926_v48, -inf }
0x13e3   : > { %4937 = vmax.xlane.f32.xlu1 %v4936_v25  ;;  %v4902_v18 = vpop.f32.mrb[53].mxu0  ;;  %v4923_v43 = vmul.f32 0.125, %v13076_v58 }
0x13e4   : > { %v4921_v51 = vmul.f32 0.125, %v4902_v18  ;;  %v13077_v40 = vpop.f32.mrb[54].mxu0 }
0x13e5   : > { %4940 = vmax.xlane.f32.xlu0 %v4939_v22  ;;  %v4905_v54 = vpop.f32.mrb[55].mxu0  ;;  %v4931_v0 = vadd.f32 %v4923_v43, %v16546_v4  ;;  %v4924_v52 = vmul.f32 0.125, %v13077_v40  ;;  %v14065_v40 = vld [vmem:[#allocation10 + $0x200] ss:$12 sps:$4 sm:$0xff]   ;;  %v14069_v22 = vld [vmem:[#allocation10 + $0x218] ss:$12 sps:$4 sm:$0xff]  }
0x13e6   : > { %v4929_v32 = vadd.f32 %v4921_v51, %v16541_v35  ;;  %v4922_v17 = vmul.f32 0.125, %v4905_v54  ;;  %v14061_v51 = vld [vmem:[#allocation10 + $0x1e8] ss:$12 sps:$4 sm:$0xff]  }
0x13e7   : > { %v4932_v14 = vadd.f32 %v4924_v52, %v16550_v21  ;;  %v4951_v36 = vsel %vm2203_vm0, %v4931_v0, -inf  ;;  %13094 = vmatprep.subr.bf16.mxu0 %v14061_v51 }
0x13e8   : > { %v4930_v15 = vadd.f32 %v4922_v17, %v16544_v6  ;;  %v4945_v33 = vsel %vm2203_vm0, %v4929_v32, -inf  ;;  %13095 = vmatpush3.bf16.msra.mxu0 %v14061_v51 }
0x13e9   : > { %4943 = vmax.xlane.f32.xlu0 %v4942_v61  ;;  %4946 = vmax.xlane.f32.xlu1 %v4945_v33  ;;  %v4954_v35 = vsel %vm2203_vm0, %v4932_v14, -inf }
0x13ea   : > { %v4948_v38 = vsel %vm2203_vm0, %v4930_v15, -inf  ;;  %13096 = vmatprep.subr.bf16.mxu0 %v14065_v40 }
0x13ec   : > { %13097 = vmatpush3.bf16.msra.mxu0 %v14065_v40 }
0x13ed   : > { %4952 = vmax.xlane.f32.xlu1 %v4951_v36  ;;  %4949 = vmax.xlane.f32.xlu0 %v4948_v38 }
0x13ee   : > { %13098 = vmatprep.subr.bf16.mxu0 %v14069_v22 }
0x13f0   : > { %13099 = vmatpush3.bf16.msra.mxu0 %v14069_v22 }
0x13f1   : > { %4955 = vmax.xlane.f32.xlu0 %v4954_v35 }
0x13fe   : > { %5029 = vrot.lane.b32.xlu1 %v16444_v39, %s15612_s19 }
0x1402   : > { %5031 = vrot.lane.b32.xlu1 %v16458_v3, %s15612_s19 }
0x146e   : > { %v4935_v6 = vpop.xlane.xlu0 %4934 }
0x146f   : > { %v4957_v4 = vsub.f32 %v4925_v37, %v4935_v6 }
0x1470   : > { %v4938_v42 = vpop.xlane.xlu1 %4937 }
0x1471   : > { %v4965_v59 = vmul.f32 1.442695, %v4957_v4  ;;  %v4958_v62 = vsub.f32 %v4926_v48, %v4938_v42 }
0x1472   : > { %v4941_v60 = vpop.xlane.xlu0 %4940 }
0x1473   : > { %v4959_v21 = vsub.f32 %v4927_v12, %v4941_v60  ;;  %v4967_v11 = vmul.f32 1.442695, %v4958_v62 }
0x1475   : > { %v4969_v16 = vmul.f32 1.442695, %v4959_v21  ;;  %v14060_v21 = vld [vmem:[#allocation10 + $0x1e4] ss:$12 sps:$4 sm:$0xff]  }
0x1476   : > { %v4944_v2 = vpop.xlane.xlu0 %4943  ;;  %v4947_v53 = vpop.xlane.xlu1 %4946 }
0x1477   : > { %15066 = vpow2.f32 %v4969_v16  ;;  %v4960_v13 = vsub.f32 %v4928_v5, %v4944_v2  ;;  %v4961_v3 = vsub.f32 %v4929_v32, %v4947_v53  ;;  %v14058_v16 = vld [vmem:[#allocation10 + $0x1e0] ss:$12 sps:$4 sm:$0xff]  }
0x1478   : > { %15068 = vpow2.f32 %v4965_v59 }
0x1479   : > { %v4971_v31 = vmul.f32 1.442695, %v4960_v13  ;;  %v4973_v41 = vmul.f32 1.442695, %v4961_v3  ;;  %v14064_v13 = vld [vmem:[#allocation10 + $0x1fc] ss:$12 sps:$4 sm:$0xff]  }
0x147a   : > { %v4953_v9 = vpop.xlane.xlu1 %4952  ;;  %v4950_v39 = vpop.xlane.xlu0 %4949  ;;  %v14062_v3 = vld [vmem:[#allocation10 + $0x1f8] ss:$12 sps:$4 sm:$0xff]  }
0x147b   : > { %15070 = vpow2.f32 %v4971_v31  ;;  %v4963_v27 = vsub.f32 %v4931_v0, %v4953_v9  ;;  %v4962_v28 = vsub.f32 %v4930_v15, %v4950_v39 }
0x147c   : > { %15072 = vpow2.f32 %v4967_v11 }
0x147d   : > { %v4977_v29 = vmul.f32 1.442695, %v4963_v27  ;;  %v4975_v55 = vmul.f32 1.442695, %v4962_v28 }
0x147e   : > { %v5030_v50 = vpop.permute.xlu1 %5029  ;;  %v4956_v7 = vpop.xlane.xlu0 %4955 }
0x147f   : > { %13078 = vmatprep.subr.bf16.mxu1 %v5030_v50  ;;  %15074 = vpow2.f32 %v4977_v29  ;;  %v4964_v34 = vsub.f32 %v4932_v14, %v4956_v7 }
0x1480   : > { %13079 = vmatpush3.bf16.msra.mxu1 %v5030_v50  ;;  %15076 = vpow2.f32 %v4973_v41  ;;  %v14068_v50 = vld [vmem:[#allocation10 + $0x214] ss:$12 sps:$4 sm:$0xff]  }
0x1481   : > { %v17032_v8 = vpop.eup %15066  ;;  %v4979_v19 = vmul.f32 1.442695, %v4964_v34  ;;  %v14070_v34 = vld [vmem:[#allocation10 + $0x228] ss:$12 sps:$4 sm:$0xff]  }
0x1482   : > { %v5032_v49 = vpop.permute.xlu1 %5031  ;;  %v4987_v46 = vsel %vm2203_vm0, %v17032_v8, 0.0  ;;  %v15069_v44 = vpop.eup %15068 }
0x1483   : > { %4988 = vadd.xlane.f32.xlu1 %v4987_v46  ;;  %13080 = vmatprep.subr.bf16.mxu1 %v5032_v49  ;;  %v4981_v30 = vsel %vm2203_vm0, %v15069_v44, 0.0  ;;  %15078 = vpow2.f32 %v4979_v19  ;;  %v14073_v46 = vld [vmem:[#allocation10 + $0x230] ss:$12 sps:$4 sm:$0xff]  }
0x1484   : > { %13081 = vmatpush3.bf16.msra.mxu1 %v5032_v49  ;;  %15080 = vpow2.f32 %v4975_v55  ;;  %v14072_v49 = vld [vmem:[#allocation10 + $0x22c] ss:$12 sps:$4 sm:$0xff]   ;;  %13100 = vmatprep.subr.bf16.mxu0 %v14073_v46 }
0x1485   : > { %v17036_v20 = vpop.eup %15070  ;;  %13101 = vmatpush3.bf16.msra.mxu0 %v14073_v46  ;;  %v15147_v46 = vld [vmem:[%s16040_s5 + $0x48] sm:$0xff] }
0x1486   : > { %v4990_v45 = vsel %vm2203_vm0, %v17036_v20, 0.0  ;;  %v15073_v37 = vpop.eup %15072 }
0x1487   : > { %4982 = vadd.xlane.f32.xlu1 %v4981_v30  ;;  %4991 = vadd.xlane.f32.xlu0 %v4990_v45  ;;  %v4984_v26 = vsel %vm2203_vm0, %v15073_v37, 0.0 }
0x1489   : > { %v17042_v12 = vpop.eup %15074 }
0x148a   : > { %v4999_v48 = vsel %vm2203_vm0, %v17042_v12, 0.0  ;;  %v15077_v47 = vpop.eup %15076 }
0x148b   : > { %4985 = vadd.xlane.f32.xlu0 %v4984_v26  ;;  %v4993_v58 = vsel %vm2203_vm0, %v15077_v47, 0.0 }
0x148d   : > { %v17047_v25 = vpop.eup %15078 }
0x148e   : > { %v5002_v5 = vsel %vm2203_vm0, %v17047_v25, 0.0  ;;  %v15081_v18 = vpop.eup %15080 }
0x148f   : > { %5000 = vadd.xlane.f32.xlu0 %v4999_v48  ;;  %v4996_v43 = vsel %vm2203_vm0, %v15081_v18, 0.0 }
0x1493   : > { %4994 = vadd.xlane.f32.xlu0 %v4993_v58  ;;  %v5400_v58 = vld [vmem:[#allocation11] sm:$0x7] }
0x1497   : > { %5003 = vadd.xlane.f32.xlu0 %v5002_v5 }
0x1498   : > { %5035 = vrot.lane.b32.xlu1 %v16482_v24, %s15612_s19 }
0x149b   : > { %4997 = vadd.xlane.f32.xlu0 %v4996_v43  ;;  %v15138_v43 = vld [vmem:[%s16040_s5] sm:$0xff] }
0x14b1   : > { %5033 = vrot.lane.b32.xlu0 %v16470_v23, %s15612_s19 }
0x1510   : > { %v4989_v54 = vpop.xlane.xlu1 %4988 }
0x1514   : > { %v4983_v32 = vpop.xlane.xlu1 %4982  ;;  %v4992_v17 = vpop.xlane.xlu0 %4991 }
0x1515   : > { %15082 = vrcp.f32 %v4983_v32  ;;  %v15139_v32 = vld [vmem:[%s16040_s5 + $0x8] sm:$0xff] }
0x1518   : > { %v4986_v24 = vpop.xlane.xlu0 %4985  ;;  %v5036_v42 = vpop.permute.xlu1 %5035 }
0x1519   : > { %15084 = vrcp.f32 %v4986_v24 }
0x151a   : > { %15086 = vrcp.f32 %v4992_v17 }
0x151b   : > { %15088 = vrcp.f32 %v4989_v54  ;;  %v17084_v54 = vrot.slane %v5400_v58, %v16345_v56 }
0x151c   : > { %v5001_v61 = vpop.xlane.xlu0 %5000 }
0x151f   : > { %v15083_v52 = vpop.eup %15082 }
0x1520   : > { %v4995_v0 = vpop.xlane.xlu0 %4994  ;;  %v5013_v33 = vmul.f32 %v15083_v52, %v15069_v44  ;;  %v15140_v52 = vld [vmem:[%s16040_s5 + $0x18] sm:$0xff] }
0x1521   : > { %15090 = vrcp.f32 %v4995_v0 }
0x1523   : > { %v15085_v23 = vpop.eup %15084 }
0x1524   : > { %v5004_v15 = vpop.xlane.xlu0 %5003  ;;  %v5014_v14 = vmul.f32 %v15085_v23, %v15073_v37  ;;  %v15087_v35 = vpop.eup %15086 }
0x1525   : > { %v15089_v4 = vpop.eup %15088  ;;  %v5016_v60 = vmul.f32 %v15087_v35, %v17036_v20  ;;  %v15142_v35 = vld [vmem:[%s16040_s5 + $0x20] sm:$0xff] }
0x1526   : > { %v5021_v36 = vpack.c.bf16 %v5014_v14, %v5013_v33  ;;  %v5015_v62 = vmul.f32 %v15089_v4, %v17032_v8  ;;  %v14066_v8 = vld [vmem:[#allocation10 + $0x210] ss:$12 sps:$4 sm:$0xff]  }
0x1528   : > { %v4998_v38 = vpop.xlane.xlu0 %4997  ;;  %13086 = vmatprep.mubr.msk.bf16.mxu1 %vm2203_vm0, %v5021_v36  ;;  %v5022_v53 = vpack.c.bf16 %v5016_v60, %v5015_v62 }
0x1529   : > { %15092 = vrcp.f32 %v4998_v38 }
0x152a   : > { %15094 = vrcp.f32 %v5004_v15  ;;  %v15141_v15 = vld [vmem:[%s16040_s5 + $0x10] sm:$0xff] }
0x152b   : > { %15096 = vrcp.f32 %v5001_v61  ;;  %v15091_v59 = vpop.eup %15090 }
0x152c   : > { %v5034_v6 = vpop.permute.xlu0 %5033  ;;  %v5017_v31 = vmul.f32 %v15091_v59, %v15077_v47 }
0x152d   : > { %13082 = vmatprep.subr.bf16.mxu1 %v5034_v6 }
0x152e   : > { %13083 = vmatpush3.bf16.msra.mxu1 %v5034_v6 }
0x152f   : > { %13084 = vmatprep.subr.bf16.mxu1 %v5036_v42 }
0x1532   : > { %13085 = vmatpush3.bf16.msra.mxu1 %v5036_v42 }
0x1533   : > { %v15093_v2 = vpop.eup %15092  ;;  %5214 = vmatprep.subr.bf16.mxu1 %v14060_v21  ;;  %v15143_v21 = vld [vmem:[%s16040_s5 + $0x28] sm:$0xff] }
0x1534   : > { %v15095_v11 = vpop.eup %15094  ;;  %v5018_v9 = vmul.f32 %v15093_v2, %v15081_v18  ;;  %v17080_v18 = vrot.slane %v5400_v58, %v16218_v63 }
0x1535   : > { %13087 = vmatmul.mubr.msk.bf16.vlgmr.msra.gmra.mrb[104].mxu1 %vm2203_vm0, %v5022_v53  ;;  %v15097_v39 = vpop.eup %15096  ;;  %v5020_v29 = vmul.f32 %v15095_v11, %v17047_v25  ;;  %v17077_v25 = vrot.slane %v5400_v58, %v16221_v1 }
0x1536   : > { %v5023_v27 = vpack.c.bf16 %v5018_v9, %v5017_v31  ;;  %5215 = vmatpush1.bf16.msra.mxu1 %v14058_v16  ;;  %v5019_v7 = vmul.f32 %v15097_v39, %v17042_v12  ;;  %v15144_v31 = vld [vmem:[%s16040_s5 + $0x30] sm:$0xff] }
0x1537   : > { %5216 = vmatprep.subr.bf16.mxu1 %v14064_v13 }
0x1538   : > { %13090 = vmatprep.mubr.msk.bf16.mxu1 %vm2203_vm0, %v5023_v27  ;;  %v5024_v41 = vpack.c.bf16 %v5020_v29, %v5019_v7 }
0x153a   : > { %5217 = vmatpush1.bf16.msra.mxu1 %v14062_v3  ;;  %v15145_v3 = vld [vmem:[%s16040_s5 + $0x40] sm:$0xff] }
0x153b   : > { %5218 = vmatprep.subr.bf16.mxu1 %v14068_v50  ;;  %v15146_v50 = vld [vmem:[%s16040_s5 + $0x38] sm:$0xff] }
0x153d   : > { %13091 = vmatmul.mubr.msk.bf16.gmra.mrb[108].mxu1 %vm2203_vm0, %v5024_v41 }
0x153e   : > { %5219 = vmatpush1.bf16.msra.mxu1 %v14066_v8  ;;  %5246 = vmatprep.mubr.bf16.mxu1 %v18121_v10 }
0x153f   : > { %5220 = vmatprep.subr.bf16.mxu1 %v14072_v49 }
0x1542   : > { %5221 = vmatpush1.bf16.msra.mxu1 %v14070_v34 }
0x1608   : > { %v13088_v44 = vpop.f32.mrb[104].mxu1 }
0x1609   : > { %v5087_v20 = vpop.f32.mrb[105].mxu1 }
0x160a   : > { %v13089_v28 = vpop.f32.mrb[106].mxu1 }
0x160b   : > { %v5119_v19 = vpack.c.bf16 %v13089_v28, %v13088_v44  ;;  %v5090_v30 = vpop.f32.mrb[107].mxu1 }
0x160c   : > { %v5118_v45 = vpack.c.bf16 %v5090_v30, %v5087_v20  ;;  %v15148_v30 = vld [vmem:[%s16040_s5 + $0x50] sm:$0xff] }
0x160e   : > { %11851 = vmatmul.mubr.msk.bf16.vlgmr.msra.gmra.mrb[64].mxu1 %vm2203_vm0, %v5118_v45  ;;  %13102 = vmatprep.mubr.msk.bf16.mxu0 %vm2203_vm0, %v5118_v45 }
0x160f   : > { %13103 = vmatmul.mubr.msk.bf16.vlgmr.msra.gmra.mrb[16].mxu0 %vm2203_vm0, %v5119_v19  ;;  %5256 = vmatprep.mubr.bf16.mxu1 %v18121_v10 }
0x1610   : > { %v13092_v37 = vpop.f32.mrb[108].mxu1 }
0x1611   : > { %v5103_v55 = vpop.f32.mrb[109].mxu1 }
0x1612   : > { %v13093_v26 = vpop.f32.mrb[110].mxu1 }
0x1613   : > { %v5121_v12 = vpack.c.bf16 %v13093_v26, %v13092_v37  ;;  %v5106_v48 = vpop.f32.mrb[111].mxu1 }
0x1614   : > { %v5120_v47 = vpack.c.bf16 %v5106_v48, %v5103_v55 }
0x1616   : > { %11852 = vmatmul.mubr.msk.bf16.gmra.mrb[68].mxu1 %vm2203_vm0, %v5119_v19  ;;  %13106 = vmatprep.mubr.msk.bf16.mxu0 %vm2203_vm0, %v5120_v47 }
0x1617   : > { %13107 = vmatmul.mubr.msk.bf16.gmra.mrb[20].mxu0 %vm2203_vm0, %v5121_v12  ;;  %5266 = vmatprep.mubr.bf16.mxu1 %v18121_v10 }
0x161e   : > { %11853 = vmatmul.mubr.msk.bf16.gmra.mrb[72].mxu1 %vm2203_vm0, %v5120_v47 }
0x161f   : > { %5276 = vmatprep.mubr.bf16.mxu1 %v18121_v10  ;;  %v14139_v10 = vld [vmem:[#allocation16 + $0x3cc] ss:$48 sps:$4 sm:$0xff]  }
0x1626   : > { %11854 = vmatmul.mubr.msk.bf16.gmra.mrb[76].mxu1 %vm2203_vm0, %v5121_v12  ;;  %v15149_v12 = vld [vmem:[%s16040_s5 + $0x58] sm:$0xff] }
0x16e1   : > { %v5248_v5 = vpop.f32.mrb[64].mxu1 }
0x16e2   : > { %v5376_v51 = vadd.f32 %v15138_v43, %v5248_v5  ;;  %v5250_v40 = vpop.f32.mrb[65].mxu1  ;;  %v13104_v22 = vpop.f32.mrb[16].mxu0 }
0x16e3   : > { %v5377_v17 = vadd.f32 %v15139_v32, %v5250_v40  ;;  %v5252_v24 = vpop.f32.mrb[66].mxu1  ;;  %v5321_v61 = vpop.f32.mrb[17].mxu0  ;;  %v5384_v29 = vadd.f32 %v15145_v3, %v13104_v22  ;;  %v15150_v40 = vld [vmem:[%s16040_s5 + $0x60] sm:$0xff] }
0x16e4   : > { %v17088_v0 = vadd.f32 %v17077_v25, %v5376_v51  ;;  %v5379_v23 = vadd.f32 %v15140_v52, %v5252_v24  ;;  %v5378_v33 = vadd.f32 %v15141_v15, %v5321_v61  ;;  %v5254_v14 = vpop.f32.mrb[67].mxu1  ;;  %v13105_v36 = vpop.f32.mrb[18].mxu0  ;;  %v15151_v24 = vld [vmem:[%s16040_s5 + $0x70] sm:$0xff]  ;;  %v15152_v52 = vld [vmem:[%s16040_s5 + $0x68] sm:$0xff] }
0x16e5   : > { %v17093_v38 = vadd.f32 %v17080_v18, %v5377_v17  ;;  %v5380_v6 = vadd.f32 %v15142_v35, %v5254_v14  ;;  %v5324_v4 = vpop.f32.mrb[19].mxu0  ;;  %v17130_v26 = vadd.f32 %v17084_v54, %v5384_v29  ;;  %v5387_v48 = vadd.f32 %v15149_v12, %v13105_v36  ;;  %v15153_v14 = vld [vmem:[%s16040_s5 + $0x78] sm:$0xff]  ;;  %v15159_v12 = vld [vmem:[%s16040_s5 + $0xa8] sm:$0xff] }
0x16e6   : > { %v17097_v42 = vadd.f32 %v17077_v25, %v5379_v23  ;;  %v17100_v60 = vadd.f32 %v17084_v54, %v5378_v33  ;;  %v5381_v59 = vadd.f32 %v15143_v21, %v5324_v4 }
0x16e7   : > { %v17104_v62 = vadd.f32 %v17080_v18, %v5380_v6  ;;  %v5443_v16 = vadd.f32 %v17093_v38, %v17088_v0  ;;  %v17143_v17 = vadd.f32 %v17084_v54, %v5387_v48  ;;  %v15154_v6 = vld [vmem:[%s16040_s5 + $0x88] sm:$0xff] }
0x16e8   : > { %v17109_v2 = vadd.f32 %v17084_v54, %v5381_v59  ;;  %v15155_v59 = vld [vmem:[%s16040_s5 + $0x80] sm:$0xff] }
0x16e9   : > { %v5258_v53 = vpop.f32.mrb[68].mxu1  ;;  %v5444_v13 = vadd.f32 %v5443_v16, %v17100_v60  ;;  %v5447_v11 = vadd.f32 %v17104_v62, %v17097_v42 }
0x16ea   : > { %v5382_v9 = vadd.f32 %v15144_v31, %v5258_v53  ;;  %v5260_v39 = vpop.f32.mrb[69].mxu1  ;;  %v13108_v27 = vpop.f32.mrb[20].mxu0 }
0x16eb   : > { %v5383_v7 = vadd.f32 %v15146_v50, %v5260_v39  ;;  %5445 = vadd.xlane.f32.xlu1 %v5444_v13  ;;  %v5262_v8 = vpop.f32.mrb[70].mxu1  ;;  %v5337_v41 = vpop.f32.mrb[21].mxu0  ;;  %v5448_v34 = vadd.f32 %v5447_v11, %v17109_v2 }
0x16ec   : > { %v17119_v49 = vadd.f32 %v17077_v25, %v5382_v9  ;;  %v5385_v44 = vadd.f32 %v15147_v46, %v5262_v8  ;;  %v5264_v20 = vpop.f32.mrb[71].mxu1  ;;  %v13109_v28 = vpop.f32.mrb[22].mxu0  ;;  %v5390_v61 = vadd.f32 %v15151_v24, %v5337_v41 }
0x16ed   : > { %v17123_v19 = vadd.f32 %v17080_v18, %v5383_v7  ;;  %v5386_v45 = vadd.f32 %v15148_v30, %v5264_v20  ;;  %5449 = vadd.xlane.f32.xlu0 %v5448_v34  ;;  %v5340_v37 = vpop.f32.mrb[23].mxu0  ;;  %v15156_v7 = vld [vmem:[%s16040_s5 + $0x90] sm:$0xff]  ;;  %v15157_v34 = vld [vmem:[%s16040_s5 + $0xa0] sm:$0xff] }
0x16ee   : > { %v17127_v55 = vadd.f32 %v17077_v25, %v5385_v44  ;;  %v5393_v4 = vadd.f32 %v15154_v6, %v5340_v37  ;;  %v17161_v11 = vadd.f32 %v17084_v54, %v5390_v61  ;;  %v5396_v46 = vadd.f32 %v15157_v34, %v13108_v27  ;;  %v15158_v44 = vld [vmem:[%s16040_s5 + $0x98] sm:$0xff]  ;;  %v14085_v6 = vld [vmem:[#allocation16 + $0x6c] ss:$48 sps:$4 sm:$0xff]   ;;  %v14098_v34 = vld [vmem:[#allocation16 + $0x180] ss:$48 sps:$4 sm:$0xff]  }
0x16ef   : > { %18170 = vst [vmem:[#allocation32_spill] sm:$0xff] %v17123_v19  ;;  %v17134_v47 = vadd.f32 %v17080_v18, %v5386_v45  ;;  %v5451_v58 = vadd.f32 %v17123_v19, %v17119_v49 }
0x16f0   : > { %18171 = vst [vmem:[#allocation33_spill] sm:$0xff] %v17127_v55  ;;  %v17169_v39 = vadd.f32 %v17084_v54, %v5393_v4  ;;  %v14083_v4 = vld [vmem:[#allocation16 + $0x68] ss:$48 sps:$4 sm:$0xff]  }
0x16f1   : > { %18172 = vst [vmem:[#allocation34_spill] sm:$0xff] %v17134_v47  ;;  %v5268_v5 = vpop.f32.mrb[72].mxu1  ;;  %v5452_v43 = vadd.f32 %v5451_v58, %v17130_v26  ;;  %v5455_v51 = vadd.f32 %v17134_v47, %v17127_v55 }
0x16f2   : > { %v5388_v22 = vadd.f32 %v15150_v40, %v5268_v5  ;;  %v5270_v32 = vpop.f32.mrb[73].mxu1  ;;  %v15160_v5 = vld [vmem:[%s16040_s5 + $0xb8] sm:$0xff]  ;;  %v15161_v40 = vld [vmem:[%s16040_s5 + $0xb0] sm:$0xff] }
0x16f3   : > { %v5389_v23 = vadd.f32 %v15152_v52, %v5270_v32  ;;  %5453 = vadd.xlane.f32.xlu1 %v5452_v43  ;;  %v5272_v15 = vpop.f32.mrb[74].mxu1  ;;  %v5456_v53 = vadd.f32 %v5455_v51, %v17143_v17  ;;  %v5399_v43 = vadd.f32 %v15160_v5, %v13109_v28  ;;  %v17191_v32 = vadd.f32 %v17084_v54, %v5396_v46  ;;  %v14101_v46 = vld [vmem:[#allocation16 + $0x188] ss:$48 sps:$4 sm:$0xff]  }
0x16f4   : > { %v17148_v33 = vadd.f32 %v17077_v25, %v5388_v22  ;;  %v5391_v36 = vadd.f32 %v15153_v14, %v5272_v15  ;;  %v5274_v35 = vpop.f32.mrb[75].mxu1  ;;  %v14074_v15 = vld [vmem:[#allocation16] ss:$48 sps:$4 sm:$0xff]   ;;  %v14076_v14 = vld [vmem:[#allocation16 + $0x4] ss:$48 sps:$4 sm:$0xff]  }
0x16f5   : > { %v17153_v21 = vadd.f32 %v17080_v18, %v5389_v23  ;;  %v5392_v16 = vadd.f32 %v15155_v59, %v5274_v35  ;;  %v17199_v28 = vadd.f32 %v17084_v54, %v5399_v43  ;;  %v14082_v35 = vld [vmem:[#allocation16 + $0x64] ss:$48 sps:$4 sm:$0xff]   ;;  %7495 = vmatprep.subr.bf16.mxu0 %v14076_v14  ;;  %v14080_v54 = vld [vmem:[#allocation16 + $0x60] ss:$48 sps:$4 sm:$0xff]   ;;  %v14113_v5 = vld [vmem:[#allocation16 + $0x248] ss:$48 sps:$4 sm:$0xff]  }
0x16f6   : > { %18173 = vst [vmem:[#allocation35_spill] sm:$0xff] %v17148_v33  ;;  %v17158_v13 = vadd.f32 %v17077_v25, %v5391_v36  ;;  %v14077_v36 = vld [vmem:[#allocation16 + $0x8] ss:$48 sps:$4 sm:$0xff]   ;;  %7496 = vmatpush1.bf16.msra.mxu0 %v14074_v15  ;;  %v14088_v59 = vld [vmem:[#allocation16 + $0xc4] ss:$48 sps:$4 sm:$0xff]  }
0x16f7   : > { %18174 = vst [vmem:[#allocation36_spill] sm:$0xff] %v17153_v21  ;;  %v17164_v31 = vadd.f32 %v17080_v18, %v5392_v16  ;;  %5457 = vadd.xlane.f32.xlu1 %v5456_v53  ;;  %v5459_v9 = vadd.f32 %v17153_v21, %v17148_v33  ;;  %7497 = vmatprep.subr.bf16.mxu0 %v14082_v35  ;;  %v14091_v16 = vld [vmem:[#allocation16 + $0xcc] ss:$48 sps:$4 sm:$0xff]   ;;  %v14086_v53 = vld [vmem:[#allocation16 + $0xc0] ss:$48 sps:$4 sm:$0xff]  }
0x16f8   : > { %18175 = vst [vmem:[#allocation37_spill] sm:$0xff] %v17158_v13  ;;  %v14118_v43 = vld [vmem:[#allocation16 + $0x2a4] ss:$48 sps:$4 sm:$0xff]   ;;  %v14125_v15 = vld [vmem:[#allocation16 + $0x308] ss:$48 sps:$4 sm:$0xff]  }
0x16f9   : > { %18176 = vst [vmem:[#allocation38_spill] sm:$0xff] %v17164_v31  ;;  %v5278_v3 = vpop.f32.mrb[76].mxu1  ;;  %v5460_v29 = vadd.f32 %v5459_v9, %v17161_v11  ;;  %v5463_v50 = vadd.f32 %v17164_v31, %v17158_v13  ;;  %v14089_v9 = vld [vmem:[#allocation16 + $0xc8] ss:$48 sps:$4 sm:$0xff]   ;;  %v14130_v14 = vld [vmem:[#allocation16 + $0x364] ss:$48 sps:$4 sm:$0xff]  }
0x16fa   : > { %v5394_v8 = vadd.f32 %v15156_v7, %v5278_v3  ;;  %v5280_v41 = vpop.f32.mrb[77].mxu1  ;;  %7498 = vmatpush1.bf16.msra.mxu0 %v14080_v54  ;;  %v14094_v3 = vld [vmem:[#allocation16 + $0x124] ss:$48 sps:$4 sm:$0xff]   ;;  %v14095_v7 = vld [vmem:[#allocation16 + $0x128] ss:$48 sps:$4 sm:$0xff]  }
0x16fb   : > { %v5395_v20 = vadd.f32 %v15158_v44, %v5280_v41  ;;  %5461 = vadd.xlane.f32.xlu1 %v5460_v29  ;;  %v5282_v30 = vpop.f32.mrb[78].mxu1  ;;  %v5464_v45 = vadd.f32 %v5463_v50, %v17169_v39  ;;  %7499 = vmatprep.subr.bf16.mxu0 %v14088_v59  ;;  %v14097_v29 = vld [vmem:[#allocation16 + $0x12c] ss:$48 sps:$4 sm:$0xff]   ;;  %v14092_v50 = vld [vmem:[#allocation16 + $0x120] ss:$48 sps:$4 sm:$0xff]  }
0x16fc   : > { %v17179_v37 = vadd.f32 %v17077_v25, %v5394_v8  ;;  %v5397_v48 = vadd.f32 %v15159_v12, %v5282_v30  ;;  %v5284_v58 = vpop.f32.mrb[79].mxu1  ;;  %v14100_v8 = vld [vmem:[#allocation16 + $0x184] ss:$48 sps:$4 sm:$0xff]   ;;  %v14103_v41 = vld [vmem:[#allocation16 + $0x18c] ss:$48 sps:$4 sm:$0xff]  }
0x16fd   : > { %v17184_v51 = vadd.f32 %v17080_v18, %v5395_v20  ;;  %v5398_v22 = vadd.f32 %v15161_v40, %v5284_v58  ;;  %5465 = vadd.xlane.f32.xlu0 %v5464_v45  ;;  %v14106_v44 = vld [vmem:[#allocation16 + $0x1e4] ss:$48 sps:$4 sm:$0xff]   ;;  %v14109_v20 = vld [vmem:[#allocation16 + $0x1ec] ss:$48 sps:$4 sm:$0xff]   ;;  %v14104_v30 = vld [vmem:[#allocation16 + $0x1e0] ss:$48 sps:$4 sm:$0xff]  }
0x16fe   : > { %18177 = vst [vmem:[#allocation39_spill] sm:$0xff] %v17179_v37  ;;  %v17188_v27 = vadd.f32 %v17077_v25, %v5397_v48  ;;  %7500 = vmatpush1.bf16.msra.mxu0 %v14086_v53  ;;  %v14107_v45 = vld [vmem:[#allocation16 + $0x1e8] ss:$48 sps:$4 sm:$0xff]   ;;  %v14112_v12 = vld [vmem:[#allocation16 + $0x244] ss:$48 sps:$4 sm:$0xff]  }
0x16ff   : > { %18178 = vst [vmem:[#allocation40_spill] sm:$0xff] %v17184_v51  ;;  %v17194_v24 = vadd.f32 %v17080_v18, %v5398_v22  ;;  %v5467_v61 = vadd.f32 %v17184_v51, %v17179_v37  ;;  %v14079_v18 = vld [vmem:[#allocation16 + $0xc] ss:$48 sps:$4 sm:$0xff]   ;;  %7501 = vmatprep.subr.bf16.mxu0 %v14094_v3  ;;  %v14110_v58 = vld [vmem:[#allocation16 + $0x240] ss:$48 sps:$4 sm:$0xff]  }
0x1700   : > { %18179 = vst [vmem:[#allocation41_spill] sm:$0xff] %v17188_v27  ;;  %7641 = vmatprep.subr.bf16.mxu1 %v14079_v18  ;;  %v14115_v48 = vld [vmem:[#allocation16 + $0x24c] ss:$48 sps:$4 sm:$0xff]   ;;  %v14116_v22 = vld [vmem:[#allocation16 + $0x2a0] ss:$48 sps:$4 sm:$0xff]  }
0x1701   : > { %18180 = vst [vmem:[#allocation42_spill] sm:$0xff] %v17194_v24  ;;  %v5468_v52 = vadd.f32 %v5467_v61, %v17191_v32  ;;  %v5471_v23 = vadd.f32 %v17194_v24, %v17188_v27  ;;  %7642 = vmatpush1.bf16.msra.mxu1 %v14077_v36  ;;  %v14121_v40 = vld [vmem:[#allocation16 + $0x2ac] ss:$48 sps:$4 sm:$0xff]   ;;  %v14119_v61 = vld [vmem:[#allocation16 + $0x2a8] ss:$48 sps:$4 sm:$0xff]  }
0x1702   : > { %7643 = vmatprep.subr.bf16.mxu1 %v14085_v6  ;;  %7502 = vmatpush1.bf16.msra.mxu0 %v14092_v50  ;;  %v14133_v36 = vld [vmem:[#allocation16 + $0x36c] ss:$48 sps:$4 sm:$0xff]   ;;  %v14128_v18 = vld [vmem:[#allocation16 + $0x360] ss:$48 sps:$4 sm:$0xff]   ;;  %v14131_v35 = vld [vmem:[#allocation16 + $0x368] ss:$48 sps:$4 sm:$0xff]  }
0x1703   : > { %5469 = vadd.xlane.f32.xlu1 %v5468_v52  ;;  %v5472_v25 = vadd.f32 %v5471_v23, %v17199_v28  ;;  %7503 = vmatprep.subr.bf16.mxu0 %v14100_v8  ;;  %v14124_v52 = vld [vmem:[#allocation16 + $0x304] ss:$48 sps:$4 sm:$0xff]   ;;  %v14127_v23 = vld [vmem:[#allocation16 + $0x30c] ss:$48 sps:$4 sm:$0xff]  }
0x1705   : > { %5473 = vadd.xlane.f32.xlu0 %v5472_v25  ;;  %7644 = vmatpush1.bf16.msra.mxu1 %v14083_v4  ;;  %v14122_v25 = vld [vmem:[#allocation16 + $0x300] ss:$48 sps:$4 sm:$0xff]  }
0x1706   : > { %7645 = vmatprep.subr.bf16.mxu1 %v14091_v16  ;;  %7504 = vmatpush1.bf16.msra.mxu0 %v14098_v34 }
0x1707   : > { %7505 = vmatprep.subr.bf16.mxu0 %v14106_v44 }
0x1709   : > { %7646 = vmatpush1.bf16.msra.mxu1 %v14089_v9 }
0x170a   : > { %7647 = vmatprep.subr.bf16.mxu1 %v14097_v29  ;;  %7506 = vmatpush1.bf16.msra.mxu0 %v14104_v30 }
0x170b   : > { %7507 = vmatprep.subr.bf16.mxu0 %v14112_v12 }
0x170d   : > { %7648 = vmatpush1.bf16.msra.mxu1 %v14095_v7 }
0x170e   : > { %7649 = vmatprep.subr.bf16.mxu1 %v14103_v41  ;;  %7508 = vmatpush1.bf16.msra.mxu0 %v14110_v58 }
0x170f   : > { %7509 = vmatprep.subr.bf16.mxu0 %v14118_v43 }
0x1711   : > { %7650 = vmatpush1.bf16.msra.mxu1 %v14101_v46 }
0x1712   : > { %7651 = vmatprep.subr.bf16.mxu1 %v14109_v20  ;;  %7510 = vmatpush1.bf16.msra.mxu0 %v14116_v22 }
0x1713   : > { %7511 = vmatprep.subr.bf16.mxu0 %v14124_v52 }
0x1715   : > { %7652 = vmatpush1.bf16.msra.mxu1 %v14107_v45 }
0x1716   : > { %7653 = vmatprep.subr.bf16.mxu1 %v14115_v48  ;;  %7512 = vmatpush1.bf16.msra.mxu0 %v14122_v25 }
0x1717   : > { %7513 = vmatprep.subr.bf16.mxu0 %v14130_v14 }
0x1719   : > { %7654 = vmatpush1.bf16.msra.mxu1 %v14113_v5 }
0x171a   : > { %7655 = vmatprep.subr.bf16.mxu1 %v14121_v40  ;;  %7514 = vmatpush1.bf16.msra.mxu0 %v14128_v18 }
0x171d   : > { %7656 = vmatpush1.bf16.msra.mxu1 %v14119_v61 }
0x171e   : > { %7657 = vmatprep.subr.bf16.mxu1 %v14127_v23 }
0x1721   : > { %7658 = vmatpush1.bf16.msra.mxu1 %v14125_v15 }
0x1722   : > { %7659 = vmatprep.subr.bf16.mxu1 %v14133_v36 }
0x1725   : > { %7660 = vmatpush1.bf16.msra.mxu1 %v14131_v35 }
0x1726   : > { %7661 = vmatprep.subr.bf16.mxu1 %v14139_v10  ;;  %v14154_v10 = vld [vmem:[#allocation16 + $0x4e4] ss:$48 sps:$4 sm:$0xff]  }
0x1778   : > { %v5446_v6 = vpop.xlane.xlu1 %5445 }
0x1779   : > { %v5475_v54 = vmul.f32 0.0026041667, %v5446_v6 }
0x177a   : > { %v5450_v4 = vpop.xlane.xlu0 %5449 }
0x177b   : > { %v17206_v59 = vsub.f32 %v17088_v0, %v5475_v54  ;;  %v17209_v16 = vsub.f32 %v17093_v38, %v5475_v54  ;;  %v17212_v53 = vsub.f32 %v17100_v60, %v5475_v54  ;;  %v5476_v9 = vmul.f32 0.0026041667, %v5450_v4 }
0x177d   : > { %v5507_v3 = vmul.f32 %v17206_v59, %v17206_v59  ;;  %v5508_v29 = vmul.f32 %v17209_v16, %v17209_v16  ;;  %v17219_v50 = vsub.f32 %v17097_v42, %v5476_v9  ;;  %v17222_v7 = vsub.f32 %v17104_v62, %v5476_v9 }
0x177e   : > { %v17225_v8 = vsub.f32 %v17109_v2, %v5476_v9  ;;  %v5509_v46 = vmul.f32 %v17212_v53, %v17212_v53 }
0x177f   : > { %v5510_v41 = vmul.f32 %v17219_v50, %v17219_v50  ;;  %v5511_v34 = vmul.f32 %v17222_v7, %v17222_v7  ;;  %v5531_v44 = vadd.f32 %v5508_v29, %v5507_v3 }
0x1780   : > { %v5454_v20 = vpop.xlane.xlu1 %5453  ;;  %v5512_v12 = vmul.f32 %v17225_v8, %v17225_v8 }
0x1781   : > { %v5477_v30 = vmul.f32 0.0026041667, %v5454_v20  ;;  %v5532_v45 = vadd.f32 %v5531_v44, %v5509_v46  ;;  %v5535_v48 = vadd.f32 %v5511_v34, %v5510_v41 }
0x1783   : > { %v17236_v58 = vsub.f32 %v17119_v49, %v5477_v30  ;;  %v17239_v5 = vsub.f32 %v17123_v19, %v5477_v30  ;;  %v17242_v43 = vsub.f32 %v17130_v26, %v5477_v30  ;;  %5533 = vadd.xlane.f32.xlu1 %v5532_v45  ;;  %v5536_v40 = vadd.f32 %v5535_v48, %v5512_v12 }
0x1784   : > { %v5458_v22 = vpop.xlane.xlu1 %5457 }
0x1785   : > { %v5513_v61 = vmul.f32 %v17236_v58, %v17236_v58  ;;  %v5514_v52 = vmul.f32 %v17239_v5, %v17239_v5  ;;  %v5478_v23 = vmul.f32 0.0026041667, %v5458_v22  ;;  %5537 = vadd.xlane.f32.xlu0 %v5536_v40  ;;  %v5515_v14 = vmul.f32 %v17242_v43, %v17242_v43 }
0x1787   : > { %v17249_v25 = vsub.f32 %v17127_v55, %v5478_v23  ;;  %v17252_v15 = vsub.f32 %v17134_v47, %v5478_v23  ;;  %v5539_v36 = vadd.f32 %v5514_v52, %v5513_v61  ;;  %v17257_v18 = vsub.f32 %v17143_v17, %v5478_v23  ;;  %v14187_v55 = vld [vmem:[#allocation16 + $0x6cc] ss:$48 sps:$4 sm:$0xff]  }
0x1788   : > { %v5462_v35 = vpop.xlane.xlu1 %5461 }
0x1789   : > { %v5516_v6 = vmul.f32 %v17249_v25, %v17249_v25  ;;  %v5517_v54 = vmul.f32 %v17252_v15, %v17252_v15  ;;  %v5479_v4 = vmul.f32 0.0026041667, %v5462_v35  ;;  %v5540_v9 = vadd.f32 %v5539_v36, %v5515_v14 }
0x178a   : > { %v5466_v3 = vpop.xlane.xlu0 %5465  ;;  %v5518_v44 = vmul.f32 %v17257_v18, %v17257_v18 }
0x178b   : > { %v17264_v29 = vsub.f32 %v17148_v33, %v5479_v4  ;;  %v17267_v41 = vsub.f32 %v17153_v21, %v5479_v4  ;;  %v17270_v34 = vsub.f32 %v17161_v11, %v5479_v4  ;;  %v5480_v46 = vmul.f32 0.0026041667, %v5466_v3  ;;  %5541 = vadd.xlane.f32.xlu1 %v5540_v9 }
0x178c   : > { %v5543_v20 = vadd.f32 %v5517_v54, %v5516_v6 }
0x178d   : > { %v5519_v30 = vmul.f32 %v17264_v29, %v17264_v29  ;;  %v5520_v45 = vmul.f32 %v17267_v41, %v17267_v41  ;;  %v17279_v12 = vsub.f32 %v17158_v13, %v5480_v46  ;;  %v17282_v48 = vsub.f32 %v17164_v31, %v5480_v46  ;;  %v14143_v13 = vld [vmem:[#allocation16 + $0x428] ss:$48 sps:$4 sm:$0xff]  }
0x178e   : > { %v17285_v40 = vsub.f32 %v17169_v39, %v5480_v46  ;;  %v5544_v22 = vadd.f32 %v5543_v20, %v5518_v44  ;;  %v5521_v23 = vmul.f32 %v17270_v34, %v17270_v34 }
0x178f   : > { %v5522_v61 = vmul.f32 %v17279_v12, %v17279_v12  ;;  %v5523_v52 = vmul.f32 %v17282_v48, %v17282_v48  ;;  %v5547_v14 = vadd.f32 %v5520_v45, %v5519_v30 }
0x1790   : > { %5545 = vadd.xlane.f32.xlu0 %v5544_v22  ;;  %v5470_v36 = vpop.xlane.xlu1 %5469  ;;  %v5524_v9 = vmul.f32 %v17285_v40, %v17285_v40 }
0x1791   : > { %v5481_v35 = vmul.f32 0.0026041667, %v5470_v36  ;;  %v5548_v6 = vadd.f32 %v5547_v14, %v5521_v23  ;;  %v5551_v54 = vadd.f32 %v5523_v52, %v5522_v61 }
0x1792   : > { %v5474_v4 = vpop.xlane.xlu0 %5473 }
0x1793   : > { %v17296_v3 = vsub.f32 %v17179_v37, %v5481_v35  ;;  %v17299_v46 = vsub.f32 %v17184_v51, %v5481_v35  ;;  %v17302_v44 = vsub.f32 %v17191_v32, %v5481_v35  ;;  %v5482_v20 = vmul.f32 0.0026041667, %v5474_v4  ;;  %5549 = vadd.xlane.f32.xlu1 %v5548_v6  ;;  %v14136_v4 = vld [vmem:[#allocation16 + $0x3c4] ss:$48 sps:$4 sm:$0xff]   ;;  %v14145_v51 = vld [vmem:[#allocation16 + $0x42c] ss:$48 sps:$4 sm:$0xff]  }
0x1794   : > { %v5552_v30 = vadd.f32 %v5551_v54, %v5524_v9  ;;  %v14134_v54 = vld [vmem:[#allocation16 + $0x3c0] ss:$48 sps:$4 sm:$0xff]   ;;  %v14137_v9 = vld [vmem:[#allocation16 + $0x3c8] ss:$48 sps:$4 sm:$0xff]   ;;  %7515 = vmatprep.subr.bf16.mxu0 %v14136_v4 }
0x1795   : > { %v5525_v45 = vmul.f32 %v17296_v3, %v17296_v3  ;;  %v5526_v22 = vmul.f32 %v17299_v46, %v17299_v46  ;;  %v17309_v61 = vsub.f32 %v17188_v27, %v5482_v20  ;;  %v17312_v52 = vsub.f32 %v17194_v24, %v5482_v20  ;;  %v14142_v24 = vld [vmem:[#allocation16 + $0x424] ss:$48 sps:$4 sm:$0xff]   ;;  %7516 = vmatpush1.bf16.msra.mxu0 %v14134_v54  ;;  %v14140_v37 = vld [vmem:[#allocation16 + $0x420] ss:$48 sps:$4 sm:$0xff]  }
0x1796   : > { %v17315_v23 = vsub.f32 %v17199_v28, %v5482_v20  ;;  %5553 = vadd.xlane.f32.xlu0 %v5552_v30  ;;  %v5527_v35 = vmul.f32 %v17302_v44, %v17302_v44  ;;  %7662 = vmatpush1.bf16.msra.mxu1 %v14137_v9  ;;  %v14166_v54 = vld [vmem:[#allocation16 + $0x5a4] ss:$48 sps:$4 sm:$0xff]   ;;  %v14164_v4 = vld [vmem:[#allocation16 + $0x5a0] ss:$48 sps:$4 sm:$0xff]   ;;  %v14167_v9 = vld [vmem:[#allocation16 + $0x5a8] ss:$48 sps:$4 sm:$0xff]  }
0x1797   : > { %v5528_v14 = vmul.f32 %v17309_v61, %v17309_v61  ;;  %v5529_v36 = vmul.f32 %v17312_v52, %v17312_v52  ;;  %v5555_v6 = vadd.f32 %v5526_v22, %v5525_v45  ;;  %7517 = vmatprep.subr.bf16.mxu0 %v14142_v24  ;;  %7663 = vmatprep.subr.bf16.mxu1 %v14145_v51  ;;  %v14148_v45 = vld [vmem:[#allocation16 + $0x484] ss:$48 sps:$4 sm:$0xff]   ;;  %v14146_v22 = vld [vmem:[#allocation16 + $0x480] ss:$48 sps:$4 sm:$0xff]   ;;  %v14161_v24 = vld [vmem:[#allocation16 + $0x548] ss:$48 sps:$4 sm:$0xff]  }
0x1798   : > { %v5530_v20 = vmul.f32 %v17315_v23, %v17315_v23  ;;  %v14158_v51 = vld [vmem:[#allocation16 + $0x540] ss:$48 sps:$4 sm:$0xff]  }
0x1799   : > { %v5556_v27 = vadd.f32 %v5555_v6, %v5527_v35  ;;  %v5559_v30 = vadd.f32 %v5529_v36, %v5528_v14  ;;  %7518 = vmatpush1.bf16.msra.mxu0 %v14140_v37  ;;  %v14151_v35 = vld [vmem:[#allocation16 + $0x48c] ss:$48 sps:$4 sm:$0xff]   ;;  %v14149_v6 = vld [vmem:[#allocation16 + $0x488] ss:$48 sps:$4 sm:$0xff]   ;;  %v14152_v14 = vld [vmem:[#allocation16 + $0x4e0] ss:$48 sps:$4 sm:$0xff]  }
0x179a   : > { %7664 = vmatpush1.bf16.msra.mxu1 %v14143_v13  ;;  %7519 = vmatprep.subr.bf16.mxu0 %v14148_v45  ;;  %v14155_v36 = vld [vmem:[#allocation16 + $0x4e8] ss:$48 sps:$4 sm:$0xff]   ;;  %v14163_v37 = vld [vmem:[#allocation16 + $0x54c] ss:$48 sps:$4 sm:$0xff]  }
0x179b   : > { %5557 = vadd.xlane.f32.xlu1 %v5556_v27  ;;  %v5560_v31 = vadd.f32 %v5559_v30, %v5530_v20  ;;  %7665 = vmatprep.subr.bf16.mxu1 %v14151_v35  ;;  %v14157_v27 = vld [vmem:[#allocation16 + $0x4ec] ss:$48 sps:$4 sm:$0xff]   ;;  %v14172_v20 = vld [vmem:[#allocation16 + $0x604] ss:$48 sps:$4 sm:$0xff]  }
0x179c   : > { %v14169_v13 = vld [vmem:[#allocation16 + $0x5ac] ss:$48 sps:$4 sm:$0xff]  }
0x179d   : > { %5561 = vadd.xlane.f32.xlu0 %v5560_v31  ;;  %7520 = vmatpush1.bf16.msra.mxu0 %v14146_v22  ;;  %v14160_v31 = vld [vmem:[#allocation16 + $0x544] ss:$48 sps:$4 sm:$0xff]   ;;  %v14175_v30 = vld [vmem:[#allocation16 + $0x60c] ss:$48 sps:$4 sm:$0xff]  }
0x179e   : > { %7666 = vmatpush1.bf16.msra.mxu1 %v14149_v6  ;;  %7521 = vmatprep.subr.bf16.mxu0 %v14154_v10 }
0x179f   : > { %7667 = vmatprep.subr.bf16.mxu1 %v14157_v27 }
0x17a1   : > { %7522 = vmatpush1.bf16.msra.mxu0 %v14152_v14 }
0x17a2   : > { %7668 = vmatpush1.bf16.msra.mxu1 %v14155_v36  ;;  %7523 = vmatprep.subr.bf16.mxu0 %v14160_v31  ;;  %v17325_v31 = vld [vmem:[#allocation13] sm:$0x7] }
0x17a3   : > { %7669 = vmatprep.subr.bf16.mxu1 %v14163_v37 }
0x17a5   : > { %7524 = vmatpush1.bf16.msra.mxu0 %v14158_v51 }
0x17a6   : > { %7670 = vmatpush1.bf16.msra.mxu1 %v14161_v24  ;;  %7525 = vmatprep.subr.bf16.mxu0 %v14166_v54  ;;  %v17327_v54 = vld [vmem:[#allocation14] sm:$0x7] }
0x17a7   : > { %7671 = vmatprep.subr.bf16.mxu1 %v14169_v13  ;;  %v17331_v13 = vrot.slane %v17325_v31, %v16218_v63 }
0x17a9   : > { %7526 = vmatpush1.bf16.msra.mxu0 %v14164_v4 }
0x17aa   : > { %7672 = vmatpush1.bf16.msra.mxu1 %v14167_v9  ;;  %7568 = vmatprep.subr.bf16.mxu0 %v14172_v20  ;;  %v17337_v9 = vrot.slane %v17325_v31, %v16221_v1 }
0x17ab   : > { %7714 = vmatprep.subr.bf16.mxu1 %v14175_v30 }
0x1810   : > { %v5534_v45 = vpop.xlane.xlu1 %5533 }
0x1811   : > { %v5563_v22 = vmul.f32 0.0026041667, %v5534_v45 }
0x1812   : > { %v5538_v35 = vpop.xlane.xlu0 %5537 }
0x1813   : > { %v5571_v6 = vadd.f32 1e-05, %v5563_v22  ;;  %v5564_v14 = vmul.f32 0.0026041667, %v5538_v35 }
0x1815   : > { %15098 = vrsqrt.f32 %v5571_v6  ;;  %v5572_v10 = vadd.f32 1e-05, %v5564_v14  ;;  %v17347_v14 = vrot.slane %v17327_v54, %v16218_v63 }
0x1817   : > { %15100 = vrsqrt.f32 %v5572_v10  ;;  %v17351_v10 = vrot.slane %v17327_v54, %v16221_v1 }
0x1818   : > { %v5542_v36 = vpop.xlane.xlu1 %5541 }
0x1819   : > { %v5565_v27 = vmul.f32 0.0026041667, %v5542_v36 }
0x181b   : > { %v5573_v51 = vadd.f32 1e-05, %v5565_v27 }
0x181d   : > { %15102 = vrsqrt.f32 %v5573_v51  ;;  %v5546_v24 = vpop.xlane.xlu0 %5545 }
0x181e   : > { %v5566_v37 = vmul.f32 0.0026041667, %v5546_v24 }
0x181f   : > { %v17333_v4 = vpop.eup %15098 }
0x1820   : > { %v5574_v20 = vadd.f32 1e-05, %v5566_v37  ;;  %v5550_v30 = vpop.xlane.xlu1 %5549  ;;  %v5588_v45 = vmul.f32 %v17333_v4, %v17209_v16  ;;  %v5587_v22 = vmul.f32 %v17333_v4, %v17206_v59 }
0x1821   : > { %v17343_v35 = vpop.eup %15100  ;;  %v5567_v6 = vmul.f32 0.0026041667, %v5550_v30 }
0x1822   : > { %15104 = vrsqrt.f32 %v5574_v20  ;;  %v5591_v36 = vmul.f32 %v17343_v35, %v17222_v7  ;;  %v5628_v16 = vmul.f32 %v17331_v13, %v5588_v45  ;;  %v5590_v59 = vmul.f32 %v17343_v35, %v17219_v50 }
0x1823   : > { %v5575_v27 = vadd.f32 1e-05, %v5567_v6  ;;  %v5554_v51 = vpop.xlane.xlu0 %5553  ;;  %v5627_v24 = vmul.f32 %v17337_v9, %v5587_v22 }
0x1824   : > { %v5568_v37 = vmul.f32 0.0026041667, %v5554_v51  ;;  %v5631_v30 = vmul.f32 %v17331_v13, %v5591_v36  ;;  %v5630_v21 = vmul.f32 %v17337_v9, %v5590_v59  ;;  %v5668_v20 = vadd.f32 %v17347_v14, %v5628_v16  ;;  %v14170_v36 = vld [vmem:[#allocation16 + $0x600] ss:$48 sps:$4 sm:$0xff]   ;;  %v14173_v59 = vld [vmem:[#allocation16 + $0x608] ss:$48 sps:$4 sm:$0xff]  }
0x1825   : > { %15106 = vrsqrt.f32 %v5575_v27  ;;  %v5667_v45 = vadd.f32 %v17351_v10, %v5627_v24 }
0x1826   : > { %v5576_v33 = vadd.f32 1e-05, %v5568_v37  ;;  %v5671_v7 = vadd.f32 %v17347_v14, %v5631_v30  ;;  %v5670_v47 = vadd.f32 %v17351_v10, %v5630_v21  ;;  %v14178_v37 = vld [vmem:[#allocation16 + $0x664] ss:$48 sps:$4 sm:$0xff]   ;;  %v14181_v30 = vld [vmem:[#allocation16 + $0x66c] ss:$48 sps:$4 sm:$0xff]  }
0x1827   : > { %v17365_v50 = vpop.eup %15102 }
0x1828   : > { %15108 = vrsqrt.f32 %v5576_v33  ;;  %v5558_v6 = vpop.xlane.xlu1 %5557  ;;  %v17367_v22 = vpack.c.bf16 %v5671_v7, %v5668_v20  ;;  %v17369_v51 = vpack.c.bf16 %v5670_v47, %v5667_v45  ;;  %v5594_v16 = vmul.f32 %v17365_v50, %v17239_v5  ;;  %v14176_v5 = vld [vmem:[#allocation16 + $0x660] ss:$48 sps:$4 sm:$0xff]   ;;  %v14179_v7 = vld [vmem:[#allocation16 + $0x668] ss:$48 sps:$4 sm:$0xff]  }
0x1829   : > { %v5569_v27 = vmul.f32 0.0026041667, %v5558_v6  ;;  %v5593_v24 = vmul.f32 %v17365_v50, %v17236_v58 }
0x182a   : > { %7527 = vmatprep.mubr.bf16.mxu0 %v17367_v22  ;;  %7673 = vmatprep.mubr.bf16.mxu1 %v17367_v22  ;;  %v5562_v33 = vpop.xlane.xlu0 %5561  ;;  %v5634_v45 = vmul.f32 %v17331_v13, %v5594_v16 }
0x182b   : > { %v5577_v21 = vadd.f32 1e-05, %v5569_v27  ;;  %v5570_v20 = vmul.f32 0.0026041667, %v5562_v33  ;;  %7528 = vmatmul.mubr.bf16.vlgmr.msra.gmra.mrb[56].mxu0 %v17369_v51  ;;  %7674 = vmatmul.mubr.bf16.vlgmr.msra.gmra.mrb[112].mxu1 %v17369_v51  ;;  %v5633_v58 = vmul.f32 %v17337_v9, %v5593_v24  ;;  %v14184_v33 = vld [vmem:[#allocation16 + $0x6c4] ss:$48 sps:$4 sm:$0xff]  }
0x182c   : > { %v17379_v47 = vpop.eup %15104  ;;  %7569 = vmatpush1.bf16.msra.mxu0 %v14170_v36  ;;  %7715 = vmatpush1.bf16.msra.mxu1 %v14173_v59  ;;  %v14185_v24 = vld [vmem:[#allocation16 + $0x6c8] ss:$48 sps:$4 sm:$0xff]  }
0x182d   : > { %15110 = vrsqrt.f32 %v5577_v21  ;;  %v5578_v6 = vadd.f32 1e-05, %v5570_v20  ;;  %7570 = vmatprep.subr.bf16.mxu0 %v14178_v37  ;;  %7716 = vmatprep.subr.bf16.mxu1 %v14181_v30  ;;  %v5597_v27 = vmul.f32 %v17379_v47, %v17252_v15  ;;  %v5596_v19 = vmul.f32 %v17379_v47, %v17249_v25  ;;  %v14182_v30 = vld [vmem:[#allocation16 + $0x6c0] ss:$48 sps:$4 sm:$0xff]  }
0x182e   : > { %v5674_v37 = vadd.f32 %v17347_v14, %v5634_v45  ;;  %v5673_v15 = vadd.f32 %v17351_v10, %v5633_v58  ;;  %v14190_v58 = vld [vmem:[#allocation16 + $0x724] ss:$48 sps:$4 sm:$0xff]  }
0x182f   : > { %v17387_v36 = vpop.eup %15106  ;;  %15112 = vrsqrt.f32 %v5578_v6  ;;  %v5637_v59 = vmul.f32 %v17331_v13, %v5597_v27  ;;  %v5636_v16 = vmul.f32 %v17337_v9, %v5596_v19  ;;  %v14193_v27 = vld [vmem:[#allocation16 + $0x72c] ss:$48 sps:$4 sm:$0xff]  }
0x1830   : > { %7571 = vmatpush1.bf16.msra.mxu0 %v14176_v5  ;;  %7717 = vmatpush1.bf16.msra.mxu1 %v14179_v7  ;;  %v5600_v21 = vmul.f32 %v17387_v36, %v17267_v41  ;;  %v5599_v19 = vmul.f32 %v17387_v36, %v17264_v29  ;;  %v14191_v29 = vld [vmem:[#allocation16 + $0x728] ss:$48 sps:$4 sm:$0xff]  }
0x1831   : > { %v5677_v25 = vadd.f32 %v17347_v14, %v5637_v59  ;;  %7572 = vmatprep.subr.bf16.mxu0 %v14184_v33  ;;  %7718 = vmatprep.subr.bf16.mxu1 %v14187_v55  ;;  %v5676_v20 = vadd.f32 %v17351_v10, %v5636_v16  ;;  %v14188_v33 = vld [vmem:[#allocation16 + $0x720] ss:$48 sps:$4 sm:$0xff]   ;;  %v14196_v16 = vld [vmem:[#allocation16 + $0x784] ss:$48 sps:$4 sm:$0xff]  }
0x1832   : > { %v17399_v5 = vpop.eup %15108  ;;  %v5640_v7 = vmul.f32 %v17331_v13, %v5600_v21 }
0x1833   : > { %v17402_v45 = vpack.c.bf16 %v5677_v25, %v5674_v37  ;;  %v17404_v6 = vpack.c.bf16 %v5676_v20, %v5673_v15  ;;  %v5603_v41 = vmul.f32 %v17399_v5, %v17282_v48  ;;  %v5602_v55 = vmul.f32 %v17399_v5, %v17279_v12  ;;  %v14199_v37 = vld [vmem:[#allocation16 + $0x78c] ss:$48 sps:$4 sm:$0xff]   ;;  %v14197_v25 = vld [vmem:[#allocation16 + $0x788] ss:$48 sps:$4 sm:$0xff]  }
0x1834   : > { %7573 = vmatpush1.bf16.msra.mxu0 %v14182_v30  ;;  %7719 = vmatpush1.bf16.msra.mxu1 %v14185_v24  ;;  %v5639_v15 = vmul.f32 %v17337_v9, %v5599_v19  ;;  %v5680_v48 = vadd.f32 %v17347_v14, %v5640_v7  ;;  %v14194_v24 = vld [vmem:[#allocation16 + $0x780] ss:$48 sps:$4 sm:$0xff]   ;;  %v14202_v7 = vld [vmem:[#allocation16 + $0x7e4] ss:$48 sps:$4 sm:$0xff]  }
0x1835   : > { %7537 = vmatprep.mubr.bf16.mxu0 %v17402_v45  ;;  %7683 = vmatprep.mubr.bf16.mxu1 %v17402_v45  ;;  %v5643_v59 = vmul.f32 %v17331_v13, %v5603_v41  ;;  %v5642_v21 = vmul.f32 %v17337_v9, %v5602_v55 }
0x1836   : > { %7538 = vmatmul.mubr.bf16.gmra.mrb[60].mxu0 %v17404_v6  ;;  %7684 = vmatmul.mubr.bf16.gmra.mrb[116].mxu1 %v17404_v6 }
0x1837   : > { %v17417_v12 = vpop.eup %15110  ;;  %7574 = vmatprep.subr.bf16.mxu0 %v14190_v58  ;;  %7720 = vmatprep.subr.bf16.mxu1 %v14193_v27  ;;  %v5683_v30 = vadd.f32 %v17347_v14, %v5643_v59  ;;  %v5682_v20 = vadd.f32 %v17351_v10, %v5642_v21  ;;  %v5679_v58 = vadd.f32 %v17351_v10, %v5639_v15  ;;  %v14205_v27 = vld [vmem:[#allocation16 + $0x7ec] ss:$48 sps:$4 sm:$0xff]   ;;  %v14203_v15 = vld [vmem:[#allocation16 + $0x7e8] ss:$48 sps:$4 sm:$0xff]  }
0x1838   : > { %7575 = vmatpush1.bf16.msra.mxu0 %v14188_v33  ;;  %7721 = vmatpush1.bf16.msra.mxu1 %v14191_v29  ;;  %v5606_v19 = vmul.f32 %v17417_v12, %v17299_v46  ;;  %v5605_v59 = vmul.f32 %v17417_v12, %v17296_v3  ;;  %v14208_v3 = vld [vmem:[#allocation16 + $0x844] ss:$48 sps:$4 sm:$0xff]  }
0x1839   : > { %v17424_v41 = vpop.eup %15112  ;;  %v17426_v55 = vpack.c.bf16 %v5683_v30, %v5680_v48  ;;  %7576 = vmatprep.subr.bf16.mxu0 %v14196_v16  ;;  %7722 = vmatprep.subr.bf16.mxu1 %v14199_v37  ;;  %v17438_v16 = vpack.c.bf16 %v5682_v20, %v5679_v58  ;;  %v14200_v37 = vld [vmem:[#allocation16 + $0x7e0] ss:$48 sps:$4 sm:$0xff]   ;;  %v14211_v48 = vld [vmem:[#allocation16 + $0x84c] ss:$48 sps:$4 sm:$0xff]   ;;  %v14209_v20 = vld [vmem:[#allocation16 + $0x848] ss:$48 sps:$4 sm:$0xff]   ;;  %v5592_v58 = vmul.f32 %v17343_v35, %v17225_v8 }
0x183a   : > { %v5609_v33 = vmul.f32 %v17424_v41, %v17312_v52  ;;  %v5646_v29 = vmul.f32 %v17331_v13, %v5606_v19  ;;  %v5608_v46 = vmul.f32 %v17424_v41, %v17309_v61  ;;  %v14212_v8 = vld [vmem:[#allocation16 + $0x8a0] ss:$48 sps:$4 sm:$0xff]   ;;  %v14215_v35 = vld [vmem:[#allocation16 + $0x8a8] ss:$48 sps:$4 sm:$0xff]  }
0x183b   : > { %7547 = vmatprep.mubr.bf16.mxu0 %v17426_v55  ;;  %7693 = vmatprep.mubr.bf16.mxu1 %v17426_v55 }
0x183c   : > { %7577 = vmatpush1.bf16.msra.mxu0 %v14194_v24  ;;  %7723 = vmatpush1.bf16.msra.mxu1 %v14197_v25  ;;  %v5649_v52 = vmul.f32 %v17331_v13, %v5609_v33  ;;  %v5648_v21 = vmul.f32 %v17337_v9, %v5608_v46  ;;  %v5686_v61 = vadd.f32 %v17347_v14, %v5646_v29  ;;  %v14206_v13 = vld [vmem:[#allocation16 + $0x840] ss:$48 sps:$4 sm:$0xff]   ;;  %v14220_v46 = vld [vmem:[#allocation16 + $0x14] ss:$48 sps:$4 sm:$0xff]  }
0x183d   : > { %7578 = vmatprep.subr.bf16.mxu0 %v14202_v7  ;;  %7724 = vmatprep.subr.bf16.mxu1 %v14205_v27  ;;  %v5645_v24 = vmul.f32 %v17337_v9, %v5605_v59  ;;  %v14214_v7 = vld [vmem:[#allocation16 + $0x8a4] ss:$48 sps:$4 sm:$0xff]   ;;  %v14217_v27 = vld [vmem:[#allocation16 + $0x8ac] ss:$48 sps:$4 sm:$0xff]   ;;  %v17459_v33 = vrot.slane %v17325_v31, %v16345_v56  ;;  %v17469_v31 = vrot.slane %v17327_v54, %v16345_v56  ;;  %v14218_v54 = vld [vmem:[#allocation16 + $0x10] ss:$48 sps:$4 sm:$0xff]  }
0x183e   : > { %7548 = vmatmul.mubr.bf16.gmra.mrb[64].mxu0 %v17438_v16  ;;  %7694 = vmatmul.mubr.bf16.gmra.mrb[120].mxu1 %v17438_v16  ;;  %v5689_v30 = vadd.f32 %v17347_v14, %v5649_v52  ;;  %v5688_v19 = vadd.f32 %v17351_v10, %v5648_v21  ;;  %v5589_v14 = vmul.f32 %v17333_v4, %v17212_v53  ;;  %v18181_v4 = vmov 0  }
0x183f   : > { %v5685_v9 = vadd.f32 %v17351_v10, %v5645_v24  ;;  %v5632_v59 = vmul.f32 %v17459_v33, %v5592_v58  ;;  %v5595_v21 = vmul.f32 %v17365_v50, %v17242_v43  ;;  %v14232_v43 = vld [vmem:[#allocation16 + $0xd4] ss:$48 sps:$4 sm:$0xff]   ;;  %v14235_v50 = vld [vmem:[#allocation16 + $0xdc] ss:$48 sps:$4 sm:$0xff]  }
0x1840   : > { %7579 = vmatpush1.bf16.msra.mxu0 %v14200_v37  ;;  %7725 = vmatpush1.bf16.msra.mxu1 %v14203_v15  ;;  %v17447_v25 = vpack.c.bf16 %v5689_v30, %v5686_v61  ;;  %v14223_v37 = vld [vmem:[#allocation16 + $0x1c] ss:$48 sps:$4 sm:$0xff]   ;;  %v5629_v53 = vmul.f32 %v17459_v33, %v5589_v14  ;;  %v5598_v15 = vmul.f32 %v17379_v47, %v17257_v18  ;;  %v14226_v61 = vld [vmem:[#allocation16 + $0x74] ss:$48 sps:$4 sm:$0xff]   ;;  %v14224_v47 = vld [vmem:[#allocation16 + $0x70] ss:$48 sps:$4 sm:$0xff]  }
0x1841   : > { %7580 = vmatprep.subr.bf16.mxu0 %v14208_v3  ;;  %7726 = vmatprep.subr.bf16.mxu1 %v14211_v48  ;;  %v17461_v29 = vpack.c.bf16 %v5688_v19, %v5685_v9  ;;  %v5672_v10 = vadd.f32 %v17469_v31, %v5632_v59  ;;  %v14221_v3 = vld [vmem:[#allocation16 + $0x18] ss:$48 sps:$4 sm:$0xff]   ;;  %v14229_v30 = vld [vmem:[#allocation16 + $0x7c] ss:$48 sps:$4 sm:$0xff]   ;;  %v5635_v18 = vmul.f32 %v17459_v33, %v5595_v21  ;;  %v14244_v59 = vld [vmem:[#allocation16 + $0x194] ss:$48 sps:$4 sm:$0xff]  }
0x1842   : > { %7557 = vmatprep.mubr.bf16.mxu0 %v17447_v25  ;;  %7703 = vmatprep.mubr.bf16.mxu1 %v17447_v25  ;;  %v5669_v52 = vadd.f32 %v17469_v31, %v5629_v53  ;;  %v5638_v24 = vmul.f32 %v17459_v33, %v5598_v15  ;;  %v5604_v19 = vmul.f32 %v17399_v5, %v17285_v40  ;;  %v14233_v9 = vld [vmem:[#allocation16 + $0xd8] ss:$48 sps:$4 sm:$0xff]  }
0x1843   : > { %v5675_v58 = vadd.f32 %v17469_v31, %v5635_v18  ;;  %v5610_v53 = vmul.f32 %v17424_v41, %v17315_v23  ;;  %v5607_v15 = vmul.f32 %v17417_v12, %v17302_v44  ;;  %v14245_v21 = vld [vmem:[#allocation16 + $0x198] ss:$48 sps:$4 sm:$0xff]   ;;  %v14248_v44 = vld [vmem:[#allocation16 + $0x1f0] ss:$48 sps:$4 sm:$0xff]  }
0x1844   : > { %7581 = vmatpush1.bf16.msra.mxu0 %v14206_v13  ;;  %7727 = vmatpush1.bf16.msra.mxu1 %v14209_v20  ;;  %v17479_v48 = vpack.c.bf16 %v5672_v10, %v5669_v52  ;;  %v14227_v13 = vld [vmem:[#allocation16 + $0x78] ss:$48 sps:$4 sm:$0xff]   ;;  %v5678_v20 = vadd.f32 %v17469_v31, %v5638_v24  ;;  %v5644_v40 = vmul.f32 %v17459_v33, %v5604_v19  ;;  %v14242_v52 = vld [vmem:[#allocation16 + $0x190] ss:$48 sps:$4 sm:$0xff]   ;;  %v14259_v24 = vld [vmem:[#allocation16 + $0x25c] ss:$48 sps:$4 sm:$0xff]  }
0x1845   : > { %7582 = vmatprep.subr.bf16.mxu0 %v14214_v7  ;;  %7728 = vmatprep.subr.bf16.mxu1 %v14217_v27  ;;  %v5601_v7 = vmul.f32 %v17387_v36, %v17270_v34  ;;  %v14230_v27 = vld [vmem:[#allocation16 + $0xd0] ss:$48 sps:$4 sm:$0xff]   ;;  %v14239_v36 = vld [vmem:[#allocation16 + $0x138] ss:$48 sps:$4 sm:$0xff]   ;;  %v5650_v23 = vmul.f32 %v17459_v33, %v5610_v53  ;;  %v5647_v41 = vmul.f32 %v17459_v33, %v5607_v15  ;;  %v14289_v53 = vld [vmem:[#allocation16 + $0x43c] ss:$48 sps:$4 sm:$0xff]  }
0x1846   : > { %7558 = vmatmul.mubr.bf16.gmra.mrb[68].mxu0 %v17461_v29  ;;  %7704 = vmatmul.mubr.bf16.gmra.mrb[124].mxu1 %v17461_v29  ;;  %v17493_v14 = vpack.c.bf16 %v5678_v20, %v5675_v58  ;;  %v14236_v34 = vld [vmem:[#allocation16 + $0x130] ss:$48 sps:$4 sm:$0xff]   ;;  %v14251_v12 = vld [vmem:[#allocation16 + $0x1f8] ss:$48 sps:$4 sm:$0xff]   ;;  %v14265_v20 = vld [vmem:[#allocation16 + $0x2bc] ss:$48 sps:$4 sm:$0xff]  }
0x1847   : > { %7600 = vmatprep.mubr.bf16.mxu0 %v18181_v4  ;;  %7746 = vmatprep.mubr.bf16.mxu1 %v18181_v4  ;;  %v5641_v5 = vmul.f32 %v17459_v33, %v5601_v7  ;;  %v5690_v18 = vadd.f32 %v17469_v31, %v5650_v23  ;;  %v14257_v33 = vld [vmem:[#allocation16 + $0x258] ss:$48 sps:$4 sm:$0xff]   ;;  %v14260_v19 = vld [vmem:[#allocation16 + $0x2b0] ss:$48 sps:$4 sm:$0xff]   ;;  %v14271_v7 = vld [vmem:[#allocation16 + $0x31c] ss:$48 sps:$4 sm:$0xff]  }
0x1848   : > { %7583 = vmatpush1.bf16.msra.mxu0 %v14212_v8  ;;  %7729 = vmatpush1.bf16.msra.mxu1 %v14215_v35  ;;  %v14238_v8 = vld [vmem:[#allocation16 + $0x134] ss:$48 sps:$4 sm:$0xff]   ;;  %v14241_v35 = vld [vmem:[#allocation16 + $0x13c] ss:$48 sps:$4 sm:$0xff]   ;;  %v14263_v58 = vld [vmem:[#allocation16 + $0x2b8] ss:$48 sps:$4 sm:$0xff]  }
0x1849   : > { %7787 = vmatprep.subr.bf16.mxu0 %v14220_v46  ;;  %7933 = vmatprep.subr.bf16.mxu1 %v14223_v37  ;;  %v14247_v46 = vld [vmem:[#allocation16 + $0x19c] ss:$48 sps:$4 sm:$0xff]   ;;  %v5684_v37 = vadd.f32 %v17469_v31, %v5644_v40  ;;  %v5681_v10 = vadd.f32 %v17469_v31, %v5641_v5  ;;  %v14272_v40 = vld [vmem:[#allocation16 + $0x370] ss:$48 sps:$4 sm:$0xff]   ;;  %v14275_v5 = vld [vmem:[#allocation16 + $0x378] ss:$48 sps:$4 sm:$0xff]  }
0x184a   : > { %v14287_v15 = vld [vmem:[#allocation16 + $0x438] ss:$48 sps:$4 sm:$0xff]   ;;  %v14298_v23 = vld [vmem:[#allocation16 + $0x4f4] ss:$48 sps:$4 sm:$0xff]  }
0x184e   : > { %7601 = vmatmul.mubr.bf16.vlgmr.msra.gmra.mrb[56].mxu0 %v17479_v48  ;;  %7747 = vmatmul.mubr.bf16.vlgmr.msra.gmra.mrb[112].mxu1 %v17479_v48 }
0x184f   : > { %7788 = vmatpush1.bf16.msra.mxu0 %v14218_v54  ;;  %7934 = vmatpush1.bf16.msra.mxu1 %v14221_v3  ;;  %v17507_v54 = vpack.c.bf16 %v5684_v37, %v5681_v10  ;;  %v14250_v3 = vld [vmem:[#allocation16 + $0x1f4] ss:$48 sps:$4 sm:$0xff]   ;;  %v14284_v10 = vld [vmem:[#allocation16 + $0x430] ss:$48 sps:$4 sm:$0xff]  }
0x1850   : > { %7789 = vmatprep.subr.bf16.mxu0 %v14226_v61  ;;  %7935 = vmatprep.subr.bf16.mxu1 %v14229_v30  ;;  %v14253_v61 = vld [vmem:[#allocation16 + $0x1fc] ss:$48 sps:$4 sm:$0xff]   ;;  %v14256_v30 = vld [vmem:[#allocation16 + $0x254] ss:$48 sps:$4 sm:$0xff]  }
0x1851   : > { %7610 = vmatprep.mubr.bf16.mxu0 %v18181_v4  ;;  %7756 = vmatprep.mubr.bf16.mxu1 %v18181_v4  ;;  %v14286_v37 = vld [vmem:[#allocation16 + $0x434] ss:$48 sps:$4 sm:$0xff]  }
0x1853   : > { %7790 = vmatpush1.bf16.msra.mxu0 %v14224_v47  ;;  %7936 = vmatpush1.bf16.msra.mxu1 %v14227_v13  ;;  %v5687_v47 = vadd.f32 %v17469_v31, %v5647_v41  ;;  %v14254_v13 = vld [vmem:[#allocation16 + $0x250] ss:$48 sps:$4 sm:$0xff]   ;;  %v14268_v31 = vld [vmem:[#allocation16 + $0x314] ss:$48 sps:$4 sm:$0xff]   ;;  %v14301_v41 = vld [vmem:[#allocation16 + $0x4fc] ss:$48 sps:$4 sm:$0xff]  }
0x1854   : > { %7791 = vmatprep.subr.bf16.mxu0 %v14232_v43  ;;  %7937 = vmatprep.subr.bf16.mxu1 %v14235_v50  ;;  %v14262_v50 = vld [vmem:[#allocation16 + $0x2b4] ss:$48 sps:$4 sm:$0xff]  }
0x1855   : > { %v17517_v43 = vpack.c.bf16 %v5690_v18, %v5687_v47  ;;  %v14302_v18 = vld [vmem:[#allocation16 + $0x550] ss:$48 sps:$4 sm:$0xff]   ;;  %v14305_v47 = vld [vmem:[#allocation16 + $0x558] ss:$48 sps:$4 sm:$0xff]  }
0x1856   : > { %7611 = vmatmul.mubr.bf16.gmra.mrb[60].mxu0 %v17493_v14  ;;  %7757 = vmatmul.mubr.bf16.gmra.mrb[116].mxu1 %v17493_v14 }
0x1857   : > { %7792 = vmatpush1.bf16.msra.mxu0 %v14230_v27  ;;  %7938 = vmatpush1.bf16.msra.mxu1 %v14233_v9  ;;  %v14266_v27 = vld [vmem:[#allocation16 + $0x310] ss:$48 sps:$4 sm:$0xff]   ;;  %v14269_v9 = vld [vmem:[#allocation16 + $0x318] ss:$48 sps:$4 sm:$0xff]  }
0x1858   : > { %7793 = vmatprep.subr.bf16.mxu0 %v14238_v8  ;;  %7939 = vmatprep.subr.bf16.mxu1 %v14241_v35  ;;  %v14274_v8 = vld [vmem:[#allocation16 + $0x374] ss:$48 sps:$4 sm:$0xff]   ;;  %v14277_v35 = vld [vmem:[#allocation16 + $0x37c] ss:$48 sps:$4 sm:$0xff]  }
0x1859   : > { %7620 = vmatprep.mubr.bf16.mxu0 %v18181_v4  ;;  %7766 = vmatprep.mubr.bf16.mxu1 %v18181_v4 }
0x185b   : > { %7794 = vmatpush1.bf16.msra.mxu0 %v14236_v34  ;;  %7940 = vmatpush1.bf16.msra.mxu1 %v14239_v36  ;;  %v14280_v34 = vld [vmem:[#allocation16 + $0x3d4] ss:$48 sps:$4 sm:$0xff]   ;;  %v14283_v36 = vld [vmem:[#allocation16 + $0x3dc] ss:$48 sps:$4 sm:$0xff]  }
0x185c   : > { %7795 = vmatprep.subr.bf16.mxu0 %v14244_v59  ;;  %7941 = vmatprep.subr.bf16.mxu1 %v14247_v46  ;;  %v14278_v59 = vld [vmem:[#allocation16 + $0x3d0] ss:$48 sps:$4 sm:$0xff]   ;;  %v14281_v46 = vld [vmem:[#allocation16 + $0x3d8] ss:$48 sps:$4 sm:$0xff]  }
0x185e   : > { %7621 = vmatmul.mubr.bf16.gmra.mrb[64].mxu0 %v17507_v54  ;;  %7767 = vmatmul.mubr.bf16.gmra.mrb[120].mxu1 %v17507_v54 }
0x185f   : > { %7796 = vmatpush1.bf16.msra.mxu0 %v14242_v52  ;;  %7942 = vmatpush1.bf16.msra.mxu1 %v14245_v21  ;;  %v14292_v52 = vld [vmem:[#allocation16 + $0x494] ss:$48 sps:$4 sm:$0xff]   ;;  %v14295_v21 = vld [vmem:[#allocation16 + $0x49c] ss:$48 sps:$4 sm:$0xff]  }
0x1860   : > { %7797 = vmatprep.subr.bf16.mxu0 %v14250_v3  ;;  %7943 = vmatprep.subr.bf16.mxu1 %v14253_v61  ;;  %v14290_v3 = vld [vmem:[#allocation16 + $0x490] ss:$48 sps:$4 sm:$0xff]   ;;  %v14293_v61 = vld [vmem:[#allocation16 + $0x498] ss:$48 sps:$4 sm:$0xff]  }
0x1861   : > { %7630 = vmatprep.mubr.bf16.mxu0 %v18181_v4  ;;  %7776 = vmatprep.mubr.bf16.mxu1 %v18181_v4 }
0x1863   : > { %7798 = vmatpush1.bf16.msra.mxu0 %v14248_v44  ;;  %7944 = vmatpush1.bf16.msra.mxu1 %v14251_v12  ;;  %v14296_v44 = vld [vmem:[#allocation16 + $0x4f0] ss:$48 sps:$4 sm:$0xff]   ;;  %v14299_v12 = vld [vmem:[#allocation16 + $0x4f8] ss:$48 sps:$4 sm:$0xff]  }
0x1864   : > { %7799 = vmatprep.subr.bf16.mxu0 %v14256_v30  ;;  %7945 = vmatprep.subr.bf16.mxu1 %v14259_v24  ;;  %v14304_v30 = vld [vmem:[#allocation16 + $0x554] ss:$48 sps:$4 sm:$0xff]   ;;  %v14307_v24 = vld [vmem:[#allocation16 + $0x55c] ss:$48 sps:$4 sm:$0xff]  }
0x1866   : > { %7631 = vmatmul.mubr.bf16.gmra.mrb[68].mxu0 %v17517_v43  ;;  %7777 = vmatmul.mubr.bf16.gmra.mrb[124].mxu1 %v17517_v43 }
0x1867   : > { %7800 = vmatpush1.bf16.msra.mxu0 %v14254_v13  ;;  %7946 = vmatpush1.bf16.msra.mxu1 %v14257_v33  ;;  %v14310_v13 = vld [vmem:[#allocation16 + $0x5b4] ss:$48 sps:$4 sm:$0xff]   ;;  %v14313_v33 = vld [vmem:[#allocation16 + $0x5bc] ss:$48 sps:$4 sm:$0xff]  }
0x1868   : > { %7819 = vmatprep.mubr.bf16.mxu0 %v17367_v22  ;;  %7965 = vmatprep.mubr.bf16.mxu1 %v17367_v22 }
0x1869   : > { %7801 = vmatprep.subr.bf16.mxu0 %v14262_v50  ;;  %7947 = vmatprep.subr.bf16.mxu1 %v14265_v20  ;;  %v14308_v50 = vld [vmem:[#allocation16 + $0x5b0] ss:$48 sps:$4 sm:$0xff]   ;;  %v14311_v20 = vld [vmem:[#allocation16 + $0x5b8] ss:$48 sps:$4 sm:$0xff]  }
0x186b   : > { %7802 = vmatpush1.bf16.msra.mxu0 %v14260_v19  ;;  %7948 = vmatpush1.bf16.msra.mxu1 %v14263_v58  ;;  %v14316_v19 = vld [vmem:[#allocation16 + $0x614] ss:$48 sps:$4 sm:$0xff]   ;;  %v14319_v58 = vld [vmem:[#allocation16 + $0x61c] ss:$48 sps:$4 sm:$0xff]  }
0x186c   : > { %7803 = vmatprep.subr.bf16.mxu0 %v14268_v31  ;;  %7949 = vmatprep.subr.bf16.mxu1 %v14271_v7  ;;  %v14314_v31 = vld [vmem:[#allocation16 + $0x610] ss:$48 sps:$4 sm:$0xff]   ;;  %v14317_v7 = vld [vmem:[#allocation16 + $0x618] ss:$48 sps:$4 sm:$0xff]  }
0x186f   : > { %7804 = vmatpush1.bf16.msra.mxu0 %v14266_v27  ;;  %7950 = vmatpush1.bf16.msra.mxu1 %v14269_v9  ;;  %v14322_v27 = vld [vmem:[#allocation16 + $0x674] ss:$48 sps:$4 sm:$0xff]   ;;  %v14325_v9 = vld [vmem:[#allocation16 + $0x67c] ss:$48 sps:$4 sm:$0xff]  }
0x1870   : > { %7805 = vmatprep.subr.bf16.mxu0 %v14274_v8  ;;  %7951 = vmatprep.subr.bf16.mxu1 %v14277_v35  ;;  %v14320_v8 = vld [vmem:[#allocation16 + $0x670] ss:$48 sps:$4 sm:$0xff]   ;;  %v14323_v35 = vld [vmem:[#allocation16 + $0x678] ss:$48 sps:$4 sm:$0xff]  }
0x1873   : > { %7806 = vmatpush1.bf16.msra.mxu0 %v14272_v40  ;;  %7952 = vmatpush1.bf16.msra.mxu1 %v14275_v5  ;;  %v14328_v40 = vld [vmem:[#allocation16 + $0x6d4] ss:$48 sps:$4 sm:$0xff]   ;;  %v14331_v5 = vld [vmem:[#allocation16 + $0x6dc] ss:$48 sps:$4 sm:$0xff]  }
0x1874   : > { %7807 = vmatprep.subr.bf16.mxu0 %v14280_v34  ;;  %7953 = vmatprep.subr.bf16.mxu1 %v14283_v36  ;;  %v14326_v34 = vld [vmem:[#allocation16 + $0x6d0] ss:$48 sps:$4 sm:$0xff]   ;;  %v14329_v36 = vld [vmem:[#allocation16 + $0x6d8] ss:$48 sps:$4 sm:$0xff]  }
0x1877   : > { %7808 = vmatpush1.bf16.msra.mxu0 %v14278_v59  ;;  %7954 = vmatpush1.bf16.msra.mxu1 %v14281_v46  ;;  %v14334_v59 = vld [vmem:[#allocation16 + $0x734] ss:$48 sps:$4 sm:$0xff]   ;;  %v14337_v46 = vld [vmem:[#allocation16 + $0x73c] ss:$48 sps:$4 sm:$0xff]  }
0x1878   : > { %7809 = vmatprep.subr.bf16.mxu0 %v14286_v37  ;;  %7955 = vmatprep.subr.bf16.mxu1 %v14289_v53  ;;  %v14332_v37 = vld [vmem:[#allocation16 + $0x730] ss:$48 sps:$4 sm:$0xff]   ;;  %v14335_v53 = vld [vmem:[#allocation16 + $0x738] ss:$48 sps:$4 sm:$0xff]  }
0x187b   : > { %7810 = vmatpush1.bf16.msra.mxu0 %v14284_v10  ;;  %7956 = vmatpush1.bf16.msra.mxu1 %v14287_v15  ;;  %v14340_v10 = vld [vmem:[#allocation16 + $0x794] ss:$48 sps:$4 sm:$0xff]   ;;  %v14343_v15 = vld [vmem:[#allocation16 + $0x79c] ss:$48 sps:$4 sm:$0xff]  }
0x187c   : > { %7811 = vmatprep.subr.bf16.mxu0 %v14292_v52  ;;  %7957 = vmatprep.subr.bf16.mxu1 %v14295_v21  ;;  %v14338_v52 = vld [vmem:[#allocation16 + $0x790] ss:$48 sps:$4 sm:$0xff]   ;;  %v14341_v21 = vld [vmem:[#allocation16 + $0x798] ss:$48 sps:$4 sm:$0xff]  }
0x187f   : > { %7812 = vmatpush1.bf16.msra.mxu0 %v14290_v3  ;;  %7958 = vmatpush1.bf16.msra.mxu1 %v14293_v61  ;;  %v14346_v3 = vld [vmem:[#allocation16 + $0x7f4] ss:$48 sps:$4 sm:$0xff]   ;;  %v14349_v61 = vld [vmem:[#allocation16 + $0x7fc] ss:$48 sps:$4 sm:$0xff]  }
0x1880   : > { %7813 = vmatprep.subr.bf16.mxu0 %v14298_v23  ;;  %7959 = vmatprep.subr.bf16.mxu1 %v14301_v41  ;;  %v14344_v23 = vld [vmem:[#allocation16 + $0x7f0] ss:$48 sps:$4 sm:$0xff]   ;;  %v14347_v41 = vld [vmem:[#allocation16 + $0x7f8] ss:$48 sps:$4 sm:$0xff]  }
0x1883   : > { %7814 = vmatpush1.bf16.msra.mxu0 %v14296_v44  ;;  %7960 = vmatpush1.bf16.msra.mxu1 %v14299_v12  ;;  %v14352_v44 = vld [vmem:[#allocation16 + $0x854] ss:$48 sps:$4 sm:$0xff]   ;;  %v14355_v12 = vld [vmem:[#allocation16 + $0x85c] ss:$48 sps:$4 sm:$0xff]  }
0x1884   : > { %7815 = vmatprep.subr.bf16.mxu0 %v14304_v30  ;;  %7961 = vmatprep.subr.bf16.mxu1 %v14307_v24  ;;  %v14350_v30 = vld [vmem:[#allocation16 + $0x850] ss:$48 sps:$4 sm:$0xff]   ;;  %v14353_v24 = vld [vmem:[#allocation16 + $0x858] ss:$48 sps:$4 sm:$0xff]  }
0x1887   : > { %7816 = vmatpush1.bf16.msra.mxu0 %v14302_v18  ;;  %7962 = vmatpush1.bf16.msra.mxu1 %v14305_v47  ;;  %v14358_v18 = vld [vmem:[#allocation16 + $0x8b4] ss:$48 sps:$4 sm:$0xff]   ;;  %v14361_v47 = vld [vmem:[#allocation16 + $0x8bc] ss:$48 sps:$4 sm:$0xff]  }
0x1888   : > { %7817 = vmatprep.subr.bf16.mxu0 %v14310_v13  ;;  %7963 = vmatprep.subr.bf16.mxu1 %v14313_v33  ;;  %v14356_v13 = vld [vmem:[#allocation16 + $0x8b0] ss:$48 sps:$4 sm:$0xff]   ;;  %v14359_v33 = vld [vmem:[#allocation16 + $0x8b8] ss:$48 sps:$4 sm:$0xff]  }
0x188b   : > { %7818 = vmatpush1.bf16.msra.mxu0 %v14308_v50  ;;  %7964 = vmatpush1.bf16.msra.mxu1 %v14311_v20  ;;  %v14364_v50 = vld [vmem:[#allocation16 + $0x24] ss:$48 sps:$4 sm:$0xff]   ;;  %v14367_v20 = vld [vmem:[#allocation16 + $0x2c] ss:$48 sps:$4 sm:$0xff]  }
0x188c   : > { %7860 = vmatprep.subr.bf16.mxu0 %v14316_v19  ;;  %8006 = vmatprep.subr.bf16.mxu1 %v14319_v58  ;;  %v14362_v19 = vld [vmem:[#allocation16 + $0x20] ss:$48 sps:$4 sm:$0xff]   ;;  %v14365_v58 = vld [vmem:[#allocation16 + $0x28] ss:$48 sps:$4 sm:$0xff]  }
0x188e   : > { %7820 = vmatmul.mubr.bf16.vlgmr.msra.gmra.mrb[72].mxu0 %v17369_v51  ;;  %7966 = vmatmul.mubr.bf16.vlgmr.msra.gmra.mrb[128].mxu1 %v17369_v51 }
0x188f   : > { %7829 = vmatprep.mubr.bf16.mxu0 %v17402_v45  ;;  %7861 = vmatpush1.bf16.msra.mxu0 %v14314_v31  ;;  %v14370_v31 = vld [vmem:[#allocation16 + $0x84] ss:$48 sps:$4 sm:$0xff]  }
0x1890   : > { %7975 = vmatprep.mubr.bf16.mxu1 %v17402_v45  ;;  %8007 = vmatpush1.bf16.msra.mxu1 %v14317_v7  ;;  %v14373_v7 = vld [vmem:[#allocation16 + $0x8c] ss:$48 sps:$4 sm:$0xff]  }
0x1891   : > { %7862 = vmatprep.subr.bf16.mxu0 %v14322_v27  ;;  %8008 = vmatprep.subr.bf16.mxu1 %v14325_v9  ;;  %v14368_v27 = vld [vmem:[#allocation16 + $0x80] ss:$48 sps:$4 sm:$0xff]   ;;  %v14371_v9 = vld [vmem:[#allocation16 + $0x88] ss:$48 sps:$4 sm:$0xff]  }
0x1893   : > { %7863 = vmatpush1.bf16.msra.mxu0 %v14320_v8  ;;  %v14376_v8 = vld [vmem:[#allocation16 + $0xe4] ss:$48 sps:$4 sm:$0xff]  }
0x1894   : > { %8009 = vmatpush1.bf16.msra.mxu1 %v14323_v35  ;;  %7864 = vmatprep.subr.bf16.mxu0 %v14328_v40  ;;  %v14379_v35 = vld [vmem:[#allocation16 + $0xec] ss:$48 sps:$4 sm:$0xff]   ;;  %v14374_v40 = vld [vmem:[#allocation16 + $0xe0] ss:$48 sps:$4 sm:$0xff]  }
0x1895   : > { %8010 = vmatprep.subr.bf16.mxu1 %v14331_v5  ;;  %v14377_v5 = vld [vmem:[#allocation16 + $0xe8] ss:$48 sps:$4 sm:$0xff]  }
0x1896   : > { %7830 = vmatmul.mubr.bf16.gmra.mrb[76].mxu0 %v17404_v6  ;;  %7976 = vmatmul.mubr.bf16.gmra.mrb[132].mxu1 %v17404_v6 }
0x1897   : > { %7839 = vmatprep.mubr.bf16.mxu0 %v17426_v55  ;;  %7865 = vmatpush1.bf16.msra.mxu0 %v14326_v34  ;;  %v14382_v34 = vld [vmem:[#allocation16 + $0x144] ss:$48 sps:$4 sm:$0xff]  }
0x1898   : > { %7985 = vmatprep.mubr.bf16.mxu1 %v17426_v55  ;;  %8011 = vmatpush1.bf16.msra.mxu1 %v14329_v36  ;;  %v14385_v36 = vld [vmem:[#allocation16 + $0x14c] ss:$48 sps:$4 sm:$0xff]  }
0x1899   : > { %7866 = vmatprep.subr.bf16.mxu0 %v14334_v59  ;;  %8012 = vmatprep.subr.bf16.mxu1 %v14337_v46  ;;  %v14380_v59 = vld [vmem:[#allocation16 + $0x140] ss:$48 sps:$4 sm:$0xff]   ;;  %v14383_v46 = vld [vmem:[#allocation16 + $0x148] ss:$48 sps:$4 sm:$0xff]  }
0x189b   : > { %7867 = vmatpush1.bf16.msra.mxu0 %v14332_v37  ;;  %v14388_v37 = vld [vmem:[#allocation16 + $0x1a4] ss:$48 sps:$4 sm:$0xff]  }
0x189c   : > { %8013 = vmatpush1.bf16.msra.mxu1 %v14335_v53  ;;  %7868 = vmatprep.subr.bf16.mxu0 %v14340_v10  ;;  %v14391_v53 = vld [vmem:[#allocation16 + $0x1ac] ss:$48 sps:$4 sm:$0xff]   ;;  %v14386_v10 = vld [vmem:[#allocation16 + $0x1a0] ss:$48 sps:$4 sm:$0xff]  }
0x189d   : > { %8014 = vmatprep.subr.bf16.mxu1 %v14343_v15  ;;  %v14389_v15 = vld [vmem:[#allocation16 + $0x1a8] ss:$48 sps:$4 sm:$0xff]  }
0x189e   : > { %7840 = vmatmul.mubr.bf16.gmra.mrb[80].mxu0 %v17438_v16  ;;  %7986 = vmatmul.mubr.bf16.gmra.mrb[136].mxu1 %v17438_v16 }
0x189f   : > { %7849 = vmatprep.mubr.bf16.mxu0 %v17447_v25  ;;  %7869 = vmatpush1.bf16.msra.mxu0 %v14338_v52  ;;  %v14394_v52 = vld [vmem:[#allocation16 + $0x204] ss:$48 sps:$4 sm:$0xff]  }
0x18a0   : > { %7995 = vmatprep.mubr.bf16.mxu1 %v17447_v25  ;;  %8015 = vmatpush1.bf16.msra.mxu1 %v14341_v21  ;;  %v14397_v21 = vld [vmem:[#allocation16 + $0x20c] ss:$48 sps:$4 sm:$0xff]  }
0x18a1   : > { %7870 = vmatprep.subr.bf16.mxu0 %v14346_v3  ;;  %8016 = vmatprep.subr.bf16.mxu1 %v14349_v61  ;;  %v14392_v3 = vld [vmem:[#allocation16 + $0x200] ss:$48 sps:$4 sm:$0xff]   ;;  %v14395_v61 = vld [vmem:[#allocation16 + $0x208] ss:$48 sps:$4 sm:$0xff]  }
0x18a3   : > { %7871 = vmatpush1.bf16.msra.mxu0 %v14344_v23  ;;  %v14400_v23 = vld [vmem:[#allocation16 + $0x264] ss:$48 sps:$4 sm:$0xff]  }
0x18a4   : > { %8017 = vmatpush1.bf16.msra.mxu1 %v14347_v41  ;;  %7872 = vmatprep.subr.bf16.mxu0 %v14352_v44  ;;  %v14403_v41 = vld [vmem:[#allocation16 + $0x26c] ss:$48 sps:$4 sm:$0xff]   ;;  %v14398_v44 = vld [vmem:[#allocation16 + $0x260] ss:$48 sps:$4 sm:$0xff]  }
0x18a5   : > { %8018 = vmatprep.subr.bf16.mxu1 %v14355_v12  ;;  %v14401_v12 = vld [vmem:[#allocation16 + $0x268] ss:$48 sps:$4 sm:$0xff]  }
0x18a6   : > { %7850 = vmatmul.mubr.bf16.gmra.mrb[84].mxu0 %v17461_v29  ;;  %7996 = vmatmul.mubr.bf16.gmra.mrb[140].mxu1 %v17461_v29 }
0x18a7   : > { %7873 = vmatpush1.bf16.msra.mxu0 %v14350_v30  ;;  %7892 = vmatprep.mubr.bf16.mxu0 %v18181_v4  ;;  %v14406_v30 = vld [vmem:[#allocation16 + $0x2c4] ss:$48 sps:$4 sm:$0xff]  }
0x18a8   : > { %8019 = vmatpush1.bf16.msra.mxu1 %v14353_v24  ;;  %7874 = vmatprep.subr.bf16.mxu0 %v14358_v18  ;;  %v14409_v24 = vld [vmem:[#allocation16 + $0x2cc] ss:$48 sps:$4 sm:$0xff]   ;;  %v14404_v18 = vld [vmem:[#allocation16 + $0x2c0] ss:$48 sps:$4 sm:$0xff]  }
0x18a9   : > { %8020 = vmatprep.subr.bf16.mxu1 %v14361_v47  ;;  %8038 = vmatprep.mubr.bf16.mxu1 %v18181_v4  ;;  %v14407_v47 = vld [vmem:[#allocation16 + $0x2c8] ss:$48 sps:$4 sm:$0xff]  }
0x18ab   : > { %7875 = vmatpush1.bf16.msra.mxu0 %v14356_v13  ;;  %v14412_v13 = vld [vmem:[#allocation16 + $0x324] ss:$48 sps:$4 sm:$0xff]  }
0x18ac   : > { %8021 = vmatpush1.bf16.msra.mxu1 %v14359_v33  ;;  %8079 = vmatprep.subr.bf16.mxu0 %v14364_v50  ;;  %v14415_v33 = vld [vmem:[#allocation16 + $0x32c] ss:$48 sps:$4 sm:$0xff]   ;;  %v14410_v50 = vld [vmem:[#allocation16 + $0x320] ss:$48 sps:$4 sm:$0xff]  }
0x18ad   : > { %8225 = vmatprep.subr.bf16.mxu1 %v14367_v20  ;;  %v14413_v20 = vld [vmem:[#allocation16 + $0x328] ss:$48 sps:$4 sm:$0xff]  }
0x18ae   : > { %7893 = vmatmul.mubr.bf16.vlgmr.msra.gmra.mrb[72].mxu0 %v17479_v48 }
0x18af   : > { %8039 = vmatmul.mubr.bf16.vlgmr.msra.gmra.mrb[128].mxu1 %v17479_v48  ;;  %8080 = vmatpush1.bf16.msra.mxu0 %v14362_v19  ;;  %v14418_v19 = vld [vmem:[#allocation16 + $0x384] ss:$48 sps:$4 sm:$0xff]  }
0x18b0   : > { %8226 = vmatpush1.bf16.msra.mxu1 %v14365_v58  ;;  %8081 = vmatprep.subr.bf16.mxu0 %v14370_v31  ;;  %v14421_v58 = vld [vmem:[#allocation16 + $0x38c] ss:$48 sps:$4 sm:$0xff]   ;;  %v14416_v31 = vld [vmem:[#allocation16 + $0x380] ss:$48 sps:$4 sm:$0xff]  }
0x18b1   : > { %8227 = vmatprep.subr.bf16.mxu1 %v14373_v7  ;;  %7902 = vmatprep.mubr.bf16.mxu0 %v18181_v4  ;;  %v14419_v7 = vld [vmem:[#allocation16 + $0x388] ss:$48 sps:$4 sm:$0xff]  }
0x18b2   : > { %8048 = vmatprep.mubr.bf16.mxu1 %v18181_v4 }
0x18b3   : > { %8082 = vmatpush1.bf16.msra.mxu0 %v14368_v27  ;;  %v14424_v27 = vld [vmem:[#allocation16 + $0x3e4] ss:$48 sps:$4 sm:$0xff]  }
0x18b4   : > { %8228 = vmatpush1.bf16.msra.mxu1 %v14371_v9  ;;  %8083 = vmatprep.subr.bf16.mxu0 %v14376_v8  ;;  %v14427_v9 = vld [vmem:[#allocation16 + $0x3ec] ss:$48 sps:$4 sm:$0xff]   ;;  %v14425_v8 = vld [vmem:[#allocation16 + $0x3e8] ss:$48 sps:$4 sm:$0xff]  }
0x18b5   : > { %8229 = vmatprep.subr.bf16.mxu1 %v14379_v35  ;;  %v14430_v35 = vld [vmem:[#allocation16 + $0x444] ss:$48 sps:$4 sm:$0xff]  }
0x18b6   : > { %7903 = vmatmul.mubr.bf16.gmra.mrb[76].mxu0 %v17493_v14 }
0x18b7   : > { %8049 = vmatmul.mubr.bf16.gmra.mrb[132].mxu1 %v17493_v14  ;;  %8084 = vmatpush1.bf16.msra.mxu0 %v14374_v40  ;;  %v14433_v40 = vld [vmem:[#allocation16 + $0x44c] ss:$48 sps:$4 sm:$0xff]  }
0x18b8   : > { %8230 = vmatpush1.bf16.msra.mxu1 %v14377_v5  ;;  %8085 = vmatprep.subr.bf16.mxu0 %v14382_v34  ;;  %v14428_v5 = vld [vmem:[#allocation16 + $0x440] ss:$48 sps:$4 sm:$0xff]   ;;  %v14431_v34 = vld [vmem:[#allocation16 + $0x448] ss:$48 sps:$4 sm:$0xff]  }
0x18b9   : > { %8231 = vmatprep.subr.bf16.mxu1 %v14385_v36  ;;  %7912 = vmatprep.mubr.bf16.mxu0 %v18181_v4  ;;  %v14436_v36 = vld [vmem:[#allocation16 + $0x4a4] ss:$48 sps:$4 sm:$0xff]  }
0x18ba   : > { %8058 = vmatprep.mubr.bf16.mxu1 %v18181_v4 }
0x18bb   : > { %8086 = vmatpush1.bf16.msra.mxu0 %v14380_v59  ;;  %v14439_v59 = vld [vmem:[#allocation16 + $0x4ac] ss:$48 sps:$4 sm:$0xff]  }
0x18bc   : > { %8232 = vmatpush1.bf16.msra.mxu1 %v14383_v46  ;;  %8087 = vmatprep.subr.bf16.mxu0 %v14388_v37  ;;  %v14434_v46 = vld [vmem:[#allocation16 + $0x4a0] ss:$48 sps:$4 sm:$0xff]   ;;  %v14437_v37 = vld [vmem:[#allocation16 + $0x4a8] ss:$48 sps:$4 sm:$0xff]  }
0x18bd   : > { %8233 = vmatprep.subr.bf16.mxu1 %v14391_v53  ;;  %v14442_v53 = vld [vmem:[#allocation16 + $0x504] ss:$48 sps:$4 sm:$0xff]  }
0x18be   : > { %7913 = vmatmul.mubr.bf16.gmra.mrb[80].mxu0 %v17507_v54 }
0x18bf   : > { %8059 = vmatmul.mubr.bf16.gmra.mrb[136].mxu1 %v17507_v54  ;;  %8088 = vmatpush1.bf16.msra.mxu0 %v14386_v10  ;;  %v14445_v10 = vld [vmem:[#allocation16 + $0x50c] ss:$48 sps:$4 sm:$0xff]  }
0x18c0   : > { %8234 = vmatpush1.bf16.msra.mxu1 %v14389_v15  ;;  %8089 = vmatprep.subr.bf16.mxu0 %v14394_v52  ;;  %v14440_v15 = vld [vmem:[#allocation16 + $0x500] ss:$48 sps:$4 sm:$0xff]   ;;  %v14443_v52 = vld [vmem:[#allocation16 + $0x508] ss:$48 sps:$4 sm:$0xff]  }
0x18c1   : > { %8235 = vmatprep.subr.bf16.mxu1 %v14397_v21  ;;  %7922 = vmatprep.mubr.bf16.mxu0 %v18181_v4  ;;  %v14448_v21 = vld [vmem:[#allocation16 + $0x564] ss:$48 sps:$4 sm:$0xff]  }
0x18c2   : > { %8068 = vmatprep.mubr.bf16.mxu1 %v18181_v4 }
0x18c3   : > { %8090 = vmatpush1.bf16.msra.mxu0 %v14392_v3  ;;  %v14451_v3 = vld [vmem:[#allocation16 + $0x56c] ss:$48 sps:$4 sm:$0xff]  }
0x18c4   : > { %8236 = vmatpush1.bf16.msra.mxu1 %v14395_v61  ;;  %8091 = vmatprep.subr.bf16.mxu0 %v14400_v23  ;;  %v14446_v61 = vld [vmem:[#allocation16 + $0x560] ss:$48 sps:$4 sm:$0xff]   ;;  %v14449_v23 = vld [vmem:[#allocation16 + $0x568] ss:$48 sps:$4 sm:$0xff]  }
0x18c5   : > { %8237 = vmatprep.subr.bf16.mxu1 %v14403_v41  ;;  %v14454_v41 = vld [vmem:[#allocation16 + $0x5c4] ss:$48 sps:$4 sm:$0xff]  }
0x18c6   : > { %7923 = vmatmul.mubr.bf16.gmra.mrb[84].mxu0 %v17517_v43 }
0x18c7   : > { %8069 = vmatmul.mubr.bf16.gmra.mrb[140].mxu1 %v17517_v43  ;;  %8092 = vmatpush1.bf16.msra.mxu0 %v14398_v44  ;;  %v14457_v44 = vld [vmem:[#allocation16 + $0x5cc] ss:$48 sps:$4 sm:$0xff]  }
0x18c8   : > { %8111 = vmatprep.mubr.bf16.mxu0 %v17367_v22  ;;  %8238 = vmatpush1.bf16.msra.mxu1 %v14401_v12  ;;  %v14452_v12 = vld [vmem:[#allocation16 + $0x5c0] ss:$48 sps:$4 sm:$0xff]  }
0x18c9   : > { %8257 = vmatprep.mubr.bf16.mxu1 %v17367_v22  ;;  %8093 = vmatprep.subr.bf16.mxu0 %v14406_v30  ;;  %v14422_v22 = vld [vmem:[#allocation16 + $0x3e0] ss:$48 sps:$4 sm:$0xff]   ;;  %v14455_v30 = vld [vmem:[#allocation16 + $0x5c8] ss:$48 sps:$4 sm:$0xff]  }
0x18ca   : > { %8239 = vmatprep.subr.bf16.mxu1 %v14409_v24  ;;  %v14460_v24 = vld [vmem:[#allocation16 + $0x624] ss:$48 sps:$4 sm:$0xff]  }
0x18cb   : > { %8094 = vmatpush1.bf16.msra.mxu0 %v14404_v18  ;;  %v14463_v18 = vld [vmem:[#allocation16 + $0x62c] ss:$48 sps:$4 sm:$0xff]  }
0x18cc   : > { %8240 = vmatpush1.bf16.msra.mxu1 %v14407_v47  ;;  %8095 = vmatprep.subr.bf16.mxu0 %v14412_v13  ;;  %v14458_v47 = vld [vmem:[#allocation16 + $0x620] ss:$48 sps:$4 sm:$0xff]   ;;  %v14461_v13 = vld [vmem:[#allocation16 + $0x628] ss:$48 sps:$4 sm:$0xff]  }
0x18cd   : > { %8241 = vmatprep.subr.bf16.mxu1 %v14415_v33  ;;  %v14466_v33 = vld [vmem:[#allocation16 + $0x684] ss:$48 sps:$4 sm:$0xff]  }
0x18cf   : > { %8096 = vmatpush1.bf16.msra.mxu0 %v14410_v50  ;;  %v14469_v50 = vld [vmem:[#allocation16 + $0x68c] ss:$48 sps:$4 sm:$0xff]  }
0x18d0   : > { %8242 = vmatpush1.bf16.msra.mxu1 %v14413_v20  ;;  %8097 = vmatprep.subr.bf16.mxu0 %v14418_v19  ;;  %v14464_v20 = vld [vmem:[#allocation16 + $0x680] ss:$48 sps:$4 sm:$0xff]   ;;  %v14467_v19 = vld [vmem:[#allocation16 + $0x688] ss:$48 sps:$4 sm:$0xff]  }
0x18d1   : > { %8243 = vmatprep.subr.bf16.mxu1 %v14421_v58  ;;  %v14472_v58 = vld [vmem:[#allocation16 + $0x6e4] ss:$48 sps:$4 sm:$0xff]  }
0x18d3   : > { %8098 = vmatpush1.bf16.msra.mxu0 %v14416_v31  ;;  %v14475_v31 = vld [vmem:[#allocation16 + $0x6ec] ss:$48 sps:$4 sm:$0xff]  }
0x18d4   : > { %8244 = vmatpush1.bf16.msra.mxu1 %v14419_v7  ;;  %8099 = vmatprep.subr.bf16.mxu0 %v14424_v27  ;;  %v14470_v7 = vld [vmem:[#allocation16 + $0x6e0] ss:$48 sps:$4 sm:$0xff]   ;;  %v14473_v27 = vld [vmem:[#allocation16 + $0x6e8] ss:$48 sps:$4 sm:$0xff]  }
0x18d5   : > { %8245 = vmatprep.subr.bf16.mxu1 %v14427_v9  ;;  %v14478_v9 = vld [vmem:[#allocation16 + $0x744] ss:$48 sps:$4 sm:$0xff]  }
0x18d7   : > { %8100 = vmatpush1.bf16.msra.mxu0 %v14422_v22  ;;  %v14479_v22 = vld [vmem:[#allocation16 + $0x748] ss:$48 sps:$4 sm:$0xff]  }
0x18d8   : > { %8246 = vmatpush1.bf16.msra.mxu1 %v14425_v8  ;;  %8101 = vmatprep.subr.bf16.mxu0 %v14430_v35  ;;  %v14484_v8 = vld [vmem:[#allocation16 + $0x7a4] ss:$48 sps:$4 sm:$0xff]   ;;  %v14487_v35 = vld [vmem:[#allocation16 + $0x7ac] ss:$48 sps:$4 sm:$0xff]  }
0x18d9   : > { %8247 = vmatprep.subr.bf16.mxu1 %v14433_v40  ;;  %v14482_v40 = vld [vmem:[#allocation16 + $0x7a0] ss:$48 sps:$4 sm:$0xff]  }
0x18db   : > { %8102 = vmatpush1.bf16.msra.mxu0 %v14428_v5  ;;  %v14485_v5 = vld [vmem:[#allocation16 + $0x7a8] ss:$48 sps:$4 sm:$0xff]  }
0x18dc   : > { %8248 = vmatpush1.bf16.msra.mxu1 %v14431_v34  ;;  %8103 = vmatprep.subr.bf16.mxu0 %v14436_v36  ;;  %v14490_v34 = vld [vmem:[#allocation16 + $0x804] ss:$48 sps:$4 sm:$0xff]   ;;  %v14491_v36 = vld [vmem:[#allocation16 + $0x808] ss:$48 sps:$4 sm:$0xff]  }
0x18dd   : > { %8249 = vmatprep.subr.bf16.mxu1 %v14439_v59  ;;  %v14496_v59 = vld [vmem:[#allocation16 + $0x864] ss:$48 sps:$4 sm:$0xff]  }
0x18df   : > { %8104 = vmatpush1.bf16.msra.mxu0 %v14434_v46  ;;  %v14499_v46 = vld [vmem:[#allocation16 + $0x86c] ss:$48 sps:$4 sm:$0xff]  }
0x18e0   : > { %8250 = vmatpush1.bf16.msra.mxu1 %v14437_v37  ;;  %8105 = vmatprep.subr.bf16.mxu0 %v14442_v53  ;;  %v14494_v37 = vld [vmem:[#allocation16 + $0x860] ss:$48 sps:$4 sm:$0xff]   ;;  %v14497_v53 = vld [vmem:[#allocation16 + $0x868] ss:$48 sps:$4 sm:$0xff]  }
0x18e1   : > { %8251 = vmatprep.subr.bf16.mxu1 %v14445_v10  ;;  %v14502_v10 = vld [vmem:[#allocation16 + $0x8c4] ss:$48 sps:$4 sm:$0xff]  }
0x18e3   : > { %8106 = vmatpush1.bf16.msra.mxu0 %v14440_v15  ;;  %v14503_v15 = vld [vmem:[#allocation16 + $0x8c8] ss:$48 sps:$4 sm:$0xff]  }
0x18e4   : > { %8252 = vmatpush1.bf16.msra.mxu1 %v14443_v52  ;;  %8107 = vmatprep.subr.bf16.mxu0 %v14448_v21  ;;  %v14508_v52 = vld [vmem:[#allocation19 + $0x4] ss:$12 sps:$4 sm:$0xff]   ;;  %v14509_v21 = vld [vmem:[#allocation19 + $0xc8] ss:$12 sps:$4 sm:$0xff]  }
0x18e5   : > { %8253 = vmatprep.subr.bf16.mxu1 %v14451_v3  ;;  %v14506_v3 = vld [vmem:[#allocation19] ss:$12 sps:$4 sm:$0xff]  }
0x18e7   : > { %8108 = vmatpush1.bf16.msra.mxu0 %v14446_v61  ;;  %v14510_v61 = vld [vmem:[#allocation19 + $0x8] ss:$12 sps:$4 sm:$0xff]  }
0x18e8   : > { %8254 = vmatpush1.bf16.msra.mxu1 %v14449_v23  ;;  %8109 = vmatprep.subr.bf16.mxu0 %v14454_v41  ;;  %v14513_v23 = vld [vmem:[#allocation19 + $0x1c] ss:$12 sps:$4 sm:$0xff]   ;;  %v14511_v41 = vld [vmem:[#allocation19 + $0x18] ss:$12 sps:$4 sm:$0xff]  }
0x18e9   : > { %8255 = vmatprep.subr.bf16.mxu1 %v14457_v44  ;;  %v14515_v44 = vld [vmem:[#allocation19 + $0x20] ss:$12 sps:$4 sm:$0xff]  }
0x18eb   : > { %8110 = vmatpush1.bf16.msra.mxu0 %v14452_v12  ;;  %v14518_v12 = vld [vmem:[#allocation19 + $0x34] ss:$12 sps:$4 sm:$0xff]  }
0x18ec   : > { %8256 = vmatpush1.bf16.msra.mxu1 %v14455_v30  ;;  %8152 = vmatprep.subr.bf16.mxu0 %v14460_v24  ;;  %v14519_v30 = vld [vmem:[#allocation19 + $0xf8] ss:$12 sps:$4 sm:$0xff]   ;;  %v14516_v24 = vld [vmem:[#allocation19 + $0x30] ss:$12 sps:$4 sm:$0xff]  }
0x18ed   : > { %8298 = vmatprep.subr.bf16.mxu1 %v14463_v18  ;;  %v14520_v18 = vld [vmem:[#allocation19 + $0x38] ss:$12 sps:$4 sm:$0xff]  }
0x18ee   : > { %8112 = vmatmul.mubr.bf16.vlgmr.msra.gmra.mrb[88].mxu0 %v17369_v51 }
0x18ef   : > { %8258 = vmatmul.mubr.bf16.vlgmr.msra.gmra.mrb[144].mxu1 %v17369_v51  ;;  %8121 = vmatprep.mubr.bf16.mxu0 %v17402_v45  ;;  %v14481_v51 = vld [vmem:[#allocation16 + $0x74c] ss:$48 sps:$4 sm:$0xff]  }
0x18f0   : > { %8153 = vmatpush1.bf16.msra.mxu0 %v14458_v47  ;;  %8267 = vmatprep.mubr.bf16.mxu1 %v17402_v45  ;;  %v14476_v45 = vld [vmem:[#allocation16 + $0x740] ss:$48 sps:$4 sm:$0xff]   ;;  %v14523_v47 = vld [vmem:[#allocation19 + $0x4c] ss:$12 sps:$4 sm:$0xff]  }
0x18f1   : > { %8299 = vmatpush1.bf16.msra.mxu1 %v14461_v13  ;;  %8154 = vmatprep.subr.bf16.mxu0 %v14466_v33  ;;  %v14521_v13 = vld [vmem:[#allocation19 + $0x48] ss:$12 sps:$4 sm:$0xff]   ;;  %v14525_v33 = vld [vmem:[#allocation19 + $0x50] ss:$12 sps:$4 sm:$0xff]  }
0x18f2   : > { %8300 = vmatprep.subr.bf16.mxu1 %v14469_v50  ;;  %v14528_v50 = vld [vmem:[#allocation19 + $0x64] ss:$12 sps:$4 sm:$0xff]  }
0x18f4   : > { %8155 = vmatpush1.bf16.msra.mxu0 %v14464_v20  ;;  %v14529_v20 = vld [vmem:[#allocation19 + $0x128] ss:$12 sps:$4 sm:$0xff]  }
0x18f5   : > { %8301 = vmatpush1.bf16.msra.mxu1 %v14467_v19  ;;  %8156 = vmatprep.subr.bf16.mxu0 %v14472_v58  ;;  %v17579_v19 = vld [vmem:[#allocation17] sm:$0xff]  ;;  %v6009_v58 = vsub.s32 3, %v16215_v57 }
0x18f6   : > { %8122 = vmatmul.mubr.bf16.gmra.mrb[92].mxu0 %v17404_v6  ;;  %8302 = vmatprep.subr.bf16.mxu1 %v14475_v31  ;;  %v14526_v31 = vld [vmem:[#allocation19 + $0x60] ss:$12 sps:$4 sm:$0xff]  }
0x18f7   : > { %8268 = vmatmul.mubr.bf16.gmra.mrb[148].mxu1 %v17404_v6  ;;  %8131 = vmatprep.mubr.bf16.mxu0 %v17426_v55  ;;  %v14493_v6 = vld [vmem:[#allocation16 + $0x80c] ss:$48 sps:$4 sm:$0xff]  }
0x18f8   : > { %8157 = vmatpush1.bf16.msra.mxu0 %v14470_v7  ;;  %8277 = vmatprep.mubr.bf16.mxu1 %v17426_v55  ;;  %v14488_v55 = vld [vmem:[#allocation16 + $0x800] ss:$48 sps:$4 sm:$0xff]   ;;  %v14533_v7 = vld [vmem:[#allocation19 + $0x7c] ss:$12 sps:$4 sm:$0xff]  }
0x18f9   : > { %8303 = vmatpush1.bf16.msra.mxu1 %v14473_v27  ;;  %8158 = vmatprep.subr.bf16.mxu0 %v14478_v9  ;;  %v17584_v27 = vrot.slane %v17579_v19, %v16221_v1  ;;  %v17588_v9 = vrot.slane %v17579_v19, %v16345_v56 }
0x18fa   : > { %8304 = vmatprep.subr.bf16.mxu1 %v14481_v51  ;;  %v14534_v51 = vld [vmem:[#allocation19 + $0x140] ss:$12 sps:$4 sm:$0xff]  }
0x18fc   : > { %8159 = vmatpush1.bf16.msra.mxu0 %v14476_v45  ;;  %v17593_v45 = vrot.slane %v17579_v19, %v16218_v63 }
0x18fd   : > { %8305 = vmatpush1.bf16.msra.mxu1 %v14479_v22  ;;  %8160 = vmatprep.subr.bf16.mxu0 %v14484_v8  ;;  %v17598_v22 = vrot.slane %v17579_v19, %v6009_v58  ;;  %v14531_v8 = vld [vmem:[#allocation19 + $0x78] ss:$12 sps:$4 sm:$0xff]  }
0x18fe   : > { %8132 = vmatmul.mubr.bf16.gmra.mrb[96].mxu0 %v17438_v16  ;;  %8306 = vmatprep.subr.bf16.mxu1 %v14487_v35 }
0x18ff   : > { %8278 = vmatmul.mubr.bf16.gmra.mrb[152].mxu1 %v17438_v16  ;;  %8141 = vmatprep.mubr.bf16.mxu0 %v17447_v25  ;;  %v14505_v16 = vld [vmem:[#allocation16 + $0x8cc] ss:$48 sps:$4 sm:$0xff]  }
0x1900   : > { %8161 = vmatpush1.bf16.msra.mxu0 %v14482_v40  ;;  %8287 = vmatprep.mubr.bf16.mxu1 %v17447_v25  ;;  %v14500_v25 = vld [vmem:[#allocation16 + $0x8c0] ss:$48 sps:$4 sm:$0xff]  }
0x1901   : > { %8307 = vmatpush1.bf16.msra.mxu1 %v14485_v5  ;;  %8162 = vmatprep.subr.bf16.mxu0 %v14490_v34  ;;  %v14535_v5 = vld [vmem:[#allocation19 + $0x80] ss:$12 sps:$4 sm:$0xff]  }
0x1902   : > { %8308 = vmatprep.subr.bf16.mxu1 %v14493_v6  ;;  %v14538_v34 = vld [vmem:[#allocation19 + $0x94] ss:$12 sps:$4 sm:$0xff]  }
0x1904   : > { %8163 = vmatpush1.bf16.msra.mxu0 %v14488_v55 }
0x1905   : > { %8309 = vmatpush1.bf16.msra.mxu1 %v14491_v36  ;;  %8164 = vmatprep.subr.bf16.mxu0 %v14496_v59 }
0x1906   : > { %8142 = vmatmul.mubr.bf16.gmra.mrb[100].mxu0 %v17461_v29  ;;  %8310 = vmatprep.subr.bf16.mxu1 %v14499_v46  ;;  %v14539_v46 = vld [vmem:[#allocation19 + $0x158] ss:$12 sps:$4 sm:$0xff]  }
0x1907   : > { %8288 = vmatmul.mubr.bf16.gmra.mrb[156].mxu1 %v17461_v29  ;;  %8184 = vmatprep.mubr.bf16.mxu0 %v18181_v4  ;;  %v14514_v29 = vld [vmem:[#allocation19 + $0xe0] ss:$12 sps:$4 sm:$0xff]  }
0x1908   : > { %8165 = vmatpush1.bf16.msra.mxu0 %v14494_v37  ;;  %8330 = vmatprep.mubr.bf16.mxu1 %v18181_v4 }
0x1909   : > { %8311 = vmatpush1.bf16.msra.mxu1 %v14497_v53  ;;  %8166 = vmatprep.subr.bf16.mxu0 %v14502_v10 }
0x190a   : > { %8312 = vmatprep.subr.bf16.mxu1 %v14505_v16 }
0x190c   : > { %8167 = vmatpush1.bf16.msra.mxu0 %v14500_v25 }
0x190d   : > { %8313 = vmatpush1.bf16.msra.mxu1 %v14503_v15  ;;  %10452 = vmatprep.subr.bf16.mxu0 %v14508_v52 }
0x190e   : > { %12582 = vmatprep.subr.bf16.mxu1 %v14509_v21  ;;  %v14536_v21 = vld [vmem:[#allocation19 + $0x90] ss:$12 sps:$4 sm:$0xff]  }
0x190f   : > { %8185 = vmatmul.mubr.bf16.vlgmr.msra.gmra.mrb[88].mxu0 %v17479_v48 }
0x1910   : > { %8331 = vmatmul.mubr.bf16.vlgmr.msra.gmra.mrb[144].mxu1 %v17479_v48  ;;  %10453 = vmatpush1.bf16.msra.mxu0 %v14506_v3  ;;  %v14524_v48 = vld [vmem:[#allocation19 + $0x110] ss:$12 sps:$4 sm:$0xff]  }
0x1911   : > { %12583 = vmatpush3.bf16.msra.mxu1 %v14510_v61  ;;  %10454 = vmatprep.subr.bf16.mxu0 %v14513_v23  ;;  %v14540_v23 = vld [vmem:[#allocation19 + $0x98] ss:$12 sps:$4 sm:$0xff]  }
0x1912   : > { %12584 = vmatprep.subr.bf16.mxu1 %v14514_v29  ;;  %8194 = vmatprep.mubr.bf16.mxu0 %v18181_v4  ;;  %v14543_v29 = vld [vmem:[#allocation19 + $0xac] ss:$12 sps:$4 sm:$0xff]  }
0x1913   : > { %8340 = vmatprep.mubr.bf16.mxu1 %v18181_v4 }
0x1914   : > { %10455 = vmatpush1.bf16.msra.mxu0 %v14511_v41 }
0x1915   : > { %12585 = vmatpush3.bf16.msra.mxu1 %v14515_v44  ;;  %10456 = vmatprep.subr.bf16.mxu0 %v14518_v12 }
0x1916   : > { %12586 = vmatprep.subr.bf16.mxu1 %v14519_v30  ;;  %v14544_v30 = vld [vmem:[#allocation19 + $0x170] ss:$12 sps:$4 sm:$0xff]  }
0x1917   : > { %8195 = vmatmul.mubr.bf16.gmra.mrb[92].mxu0 %v17493_v14 }
0x1918   : > { %8341 = vmatmul.mubr.bf16.gmra.mrb[148].mxu1 %v17493_v14  ;;  %10457 = vmatpush1.bf16.msra.mxu0 %v14516_v24  ;;  %v14530_v14 = vld [vmem:[#allocation19 + $0x68] ss:$12 sps:$4 sm:$0xff]  }
0x1919   : > { %12587 = vmatpush3.bf16.msra.mxu1 %v14520_v18  ;;  %10458 = vmatprep.subr.bf16.mxu0 %v14523_v47 }
0x191a   : > { %12588 = vmatprep.subr.bf16.mxu1 %v14524_v48  ;;  %8204 = vmatprep.mubr.bf16.mxu0 %v18181_v4 }
0x191b   : > { %8350 = vmatprep.mubr.bf16.mxu1 %v18181_v4 }
0x191c   : > { %10459 = vmatpush1.bf16.msra.mxu0 %v14521_v13 }
0x191d   : > { %12589 = vmatpush3.bf16.msra.mxu1 %v14525_v33  ;;  %10460 = vmatprep.subr.bf16.mxu0 %v14528_v50  ;;  %v14541_v50 = vld [vmem:[#allocation19 + $0xa8] ss:$12 sps:$4 sm:$0xff]  }
0x191e   : > { %12590 = vmatprep.subr.bf16.mxu1 %v14529_v20 }
0x191f   : > { %8205 = vmatmul.mubr.bf16.gmra.mrb[96].mxu0 %v17507_v54 }
0x1920   : > { %8351 = vmatmul.mubr.bf16.gmra.mrb[152].mxu1 %v17507_v54  ;;  %10461 = vmatpush1.bf16.msra.mxu0 %v14526_v31 }
0x1921   : > { %12591 = vmatpush3.bf16.msra.mxu1 %v14530_v14  ;;  %v7602_v35 = vpop.f32.mrb[56].mxu0  ;;  %v7748_v40 = vpop.f32.mrb[112].mxu1  ;;  %10462 = vmatprep.subr.bf16.mxu0 %v14533_v7 }
0x1922   : > { %v13110_v6 = vadd.f32 %v7602_v35, %v17584_v27  ;;  %v13126_v55 = vadd.f32 %v7748_v40, %v17588_v9  ;;  %12592 = vmatprep.subr.bf16.mxu1 %v14534_v51  ;;  %v7604_v36 = vpop.f32.mrb[57].mxu0  ;;  %v7750_v59 = vpop.f32.mrb[113].mxu1  ;;  %8214 = vmatprep.mubr.bf16.mxu0 %v18181_v4  ;;  %v14545_v51 = vld [vmem:[#allocation19 + $0xb0] ss:$12 sps:$4 sm:$0xff]  }
0x1923   : > { %v13111_v54 = vadd.f32 %v7604_v36, %v17593_v45  ;;  %v13127_v37 = vadd.f32 %v7750_v59, %v17598_v22  ;;  %v7606_v53 = vpop.f32.mrb[58].mxu0  ;;  %v7752_v10 = vpop.f32.mrb[114].mxu1  ;;  %8360 = vmatprep.mubr.bf16.mxu1 %v18181_v4 }
0x1924   : > { %10463 = vmatpush1.bf16.msra.mxu0 %v14531_v8  ;;  %v13112_v16 = vadd.f32 %v7606_v53, %v17584_v27  ;;  %v13128_v25 = vadd.f32 %v7752_v10, %v17588_v9  ;;  %v7608_v15 = vpop.f32.mrb[59].mxu0  ;;  %v7754_v52 = vpop.f32.mrb[115].mxu1  ;;  %v8371_v41 = vmax.f32 %v13110_v6, 0.0  ;;  %v8373_v44 = vmax.f32 %v13126_v55, 0.0  ;;  %v14548_v8 = vld [vmem:[#allocation19 + $0xc4] ss:$12 sps:$4 sm:$0xff]  }
0x1925   : > { %12593 = vmatpush3.bf16.msra.mxu1 %v14535_v5  ;;  %v13113_v3 = vadd.f32 %v7608_v15, %v17593_v45  ;;  %v13129_v61 = vadd.f32 %v7754_v52, %v17598_v22  ;;  %10464 = vmatprep.subr.bf16.mxu0 %v14538_v34  ;;  %v8372_v24 = vmax.f32 %v13111_v54, 0.0  ;;  %v8374_v18 = vmax.f32 %v13127_v37, 0.0  ;;  %v14549_v6 = vld [vmem:[#allocation19 + $0x248] ss:$12 sps:$4 sm:$0xff]   ;;  %v14546_v10 = vld [vmem:[#allocation19 + $0xc0] ss:$12 sps:$4 sm:$0xff]  }
0x1926   : > { %v8383_v12 = vmax.f32 %v13112_v16, 0.0  ;;  %v8385_v4 = vmax.f32 %v13128_v25, 0.0  ;;  %12594 = vmatprep.subr.bf16.mxu1 %v14539_v46  ;;  %v14550_v15 = vld [vmem:[#allocation19 + $0x188] ss:$12 sps:$4 sm:$0xff]  }
0x1927   : > { %v8384_v47 = vmax.f32 %v13113_v3, 0.0  ;;  %v8386_v48 = vmax.f32 %v13129_v61, 0.0  ;;  %8215 = vmatmul.mubr.bf16.gmra.mrb[100].mxu0 %v17517_v43  ;;  %v14553_v52 = vld [vmem:[#allocation19 + $0xdc] ss:$12 sps:$4 sm:$0xff]  }
0x1928   : > { %v17612_v13 = vpack.c.bf16 %v8383_v12, %v8371_v41  ;;  %v17614_v33 = vpack.c.bf16 %v8385_v4, %v8373_v44  ;;  %8361 = vmatmul.mubr.bf16.gmra.mrb[156].mxu1 %v17517_v43  ;;  %10465 = vmatpush1.bf16.msra.mxu0 %v14536_v21 }
0x1929   : > { %v8468_v20 = vpack.c.bf16 %v8384_v47, %v8372_v24  ;;  %v17617_v31 = vpack.c.bf16 %v8386_v48, %v8374_v18  ;;  %12595 = vmatpush3.bf16.msra.mxu1 %v14540_v23  ;;  %v7612_v14 = vpop.f32.mrb[60].mxu0  ;;  %v7758_v7 = vpop.f32.mrb[116].mxu1  ;;  %10466 = vmatprep.subr.bf16.mxu0 %v14543_v29  ;;  %v14554_v29 = vld [vmem:[#allocation19 + $0x260] ss:$12 sps:$4 sm:$0xff]   ;;  %v14551_v18 = vld [vmem:[#allocation19 + $0xd8] ss:$12 sps:$4 sm:$0xff]  }
0x192a   : > { %v13114_v35 = vadd.f32 %v7612_v14, %v17584_v27  ;;  %v13130_v40 = vadd.f32 %v7758_v7, %v17588_v9  ;;  %12596 = vmatprep.subr.bf16.mxu1 %v14544_v30  ;;  %v7614_v5 = vpop.f32.mrb[61].mxu0  ;;  %v7760_v34 = vpop.f32.mrb[117].mxu1  ;;  %v14555_v14 = vld [vmem:[#allocation19 + $0x1a0] ss:$12 sps:$4 sm:$0xff]  }
0x192b   : > { %v13115_v43 = vadd.f32 %v7614_v5, %v17593_v45  ;;  %v13131_v55 = vadd.f32 %v7760_v34, %v17598_v22  ;;  %v7616_v36 = vpop.f32.mrb[62].mxu0  ;;  %v7762_v59 = vpop.f32.mrb[118].mxu1  ;;  %10484 = vmatprep.mubr.bf16.mxu0 %v8468_v20  ;;  %10922 = vmatprep.mubr.bf16.mxu1 %v8468_v20  ;;  %v14558_v7 = vld [vmem:[#allocation19 + $0xf4] ss:$12 sps:$4 sm:$0xff]   ;;  %v14559_v5 = vld [vmem:[#allocation19 + $0x278] ss:$12 sps:$4 sm:$0xff]  }
0x192c   : > { %10467 = vmatpush1.bf16.msra.mxu0 %v14541_v50  ;;  %v13116_v46 = vadd.f32 %v7616_v36, %v17584_v27  ;;  %v13132_v54 = vadd.f32 %v7762_v59, %v17588_v9  ;;  %v7618_v37 = vpop.f32.mrb[63].mxu0  ;;  %v7764_v53 = vpop.f32.mrb[119].mxu1  ;;  %v8395_v21 = vmax.f32 %v13114_v35, 0.0  ;;  %v8397_v3 = vmax.f32 %v13130_v40, 0.0 }
0x192d   : > { %12597 = vmatpush3.bf16.msra.mxu1 %v14545_v51  ;;  %v13117_v16 = vadd.f32 %v7618_v37, %v17593_v45  ;;  %v13133_v25 = vadd.f32 %v7764_v53, %v17598_v22  ;;  %10468 = vmatprep.subr.bf16.mxu0 %v14548_v8  ;;  %v8396_v41 = vmax.f32 %v13115_v43, 0.0  ;;  %v8398_v44 = vmax.f32 %v13131_v55, 0.0  ;;  %v14556_v37 = vld [vmem:[#allocation19 + $0xf0] ss:$12 sps:$4 sm:$0xff]  }
0x192e   : > { %v8407_v61 = vmax.f32 %v13116_v46, 0.0  ;;  %v8409_v23 = vmax.f32 %v13132_v54, 0.0  ;;  %12622 = vmatprep.subr.bf16.mxu1 %v14549_v6 }
0x192f   : > { %v8408_v12 = vmax.f32 %v13117_v16, 0.0  ;;  %v8410_v4 = vmax.f32 %v13133_v25, 0.0  ;;  %v14560_v16 = vld [vmem:[#allocation19 + $0x1b8] ss:$12 sps:$4 sm:$0xff]  }
0x1930   : > { %v17627_v30 = vpack.c.bf16 %v8407_v61, %v8395_v21  ;;  %v17629_v24 = vpack.c.bf16 %v8409_v23, %v8397_v3  ;;  %10923 = vmatmul.mubr.bf16.vlgmr.msra.gmra.mrb[160].mxu1 %v17612_v13  ;;  %10469 = vmatpush1.bf16.msra.mxu0 %v14546_v10  ;;  %v14563_v25 = vld [vmem:[#allocation19 + $0x10c] ss:$12 sps:$4 sm:$0xff]   ;;  %v14564_v61 = vld [vmem:[#allocation19 + $0x290] ss:$12 sps:$4 sm:$0xff]  }
0x1931   : > { %v17632_v47 = vpack.c.bf16 %v8408_v12, %v8396_v41  ;;  %v17634_v48 = vpack.c.bf16 %v8410_v4, %v8398_v44  ;;  %12623 = vmatpush3.bf16.msra.mxu1 %v14550_v15  ;;  %v7622_v50 = vpop.f32.mrb[64].mxu0  ;;  %v7768_v20 = vpop.f32.mrb[120].mxu1  ;;  %10470 = vmatprep.subr.bf16.mxu0 %v14553_v52 }
0x1932   : > { %v13118_v51 = vadd.f32 %v7622_v50, %v17584_v27  ;;  %v13134_v8 = vadd.f32 %v7768_v20, %v17588_v9  ;;  %12624 = vmatprep.subr.bf16.mxu1 %v14554_v29  ;;  %v7624_v35 = vpop.f32.mrb[65].mxu0  ;;  %v7770_v40 = vpop.f32.mrb[121].mxu1 }
0x1933   : > { %v13119_v34 = vadd.f32 %v7624_v35, %v17593_v45  ;;  %v13135_v6 = vadd.f32 %v7770_v40, %v17598_v22  ;;  %v7626_v43 = vpop.f32.mrb[66].mxu0  ;;  %v7772_v55 = vpop.f32.mrb[122].mxu1  ;;  %10930 = vmatprep.mubr.bf16.mxu1 %v17632_v47 }
0x1934   : > { %10471 = vmatpush1.bf16.msra.mxu0 %v14551_v18  ;;  %v13120_v36 = vadd.f32 %v7626_v43, %v17584_v27  ;;  %v13136_v59 = vadd.f32 %v7772_v55, %v17588_v9  ;;  %v7628_v46 = vpop.f32.mrb[67].mxu0  ;;  %v7774_v54 = vpop.f32.mrb[123].mxu1  ;;  %v8419_v15 = vmax.f32 %v13118_v51, 0.0  ;;  %v8421_v52 = vmax.f32 %v13134_v8, 0.0  ;;  %v14561_v18 = vld [vmem:[#allocation19 + $0x108] ss:$12 sps:$4 sm:$0xff]  }
0x1935   : > { %12625 = vmatpush3.bf16.msra.mxu1 %v14555_v14  ;;  %v13121_v53 = vadd.f32 %v7628_v46, %v17593_v45  ;;  %v13137_v10 = vadd.f32 %v7774_v54, %v17598_v22  ;;  %10472 = vmatprep.subr.bf16.mxu0 %v14558_v7  ;;  %v8420_v23 = vmax.f32 %v13119_v34, 0.0  ;;  %v8422_v29 = vmax.f32 %v13135_v6, 0.0  ;;  %v14565_v51 = vld [vmem:[#allocation19 + $0x1d0] ss:$12 sps:$4 sm:$0xff]   ;;  %v14569_v6 = vld [vmem:[#allocation19 + $0x2a8] ss:$12 sps:$4 sm:$0xff]  }
0x1936   : > { %v8431_v21 = vmax.f32 %v13120_v36, 0.0  ;;  %v8433_v3 = vmax.f32 %v13136_v59, 0.0  ;;  %12626 = vmatprep.subr.bf16.mxu1 %v14559_v5  ;;  %v14568_v8 = vld [vmem:[#allocation19 + $0x124] ss:$12 sps:$4 sm:$0xff]  }
0x1937   : > { %v8432_v41 = vmax.f32 %v13121_v53, 0.0  ;;  %v8434_v44 = vmax.f32 %v13137_v10, 0.0  ;;  %v14566_v10 = vld [vmem:[#allocation19 + $0x120] ss:$12 sps:$4 sm:$0xff]  }
0x1938   : > { %v17645_v12 = vpack.c.bf16 %v8431_v21, %v8419_v15  ;;  %v17647_v4 = vpack.c.bf16 %v8433_v3, %v8421_v52  ;;  %10931 = vmatmul.mubr.bf16.gmra.mrb[164].mxu1 %v17627_v30  ;;  %10473 = vmatpush1.bf16.msra.mxu0 %v14556_v37  ;;  %v14570_v15 = vld [vmem:[#allocation19 + $0x1e8] ss:$12 sps:$4 sm:$0xff]  }
0x1939   : > { %v17650_v50 = vpack.c.bf16 %v8432_v41, %v8420_v23  ;;  %v17652_v20 = vpack.c.bf16 %v8434_v44, %v8422_v29  ;;  %12627 = vmatpush3.bf16.msra.mxu1 %v14560_v16  ;;  %v7632_v14 = vpop.f32.mrb[68].mxu0  ;;  %v7778_v7 = vpop.f32.mrb[124].mxu1  ;;  %10474 = vmatprep.subr.bf16.mxu0 %v14563_v25  ;;  %v14573_v52 = vld [vmem:[#allocation19 + $0x13c] ss:$12 sps:$4 sm:$0xff]   ;;  %v14574_v29 = vld [vmem:[#allocation19 + $0x2c0] ss:$12 sps:$4 sm:$0xff]  }
0x193a   : > { %v13122_v35 = vadd.f32 %v7632_v14, %v17584_v27  ;;  %v13138_v40 = vadd.f32 %v7778_v7, %v17588_v9  ;;  %12628 = vmatprep.subr.bf16.mxu1 %v14564_v61  ;;  %v7634_v5 = vpop.f32.mrb[69].mxu0  ;;  %v7780_v34 = vpop.f32.mrb[125].mxu1 }
0x193b   : > { %v13123_v43 = vadd.f32 %v7634_v5, %v17593_v45  ;;  %v13139_v55 = vadd.f32 %v7780_v34, %v17598_v22  ;;  %v7636_v36 = vpop.f32.mrb[70].mxu0  ;;  %v7782_v59 = vpop.f32.mrb[126].mxu1  ;;  %10938 = vmatprep.mubr.bf16.mxu1 %v17650_v50  ;;  %v14580_v5 = vld [vmem:[#allocation19 + $0x218] ss:$12 sps:$4 sm:$0xff]  }
0x193c   : > { %10475 = vmatpush1.bf16.msra.mxu0 %v14561_v18  ;;  %v13124_v46 = vadd.f32 %v7636_v36, %v17584_v27  ;;  %v13140_v54 = vadd.f32 %v7782_v59, %v17588_v9  ;;  %v7638_v37 = vpop.f32.mrb[71].mxu0  ;;  %v7784_v53 = vpop.f32.mrb[127].mxu1  ;;  %v8443_v21 = vmax.f32 %v13122_v35, 0.0  ;;  %v8445_v3 = vmax.f32 %v13138_v40, 0.0  ;;  %v14579_v35 = vld [vmem:[#allocation19 + $0x2d8] ss:$12 sps:$4 sm:$0xff]  }
0x193d   : > { %12629 = vmatpush3.bf16.msra.mxu1 %v14565_v51  ;;  %v13125_v16 = vadd.f32 %v7638_v37, %v17593_v45  ;;  %v13141_v25 = vadd.f32 %v7784_v53, %v17598_v22  ;;  %10476 = vmatprep.subr.bf16.mxu0 %v14568_v8  ;;  %v8444_v27 = vmax.f32 %v13123_v43, 0.0  ;;  %v8446_v41 = vmax.f32 %v13139_v55, 0.0  ;;  %v14571_v45 = vld [vmem:[#allocation19 + $0x138] ss:$12 sps:$4 sm:$0xff]   ;;  %v14575_v51 = vld [vmem:[#allocation19 + $0x200] ss:$12 sps:$4 sm:$0xff]  }
0x193e   : > { %v8455_v61 = vmax.f32 %v13124_v46, 0.0  ;;  %v8457_v23 = vmax.f32 %v13140_v54, 0.0  ;;  %12630 = vmatprep.subr.bf16.mxu1 %v14569_v6  ;;  %v14578_v8 = vld [vmem:[#allocation19 + $0x154] ss:$12 sps:$4 sm:$0xff]   ;;  %v14576_v40 = vld [vmem:[#allocation19 + $0x150] ss:$12 sps:$4 sm:$0xff]  }
0x193f   : > { %v8456_v9 = vmax.f32 %v13125_v16, 0.0  ;;  %v8458_v44 = vmax.f32 %v13141_v25, 0.0  ;;  %v14583_v34 = vld [vmem:[#allocation19 + $0x16c] ss:$12 sps:$4 sm:$0xff]   ;;  %v14584_v6 = vld [vmem:[#allocation19 + $0x2f0] ss:$12 sps:$4 sm:$0xff]  }
0x1940   : > { %v17663_v18 = vpack.c.bf16 %v8455_v61, %v8443_v21  ;;  %v17665_v14 = vpack.c.bf16 %v8457_v23, %v8445_v3  ;;  %10939 = vmatmul.mubr.bf16.gmra.mrb[168].mxu1 %v17645_v12  ;;  %10477 = vmatpush1.bf16.msra.mxu0 %v14566_v10  ;;  %v14581_v43 = vld [vmem:[#allocation19 + $0x168] ss:$12 sps:$4 sm:$0xff]   ;;  %v14585_v55 = vld [vmem:[#allocation19 + $0x230] ss:$12 sps:$4 sm:$0xff]   ;;  %v14586_v46 = vld [vmem:[#allocation19 + $0x180] ss:$12 sps:$4 sm:$0xff]  }
0x1941   : > { %v17668_v22 = vpack.c.bf16 %v8456_v9, %v8444_v27  ;;  %v17670_v7 = vpack.c.bf16 %v8458_v44, %v8446_v41  ;;  %12631 = vmatpush3.bf16.msra.mxu1 %v14570_v15  ;;  %10478 = vmatprep.subr.bf16.mxu0 %v14573_v52  ;;  %v14588_v36 = vld [vmem:[#allocation19 + $0x184] ss:$12 sps:$4 sm:$0xff]   ;;  %v14610_v59 = vld [vmem:[#allocation19 + $0x3c8] ss:$12 sps:$4 sm:$0xff]   ;;  %v14615_v53 = vld [vmem:[#allocation19 + $0x3e0] ss:$12 sps:$4 sm:$0xff]  }
0x1942   : > { %12632 = vmatprep.subr.bf16.mxu1 %v14574_v29  ;;  %v14591_v54 = vld [vmem:[#allocation19 + $0x19c] ss:$12 sps:$4 sm:$0xff]   ;;  %v14589_v10 = vld [vmem:[#allocation19 + $0x198] ss:$12 sps:$4 sm:$0xff]   ;;  %v14594_v16 = vld [vmem:[#allocation19 + $0x1b4] ss:$12 sps:$4 sm:$0xff]  }
0x1943   : > { %10946 = vmatprep.mubr.bf16.mxu1 %v17668_v22  ;;  %v14611_v37 = vld [vmem:[#allocation19 + $0x308] ss:$12 sps:$4 sm:$0xff]   ;;  %v14616_v25 = vld [vmem:[#allocation19 + $0x320] ss:$12 sps:$4 sm:$0xff]   ;;  %v14620_v15 = vld [vmem:[#allocation19 + $0x3f8] ss:$12 sps:$4 sm:$0xff]  }
0x1944   : > { %10479 = vmatpush1.bf16.msra.mxu0 %v14571_v45  ;;  %v14592_v52 = vld [vmem:[#allocation19 + $0x1b0] ss:$12 sps:$4 sm:$0xff]   ;;  %v14597_v21 = vld [vmem:[#allocation19 + $0x1cc] ss:$12 sps:$4 sm:$0xff]   ;;  %v14595_v3 = vld [vmem:[#allocation19 + $0x1c8] ss:$12 sps:$4 sm:$0xff]  }
0x1945   : > { %12633 = vmatpush3.bf16.msra.mxu1 %v14575_v51  ;;  %10480 = vmatprep.subr.bf16.mxu0 %v14578_v8  ;;  %v14600_v61 = vld [vmem:[#allocation19 + $0x1e4] ss:$12 sps:$4 sm:$0xff]   ;;  %v14630_v29 = vld [vmem:[#allocation19 + $0x428] ss:$12 sps:$4 sm:$0xff]   ;;  %v14598_v27 = vld [vmem:[#allocation19 + $0x1e0] ss:$12 sps:$4 sm:$0xff]  }
0x1946   : > { %12634 = vmatprep.subr.bf16.mxu1 %v14579_v35  ;;  %v14626_v23 = vld [vmem:[#allocation19 + $0x350] ss:$12 sps:$4 sm:$0xff]   ;;  %v14631_v41 = vld [vmem:[#allocation19 + $0x368] ss:$12 sps:$4 sm:$0xff]   ;;  %v14601_v9 = vld [vmem:[#allocation19 + $0x1f8] ss:$12 sps:$4 sm:$0xff]  }
0x1947   : > { %v14606_v44 = vld [vmem:[#allocation19 + $0x214] ss:$12 sps:$4 sm:$0xff]   ;;  %v14640_v51 = vld [vmem:[#allocation19 + $0x458] ss:$12 sps:$4 sm:$0xff]   ;;  %v14604_v8 = vld [vmem:[#allocation19 + $0x210] ss:$12 sps:$4 sm:$0xff]  }
0x1948   : > { %10947 = vmatmul.mubr.bf16.gmra.mrb[172].mxu1 %v17663_v18  ;;  %10481 = vmatpush1.bf16.msra.mxu0 %v14576_v40  ;;  %v14636_v45 = vld [vmem:[#allocation19 + $0x380] ss:$12 sps:$4 sm:$0xff]   ;;  %v14641_v35 = vld [vmem:[#allocation19 + $0x398] ss:$12 sps:$4 sm:$0xff]   ;;  %v14607_v40 = vld [vmem:[#allocation19 + $0x228] ss:$12 sps:$4 sm:$0xff]  }
0x1949   : > { %12635 = vmatpush3.bf16.msra.mxu1 %v14580_v5  ;;  %10987 = vmatprep.mubr.bf16.mxu1 %v17617_v31  ;;  %v14614_v5 = vld [vmem:[#allocation19 + $0x244] ss:$12 sps:$4 sm:$0xff]  }
0x194a   : > { %10482 = vmatprep.subr.bf16.mxu0 %v14583_v34  ;;  %12636 = vmatprep.subr.bf16.mxu1 %v14584_v6  ;;  %v14646_v34 = vld [vmem:[#allocation19 + $0x3b0] ss:$12 sps:$4 sm:$0xff]   ;;  %v14650_v6 = vld [vmem:[#allocation19 + $0x548] ss:$12 sps:$4 sm:$0xff]  }
0x194c   : > { %10483 = vmatpush1.bf16.msra.mxu0 %v14581_v43  ;;  %v14612_v43 = vld [vmem:[#allocation19 + $0x240] ss:$12 sps:$4 sm:$0xff]  }
0x194d   : > { %12637 = vmatpush3.bf16.msra.mxu1 %v14585_v55  ;;  %10525 = vmatprep.subr.bf16.mxu0 %v14588_v36  ;;  %v14619_v55 = vld [vmem:[#allocation19 + $0x25c] ss:$12 sps:$4 sm:$0xff]   ;;  %v14624_v36 = vld [vmem:[#allocation19 + $0x274] ss:$12 sps:$4 sm:$0xff]  }
0x194e   : > { %12662 = vmatprep.subr.bf16.mxu1 %v14610_v59  ;;  %v14629_v59 = vld [vmem:[#allocation19 + $0x28c] ss:$12 sps:$4 sm:$0xff]  }
0x194f   : > { %10485 = vmatmul.mubr.bf16.vlgmr.msra.gmra.mrb[104].mxu0 %v17612_v13  ;;  %v14621_v13 = vld [vmem:[#allocation19 + $0x338] ss:$12 sps:$4 sm:$0xff]  }
0x1950   : > { %10988 = vmatmul.mubr.bf16.vlgmr.msra.gmra.mrb[176].mxu1 %v17614_v33  ;;  %10494 = vmatprep.mubr.bf16.mxu0 %v17632_v47  ;;  %v14625_v47 = vld [vmem:[#allocation19 + $0x410] ss:$12 sps:$4 sm:$0xff]  }
0x1951   : > { %10526 = vmatpush1.bf16.msra.mxu0 %v14586_v46  ;;  %10995 = vmatprep.mubr.bf16.mxu1 %v17634_v48  ;;  %v14627_v46 = vld [vmem:[#allocation19 + $0x288] ss:$12 sps:$4 sm:$0xff]  }
0x1952   : > { %10527 = vmatprep.subr.bf16.mxu0 %v14591_v54  ;;  %12663 = vmatpush3.bf16.msra.mxu1 %v14611_v37  ;;  %v14634_v54 = vld [vmem:[#allocation19 + $0x2a4] ss:$12 sps:$4 sm:$0xff]   ;;  %v6013_v37 = vsub.s32 4, %v16215_v57 }
0x1953   : > { %12664 = vmatprep.subr.bf16.mxu1 %v14615_v53  ;;  %v6021_v53 = vsub.s32 6, %v16215_v57 }
0x1955   : > { %10528 = vmatpush1.bf16.msra.mxu0 %v14589_v10  ;;  %v6017_v10 = vsub.s32 5, %v16215_v57 }
0x1956   : > { %10529 = vmatprep.subr.bf16.mxu0 %v14594_v16  ;;  %12665 = vmatpush3.bf16.msra.mxu1 %v14616_v25  ;;  %v6025_v16 = vsub.s32 7, %v16215_v57  ;;  %v14632_v25 = vld [vmem:[#allocation19 + $0x2a0] ss:$12 sps:$4 sm:$0xff]  }
0x1957   : > { %10495 = vmatmul.mubr.bf16.gmra.mrb[108].mxu0 %v17627_v30  ;;  %12666 = vmatprep.subr.bf16.mxu1 %v14620_v15  ;;  %v14603_v30 = vld [vmem:[#allocation19 + $0x1fc] ss:$12 sps:$4 sm:$0xff]   ;;  %v17695_v15 = vrot.slane %v17579_v19, %v6013_v37 }
0x1958   : > { %10996 = vmatmul.mubr.bf16.gmra.mrb[180].mxu1 %v17629_v24  ;;  %10504 = vmatprep.mubr.bf16.mxu0 %v17650_v50  ;;  %v14635_v50 = vld [vmem:[#allocation19 + $0x440] ss:$12 sps:$4 sm:$0xff]  }
0x1959   : > { %10530 = vmatpush1.bf16.msra.mxu0 %v14592_v52  ;;  %11003 = vmatprep.mubr.bf16.mxu1 %v17652_v20  ;;  %v14639_v52 = vld [vmem:[#allocation19 + $0x2bc] ss:$12 sps:$4 sm:$0xff]  }
0x195a   : > { %10531 = vmatprep.subr.bf16.mxu0 %v14597_v21  ;;  %12667 = vmatpush3.bf16.msra.mxu1 %v14621_v13  ;;  %v17698_v21 = vrot.slane %v17579_v19, %v6021_v53  ;;  %v17701_v13 = vrot.slane %v17579_v19, %v6017_v10 }
0x195b   : > { %12668 = vmatprep.subr.bf16.mxu1 %v14625_v47  ;;  %v17704_v47 = vrot.slane %v17579_v19, %v6025_v16  ;;  %v14647_v16 = vld [vmem:[#allocation19 + $0x2e8] ss:$12 sps:$4 sm:$0xff]  }
0x195d   : > { %10532 = vmatpush1.bf16.msra.mxu0 %v14595_v3 }
0x195e   : > { %10533 = vmatprep.subr.bf16.mxu0 %v14600_v61  ;;  %12669 = vmatpush3.bf16.msra.mxu1 %v14626_v23  ;;  %v14637_v61 = vld [vmem:[#allocation19 + $0x2b8] ss:$12 sps:$4 sm:$0xff]  }
0x195f   : > { %10505 = vmatmul.mubr.bf16.gmra.mrb[112].mxu0 %v17645_v12  ;;  %12670 = vmatprep.subr.bf16.mxu1 %v14630_v29  ;;  %v14609_v12 = vld [vmem:[#allocation19 + $0x22c] ss:$12 sps:$4 sm:$0xff]  }
0x1960   : > { %11004 = vmatmul.mubr.bf16.gmra.mrb[184].mxu1 %v17647_v4  ;;  %10514 = vmatprep.mubr.bf16.mxu0 %v17668_v22  ;;  %v14645_v22 = vld [vmem:[#allocation19 + $0x470] ss:$12 sps:$4 sm:$0xff]  }
0x1961   : > { %10534 = vmatpush1.bf16.msra.mxu0 %v14598_v27  ;;  %11011 = vmatprep.mubr.bf16.mxu1 %v17670_v7 }
0x1962   : > { %10535 = vmatprep.subr.bf16.mxu0 %v14603_v30  ;;  %12671 = vmatpush3.bf16.msra.mxu1 %v14631_v41  ;;  %v14644_v30 = vld [vmem:[#allocation19 + $0x2d4] ss:$12 sps:$4 sm:$0xff]  }
0x1963   : > { %12672 = vmatprep.subr.bf16.mxu1 %v14635_v50 }
0x1965   : > { %10536 = vmatpush1.bf16.msra.mxu0 %v14601_v9 }
0x1966   : > { %10537 = vmatprep.subr.bf16.mxu0 %v14606_v44  ;;  %12673 = vmatpush3.bf16.msra.mxu1 %v14636_v45 }
0x1967   : > { %10515 = vmatmul.mubr.bf16.gmra.mrb[116].mxu0 %v17663_v18  ;;  %12674 = vmatprep.subr.bf16.mxu1 %v14640_v51  ;;  %v14617_v18 = vld [vmem:[#allocation19 + $0x258] ss:$12 sps:$4 sm:$0xff]  }
0x1968   : > { %11012 = vmatmul.mubr.bf16.gmra.mrb[188].mxu1 %v17665_v14  ;;  %10557 = vmatprep.mubr.bf16.mxu0 %v17617_v31  ;;  %v14622_v31 = vld [vmem:[#allocation19 + $0x270] ss:$12 sps:$4 sm:$0xff]  }
0x1969   : > { %10538 = vmatpush1.bf16.msra.mxu0 %v14604_v8 }
0x196a   : > { %10539 = vmatprep.subr.bf16.mxu0 %v14609_v12  ;;  %12675 = vmatpush3.bf16.msra.mxu1 %v14641_v35 }
0x196b   : > { %12676 = vmatprep.subr.bf16.mxu1 %v14645_v22 }
0x196d   : > { %10540 = vmatpush1.bf16.msra.mxu0 %v14607_v40  ;;  %v14642_v40 = vld [vmem:[#allocation19 + $0x2d0] ss:$12 sps:$4 sm:$0xff]  }
0x196e   : > { %10541 = vmatprep.subr.bf16.mxu0 %v14614_v5  ;;  %12677 = vmatpush3.bf16.msra.mxu1 %v14646_v34 }
0x196f   : > { %12702 = vmatprep.subr.bf16.mxu1 %v14650_v6 }
0x1971   : > { %10542 = vmatpush1.bf16.msra.mxu0 %v14612_v43  ;;  %v14649_v43 = vld [vmem:[#allocation19 + $0x2ec] ss:$12 sps:$4 sm:$0xff]  }
0x1972   : > { %10543 = vmatprep.subr.bf16.mxu0 %v14619_v55 }
0x1975   : > { %10544 = vmatpush1.bf16.msra.mxu0 %v14617_v18 }
0x1976   : > { %10545 = vmatprep.subr.bf16.mxu0 %v14624_v36 }
0x1979   : > { %10546 = vmatpush1.bf16.msra.mxu0 %v14622_v31 }
0x197a   : > { %10547 = vmatprep.subr.bf16.mxu0 %v14629_v59 }
0x197d   : > { %10548 = vmatpush1.bf16.msra.mxu0 %v14627_v46 }
0x197e   : > { %10549 = vmatprep.subr.bf16.mxu0 %v14634_v54 }
0x1981   : > { %10550 = vmatpush1.bf16.msra.mxu0 %v14632_v25  ;;  %v7894_v3 = vpop.f32.mrb[72].mxu0  ;;  %v14651_v25 = vld [vmem:[#allocation19 + $0x488] ss:$12 sps:$4 sm:$0xff]  }
0x1982   : > { %v13142_v23 = vadd.f32 %v7894_v3, %v17695_v15  ;;  %v8040_v29 = vpop.f32.mrb[128].mxu1  ;;  %v7896_v27 = vpop.f32.mrb[73].mxu0  ;;  %10551 = vmatprep.subr.bf16.mxu0 %v14639_v52 }
0x1983   : > { %v13158_v41 = vadd.f32 %v8040_v29, %v17698_v21  ;;  %v13143_v50 = vadd.f32 %v7896_v27, %v17701_v13  ;;  %v8042_v9 = vpop.f32.mrb[129].mxu1  ;;  %v7898_v44 = vpop.f32.mrb[74].mxu0  ;;  %v14654_v29 = vld [vmem:[#allocation19 + $0x304] ss:$12 sps:$4 sm:$0xff]   ;;  %v14655_v27 = vld [vmem:[#allocation19 + $0x560] ss:$12 sps:$4 sm:$0xff]  }
0x1984   : > { %v13159_v45 = vadd.f32 %v8042_v9, %v17704_v47  ;;  %v13144_v19 = vadd.f32 %v7898_v44, %v17695_v15  ;;  %v8044_v51 = vpop.f32.mrb[130].mxu1  ;;  %v7900_v8 = vpop.f32.mrb[75].mxu0  ;;  %v8375_v5 = vmax.f32 %v13142_v23, 0.0 }
0x1985   : > { %v13160_v12 = vadd.f32 %v8044_v51, %v17698_v21  ;;  %10552 = vmatpush1.bf16.msra.mxu0 %v14637_v61  ;;  %v13145_v35 = vadd.f32 %v7900_v8, %v17701_v13  ;;  %v8046_v22 = vpop.f32.mrb[131].mxu1  ;;  %v8377_v55 = vmax.f32 %v13158_v41, 0.0  ;;  %v8376_v18 = vmax.f32 %v13143_v50, 0.0 }
0x1986   : > { %v8387_v34 = vmax.f32 %v13144_v19, 0.0  ;;  %v13161_v6 = vadd.f32 %v8046_v22, %v17704_v47  ;;  %10553 = vmatprep.subr.bf16.mxu0 %v14644_v30  ;;  %v8378_v59 = vmax.f32 %v13159_v45, 0.0  ;;  %v14652_v22 = vld [vmem:[#allocation19 + $0x300] ss:$12 sps:$4 sm:$0xff]  }
0x1987   : > { %v8389_v36 = vmax.f32 %v13160_v12, 0.0  ;;  %v8388_v31 = vmax.f32 %v13145_v35, 0.0 }
0x1988   : > { %v17714_v46 = vpack.c.bf16 %v8387_v34, %v8375_v5  ;;  %v8390_v54 = vmax.f32 %v13161_v6, 0.0  ;;  %v14656_v6 = vld [vmem:[#allocation19 + $0x4a0] ss:$12 sps:$4 sm:$0xff]  }
0x1989   : > { %v17716_v37 = vpack.c.bf16 %v8389_v36, %v8377_v55  ;;  %v17718_v53 = vpack.c.bf16 %v8388_v31, %v8376_v18  ;;  %10554 = vmatpush1.bf16.msra.mxu0 %v14642_v40  ;;  %v7904_v10 = vpop.f32.mrb[76].mxu0 }
0x198a   : > { %v17720_v52 = vpack.c.bf16 %v8390_v54, %v8378_v59  ;;  %v13146_v3 = vadd.f32 %v7904_v10, %v17695_v15  ;;  %v8050_v61 = vpop.f32.mrb[132].mxu1  ;;  %v7906_v23 = vpop.f32.mrb[77].mxu0  ;;  %10555 = vmatprep.subr.bf16.mxu0 %v14649_v43  ;;  %v14659_v43 = vld [vmem:[#allocation19 + $0x31c] ss:$12 sps:$4 sm:$0xff]   ;;  %v14660_v59 = vld [vmem:[#allocation19 + $0x578] ss:$12 sps:$4 sm:$0xff]  }
0x198b   : > { %v13162_v30 = vadd.f32 %v8050_v61, %v17698_v21  ;;  %v13147_v41 = vadd.f32 %v7906_v23, %v17701_v13  ;;  %v8052_v50 = vpop.f32.mrb[133].mxu1  ;;  %v7908_v9 = vpop.f32.mrb[78].mxu0  ;;  %11052 = vmatprep.mubr.bf16.mxu1 %v17718_v53  ;;  %v14657_v23 = vld [vmem:[#allocation19 + $0x318] ss:$12 sps:$4 sm:$0xff]  }
0x198c   : > { %v13163_v44 = vadd.f32 %v8052_v50, %v17704_v47  ;;  %v13148_v45 = vadd.f32 %v7908_v9, %v17695_v15  ;;  %v8054_v19 = vpop.f32.mrb[134].mxu1  ;;  %v7910_v51 = vpop.f32.mrb[79].mxu0  ;;  %11053 = vmatmul.mubr.bf16.vlgmr.msra.gmra.mrb[192].mxu1 %v17714_v46  ;;  %v8399_v40 = vmax.f32 %v13146_v3, 0.0  ;;  %v14661_v50 = vld [vmem:[#allocation19 + $0x4b8] ss:$12 sps:$4 sm:$0xff]  }
0x198d   : > { %v13164_v8 = vadd.f32 %v8054_v19, %v17698_v21  ;;  %10556 = vmatpush1.bf16.msra.mxu0 %v14647_v16  ;;  %v13149_v12 = vadd.f32 %v7910_v51, %v17701_v13  ;;  %v8056_v35 = vpop.f32.mrb[135].mxu1  ;;  %12703 = vmatpush3.bf16.msra.mxu1 %v14651_v25  ;;  %v8401_v55 = vmax.f32 %v13162_v30, 0.0  ;;  %v8400_v18 = vmax.f32 %v13147_v41, 0.0  ;;  %v14664_v9 = vld [vmem:[#allocation19 + $0x334] ss:$12 sps:$4 sm:$0xff]  }
0x198e   : > { %v8411_v5 = vmax.f32 %v13148_v45, 0.0  ;;  %v13165_v34 = vadd.f32 %v8056_v35, %v17704_v47  ;;  %10598 = vmatprep.subr.bf16.mxu0 %v14654_v29  ;;  %12704 = vmatprep.subr.bf16.mxu1 %v14655_v27  ;;  %v8402_v54 = vmax.f32 %v13163_v44, 0.0 }
0x198f   : > { %v8413_v36 = vmax.f32 %v13164_v8, 0.0  ;;  %v8412_v31 = vmax.f32 %v13149_v12, 0.0 }
0x1990   : > { %v17732_v10 = vpack.c.bf16 %v8411_v5, %v8399_v40  ;;  %v8414_v16 = vmax.f32 %v13165_v34, 0.0  ;;  %10558 = vmatmul.mubr.bf16.vlgmr.msra.gmra.mrb[104].mxu0 %v17614_v33  ;;  %v14662_v34 = vld [vmem:[#allocation19 + $0x330] ss:$12 sps:$4 sm:$0xff]  }
0x1991   : > { %v17735_v25 = vpack.c.bf16 %v8413_v36, %v8401_v55  ;;  %v17737_v3 = vpack.c.bf16 %v8412_v31, %v8400_v18  ;;  %10567 = vmatprep.mubr.bf16.mxu0 %v17634_v48  ;;  %10599 = vmatpush1.bf16.msra.mxu0 %v14652_v22  ;;  %v7914_v61 = vpop.f32.mrb[80].mxu0  ;;  %v14665_v48 = vld [vmem:[#allocation19 + $0x590] ss:$12 sps:$4 sm:$0xff]   ;;  %v14669_v36 = vld [vmem:[#allocation19 + $0x34c] ss:$12 sps:$4 sm:$0xff]  }
0x1992   : > { %v17740_v29 = vpack.c.bf16 %v8414_v16, %v8402_v54  ;;  %v13150_v27 = vadd.f32 %v7914_v61, %v17695_v15  ;;  %v8060_v30 = vpop.f32.mrb[136].mxu1  ;;  %12705 = vmatpush3.bf16.msra.mxu1 %v14656_v6  ;;  %v7916_v41 = vpop.f32.mrb[81].mxu0  ;;  %10600 = vmatprep.subr.bf16.mxu0 %v14659_v43  ;;  %v14666_v18 = vld [vmem:[#allocation19 + $0x4d0] ss:$12 sps:$4 sm:$0xff]   ;;  %v14670_v61 = vld [vmem:[#allocation19 + $0x5a8] ss:$12 sps:$4 sm:$0xff]  }
0x1993   : > { %v13166_v33 = vadd.f32 %v8060_v30, %v17698_v21  ;;  %v13151_v44 = vadd.f32 %v7916_v41, %v17701_v13  ;;  %v8062_v45 = vpop.f32.mrb[137].mxu1  ;;  %v7918_v19 = vpop.f32.mrb[82].mxu0  ;;  %11060 = vmatprep.mubr.bf16.mxu1 %v17737_v3  ;;  %12706 = vmatprep.subr.bf16.mxu1 %v14660_v59 }
0x1994   : > { %v13167_v51 = vadd.f32 %v8062_v45, %v17704_v47  ;;  %v13152_v8 = vadd.f32 %v7918_v19, %v17695_v15  ;;  %v8064_v12 = vpop.f32.mrb[138].mxu1  ;;  %v7920_v35 = vpop.f32.mrb[83].mxu0  ;;  %11061 = vmatmul.mubr.bf16.gmra.mrb[196].mxu1 %v17732_v10  ;;  %v8423_v6 = vmax.f32 %v13150_v27, 0.0 }
0x1995   : > { %v13168_v22 = vadd.f32 %v8064_v12, %v17698_v21  ;;  %10601 = vmatpush1.bf16.msra.mxu0 %v14657_v23  ;;  %v13153_v40 = vadd.f32 %v7920_v35, %v17701_v13  ;;  %v8066_v5 = vpop.f32.mrb[139].mxu1  ;;  %v8425_v31 = vmax.f32 %v13166_v33, 0.0  ;;  %v8424_v59 = vmax.f32 %v13151_v44, 0.0 }
0x1996   : > { %v8435_v43 = vmax.f32 %v13152_v8, 0.0  ;;  %v13169_v55 = vadd.f32 %v8066_v5, %v17704_v47  ;;  %12707 = vmatpush3.bf16.msra.mxu1 %v14661_v50  ;;  %10602 = vmatprep.subr.bf16.mxu0 %v14664_v9  ;;  %v8426_v30 = vmax.f32 %v13167_v51, 0.0  ;;  %v14667_v9 = vld [vmem:[#allocation19 + $0x348] ss:$12 sps:$4 sm:$0xff]   ;;  %v14674_v8 = vld [vmem:[#allocation19 + $0x364] ss:$12 sps:$4 sm:$0xff]  }
0x1997   : > { %v8437_v54 = vmax.f32 %v13168_v22, 0.0  ;;  %v8436_v16 = vmax.f32 %v13153_v40, 0.0  ;;  %12708 = vmatprep.subr.bf16.mxu1 %v14665_v48  ;;  %v14671_v51 = vld [vmem:[#allocation19 + $0x4e8] ss:$12 sps:$4 sm:$0xff]  }
0x1998   : > { %v17752_v23 = vpack.c.bf16 %v8435_v43, %v8423_v6  ;;  %v8438_v41 = vmax.f32 %v13169_v55, 0.0  ;;  %10568 = vmatmul.mubr.bf16.gmra.mrb[108].mxu0 %v17629_v24 }
0x1999   : > { %v17755_v27 = vpack.c.bf16 %v8437_v54, %v8425_v31  ;;  %v17757_v45 = vpack.c.bf16 %v8436_v16, %v8424_v59  ;;  %10577 = vmatprep.mubr.bf16.mxu0 %v17652_v20  ;;  %10603 = vmatpush1.bf16.msra.mxu0 %v14662_v34  ;;  %v7924_v50 = vpop.f32.mrb[84].mxu0  ;;  %v14675_v20 = vld [vmem:[#allocation19 + $0x5c0] ss:$12 sps:$4 sm:$0xff]  }
0x199a   : > { %v17760_v33 = vpack.c.bf16 %v8438_v41, %v8426_v30  ;;  %v13154_v44 = vadd.f32 %v7924_v50, %v17695_v15  ;;  %v8070_v19 = vpop.f32.mrb[140].mxu1  ;;  %12709 = vmatpush3.bf16.msra.mxu1 %v14666_v18  ;;  %v7926_v48 = vpop.f32.mrb[85].mxu0  ;;  %10604 = vmatprep.subr.bf16.mxu0 %v14669_v36  ;;  %v14672_v36 = vld [vmem:[#allocation19 + $0x360] ss:$12 sps:$4 sm:$0xff]  }
0x199b   : > { %v13170_v24 = vadd.f32 %v8070_v19, %v17698_v21  ;;  %v13155_v12 = vadd.f32 %v7926_v48, %v17701_v13  ;;  %v8072_v35 = vpop.f32.mrb[141].mxu1  ;;  %v7928_v22 = vpop.f32.mrb[86].mxu0  ;;  %11068 = vmatprep.mubr.bf16.mxu1 %v17757_v45  ;;  %12710 = vmatprep.subr.bf16.mxu1 %v14670_v61  ;;  %v14676_v16 = vld [vmem:[#allocation19 + $0x500] ss:$12 sps:$4 sm:$0xff]   ;;  %v14679_v61 = vld [vmem:[#allocation19 + $0x37c] ss:$12 sps:$4 sm:$0xff]  }
0x199c   : > { %v13171_v40 = vadd.f32 %v8072_v35, %v17704_v47  ;;  %v13156_v5 = vadd.f32 %v7928_v22, %v17695_v15  ;;  %v8074_v34 = vpop.f32.mrb[142].mxu1  ;;  %v7930_v6 = vpop.f32.mrb[87].mxu0  ;;  %11069 = vmatmul.mubr.bf16.gmra.mrb[200].mxu1 %v17752_v23  ;;  %v8447_v31 = vmax.f32 %v13154_v44, 0.0  ;;  %v14680_v19 = vld [vmem:[#allocation19 + $0x5d8] ss:$12 sps:$4 sm:$0xff]  }
0x199d   : > { %v13172_v43 = vadd.f32 %v8074_v34, %v17698_v21  ;;  %10605 = vmatpush1.bf16.msra.mxu0 %v14667_v9  ;;  %v13157_v55 = vadd.f32 %v7930_v6, %v17701_v13  ;;  %v8076_v18 = vpop.f32.mrb[143].mxu1  ;;  %v8449_v15 = vmax.f32 %v13170_v24, 0.0  ;;  %v8448_v30 = vmax.f32 %v13155_v12, 0.0  ;;  %v14684_v24 = vld [vmem:[#allocation19 + $0x394] ss:$12 sps:$4 sm:$0xff]  }
0x199e   : > { %v8459_v59 = vmax.f32 %v13156_v5, 0.0  ;;  %v13173_v54 = vadd.f32 %v8076_v18, %v17704_v47  ;;  %12711 = vmatpush3.bf16.msra.mxu1 %v14671_v51  ;;  %10606 = vmatprep.subr.bf16.mxu0 %v14674_v8  ;;  %v8450_v21 = vmax.f32 %v13171_v40, 0.0  ;;  %v14677_v47 = vld [vmem:[#allocation19 + $0x378] ss:$12 sps:$4 sm:$0xff]   ;;  %v14685_v12 = vld [vmem:[#allocation19 + $0x5f0] ss:$12 sps:$4 sm:$0xff]  }
0x199f   : > { %v8461_v41 = vmax.f32 %v13172_v43, 0.0  ;;  %v8460_v50 = vmax.f32 %v13157_v55, 0.0  ;;  %12712 = vmatprep.subr.bf16.mxu1 %v14675_v20  ;;  %v14681_v8 = vld [vmem:[#allocation19 + $0x518] ss:$12 sps:$4 sm:$0xff]   ;;  %v14714_v22 = vld [vmem:[#allocation19 + $0x6c8] ss:$12 sps:$4 sm:$0xff]  }
0x19a0   : > { %v17772_v9 = vpack.c.bf16 %v8459_v59, %v8447_v31  ;;  %v8462_v13 = vmax.f32 %v13173_v54, 0.0  ;;  %10578 = vmatmul.mubr.bf16.gmra.mrb[112].mxu0 %v17647_v4  ;;  %v14682_v4 = vld [vmem:[#allocation19 + $0x390] ss:$12 sps:$4 sm:$0xff]   ;;  %v14689_v35 = vld [vmem:[#allocation19 + $0x3ac] ss:$12 sps:$4 sm:$0xff]  }
0x19a1   : > { %v17775_v44 = vpack.c.bf16 %v8461_v41, %v8449_v15  ;;  %v17777_v48 = vpack.c.bf16 %v8460_v50, %v8448_v30  ;;  %10587 = vmatprep.mubr.bf16.mxu0 %v17670_v7  ;;  %10607 = vmatpush1.bf16.msra.mxu0 %v14672_v36  ;;  %v14686_v7 = vld [vmem:[#allocation19 + $0x530] ss:$12 sps:$4 sm:$0xff]   ;;  %v14687_v20 = vld [vmem:[#allocation19 + $0x3a8] ss:$12 sps:$4 sm:$0xff]   ;;  %v14719_v34 = vld [vmem:[#allocation19 + $0x6e0] ss:$12 sps:$4 sm:$0xff]  }
0x19a2   : > { %v17780_v51 = vpack.c.bf16 %v8462_v13, %v8450_v21  ;;  %12713 = vmatpush3.bf16.msra.mxu1 %v14676_v16  ;;  %10608 = vmatprep.subr.bf16.mxu0 %v14679_v61  ;;  %v14692_v40 = vld [vmem:[#allocation19 + $0x3c4] ss:$12 sps:$4 sm:$0xff]   ;;  %v14715_v5 = vld [vmem:[#allocation19 + $0x608] ss:$12 sps:$4 sm:$0xff]   ;;  %v14690_v6 = vld [vmem:[#allocation19 + $0x3c0] ss:$12 sps:$4 sm:$0xff]  }
0x19a3   : > { %11076 = vmatprep.mubr.bf16.mxu1 %v17777_v48  ;;  %12714 = vmatprep.subr.bf16.mxu1 %v14680_v19  ;;  %v14695_v43 = vld [vmem:[#allocation19 + $0x3dc] ss:$12 sps:$4 sm:$0xff]   ;;  %v14724_v55 = vld [vmem:[#allocation19 + $0x6f8] ss:$12 sps:$4 sm:$0xff]   ;;  %v14698_v18 = vld [vmem:[#allocation19 + $0x3f4] ss:$12 sps:$4 sm:$0xff]  }
0x19a4   : > { %11077 = vmatmul.mubr.bf16.gmra.mrb[204].mxu1 %v17772_v9  ;;  %v14725_v36 = vld [vmem:[#allocation19 + $0x638] ss:$12 sps:$4 sm:$0xff]   ;;  %v14729_v31 = vld [vmem:[#allocation19 + $0x710] ss:$12 sps:$4 sm:$0xff]   ;;  %v14734_v61 = vld [vmem:[#allocation19 + $0x728] ss:$12 sps:$4 sm:$0xff]  }
0x19a5   : > { %10609 = vmatpush1.bf16.msra.mxu0 %v14677_v47  ;;  %11117 = vmatprep.mubr.bf16.mxu1 %v17720_v52  ;;  %v14696_v59 = vld [vmem:[#allocation19 + $0x3f0] ss:$12 sps:$4 sm:$0xff]   ;;  %v14701_v54 = vld [vmem:[#allocation19 + $0x40c] ss:$12 sps:$4 sm:$0xff]   ;;  %v14699_v15 = vld [vmem:[#allocation19 + $0x408] ss:$12 sps:$4 sm:$0xff]  }
0x19a6   : > { %12715 = vmatpush3.bf16.msra.mxu1 %v14681_v8  ;;  %10610 = vmatprep.subr.bf16.mxu0 %v14684_v24  ;;  %v14730_v16 = vld [vmem:[#allocation19 + $0x650] ss:$12 sps:$4 sm:$0xff]   ;;  %v14735_v41 = vld [vmem:[#allocation19 + $0x668] ss:$12 sps:$4 sm:$0xff]   ;;  %v14739_v50 = vld [vmem:[#allocation19 + $0x740] ss:$12 sps:$4 sm:$0xff]  }
0x19a7   : > { %12716 = vmatprep.subr.bf16.mxu1 %v14685_v12  ;;  %v14704_v30 = vld [vmem:[#allocation19 + $0x424] ss:$12 sps:$4 sm:$0xff]   ;;  %v14702_v19 = vld [vmem:[#allocation19 + $0x420] ss:$12 sps:$4 sm:$0xff]   ;;  %v14707_v21 = vld [vmem:[#allocation19 + $0x43c] ss:$12 sps:$4 sm:$0xff]  }
0x19a8   : > { %10588 = vmatmul.mubr.bf16.gmra.mrb[116].mxu0 %v17665_v14  ;;  %v14720_v14 = vld [vmem:[#allocation19 + $0x620] ss:$12 sps:$4 sm:$0xff]   ;;  %v14744_v47 = vld [vmem:[#allocation19 + $0x758] ss:$12 sps:$4 sm:$0xff]  }
0x19a9   : > { %10611 = vmatpush1.bf16.msra.mxu0 %v14682_v4  ;;  %10630 = vmatprep.mubr.bf16.mxu0 %v17718_v53  ;;  %v14693_v53 = vld [vmem:[#allocation19 + $0x3d8] ss:$12 sps:$4 sm:$0xff]   ;;  %v14740_v13 = vld [vmem:[#allocation19 + $0x680] ss:$12 sps:$4 sm:$0xff]   ;;  %v14749_v4 = vld [vmem:[#allocation19 + $0x770] ss:$12 sps:$4 sm:$0xff]  }
0x19aa   : > { %12717 = vmatpush3.bf16.msra.mxu1 %v14686_v7  ;;  %10612 = vmatprep.subr.bf16.mxu0 %v14689_v35  ;;  %v14705_v8 = vld [vmem:[#allocation19 + $0x438] ss:$12 sps:$4 sm:$0xff]   ;;  %v14710_v24 = vld [vmem:[#allocation19 + $0x454] ss:$12 sps:$4 sm:$0xff]   ;;  %v14708_v7 = vld [vmem:[#allocation19 + $0x450] ss:$12 sps:$4 sm:$0xff]  }
0x19ab   : > { %12742 = vmatprep.subr.bf16.mxu1 %v14714_v22  ;;  %v14745_v12 = vld [vmem:[#allocation19 + $0x698] ss:$12 sps:$4 sm:$0xff]   ;;  %v14750_v22 = vld [vmem:[#allocation19 + $0x6b0] ss:$12 sps:$4 sm:$0xff]  }
0x19ac   : > { %v14713_v35 = vld [vmem:[#allocation19 + $0x46c] ss:$12 sps:$4 sm:$0xff]  }
0x19ad   : > { %10613 = vmatpush1.bf16.msra.mxu0 %v14687_v20  ;;  %11118 = vmatmul.mubr.bf16.vlgmr.msra.gmra.mrb[208].mxu1 %v17716_v37  ;;  %v14754_v20 = vld [vmem:[#allocation19 + $0x848] ss:$12 sps:$4 sm:$0xff]  }
0x19ae   : > { %11125 = vmatprep.mubr.bf16.mxu1 %v17740_v29  ;;  %10614 = vmatprep.subr.bf16.mxu0 %v14692_v40  ;;  %v14711_v40 = vld [vmem:[#allocation19 + $0x468] ss:$12 sps:$4 sm:$0xff]  }
0x19af   : > { %12743 = vmatpush3.bf16.msra.mxu1 %v14715_v5  ;;  %v14718_v5 = vld [vmem:[#allocation19 + $0x484] ss:$12 sps:$4 sm:$0xff]  }
0x19b0   : > { %12744 = vmatprep.subr.bf16.mxu1 %v14719_v34  ;;  %v14716_v34 = vld [vmem:[#allocation19 + $0x480] ss:$12 sps:$4 sm:$0xff]  }
0x19b1   : > { %10615 = vmatpush1.bf16.msra.mxu0 %v14690_v6  ;;  %v14723_v6 = vld [vmem:[#allocation19 + $0x49c] ss:$12 sps:$4 sm:$0xff]  }
0x19b2   : > { %10616 = vmatprep.subr.bf16.mxu0 %v14695_v43  ;;  %v14721_v43 = vld [vmem:[#allocation19 + $0x498] ss:$12 sps:$4 sm:$0xff]  }
0x19b3   : > { %12745 = vmatpush3.bf16.msra.mxu1 %v14720_v14  ;;  %v14728_v14 = vld [vmem:[#allocation19 + $0x4b4] ss:$12 sps:$4 sm:$0xff]  }
0x19b4   : > { %12746 = vmatprep.subr.bf16.mxu1 %v14724_v55  ;;  %v14726_v55 = vld [vmem:[#allocation19 + $0x4b0] ss:$12 sps:$4 sm:$0xff]  }
0x19b5   : > { %10617 = vmatpush1.bf16.msra.mxu0 %v14693_v53  ;;  %11126 = vmatmul.mubr.bf16.gmra.mrb[212].mxu1 %v17735_v25  ;;  %v14733_v53 = vld [vmem:[#allocation19 + $0x4cc] ss:$12 sps:$4 sm:$0xff]  }
0x19b6   : > { %11133 = vmatprep.mubr.bf16.mxu1 %v17760_v33  ;;  %10618 = vmatprep.subr.bf16.mxu0 %v14698_v18  ;;  %v14731_v18 = vld [vmem:[#allocation19 + $0x4c8] ss:$12 sps:$4 sm:$0xff]  }
0x19b7   : > { %12747 = vmatpush3.bf16.msra.mxu1 %v14725_v36  ;;  %v14738_v36 = vld [vmem:[#allocation19 + $0x4e4] ss:$12 sps:$4 sm:$0xff]  }
0x19b8   : > { %12748 = vmatprep.subr.bf16.mxu1 %v14729_v31  ;;  %v5992_v31 = vld [vmem:[#allocation17 + $0x8] sm:$0xf] }
0x19b9   : > { %10619 = vmatpush1.bf16.msra.mxu0 %v14696_v59  ;;  %v17799_v59 = vrot.slane %v5992_v31, %v16221_v1 }
0x19ba   : > { %10620 = vmatprep.subr.bf16.mxu0 %v14701_v54  ;;  %v17803_v54 = vrot.slane %v5992_v31, %v16345_v56 }
0x19bb   : > { %12749 = vmatpush3.bf16.msra.mxu1 %v14730_v16  ;;  %v14741_v16 = vld [vmem:[#allocation19 + $0x4f8] ss:$12 sps:$4 sm:$0xff]  }
0x19bc   : > { %12750 = vmatprep.subr.bf16.mxu1 %v14734_v61 }
0x19bd   : > { %10621 = vmatpush1.bf16.msra.mxu0 %v14699_v15  ;;  %11134 = vmatmul.mubr.bf16.gmra.mrb[216].mxu1 %v17755_v27  ;;  %v14748_v15 = vld [vmem:[#allocation19 + $0x514] ss:$12 sps:$4 sm:$0xff]  }
0x19be   : > { %11141 = vmatprep.mubr.bf16.mxu1 %v17780_v51  ;;  %10622 = vmatprep.subr.bf16.mxu0 %v14704_v30 }
0x19bf   : > { %12751 = vmatpush3.bf16.msra.mxu1 %v14735_v41 }
0x19c0   : > { %12752 = vmatprep.subr.bf16.mxu1 %v14739_v50 }
0x19c1   : > { %10623 = vmatpush1.bf16.msra.mxu0 %v14702_v19 }
0x19c2   : > { %10624 = vmatprep.subr.bf16.mxu0 %v14707_v21 }
0x19c3   : > { %12753 = vmatpush3.bf16.msra.mxu1 %v14740_v13 }
0x19c4   : > { %12754 = vmatprep.subr.bf16.mxu1 %v14744_v47 }
0x19c5   : > { %10625 = vmatpush1.bf16.msra.mxu0 %v14705_v8  ;;  %11142 = vmatmul.mubr.bf16.gmra.mrb[220].mxu1 %v17775_v44  ;;  %v14746_v8 = vld [vmem:[#allocation19 + $0x510] ss:$12 sps:$4 sm:$0xff]  }
0x19c6   : > { %10626 = vmatprep.subr.bf16.mxu0 %v14710_v24 }
0x19c7   : > { %12755 = vmatpush3.bf16.msra.mxu1 %v14745_v12 }
0x19c8   : > { %12756 = vmatprep.subr.bf16.mxu1 %v14749_v4 }
0x19c9   : > { %10627 = vmatpush1.bf16.msra.mxu0 %v14708_v7  ;;  %v14753_v7 = vld [vmem:[#allocation19 + $0x52c] ss:$12 sps:$4 sm:$0xff]  }
0x19ca   : > { %10628 = vmatprep.subr.bf16.mxu0 %v14713_v35 }
0x19cb   : > { %12757 = vmatpush3.bf16.msra.mxu1 %v14750_v22 }
0x19cc   : > { %12782 = vmatprep.subr.bf16.mxu1 %v14754_v20 }
0x19cd   : > { %10629 = vmatpush1.bf16.msra.mxu0 %v14711_v40 }
0x19ce   : > { %10671 = vmatprep.subr.bf16.mxu0 %v14718_v5 }
0x19d0   : > { %10631 = vmatmul.mubr.bf16.vlgmr.msra.gmra.mrb[104].mxu0 %v17714_v46  ;;  %v14736_v46 = vld [vmem:[#allocation19 + $0x4e0] ss:$12 sps:$4 sm:$0xff]  }
0x19d1   : > { %10640 = vmatprep.mubr.bf16.mxu0 %v17737_v3  ;;  %10672 = vmatpush1.bf16.msra.mxu0 %v14716_v34  ;;  %v14743_v3 = vld [vmem:[#allocation19 + $0x4fc] ss:$12 sps:$4 sm:$0xff]  }
0x19d2   : > { %10673 = vmatprep.subr.bf16.mxu0 %v14723_v6 }
0x19d5   : > { %10674 = vmatpush1.bf16.msra.mxu0 %v14721_v43 }
0x19d6   : > { %10675 = vmatprep.subr.bf16.mxu0 %v14728_v14 }
0x19d8   : > { %10641 = vmatmul.mubr.bf16.gmra.mrb[108].mxu0 %v17732_v10  ;;  %v17806_v10 = vrot.slane %v5992_v31, %v16218_v63 }
0x19d9   : > { %10650 = vmatprep.mubr.bf16.mxu0 %v17757_v45  ;;  %10676 = vmatpush1.bf16.msra.mxu0 %v14726_v55  ;;  %v17811_v45 = vrot.slane %v5992_v31, %v6009_v58 }
0x19da   : > { %10677 = vmatprep.subr.bf16.mxu0 %v14733_v53  ;;  %v14751_v53 = vld [vmem:[#allocation19 + $0x528] ss:$12 sps:$4 sm:$0xff]  }
0x19dd   : > { %10678 = vmatpush1.bf16.msra.mxu0 %v14731_v18 }
0x19de   : > { %10679 = vmatprep.subr.bf16.mxu0 %v14738_v36 }
0x19e0   : > { %10651 = vmatmul.mubr.bf16.gmra.mrb[112].mxu0 %v17752_v23 }
0x19e1   : > { %10660 = vmatprep.mubr.bf16.mxu0 %v17777_v48  ;;  %10680 = vmatpush1.bf16.msra.mxu0 %v14736_v46  ;;  %v14755_v46 = vld [vmem:[#allocation19 + $0x788] ss:$12 sps:$4 sm:$0xff]  }
0x19e2   : > { %v8186_v61 = vpop.f32.mrb[88].mxu0  ;;  %10681 = vmatprep.subr.bf16.mxu0 %v14743_v3  ;;  %v14758_v3 = vld [vmem:[#allocation19 + $0x544] ss:$12 sps:$4 sm:$0xff]  }
0x19e3   : > { %v13174_v30 = vadd.f32 %v8186_v61, %v17799_v59  ;;  %v8332_v23 = vpop.f32.mrb[144].mxu1  ;;  %v8188_v41 = vpop.f32.mrb[89].mxu0 }
0x19e4   : > { %v13190_v50 = vadd.f32 %v8332_v23, %v17803_v54  ;;  %v13175_v19 = vadd.f32 %v8188_v41, %v17806_v10  ;;  %v8334_v21 = vpop.f32.mrb[145].mxu1  ;;  %v8190_v13 = vpop.f32.mrb[90].mxu0 }
0x19e5   : > { %v13191_v48 = vadd.f32 %v8334_v21, %v17811_v45  ;;  %v13176_v57 = vadd.f32 %v8190_v13, %v17799_v59  ;;  %v8336_v58 = vpop.f32.mrb[146].mxu1  ;;  %10682 = vmatpush1.bf16.msra.mxu0 %v14741_v16  ;;  %v8192_v47 = vpop.f32.mrb[91].mxu0  ;;  %v8379_v35 = vmax.f32 %v13174_v30, 0.0  ;;  %v14759_v30 = vld [vmem:[#allocation19 + $0x860] ss:$12 sps:$4 sm:$0xff]  }
0x19e6   : > { %v13192_v24 = vadd.f32 %v8336_v58, %v17803_v54  ;;  %v13177_v12 = vadd.f32 %v8192_v47, %v17806_v10  ;;  %v8338_v4 = vpop.f32.mrb[147].mxu1  ;;  %10683 = vmatprep.subr.bf16.mxu0 %v14748_v15  ;;  %v8381_v40 = vmax.f32 %v13190_v50, 0.0  ;;  %v8380_v5 = vmax.f32 %v13175_v19, 0.0 }
0x19e7   : > { %v8391_v22 = vmax.f32 %v13176_v57, 0.0  ;;  %v13193_v20 = vadd.f32 %v8338_v4, %v17811_v45  ;;  %v8382_v43 = vmax.f32 %v13191_v48, 0.0  ;;  %v14756_v57 = vld [vmem:[#allocation19 + $0x540] ss:$12 sps:$4 sm:$0xff]  }
0x19e8   : > { %v8393_v34 = vmax.f32 %v13192_v24, 0.0  ;;  %v8392_v6 = vmax.f32 %v13177_v12, 0.0  ;;  %10661 = vmatmul.mubr.bf16.gmra.mrb[116].mxu0 %v17772_v9  ;;  %v14760_v24 = vld [vmem:[#allocation19 + $0x7a0] ss:$12 sps:$4 sm:$0xff]   ;;  %v14763_v12 = vld [vmem:[#allocation19 + $0x55c] ss:$12 sps:$4 sm:$0xff]  }
0x19e9   : > { %v17822_v14 = vpack.c.bf16 %v8391_v22, %v8379_v35  ;;  %v8394_v55 = vmax.f32 %v13193_v20, 0.0  ;;  %10684 = vmatpush1.bf16.msra.mxu0 %v14746_v8  ;;  %10703 = vmatprep.mubr.bf16.mxu0 %v17720_v52  ;;  %v14764_v22 = vld [vmem:[#allocation19 + $0x878] ss:$12 sps:$4 sm:$0xff]  }
0x19ea   : > { %v17825_v18 = vpack.c.bf16 %v8393_v34, %v8381_v40  ;;  %v17827_v36 = vpack.c.bf16 %v8392_v6, %v8380_v5  ;;  %v8196_v31 = vpop.f32.mrb[92].mxu0  ;;  %10685 = vmatprep.subr.bf16.mxu0 %v14753_v7 }
0x19eb   : > { %v17829_v16 = vpack.c.bf16 %v8394_v55, %v8382_v43  ;;  %v13178_v9 = vadd.f32 %v8196_v31, %v17799_v59  ;;  %v8342_v61 = vpop.f32.mrb[148].mxu1  ;;  %v8198_v15 = vpop.f32.mrb[93].mxu0 }
0x19ec   : > { %v13194_v23 = vadd.f32 %v8342_v61, %v17803_v54  ;;  %v13179_v52 = vadd.f32 %v8198_v15, %v17806_v10  ;;  %v8344_v41 = vpop.f32.mrb[149].mxu1  ;;  %v8200_v50 = vpop.f32.mrb[94].mxu0  ;;  %11182 = vmatprep.mubr.bf16.mxu1 %v17827_v36  ;;  %v14768_v61 = vld [vmem:[#allocation19 + $0x574] ss:$12 sps:$4 sm:$0xff]  }
0x19ed   : > { %v13195_v19 = vadd.f32 %v8344_v41, %v17811_v45  ;;  %v13180_v21 = vadd.f32 %v8200_v50, %v17799_v59  ;;  %v8346_v13 = vpop.f32.mrb[150].mxu1  ;;  %10686 = vmatpush1.bf16.msra.mxu0 %v14751_v53  ;;  %v8202_v48 = vpop.f32.mrb[95].mxu0  ;;  %11183 = vmatmul.mubr.bf16.vlgmr.msra.gmra.mrb[224].mxu1 %v17822_v14  ;;  %v8403_v4 = vmax.f32 %v13178_v9, 0.0  ;;  %v14761_v53 = vld [vmem:[#allocation19 + $0x558] ss:$12 sps:$4 sm:$0xff]  }
0x19ee   : > { %v13196_v58 = vadd.f32 %v8346_v13, %v17803_v54  ;;  %v13181_v47 = vadd.f32 %v8202_v48, %v17806_v10  ;;  %v8348_v8 = vpop.f32.mrb[151].mxu1  ;;  %12783 = vmatpush3.bf16.msra.mxu1 %v14755_v46  ;;  %10687 = vmatprep.subr.bf16.mxu0 %v14758_v3  ;;  %v8405_v20 = vmax.f32 %v13194_v23, 0.0  ;;  %v8404_v40 = vmax.f32 %v13179_v52, 0.0  ;;  %v14765_v9 = vld [vmem:[#allocation19 + $0x7b8] ss:$12 sps:$4 sm:$0xff]  }
0x19ef   : > { %v8415_v7 = vmax.f32 %v13180_v21, 0.0  ;;  %v13197_v35 = vadd.f32 %v8348_v8, %v17811_v45  ;;  %12784 = vmatprep.subr.bf16.mxu1 %v14759_v30  ;;  %v8406_v6 = vmax.f32 %v13195_v19, 0.0  ;;  %v14769_v41 = vld [vmem:[#allocation19 + $0x890] ss:$12 sps:$4 sm:$0xff]  }
0x19f0   : > { %v8417_v5 = vmax.f32 %v13196_v58, 0.0  ;;  %v8416_v34 = vmax.f32 %v13181_v47, 0.0  ;;  %v14766_v8 = vld [vmem:[#allocation19 + $0x570] ss:$12 sps:$4 sm:$0xff]  }
0x19f1   : > { %v17841_v43 = vpack.c.bf16 %v8415_v7, %v8403_v4  ;;  %v8418_v55 = vmax.f32 %v13197_v35, 0.0  ;;  %10688 = vmatpush1.bf16.msra.mxu0 %v14756_v57  ;;  %v14770_v7 = vld [vmem:[#allocation19 + $0x7d0] ss:$12 sps:$4 sm:$0xff]   ;;  %v14773_v35 = vld [vmem:[#allocation19 + $0x58c] ss:$12 sps:$4 sm:$0xff]  }
0x19f2   : > { %v17843_v31 = vpack.c.bf16 %v8417_v5, %v8405_v20  ;;  %v17845_v46 = vpack.c.bf16 %v8416_v34, %v8404_v40  ;;  %v8206_v3 = vpop.f32.mrb[96].mxu0  ;;  %12785 = vmatpush3.bf16.msra.mxu1 %v14760_v24  ;;  %10689 = vmatprep.subr.bf16.mxu0 %v14763_v12  ;;  %v14774_v5 = vld [vmem:[#allocation19 + $0x8a8] ss:$12 sps:$4 sm:$0xff]  }
0x19f3   : > { %v17847_v15 = vpack.c.bf16 %v8418_v55, %v8406_v6  ;;  %v13182_v30 = vadd.f32 %v8206_v3, %v17799_v59  ;;  %v8352_v23 = vpop.f32.mrb[152].mxu1  ;;  %v8208_v52 = vpop.f32.mrb[97].mxu0  ;;  %12786 = vmatprep.subr.bf16.mxu1 %v14764_v22 }
0x19f4   : > { %v13198_v50 = vadd.f32 %v8352_v23, %v17803_v54  ;;  %v13183_v19 = vadd.f32 %v8208_v52, %v17806_v10  ;;  %v8354_v21 = vpop.f32.mrb[153].mxu1  ;;  %v8210_v13 = vpop.f32.mrb[98].mxu0  ;;  %11190 = vmatprep.mubr.bf16.mxu1 %v17845_v46 }
0x19f5   : > { %v13199_v48 = vadd.f32 %v8354_v21, %v17811_v45  ;;  %v13184_v57 = vadd.f32 %v8210_v13, %v17799_v59  ;;  %v8356_v58 = vpop.f32.mrb[154].mxu1  ;;  %10690 = vmatpush1.bf16.msra.mxu0 %v14761_v53  ;;  %v8212_v47 = vpop.f32.mrb[99].mxu0  ;;  %11191 = vmatmul.mubr.bf16.gmra.mrb[228].mxu1 %v17841_v43  ;;  %v8427_v22 = vmax.f32 %v13182_v30, 0.0  ;;  %v14771_v21 = vld [vmem:[#allocation19 + $0x588] ss:$12 sps:$4 sm:$0xff]  }
0x19f6   : > { %v13200_v24 = vadd.f32 %v8356_v58, %v17803_v54  ;;  %v13185_v12 = vadd.f32 %v8212_v47, %v17806_v10  ;;  %v8358_v4 = vpop.f32.mrb[155].mxu1  ;;  %12787 = vmatpush3.bf16.msra.mxu1 %v14765_v9  ;;  %10691 = vmatprep.subr.bf16.mxu0 %v14768_v61  ;;  %v8429_v34 = vmax.f32 %v13198_v50, 0.0  ;;  %v8428_v6 = vmax.f32 %v13183_v19, 0.0  ;;  %v14775_v13 = vld [vmem:[#allocation19 + $0x7e8] ss:$12 sps:$4 sm:$0xff]  }
0x19f7   : > { %v8439_v20 = vmax.f32 %v13184_v57, 0.0  ;;  %v13201_v40 = vadd.f32 %v8358_v4, %v17811_v45  ;;  %12788 = vmatprep.subr.bf16.mxu1 %v14769_v41  ;;  %v8430_v3 = vmax.f32 %v13199_v48, 0.0  ;;  %v14778_v41 = vld [vmem:[#allocation19 + $0x5a4] ss:$12 sps:$4 sm:$0xff]   ;;  %v14779_v58 = vld [vmem:[#allocation19 + $0x8c0] ss:$12 sps:$4 sm:$0xff]  }
0x19f8   : > { %v8441_v55 = vmax.f32 %v13200_v24, 0.0  ;;  %v8440_v53 = vmax.f32 %v13185_v12, 0.0 }
0x19f9   : > { %v17859_v23 = vpack.c.bf16 %v8439_v20, %v8427_v22  ;;  %v8442_v52 = vmax.f32 %v13201_v40, 0.0  ;;  %10692 = vmatpush1.bf16.msra.mxu0 %v14766_v8  ;;  %v14776_v20 = vld [vmem:[#allocation19 + $0x5a0] ss:$12 sps:$4 sm:$0xff]  }
0x19fa   : > { %v17861_v9 = vpack.c.bf16 %v8441_v55, %v8429_v34  ;;  %v17863_v61 = vpack.c.bf16 %v8440_v53, %v8428_v6  ;;  %v8216_v30 = vpop.f32.mrb[100].mxu0  ;;  %12789 = vmatpush3.bf16.msra.mxu1 %v14770_v7  ;;  %10693 = vmatprep.subr.bf16.mxu0 %v14773_v35  ;;  %v14780_v6 = vld [vmem:[#allocation19 + $0x800] ss:$12 sps:$4 sm:$0xff]   ;;  %v14783_v55 = vld [vmem:[#allocation19 + $0x5bc] ss:$12 sps:$4 sm:$0xff]  }
0x19fb   : > { %v17865_v57 = vpack.c.bf16 %v8442_v52, %v8430_v3  ;;  %v13186_v50 = vadd.f32 %v8216_v30, %v17799_v59  ;;  %v8362_v19 = vpop.f32.mrb[156].mxu1  ;;  %v8218_v48 = vpop.f32.mrb[101].mxu0  ;;  %12790 = vmatprep.subr.bf16.mxu1 %v14774_v5 }
0x19fc   : > { %v13202_v47 = vadd.f32 %v8362_v19, %v17803_v54  ;;  %v13187_v8 = vadd.f32 %v8218_v48, %v17806_v10  ;;  %v8364_v24 = vpop.f32.mrb[157].mxu1  ;;  %v8220_v12 = vpop.f32.mrb[102].mxu0  ;;  %11198 = vmatprep.mubr.bf16.mxu1 %v17863_v61 }
0x19fd   : > { %v13203_v4 = vadd.f32 %v8364_v24, %v17811_v45  ;;  %v13188_v7 = vadd.f32 %v8220_v12, %v17799_v59  ;;  %v8366_v35 = vpop.f32.mrb[158].mxu1  ;;  %10694 = vmatpush1.bf16.msra.mxu0 %v14771_v21  ;;  %v8222_v22 = vpop.f32.mrb[103].mxu0  ;;  %11199 = vmatmul.mubr.bf16.gmra.mrb[232].mxu1 %v17859_v23  ;;  %v8451_v53 = vmax.f32 %v13186_v50, 0.0  ;;  %v14784_v59 = vld [vmem:[#allocation19 + $0x8d8] ss:$12 sps:$4 sm:$0xff]  }
0x19fe   : > { %v13204_v40 = vadd.f32 %v8366_v35, %v17803_v54  ;;  %v13189_v5 = vadd.f32 %v8222_v22, %v17806_v10  ;;  %v8368_v34 = vpop.f32.mrb[159].mxu1  ;;  %12791 = vmatpush3.bf16.msra.mxu1 %v14775_v13  ;;  %10695 = vmatprep.subr.bf16.mxu0 %v14778_v41  ;;  %v8453_v21 = vmax.f32 %v13202_v47, 0.0  ;;  %v8452_v30 = vmax.f32 %v13187_v8, 0.0  ;;  %v14781_v10 = vld [vmem:[#allocation19 + $0x5b8] ss:$12 sps:$4 sm:$0xff]  }
0x19ff   : > { %v8463_v3 = vmax.f32 %v13188_v7, 0.0  ;;  %v13205_v52 = vadd.f32 %v8368_v34, %v17811_v45  ;;  %12792 = vmatprep.subr.bf16.mxu1 %v14779_v58  ;;  %v8454_v24 = vmax.f32 %v13203_v4, 0.0  ;;  %v14785_v50 = vld [vmem:[#allocation19 + $0x818] ss:$12 sps:$4 sm:$0xff]   ;;  %v14788_v47 = vld [vmem:[#allocation19 + $0x5d4] ss:$12 sps:$4 sm:$0xff]  }
0x1a00   : > { %v8465_v19 = vmax.f32 %v13204_v40, 0.0  ;;  %v8464_v48 = vmax.f32 %v13189_v5, 0.0  ;;  %v14789_v8 = vld [vmem:[#allocation19 + $0x8f0] ss:$12 sps:$4 sm:$0xff]   ;;  %v14793_v5 = vld [vmem:[#allocation19 + $0x5ec] ss:$12 sps:$4 sm:$0xff]  }
0x1a01   : > { %v17877_v12 = vpack.c.bf16 %v8463_v3, %v8451_v53  ;;  %v8466_v54 = vmax.f32 %v13205_v52, 0.0  ;;  %10696 = vmatpush1.bf16.msra.mxu0 %v14776_v20  ;;  %v14786_v22 = vld [vmem:[#allocation19 + $0x5d0] ss:$12 sps:$4 sm:$0xff]  }
0x1a02   : > { %v17879_v13 = vpack.c.bf16 %v8465_v19, %v8453_v21  ;;  %v17881_v41 = vpack.c.bf16 %v8464_v48, %v8452_v30  ;;  %12793 = vmatpush3.bf16.msra.mxu1 %v14780_v6  ;;  %10697 = vmatprep.subr.bf16.mxu0 %v14783_v55  ;;  %v14790_v40 = vld [vmem:[#allocation19 + $0x830] ss:$12 sps:$4 sm:$0xff]   ;;  %v14791_v6 = vld [vmem:[#allocation19 + $0x5e8] ss:$12 sps:$4 sm:$0xff]   ;;  %v14794_v21 = vld [vmem:[#allocation19 + $0x600] ss:$12 sps:$4 sm:$0xff]  }
0x1a03   : > { %v17883_v45 = vpack.c.bf16 %v8466_v54, %v8454_v24  ;;  %v12598_v58 = vpop.f32.mrb[160].mxu1  ;;  %12794 = vmatprep.subr.bf16.mxu1 %v14784_v59  ;;  %v14796_v55 = vld [vmem:[#allocation19 + $0x604] ss:$12 sps:$4 sm:$0xff]   ;;  %v14799_v19 = vld [vmem:[#allocation19 + $0x61c] ss:$12 sps:$4 sm:$0xff]  }
0x1a04   : > { %v12599_v7 = vpop.f32.mrb[161].mxu1  ;;  %11206 = vmatprep.mubr.bf16.mxu1 %v17881_v41  ;;  %v14797_v24 = vld [vmem:[#allocation19 + $0x618] ss:$12 sps:$4 sm:$0xff]   ;;  %v14802_v54 = vld [vmem:[#allocation19 + $0x634] ss:$12 sps:$4 sm:$0xff]  }
0x1a05   : > { %v17886_v4 = vadd.f32 %v12599_v7, %v12598_v58  ;;  %10698 = vmatpush1.bf16.msra.mxu0 %v14781_v10  ;;  %v12601_v35 = vpop.f32.mrb[162].mxu1  ;;  %11207 = vmatmul.mubr.bf16.gmra.mrb[236].mxu1 %v17877_v12 }
0x1a06   : > { %v12602_v20 = vpop.f32.mrb[163].mxu1  ;;  %12795 = vmatpush3.bf16.msra.mxu1 %v14785_v50  ;;  %11247 = vmatprep.mubr.bf16.mxu1 %v17829_v16 }
0x1a07   : > { %v17890_v34 = vadd.f32 %v12602_v20, %v12601_v35  ;;  %10699 = vmatprep.subr.bf16.mxu0 %v14788_v47  ;;  %12796 = vmatprep.subr.bf16.mxu1 %v14789_v8  ;;  %v14800_v8 = vld [vmem:[#allocation19 + $0x630] ss:$12 sps:$4 sm:$0xff]  }
0x1a09   : > { %10700 = vmatpush1.bf16.msra.mxu0 %v14786_v22  ;;  %v14808_v22 = vld [vmem:[#allocation19 + $0x664] ss:$12 sps:$4 sm:$0xff]  }
0x1a0a   : > { %12797 = vmatpush3.bf16.msra.mxu1 %v14790_v40  ;;  %10701 = vmatprep.subr.bf16.mxu0 %v14793_v5 }
0x1a0b   : > { %v12604_v53 = vpop.f32.mrb[164].mxu1 }
0x1a0c   : > { %v12605_v3 = vpop.f32.mrb[165].mxu1 }
0x1a0d   : > { %v17892_v52 = vadd.f32 %v12605_v3, %v12604_v53  ;;  %10702 = vmatpush1.bf16.msra.mxu0 %v14791_v6  ;;  %v12607_v59 = vpop.f32.mrb[166].mxu1  ;;  %11248 = vmatmul.mubr.bf16.vlgmr.msra.gmra.mrb[240].mxu1 %v17825_v18  ;;  %v17911_v53 = vld [vmem:[#allocation20] sm:$0x7] }
0x1a0e   : > { %v12608_v30 = vpop.f32.mrb[167].mxu1  ;;  %11255 = vmatprep.mubr.bf16.mxu1 %v17847_v15  ;;  %10744 = vmatprep.subr.bf16.mxu0 %v14796_v55  ;;  %v14806_v55 = vld [vmem:[#allocation19 + $0x660] ss:$12 sps:$4 sm:$0xff]  }
0x1a0f   : > { %v17896_v48 = vadd.f32 %v12608_v30, %v12607_v59  ;;  %v17919_v59 = vrot.slane %v17911_v53, %v16345_v56  ;;  %v14814_v30 = vld [vmem:[#allocation19 + $0x694] ss:$12 sps:$4 sm:$0xff]   ;;  %v14817_v56 = vld [vmem:[#allocation19 + $0x6ac] ss:$12 sps:$4 sm:$0xff]  }
0x1a10   : > { %10704 = vmatmul.mubr.bf16.vlgmr.msra.gmra.mrb[104].mxu0 %v17716_v37  ;;  %v14805_v37 = vld [vmem:[#allocation19 + $0x64c] ss:$12 sps:$4 sm:$0xff]  }
0x1a11   : > { %10713 = vmatprep.mubr.bf16.mxu0 %v17740_v29  ;;  %10745 = vmatpush1.bf16.msra.mxu0 %v14794_v21  ;;  %v14803_v29 = vld [vmem:[#allocation19 + $0x648] ss:$12 sps:$4 sm:$0xff]   ;;  %v14809_v21 = vld [vmem:[#allocation19 + $0x678] ss:$12 sps:$4 sm:$0xff]  }
0x1a12   : > { %10746 = vmatprep.subr.bf16.mxu0 %v14799_v19 }
0x1a13   : > { %v12610_v10 = vpop.f32.mrb[168].mxu1 }
0x1a14   : > { %v12611_v50 = vpop.f32.mrb[169].mxu1 }
0x1a15   : > { %v17900_v58 = vadd.f32 %v12611_v50, %v12610_v10  ;;  %10747 = vmatpush1.bf16.msra.mxu0 %v14797_v24  ;;  %v12613_v47 = vpop.f32.mrb[170].mxu1  ;;  %11256 = vmatmul.mubr.bf16.gmra.mrb[244].mxu1 %v17843_v31 }
0x1a16   : > { %v12614_v7 = vpop.f32.mrb[171].mxu1  ;;  %11263 = vmatprep.mubr.bf16.mxu1 %v17865_v57  ;;  %10748 = vmatprep.subr.bf16.mxu0 %v14802_v54  ;;  %v10925_v54 = vadd.f32 %v17886_v4, %v17919_v59  ;;  %v14815_v4 = vld [vmem:[#allocation19 + $0x6a8] ss:$12 sps:$4 sm:$0xff]  }
0x1a17   : > { %v17904_v35 = vadd.f32 %v12614_v7, %v12613_v47 }
0x1a18   : > { %10714 = vmatmul.mubr.bf16.gmra.mrb[108].mxu0 %v17735_v25  ;;  %v14811_v25 = vld [vmem:[#allocation19 + $0x67c] ss:$12 sps:$4 sm:$0xff]  }
0x1a19   : > { %10723 = vmatprep.mubr.bf16.mxu0 %v17760_v33  ;;  %10749 = vmatpush1.bf16.msra.mxu0 %v14800_v8 }
0x1a1a   : > { %10750 = vmatprep.subr.bf16.mxu0 %v14805_v37 }
0x1a1b   : > { %v12616_v20 = vpop.f32.mrb[172].mxu1 }
0x1a1c   : > { %v12617_v40 = vpop.f32.mrb[173].mxu1 }
0x1a1d   : > { %v17908_v5 = vadd.f32 %v12617_v40, %v12616_v20  ;;  %10751 = vmatpush1.bf16.msra.mxu0 %v14803_v29  ;;  %v12619_v6 = vpop.f32.mrb[174].mxu1  ;;  %11264 = vmatmul.mubr.bf16.gmra.mrb[248].mxu1 %v17861_v9  ;;  %v14820_v29 = vld [vmem:[#allocation19 + $0x6c4] ss:$12 sps:$4 sm:$0xff]   ;;  %v10933_v40 = vadd.f32 %v17892_v52, %v17919_v59 }
0x1a1e   : > { %v12620_v3 = vpop.f32.mrb[175].mxu1  ;;  %11271 = vmatprep.mubr.bf16.mxu1 %v17883_v45  ;;  %10752 = vmatprep.subr.bf16.mxu0 %v14808_v22 }
0x1a1f   : > { %v17914_v33 = vadd.f32 %v12620_v3, %v12619_v6 }
0x1a20   : > { %10724 = vmatmul.mubr.bf16.gmra.mrb[112].mxu0 %v17755_v27  ;;  %v14812_v27 = vld [vmem:[#allocation19 + $0x690] ss:$12 sps:$4 sm:$0xff]  }
0x1a21   : > { %10733 = vmatprep.mubr.bf16.mxu0 %v17780_v51  ;;  %10753 = vmatpush1.bf16.msra.mxu0 %v14806_v55  ;;  %v10928_v51 = vadd.f32 %v17890_v34, %v17919_v59  ;;  %v14818_v55 = vld [vmem:[#allocation19 + $0x6c0] ss:$12 sps:$4 sm:$0xff]  }
0x1a22   : > { %10754 = vmatprep.subr.bf16.mxu0 %v14811_v25  ;;  %v10936_v25 = vadd.f32 %v17896_v48, %v17919_v59  ;;  %v14829_v48 = vld [vmem:[#allocation19 + $0x70c] ss:$12 sps:$4 sm:$0xff]  }
0x1a23   : > { %v12638_v19 = vpop.f32.mrb[176].mxu1 }
0x1a24   : > { %v12639_v24 = vpop.f32.mrb[177].mxu1 }
0x1a25   : > { %v12640_v10 = vadd.f32 %v12639_v24, %v12638_v19  ;;  %10755 = vmatpush1.bf16.msra.mxu0 %v14809_v21  ;;  %v12641_v50 = vpop.f32.mrb[178].mxu1  ;;  %11272 = vmatmul.mubr.bf16.gmra.mrb[252].mxu1 %v17879_v13  ;;  %v14821_v19 = vld [vmem:[#allocation19 + $0x6d8] ss:$12 sps:$4 sm:$0xff]   ;;  %v14826_v24 = vld [vmem:[#allocation19 + $0x6f4] ss:$12 sps:$4 sm:$0xff]  }
0x1a26   : > { %v12642_v47 = vpop.f32.mrb[179].mxu1  ;;  %10756 = vmatprep.subr.bf16.mxu0 %v14814_v30 }
0x1a27   : > { %v17927_v8 = vadd.f32 %v12640_v10, %v10925_v54  ;;  %v12643_v7 = vadd.f32 %v12642_v47, %v12641_v50  ;;  %v10941_v10 = vadd.f32 %v17900_v58, %v17919_v59  ;;  %v14824_v47 = vld [vmem:[#allocation19 + $0x6f0] ss:$12 sps:$4 sm:$0xff]  }
0x1a28   : > { %10734 = vmatmul.mubr.bf16.gmra.mrb[116].mxu0 %v17775_v44  ;;  %v14823_v44 = vld [vmem:[#allocation19 + $0x6dc] ss:$12 sps:$4 sm:$0xff]  }
0x1a29   : > { %v17930_v37 = vadd.f32 %v12643_v7, %v10928_v51  ;;  %10757 = vmatpush1.bf16.msra.mxu0 %v14812_v27  ;;  %10776 = vmatprep.mubr.bf16.mxu0 %v17827_v36  ;;  %v10944_v51 = vadd.f32 %v17904_v35, %v17919_v59  ;;  %v14835_v35 = vld [vmem:[#allocation19 + $0x73c] ss:$12 sps:$4 sm:$0xff]  }
0x1a2a   : > { %10758 = vmatprep.subr.bf16.mxu0 %v14817_v56 }
0x1a2b   : > { %v12644_v22 = vpop.f32.mrb[180].mxu1 }
0x1a2c   : > { %v12645_v20 = vpop.f32.mrb[181].mxu1 }
0x1a2d   : > { %v12646_v6 = vadd.f32 %v12645_v20, %v12644_v22  ;;  %10759 = vmatpush1.bf16.msra.mxu0 %v14815_v4  ;;  %v12647_v34 = vpop.f32.mrb[182].mxu1  ;;  %v14827_v22 = vld [vmem:[#allocation19 + $0x708] ss:$12 sps:$4 sm:$0xff]   ;;  %v14832_v20 = vld [vmem:[#allocation19 + $0x724] ss:$12 sps:$4 sm:$0xff]  }
0x1a2e   : > { %v12648_v3 = vpop.f32.mrb[183].mxu1  ;;  %10760 = vmatprep.subr.bf16.mxu0 %v14820_v29 }
0x1a2f   : > { %v17937_v21 = vadd.f32 %v12646_v6, %v10933_v40  ;;  %v12649_v36 = vadd.f32 %v12648_v3, %v12647_v34  ;;  %v10949_v6 = vadd.f32 %v17908_v5, %v17919_v59  ;;  %v14830_v3 = vld [vmem:[#allocation19 + $0x720] ss:$12 sps:$4 sm:$0xff]   ;;  %v14836_v5 = vld [vmem:[#allocation19 + $0x750] ss:$12 sps:$4 sm:$0xff]  }
0x1a31   : > { %v17939_v30 = vadd.f32 %v12649_v36, %v10936_v25  ;;  %10761 = vmatpush1.bf16.msra.mxu0 %v14818_v55  ;;  %v10952_v25 = vadd.f32 %v17914_v33, %v17919_v59  ;;  %v14847_v33 = vld [vmem:[#allocation19 + $0x79c] ss:$12 sps:$4 sm:$0xff]   ;;  %v14845_v59 = vld [vmem:[#allocation19 + $0x798] ss:$12 sps:$4 sm:$0xff]  }
0x1a32   : > { %10762 = vmatprep.subr.bf16.mxu0 %v14823_v44 }
0x1a33   : > { %v12650_v52 = vpop.f32.mrb[184].mxu1 }
0x1a34   : > { %v12651_v54 = vpop.f32.mrb[185].mxu1 }
0x1a35   : > { %v12652_v50 = vadd.f32 %v12651_v54, %v12650_v52  ;;  %10763 = vmatpush1.bf16.msra.mxu0 %v14821_v19  ;;  %v12653_v27 = vpop.f32.mrb[186].mxu1  ;;  %v14833_v52 = vld [vmem:[#allocation19 + $0x738] ss:$12 sps:$4 sm:$0xff]   ;;  %v14838_v54 = vld [vmem:[#allocation19 + $0x754] ss:$12 sps:$4 sm:$0xff]  }
0x1a36   : > { %v12654_v56 = vpop.f32.mrb[187].mxu1  ;;  %10764 = vmatprep.subr.bf16.mxu0 %v14826_v24 }
0x1a37   : > { %v17945_v7 = vadd.f32 %v12652_v50, %v10941_v10  ;;  %v12655_v4 = vadd.f32 %v12654_v56, %v12653_v27  ;;  %v14841_v10 = vld [vmem:[#allocation19 + $0x76c] ss:$12 sps:$4 sm:$0xff]   ;;  %v14839_v50 = vld [vmem:[#allocation19 + $0x768] ss:$12 sps:$4 sm:$0xff]   ;;  %v14844_v27 = vld [vmem:[#allocation19 + $0x784] ss:$12 sps:$4 sm:$0xff]  }
0x1a38   : > { %v14850_v56 = vld [vmem:[#allocation19 + $0x7b4] ss:$12 sps:$4 sm:$0xff]  }
0x1a39   : > { %v17947_v29 = vadd.f32 %v12655_v4, %v10944_v51  ;;  %10765 = vmatpush1.bf16.msra.mxu0 %v14824_v47  ;;  %v14842_v47 = vld [vmem:[#allocation19 + $0x780] ss:$12 sps:$4 sm:$0xff]   ;;  %v14851_v4 = vld [vmem:[#allocation19 + $0x7c8] ss:$12 sps:$4 sm:$0xff]  }
0x1a3a   : > { %10766 = vmatprep.subr.bf16.mxu0 %v14829_v48  ;;  %v14848_v48 = vld [vmem:[#allocation19 + $0x7b0] ss:$12 sps:$4 sm:$0xff]   ;;  %v14853_v51 = vld [vmem:[#allocation19 + $0x7cc] ss:$12 sps:$4 sm:$0xff]  }
0x1a3b   : > { %v12656_v58 = vpop.f32.mrb[188].mxu1 }
0x1a3c   : > { %v12657_v40 = vpop.f32.mrb[189].mxu1 }
0x1a3d   : > { %v12658_v34 = vadd.f32 %v12657_v40, %v12656_v58  ;;  %10767 = vmatpush1.bf16.msra.mxu0 %v14827_v22  ;;  %v12659_v55 = vpop.f32.mrb[190].mxu1  ;;  %v14856_v22 = vld [vmem:[#allocation19 + $0x7e4] ss:$12 sps:$4 sm:$0xff]  }
0x1a3e   : > { %v12660_v44 = vpop.f32.mrb[191].mxu1  ;;  %10768 = vmatprep.subr.bf16.mxu0 %v14832_v20 }
0x1a3f   : > { %v17953_v36 = vadd.f32 %v12658_v34, %v10949_v6  ;;  %v12661_v19 = vadd.f32 %v12660_v44, %v12659_v55  ;;  %v14862_v34 = vld [vmem:[#allocation19 + $0x814] ss:$12 sps:$4 sm:$0xff]  }
0x1a41   : > { %v17955_v24 = vadd.f32 %v12661_v19, %v10952_v25  ;;  %10769 = vmatpush1.bf16.msra.mxu0 %v14830_v3 }
0x1a42   : > { %10770 = vmatprep.subr.bf16.mxu0 %v14835_v35  ;;  %v14860_v35 = vld [vmem:[#allocation19 + $0x810] ss:$12 sps:$4 sm:$0xff]  }
0x1a45   : > { %10771 = vmatpush1.bf16.msra.mxu0 %v14833_v52 }
0x1a46   : > { %10772 = vmatprep.subr.bf16.mxu0 %v14838_v54  ;;  %v14863_v54 = vld [vmem:[#allocation19 + $0x828] ss:$12 sps:$4 sm:$0xff]  }
0x1a49   : > { %10773 = vmatpush1.bf16.msra.mxu0 %v14836_v5  ;;  %v14868_v5 = vld [vmem:[#allocation19 + $0x844] ss:$12 sps:$4 sm:$0xff]  }
0x1a4a   : > { %10774 = vmatprep.subr.bf16.mxu0 %v14841_v10 }
0x1a4d   : > { %10775 = vmatpush1.bf16.msra.mxu0 %v14839_v50 }
0x1a4e   : > { %10817 = vmatprep.subr.bf16.mxu0 %v14844_v27  ;;  %v14866_v27 = vld [vmem:[#allocation19 + $0x840] ss:$12 sps:$4 sm:$0xff]  }
0x1a50   : > { %10777 = vmatmul.mubr.bf16.vlgmr.msra.gmra.mrb[104].mxu0 %v17822_v14  ;;  %v14854_v14 = vld [vmem:[#allocation19 + $0x7e0] ss:$12 sps:$4 sm:$0xff]  }
0x1a51   : > { %10786 = vmatprep.mubr.bf16.mxu0 %v17845_v46  ;;  %10818 = vmatpush1.bf16.msra.mxu0 %v14842_v47  ;;  %v14859_v46 = vld [vmem:[#allocation19 + $0x7fc] ss:$12 sps:$4 sm:$0xff]  }
0x1a52   : > { %10819 = vmatprep.subr.bf16.mxu0 %v14847_v33 }
0x1a55   : > { %10820 = vmatpush1.bf16.msra.mxu0 %v14845_v59 }
0x1a56   : > { %10821 = vmatprep.subr.bf16.mxu0 %v14850_v56  ;;  %v14869_v56 = vld [vmem:[#allocation19 + $0x858] ss:$12 sps:$4 sm:$0xff]  }
0x1a58   : > { %10787 = vmatmul.mubr.bf16.gmra.mrb[108].mxu0 %v17841_v43  ;;  %v14857_v43 = vld [vmem:[#allocation19 + $0x7f8] ss:$12 sps:$4 sm:$0xff]  }
0x1a59   : > { %10796 = vmatprep.mubr.bf16.mxu0 %v17863_v61  ;;  %10822 = vmatpush1.bf16.msra.mxu0 %v14848_v48 }
0x1a5a   : > { %10823 = vmatprep.subr.bf16.mxu0 %v14853_v51  ;;  %v14874_v51 = vld [vmem:[#allocation19 + $0x874] ss:$12 sps:$4 sm:$0xff]  }
0x1a5d   : > { %10824 = vmatpush1.bf16.msra.mxu0 %v14851_v4 }
0x1a5e   : > { %10825 = vmatprep.subr.bf16.mxu0 %v14856_v22 }
0x1a5f   : > { %v12678_v20 = vpop.f32.mrb[192].mxu1 }
0x1a60   : > { %10797 = vmatmul.mubr.bf16.gmra.mrb[112].mxu0 %v17859_v23  ;;  %v12679_v58 = vpop.f32.mrb[193].mxu1  ;;  %v14865_v23 = vld [vmem:[#allocation19 + $0x82c] ss:$12 sps:$4 sm:$0xff]  }
0x1a61   : > { %10806 = vmatprep.mubr.bf16.mxu0 %v17881_v41  ;;  %10826 = vmatpush1.bf16.msra.mxu0 %v14854_v14  ;;  %v12680_v40 = vadd.f32 %v12679_v58, %v12678_v20  ;;  %v12681_v6 = vpop.f32.mrb[194].mxu1  ;;  %v14877_v14 = vld [vmem:[#allocation19 + $0x88c] ss:$12 sps:$4 sm:$0xff]  }
0x1a62   : > { %10827 = vmatprep.subr.bf16.mxu0 %v14859_v46  ;;  %v12682_v61 = vpop.f32.mrb[195].mxu1 }
0x1a63   : > { %v17964_v55 = vadd.f32 %v12680_v40, %v17927_v8  ;;  %v12683_v3 = vadd.f32 %v12682_v61, %v12681_v6  ;;  %v14875_v6 = vld [vmem:[#allocation19 + $0x888] ss:$12 sps:$4 sm:$0xff]   ;;  %v14880_v61 = vld [vmem:[#allocation19 + $0x8a4] ss:$12 sps:$4 sm:$0xff]  }
0x1a65   : > { %v17967_v44 = vadd.f32 %v12683_v3, %v17930_v37  ;;  %10828 = vmatpush1.bf16.msra.mxu0 %v14857_v43 }
0x1a66   : > { %10829 = vmatprep.subr.bf16.mxu0 %v14862_v34 }
0x1a67   : > { %v12684_v25 = vpop.f32.mrb[196].mxu1 }
0x1a68   : > { %10807 = vmatmul.mubr.bf16.gmra.mrb[116].mxu0 %v17877_v12  ;;  %v12685_v41 = vpop.f32.mrb[197].mxu1  ;;  %v14871_v12 = vld [vmem:[#allocation19 + $0x85c] ss:$12 sps:$4 sm:$0xff]  }
0x1a69   : > { %10830 = vmatpush1.bf16.msra.mxu0 %v14860_v35  ;;  %10849 = vmatprep.mubr.bf16.mxu0 %v17829_v16  ;;  %v12686_v19 = vadd.f32 %v12685_v41, %v12684_v25  ;;  %v12687_v52 = vpop.f32.mrb[198].mxu1  ;;  %v14883_v35 = vld [vmem:[#allocation19 + $0x8bc] ss:$12 sps:$4 sm:$0xff]   ;;  %v14881_v41 = vld [vmem:[#allocation19 + $0x8b8] ss:$12 sps:$4 sm:$0xff]  }
0x1a6a   : > { %10831 = vmatprep.subr.bf16.mxu0 %v14865_v23  ;;  %v12688_v8 = vpop.f32.mrb[199].mxu1 }
0x1a6b   : > { %v17972_v37 = vadd.f32 %v12686_v19, %v17937_v21  ;;  %v12689_v10 = vadd.f32 %v12688_v8, %v12687_v52 }
0x1a6d   : > { %v17975_v50 = vadd.f32 %v12689_v10, %v17939_v30  ;;  %10832 = vmatpush1.bf16.msra.mxu0 %v14863_v54  ;;  %v14872_v30 = vld [vmem:[#allocation19 + $0x870] ss:$12 sps:$4 sm:$0xff]   ;;  %v14886_v54 = vld [vmem:[#allocation19 + $0x8d4] ss:$12 sps:$4 sm:$0xff]  }
0x1a6e   : > { %10833 = vmatprep.subr.bf16.mxu0 %v14868_v5 }
0x1a6f   : > { %v12690_v47 = vpop.f32.mrb[200].mxu1 }
0x1a70   : > { %v12691_v33 = vpop.f32.mrb[201].mxu1 }
0x1a71   : > { %10834 = vmatpush1.bf16.msra.mxu0 %v14866_v27  ;;  %v12692_v16 = vadd.f32 %v12691_v33, %v12690_v47  ;;  %v12693_v59 = vpop.f32.mrb[202].mxu1  ;;  %v14889_v27 = vld [vmem:[#allocation19 + $0x8ec] ss:$12 sps:$4 sm:$0xff]   ;;  %v14887_v33 = vld [vmem:[#allocation19 + $0x8e8] ss:$12 sps:$4 sm:$0xff]  }
0x1a72   : > { %10835 = vmatprep.subr.bf16.mxu0 %v14871_v12  ;;  %v12694_v48 = vpop.f32.mrb[203].mxu1 }
0x1a73   : > { %v11071_v21 = vadd.f32 %v12692_v16, %v17945_v7  ;;  %v12695_v4 = vadd.f32 %v12694_v48, %v12693_v59 }
0x1a75   : > { %v11074_v22 = vadd.f32 %v12695_v4, %v17947_v29  ;;  %10836 = vmatpush1.bf16.msra.mxu0 %v14869_v56  ;;  %v14878_v29 = vld [vmem:[#allocation19 + $0x8a0] ss:$12 sps:$4 sm:$0xff]  }
0x1a76   : > { %10837 = vmatprep.subr.bf16.mxu0 %v14874_v51 }
0x1a77   : > { %v12696_v46 = vpop.f32.mrb[204].mxu1 }
0x1a78   : > { %v12697_v20 = vpop.f32.mrb[205].mxu1 }
0x1a79   : > { %10838 = vmatpush1.bf16.msra.mxu0 %v14872_v30  ;;  %v12698_v58 = vadd.f32 %v12697_v20, %v12696_v46  ;;  %v12699_v40 = vpop.f32.mrb[206].mxu1 }
0x1a7a   : > { %10839 = vmatprep.subr.bf16.mxu0 %v14877_v14  ;;  %v12700_v43 = vpop.f32.mrb[207].mxu1 }
0x1a7b   : > { %v11079_v34 = vadd.f32 %v12698_v58, %v17953_v36  ;;  %v12701_v3 = vadd.f32 %v12700_v43, %v12699_v40  ;;  %v14884_v36 = vld [vmem:[#allocation19 + $0x8d0] ss:$12 sps:$4 sm:$0xff]  }
0x1a7d   : > { %v11082_v7 = vadd.f32 %v12701_v3, %v17955_v24  ;;  %10840 = vmatpush1.bf16.msra.mxu0 %v14875_v6 }
0x1a7e   : > { %10841 = vmatprep.subr.bf16.mxu0 %v14880_v61 }
0x1a80   : > { %v12718_v23 = vpop.f32.mrb[208].mxu1 }
0x1a81   : > { %10842 = vmatpush1.bf16.msra.mxu0 %v14878_v29  ;;  %v12719_v25 = vpop.f32.mrb[209].mxu1 }
0x1a82   : > { %v12720_v19 = vadd.f32 %v12719_v25, %v12718_v23  ;;  %v12721_v52 = vpop.f32.mrb[210].mxu1  ;;  %10843 = vmatprep.subr.bf16.mxu0 %v14883_v35 }
0x1a83   : > { %v12722_v8 = vpop.f32.mrb[211].mxu1 }
0x1a84   : > { %v11120_v5 = vadd.f32 %v12720_v19, %v17964_v55  ;;  %v12723_v10 = vadd.f32 %v12722_v8, %v12721_v52 }
0x1a85   : > { %10844 = vmatpush1.bf16.msra.mxu0 %v14881_v41 }
0x1a86   : > { %v11123_v24 = vadd.f32 %v12723_v10, %v17967_v44  ;;  %10845 = vmatprep.subr.bf16.mxu0 %v14886_v54 }
0x1a88   : > { %v12724_v12 = vpop.f32.mrb[212].mxu1 }
0x1a89   : > { %10846 = vmatpush1.bf16.msra.mxu0 %v14884_v36  ;;  %v12725_v47 = vpop.f32.mrb[213].mxu1 }
0x1a8a   : > { %v12726_v16 = vadd.f32 %v12725_v47, %v12724_v12  ;;  %v12727_v59 = vpop.f32.mrb[214].mxu1  ;;  %10847 = vmatprep.subr.bf16.mxu0 %v14889_v27 }
0x1a8b   : > { %v12728_v56 = vpop.f32.mrb[215].mxu1 }
0x1a8c   : > { %v11128_v48 = vadd.f32 %v12726_v16, %v17972_v37  ;;  %v12729_v51 = vadd.f32 %v12728_v56, %v12727_v59 }
0x1a8d   : > { %10848 = vmatpush1.bf16.msra.mxu0 %v14887_v33 }
0x1a8e   : > { %v11131_v55 = vadd.f32 %v12729_v51, %v17975_v50 }
0x1a90   : > { %10850 = vmatmul.mubr.bf16.vlgmr.msra.gmra.mrb[104].mxu0 %v17825_v18  ;;  %v12730_v4 = vpop.f32.mrb[216].mxu1 }
0x1a91   : > { %10859 = vmatprep.mubr.bf16.mxu0 %v17847_v15  ;;  %v12731_v44 = vpop.f32.mrb[217].mxu1 }
0x1a92   : > { %v12732_v30 = vadd.f32 %v12731_v44, %v12730_v4  ;;  %v12733_v14 = vpop.f32.mrb[218].mxu1 }
0x1a93   : > { %v12734_v46 = vpop.f32.mrb[219].mxu1 }
0x1a94   : > { %v11136_v20 = vadd.f32 %v12732_v30, %v11071_v21  ;;  %v12735_v58 = vadd.f32 %v12734_v46, %v12733_v14 }
0x1a96   : > { %v11139_v40 = vadd.f32 %v12735_v58, %v11074_v22 }
0x1a98   : > { %10860 = vmatmul.mubr.bf16.gmra.mrb[108].mxu0 %v17843_v31  ;;  %v12736_v6 = vpop.f32.mrb[220].mxu1 }
0x1a99   : > { %10869 = vmatprep.mubr.bf16.mxu0 %v17865_v57  ;;  %v12737_v37 = vpop.f32.mrb[221].mxu1 }
0x1a9a   : > { %v12738_v43 = vadd.f32 %v12737_v37, %v12736_v6  ;;  %v12739_v50 = vpop.f32.mrb[222].mxu1 }
0x1a9b   : > { %v12740_v61 = vpop.f32.mrb[223].mxu1 }
0x1a9c   : > { %v11144_v18 = vadd.f32 %v12738_v43, %v11079_v34  ;;  %v12741_v3 = vadd.f32 %v12740_v61, %v12739_v50 }
0x1a9e   : > { %v11147_v29 = vadd.f32 %v12741_v3, %v11082_v7 }
0x1aa0   : > { %10870 = vmatmul.mubr.bf16.gmra.mrb[112].mxu0 %v17861_v9 }
0x1aa1   : > { %10879 = vmatprep.mubr.bf16.mxu0 %v17883_v45 }
0x1aa8   : > { %10880 = vmatmul.mubr.bf16.gmra.mrb[116].mxu0 %v17879_v13 }
0x1ac0   : > { %v12758_v15 = vpop.f32.mrb[224].mxu1 }
0x1ac1   : > { %v12759_v21 = vpop.f32.mrb[225].mxu1 }
0x1ac2   : > { %v12760_v22 = vadd.f32 %v12759_v21, %v12758_v15  ;;  %v12761_v31 = vpop.f32.mrb[226].mxu1 }
0x1ac3   : > { %v12762_v35 = vpop.f32.mrb[227].mxu1 }
0x1ac4   : > { %v11185_v23 = vadd.f32 %v12760_v22, %v11120_v5  ;;  %v12763_v57 = vadd.f32 %v12762_v35, %v12761_v31 }
0x1ac6   : > { %v11188_v25 = vadd.f32 %v12763_v57, %v11123_v24 }
0x1ac8   : > { %v12764_v41 = vpop.f32.mrb[228].mxu1 }
0x1ac9   : > { %v12765_v19 = vpop.f32.mrb[229].mxu1 }
0x1aca   : > { %v12766_v52 = vadd.f32 %v12765_v19, %v12764_v41  ;;  %v12767_v34 = vpop.f32.mrb[230].mxu1 }
0x1acb   : > { %v12768_v54 = vpop.f32.mrb[231].mxu1 }
0x1acc   : > { %v11193_v7 = vadd.f32 %v12766_v52, %v11128_v48  ;;  %v12769_v8 = vadd.f32 %v12768_v54, %v12767_v34 }
0x1ace   : > { %v11196_v9 = vadd.f32 %v12769_v8, %v11131_v55 }
0x1ad0   : > { %v12770_v10 = vpop.f32.mrb[232].mxu1 }
0x1ad1   : > { %v12771_v45 = vpop.f32.mrb[233].mxu1 }
0x1ad2   : > { %v12772_v36 = vadd.f32 %v12771_v45, %v12770_v10  ;;  %v12773_v13 = vpop.f32.mrb[234].mxu1 }
0x1ad3   : > { %v12774_v27 = vpop.f32.mrb[235].mxu1 }
0x1ad4   : > { %v11201_v12 = vadd.f32 %v12772_v36, %v11136_v20  ;;  %v12775_v47 = vadd.f32 %v12774_v27, %v12773_v13  ;;  %v8908_v13 = vrot.slane %v17911_v53, %v16218_v63 }
0x1ad6   : > { %v11204_v33 = vadd.f32 %v12775_v47, %v11139_v40 }
0x1ad8   : > { %v12776_v16 = vpop.f32.mrb[236].mxu1 }
0x1ad9   : > { %v12777_v5 = vpop.f32.mrb[237].mxu1 }
0x1ada   : > { %v12778_v24 = vadd.f32 %v12777_v5, %v12776_v16  ;;  %v12779_v59 = vpop.f32.mrb[238].mxu1 }
0x1adb   : > { %v12780_v56 = vpop.f32.mrb[239].mxu1 }
0x1adc   : > { %v11209_v51 = vadd.f32 %v12778_v24, %v11144_v18  ;;  %v12781_v4 = vadd.f32 %v12780_v56, %v12779_v59 }
0x1ade   : > { %v11212_v44 = vadd.f32 %v12781_v4, %v11147_v29 }
0x1ae0   : > { %v12798_v48 = vpop.f32.mrb[240].mxu1 }
0x1ae1   : > { %v12799_v30 = vpop.f32.mrb[241].mxu1 }
0x1ae2   : > { %v12800_v55 = vadd.f32 %v12799_v30, %v12798_v48  ;;  %v12801_v14 = vpop.f32.mrb[242].mxu1  ;;  %v18182_v30 = vld [vmem:[#allocation32_spill] sm:$0xff] }
0x1ae3   : > { %v12802_v46 = vpop.f32.mrb[243].mxu1 }
0x1ae4   : > { %v11250_v58 = vadd.f32 %v12800_v55, %v11185_v23  ;;  %v12803_v6 = vadd.f32 %v12802_v46, %v12801_v14  ;;  %v18183_v14 = vld [vmem:[#allocation33_spill] sm:$0xff]  ;;  %v18184_v46 = vld [vmem:[#allocation34_spill] sm:$0xff] }
0x1ae6   : > { %v11282_v20 = vadd.f32 %v11250_v58, %v17100_v60  ;;  %v11253_v37 = vadd.f32 %v12803_v6, %v11188_v25 }
0x1ae8   : > { %11306 = vst [vmem:[%s17995_s29 + $0x10] sm:$0xff] %v11282_v20  ;;  %v11285_v40 = vadd.f32 %v11253_v37, %v17109_v2  ;;  %v12804_v43 = vpop.f32.mrb[244].mxu1 }
0x1ae9   : > { %v12805_v50 = vpop.f32.mrb[245].mxu1 }
0x1aea   : > { %11309 = vst [vmem:[%s17995_s29 + $0x28] sm:$0xff] %v11285_v40  ;;  %v12806_v61 = vadd.f32 %v12805_v50, %v12804_v43  ;;  %v12807_v18 = vpop.f32.mrb[246].mxu1  ;;  %v18185_v43 = vld [vmem:[#allocation35_spill] sm:$0xff] }
0x1aeb   : > { %v12808_v3 = vpop.f32.mrb[247].mxu1 }
0x1aec   : > { %v11258_v29 = vadd.f32 %v12806_v61, %v11193_v7  ;;  %v12809_v60 = vadd.f32 %v12808_v3, %v12807_v18  ;;  %v18186_v3 = vld [vmem:[#allocation36_spill] sm:$0xff] }
0x1aee   : > { %v11288_v15 = vadd.f32 %v11258_v29, %v17130_v26  ;;  %v11261_v21 = vadd.f32 %v12809_v60, %v11196_v9 }
0x1af0   : > { %11312 = vst [vmem:[%s17995_s29 + $0x40] sm:$0xff] %v11288_v15  ;;  %v11291_v22 = vadd.f32 %v11261_v21, %v17143_v17  ;;  %v12810_v31 = vpop.f32.mrb[248].mxu1  ;;  %v18187_v15 = vld [vmem:[#allocation37_spill] sm:$0xff] }
0x1af1   : > { %v12811_v35 = vpop.f32.mrb[249].mxu1 }
0x1af2   : > { %11315 = vst [vmem:[%s17995_s29 + $0x58] sm:$0xff] %v11291_v22  ;;  %v12812_v2 = vadd.f32 %v12811_v35, %v12810_v31  ;;  %v12813_v23 = vpop.f32.mrb[250].mxu1  ;;  %v18188_v22 = vld [vmem:[#allocation38_spill] sm:$0xff] }
0x1af3   : > { %v12814_v57 = vpop.f32.mrb[251].mxu1 }
0x1af4   : > { %v11266_v25 = vadd.f32 %v12812_v2, %v11201_v12  ;;  %v12815_v41 = vadd.f32 %v12814_v57, %v12813_v23 }
0x1af6   : > { %v11294_v19 = vadd.f32 %v11266_v25, %v17161_v11  ;;  %v11269_v52 = vadd.f32 %v12815_v41, %v11204_v33  ;;  %v18189_v41 = vld [vmem:[#allocation39_spill] sm:$0xff] }
0x1af8   : > { %11318 = vst [vmem:[%s17995_s29 + $0x70] sm:$0xff] %v11294_v19  ;;  %v11297_v26 = vadd.f32 %v11269_v52, %v17169_v39  ;;  %v12816_v34 = vpop.f32.mrb[252].mxu1  ;;  %v8904_v39 = vrot.slane %v17911_v53, %v16221_v1 }
0x1af9   : > { %v12817_v54 = vpop.f32.mrb[253].mxu1 }
0x1afa   : > { %11321 = vst [vmem:[%s17995_s29 + $0x88] sm:$0xff] %v11297_v26  ;;  %v12818_v17 = vadd.f32 %v12817_v54, %v12816_v34  ;;  %v12819_v7 = vpop.f32.mrb[254].mxu1  ;;  %v18190_v34 = vld [vmem:[#allocation40_spill] sm:$0xff] }
0x1afb   : > { %v12820_v8 = vpop.f32.mrb[255].mxu1 }
0x1afc   : > { %v11274_v9 = vadd.f32 %v12818_v17, %v11209_v51  ;;  %v12821_v10 = vadd.f32 %v12820_v8, %v12819_v7  ;;  %v18191_v7 = vld [vmem:[#allocation41_spill] sm:$0xff] }
0x1afe   : > { %v11300_v45 = vadd.f32 %v11274_v9, %v17191_v32  ;;  %v11277_v36 = vadd.f32 %v12821_v10, %v11212_v44  ;;  %v18193_v9 = vld [vmem:[#allocation42_spill] sm:$0xff] }
0x1b00   : > { %11324 = vst [vmem:[%s17995_s29 + $0xa0] sm:$0xff] %v11300_v45  ;;  %v11303_v11 = vadd.f32 %v11277_v36, %v17199_v28 }
0x1b02   : > { %11327 = vst [vmem:[%s17995_s29 + $0xb8] sm:$0xff] %v11303_v11 }
0x1b63   : > { %v10851_v27 = vpop.f32.mrb[104].mxu0 }
0x1b64   : > { %v13206_v12 = vadd.f32 %v10851_v27, %v8904_v39  ;;  %v10853_v47 = vpop.f32.mrb[105].mxu0 }
0x1b65   : > { %v13207_v33 = vadd.f32 %v10853_v47, %v8908_v13  ;;  %v10855_v32 = vpop.f32.mrb[106].mxu0 }
0x1b66   : > { %v11280_v16 = vadd.f32 %v13206_v12, %v17088_v0  ;;  %v13208_v5 = vadd.f32 %v10855_v32, %v8904_v39  ;;  %v10857_v24 = vpop.f32.mrb[107].mxu0 }
0x1b67   : > { %v11281_v28 = vadd.f32 %v13207_v33, %v17093_v38  ;;  %v13209_v59 = vadd.f32 %v10857_v24, %v8908_v13 }
0x1b68   : > { %11304 = vst [vmem:[%s17995_s29] sm:$0xff] %v11280_v16  ;;  %v11283_v1 = vadd.f32 %v13208_v5, %v17097_v42 }
0x1b69   : > { %11305 = vst [vmem:[%s17995_s29 + $0x8] sm:$0xff] %v11281_v28  ;;  %v11284_v63 = vadd.f32 %v13209_v59, %v17104_v62 }
0x1b6a   : > { %11307 = vst [vmem:[%s17995_s29 + $0x18] sm:$0xff] %v11283_v1 }
0x1b6b   : > { %11308 = vst [vmem:[%s17995_s29 + $0x20] sm:$0xff] %v11284_v63  ;;  %v10861_v53 = vpop.f32.mrb[108].mxu0 }
0x1b6c   : > { %v13210_v56 = vadd.f32 %v10861_v53, %v8904_v39  ;;  %v10863_v0 = vpop.f32.mrb[109].mxu0 }
0x1b6d   : > { %v13211_v51 = vadd.f32 %v10863_v0, %v8908_v13  ;;  %v10865_v4 = vpop.f32.mrb[110].mxu0 }
0x1b6e   : > { %v11286_v38 = vadd.f32 %v13210_v56, %v17119_v49  ;;  %v13212_v44 = vadd.f32 %v10865_v4, %v8904_v39  ;;  %v10867_v48 = vpop.f32.mrb[111].mxu0 }
0x1b6f   : > { %v11287_v55 = vadd.f32 %v13211_v51, %v18182_v30  ;;  %v13213_v42 = vadd.f32 %v10867_v48, %v8908_v13 }
0x1b70   : > { %11310 = vst [vmem:[%s17995_s29 + $0x30] sm:$0xff] %v11286_v38  ;;  %v11289_v62 = vadd.f32 %v13212_v44, %v18183_v14 }
0x1b71   : > { %11311 = vst [vmem:[%s17995_s29 + $0x38] sm:$0xff] %v11287_v55  ;;  %v11290_v58 = vadd.f32 %v13213_v42, %v18184_v46 }
0x1b72   : > { %11313 = vst [vmem:[%s17995_s29 + $0x48] sm:$0xff] %v11289_v62 }
0x1b73   : > { %11314 = vst [vmem:[%s17995_s29 + $0x50] sm:$0xff] %v11290_v58  ;;  %v10871_v6 = vpop.f32.mrb[112].mxu0 }
0x1b74   : > { %v13214_v20 = vadd.f32 %v10871_v6, %v8904_v39  ;;  %v10873_v49 = vpop.f32.mrb[113].mxu0 }
0x1b75   : > { %v13215_v37 = vadd.f32 %v10873_v49, %v8908_v13  ;;  %v10875_v40 = vpop.f32.mrb[114].mxu0 }
0x1b76   : > { %v11292_v50 = vadd.f32 %v13214_v20, %v18185_v43  ;;  %v13216_v61 = vadd.f32 %v10875_v40, %v8904_v39  ;;  %v10877_v18 = vpop.f32.mrb[115].mxu0 }
0x1b77   : > { %v11293_v29 = vadd.f32 %v13215_v37, %v18186_v3  ;;  %v13217_v60 = vadd.f32 %v10877_v18, %v8908_v13 }
0x1b78   : > { %11316 = vst [vmem:[%s17995_s29 + $0x60] sm:$0xff] %v11292_v50  ;;  %v11295_v21 = vadd.f32 %v13216_v61, %v18187_v15 }
0x1b79   : > { %11317 = vst [vmem:[%s17995_s29 + $0x68] sm:$0xff] %v11293_v29  ;;  %v11296_v31 = vadd.f32 %v13217_v60, %v18188_v22 }
0x1b7a   : > { %11319 = vst [vmem:[%s17995_s29 + $0x78] sm:$0xff] %v11295_v21 }
0x1b7b   : > { %11320 = vst [vmem:[%s17995_s29 + $0x80] sm:$0xff] %v11296_v31  ;;  %v10881_v35 = vpop.f32.mrb[116].mxu0 }
0x1b7c   : > { %v13218_v2 = vadd.f32 %v10881_v35, %v8904_v39  ;;  %v10883_v23 = vpop.f32.mrb[117].mxu0 }
0x1b7d   : > { %v13219_v57 = vadd.f32 %v10883_v23, %v8908_v13  ;;  %v10885_v25 = vpop.f32.mrb[118].mxu0 }
0x1b7e   : > { %v11298_v19 = vadd.f32 %v13218_v2, %v18189_v41  ;;  %v13220_v52 = vadd.f32 %v10885_v25, %v8904_v39  ;;  %v10887_v26 = vpop.f32.mrb[119].mxu0 }
0x1b7f   : > { %v11299_v54 = vadd.f32 %v13219_v57, %v18190_v34  ;;  %v13221_v17 = vadd.f32 %v10887_v26, %v8908_v13 }
0x1b80   : > { %11322 = vst [vmem:[%s17995_s29 + $0x90] sm:$0xff] %v11298_v19  ;;  %v11301_v8 = vadd.f32 %v13220_v52, %v18191_v7 }
0x1b81   : > { %11323 = vst [vmem:[%s17995_s29 + $0x98] sm:$0xff] %v11299_v54  ;;  %v11302_v10 = vadd.f32 %v13221_v17, %v18193_v9 }
0x1b82   : > { %11325 = vst [vmem:[%s17995_s29 + $0xa8] sm:$0xff] %v11301_v8 }
0x1b83   : > { %11326 = vst [vmem:[%s17995_s29 + $0xb0] sm:$0xff] %v11302_v10 }
0x1b84   : > { %15513 = shalt.err (!%p15510_p9)
}
0x1b85   : > { %s15514_s5 = scalar_lea.hbm %s18049_s27, 3072  ;;  %s15518_s16 = scalar_lea.hbm %s18192_s26, 6144 }
0x1b86   : > { %p15515_p7 = scmp.ne.s32.totalorder %s18049_s27, %s15514_s5  ;;  %p15519_p13 = scmp.lt.u32.totalorder %s18049_s27, %s18192_s26 }
0x1b87   : > { %p15520_p1 = scmp.lt.u32.totalorder %s15518_s16, %s15514_s5  ;;  %p15522_p2 = scmp.lt.u32.totalorder %s15514_s5, %s18049_s27 }
0x1b88   : > { %p15516_p10 = pnand %p15515_p7, %p18194_p8 }
0x1b89   : > { %p15521_p3 = por %p15520_p1, %p15519_p13 }
0x1b8a   : > { %p15517_p4 = pneg %p15516_p10 }
0x1b8b   : > { %p15523_p6 = por %p15522_p2, %p15521_p3 }
0x1b8d   : > { %p15524_p11 = pnand %p15523_p6, %p15517_p4 }
0x1b8f   : > { %15527 = shalt.err (!%p15524_p11)
}
0x1b90   : > { %s15614_s14 = smov 384   ;;  %s15615_s30 = smov 24  }
0x1b91   : > { %13640 = dma.vmem_to_hbm [thread:$0]  (%p18194_p8), %s18053_s18, 3072, %s18049_s27, %s11329_s25, %s15614_s14, %s15614_s14, %s15615_s30  }
0x1b92 PF: > { %s11357_s15 = sand.u32 1, %s15578_s21   ;;  %p18195_p12 = scmp.ne.s32.totalorder %s18152_s2, 0 }
0x1b93   : > { %p18196_p0 = scmp.ge.s32.totalorder %s15590_s24, 2  ;;  %s11358_s12 = scalar_lea.sflag [#allocation4], %s11357_s15 }
0x1b95   : > { %p13681_p5 = pnand %p18196_p0, %p18195_p12 }
0x1b97   : > { %15573 = dma.done.wait (!%p13681_p5), %s11358_s12, 3072  }
0x1b98   : > { %15575 = vsyncadd (!%p13681_p5), %s11358_s12, 4294964224  ;;  %p31_p9 = scmp.ge.s32.totalorder %s15958_s13, 4   ;;  %s18197_s21 = smov %s15582_s22 }
0x1b99   : > { %s18198_s22 = smov %s15586_s23  ;;  %s18199_s23 = smov %s15970_s20 }
0x1b9a   : > { %s18200_s24 = smov %s15958_s13  ;;  %33 = sbr.rel (!%p31_p9) target bundleno = 17 (0x11), region = 157 }
0x1ba1   :  { %11363 = vsyncpa [#allocation3], 1 }
0x1ba2   :  { %11365 = vsyncpa [#allocation3 + $0x1], 1 }
0x1ba3   :  { %11366 = vsyncpa [#allocation6], 1 }
0x1ba4   :  { %11367 = vsyncpa [#allocation9], 1 }
0x1ba5   :  { %11368 = vsyncpa [#allocation12], 1 }
0x1ba6   :  { %11369 = vsyncpa [#allocation15], 1 }
0x1ba7   :  { %11370 = vsyncpa [#allocation18], 1 }
0x1ba8   :  { %11371 = vsyncpa [#allocation21], 1 }
0x1ba9   :  { %11372 = vsyncpa [#allocation4], 1 }
0x1baa   :  { %11374 = vsyncpa [#allocation4 + $0x1], 1 }

</bundles_post_ra>
